<compile_context>
chip_gen: v7x
topology: tpu7x:2x2x1
jax: 0.10.0
libtpu: 0.0.40
codegen_flags: <defaults>
</compile_context>

<pallas_src>
import jax
import jax.numpy as jnp
import numpy as np
from jax.experimental import pallas as pl
from jax.experimental.pallas import tpu as pltpu

EPS = 1e-5  # InstanceNorm2d default eps


def mysblock_kernel(x_ref, w1_ref, w2_ref, o_ref, pad_ref, col_ref):
    # x_ref: (1, H, W, C) f32      w1/w2: (9*C, C) bf16      o_ref: (1, H, W, C) f32
    # pad_ref: (H+2, W+2, C) bf16 scratch     col_ref: (H*W, 9*C) bf16 scratch
    _, H, W, C = x_ref.shape
    HW = H * W

    # Zero the pad scratch once per step; borders stay zero, interior is
    # overwritten before each conv.
    pad_ref[...] = jnp.zeros(pad_ref.shape, pad_ref.dtype)

    x = x_ref[0]  # (H, W, C) f32

    def conv3x3_instnorm(v_bf16, w_ref):
        # v_bf16: (H, W, C) bf16.  zero-pad -> im2col -> single MXU matmul -> IN.
        pad_ref[1:H + 1, 1:W + 1, :] = v_bf16
        for dy in range(3):
            for dx in range(3):
                k = dy * 3 + dx
                col_ref[:, k * C:(k + 1) * C] = (
                    pad_ref[dy:dy + H, dx:dx + W, :].reshape(HW, C))
        # One big matmul: (HW, 9C) x (9C, C), bf16 operands, f32 accumulation.
        acc = jnp.dot(col_ref[...], w_ref[...],
                      preferred_element_type=jnp.float32)        # (HW, C) f32
        # InstanceNorm2d (no affine): per-channel stats over the spatial dim.
        mean = jnp.mean(acc, axis=0, keepdims=True)
        cen = acc - mean
        var = jnp.mean(cen * cen, axis=0, keepdims=True)
        return cen * jax.lax.rsqrt(var + EPS)

    # mySConv: conv1 -> IN -> ReLU
    y1 = conv3x3_instnorm(x.astype(jnp.bfloat16), w1_ref)
    y1 = jnp.maximum(y1, 0.0)
    # conv2 -> IN
    y2 = conv3x3_instnorm(y1.reshape(H, W, C).astype(jnp.bfloat16), w2_ref)
    # residual + ReLU
    out = jnp.maximum(x.reshape(HW, C) + y2, 0.0)
    o_ref[0] = out.reshape(H, W, C)


def mysblock_forward(x_nchw, w1_oihw, w2_oihw):
    """x_nchw: (N, C, H, W) float32 (PyTorch layout). Returns (N, C, H, W).

    Conv biases are intentionally omitted: under InstanceNorm (affine=False)
    they cancel exactly and change nothing in the forward output.
    """
    N, C, H, W = x_nchw.shape

    # NCHW -> NHWC once (API glue); everything inside the kernel stays NHWC.
    x = jnp.transpose(x_nchw, (0, 2, 3, 1)).astype(jnp.float32)

    def pack_w(w_oihw):
        # (Cout, Cin, 3, 3) -> (3, 3, Cin, Cout) -> (9*Cin, Cout), bf16 for the MXU.
        return jnp.transpose(w_oihw, (2, 3, 1, 0)).reshape(9 * C, C).astype(jnp.bfloat16)

    w1 = pack_w(w1_oihw)
    w2 = pack_w(w2_oihw)

    out_nhwc = pl.pallas_call(
        mysblock_kernel,
        out_shape=jax.ShapeDtypeStruct((N, H, W, C), jnp.float32),
        grid_spec=pltpu.PrefetchScalarGridSpec(
            num_scalar_prefetch=0,
            grid=(N,),
            in_specs=[
                pl.BlockSpec((1, H, W, C), lambda n: (n, 0, 0, 0)),
                # constant index_map -> weights stay VMEM-resident across steps
                pl.BlockSpec((9 * C, C), lambda n: (0, 0)),
                pl.BlockSpec((9 * C, C), lambda n: (0, 0)),
            ],
            out_specs=pl.BlockSpec((1, H, W, C), lambda n: (n, 0, 0, 0)),
            scratch_shapes=[
                pltpu.VMEM((H + 2, W + 2, C), jnp.bfloat16),  # zero-pad buffer
                pltpu.VMEM((H * W, 9 * C), jnp.bfloat16),     # im2col buffer
            ],
        ),
        compiler_params=pltpu.CompilerParams(
            # batch axis is independent -> megacore sharding on v7x
            dimension_semantics=("parallel",),
        ),
    )(x, w1, w2)

    return jnp.transpose(out_nhwc, (0, 3, 1, 2))


def reference_forward(x, w1, b1, w2, b2):
    """Pure-JAX reference with full PyTorch semantics (incl. conv biases)."""
    def conv(v, w, b):
        y = jax.lax.conv_general_dilated(
            v, w, window_strides=(1, 1), padding=((1, 1), (1, 1)),
            dimension_numbers=("NCHW", "OIHW", "NCHW"))
        return y + b[None, :, None, None]

    def inorm(v):
        mean = jnp.mean(v, axis=(2, 3), keepdims=True)
        var = jnp.mean((v - mean) ** 2, axis=(2, 3), keepdims=True)
        return (v - mean) * jax.lax.rsqrt(var + EPS)

    y = jax.nn.relu(inorm(conv(x, w1, b1)))      # mySConv
    y = inorm(conv(y, w2, b2))                   # conv2 + IN
    return jax.nn.relu(x + y)                    # residual + ReLU


if __name__ == "__main__":
    # Small shapes consistent with mySBlock defaults (num_filter=128).
    N, C, H, W = 2, 128, 16, 16

    key = jax.random.PRNGKey(0)
    kx, kw1, kb1, kw2, kb2 = jax.random.split(key, 5)

    x = jax.random.normal(kx, (N, C, H, W), dtype=jnp.float32)
    w1 = jax.random.normal(kw1, (C, C, 3, 3), dtype=jnp.float32) * 0.03
    b1 = jax.random.normal(kb1, (C,), dtype=jnp.float32) * 0.1
    w2 = jax.random.normal(kw2, (C, C, 3, 3), dtype=jnp.float32) * 0.03
    b2 = jax.random.normal(kb2, (C,), dtype=jnp.float32) * 0.1

    out = jax.block_until_ready(mysblock_forward(x, w1, w2))
    ref = jax.block_until_ready(reference_forward(x, w1, b1, w2, b2))

    # bf16 MXU operands -> slightly looser tolerance than pure-f32.
    np.testing.assert_allclose(np.asarray(out), np.asarray(ref),
                               rtol=5e-2, atol=5e-2)

    print("KERNEL_OK")
</pallas_src>

<mosaic_0001>
module attributes {stable_mosaic.version = 11 : i64} {
  func.func @mysblock_kernel(%arg0: i32, %arg1: memref<1x16x16x128xf32, #tpu.memory_space<vmem>>, %arg2: memref<1152x128xbf16, #tpu.memory_space<vmem>>, %arg3: memref<1152x128xbf16, #tpu.memory_space<vmem>>, %arg4: memref<1x16x16x128xf32, #tpu.memory_space<vmem>>, %arg5: memref<18x18x128xbf16, #tpu.memory_space<vmem>>, %arg6: memref<256x1152xbf16, #tpu.memory_space<vmem>>) attributes {dimension_semantics = [#tpu.dimension_semantics<parallel>], iteration_bounds = array<i64: 2>, scalar_prefetch = 0 : i64, scratch_operands = 2 : i64, tpu.core_type = #tpu.core_type<tc>, window_params = [{transform_indices = @transform_0, window_bounds = array<i64: 1, 16, 16, 128>}, {pipeline_mode = #tpu.pipeline_mode<synchronous>, transform_indices = @transform_1, window_bounds = array<i64: 1152, 128>}, {pipeline_mode = #tpu.pipeline_mode<synchronous>, transform_indices = @transform_2, window_bounds = array<i64: 1152, 128>}, {transform_indices = @transform_3, window_bounds = array<i64: 1, 16, 16, 128>}]} {
    %cst = arith.constant 0.000000e+00 : bf16
    %0 = vector.broadcast %cst : bf16 to vector<18x18x128xbf16>
    %c0 = arith.constant 0 : index
    %c0_0 = arith.constant 0 : index
    %c0_1 = arith.constant 0 : index
    %1 = vector.load %arg5[%c0, %c0_0, %c0_1] : memref<18x18x128xbf16, #tpu.memory_space<vmem>>, vector<18x18x128xbf16>
    tpu.vector_store %arg5[%c0, %c0_0, %c0_1], %0 {strides = array<i32>} : memref<18x18x128xbf16, #tpu.memory_space<vmem>>, vector<18x18x128xbf16>,
    %c0_2 = arith.constant 0 : index
    %c0_3 = arith.constant 0 : index
    %c0_4 = arith.constant 0 : index
    %c0_5 = arith.constant 0 : index
    %2 = vector.load %arg1[%c0_2, %c0_3, %c0_4, %c0_5] : memref<1x16x16x128xf32, #tpu.memory_space<vmem>>, vector<1x16x16x128xf32>
    %3 = vector.shape_cast %2 : vector<1x16x16x128xf32> to vector<16x16x128xf32>
    %4 = arith.truncf %3 : vector<16x16x128xf32> to vector<16x16x128xbf16>
    %c1 = arith.constant 1 : index
    %c1_6 = arith.constant 1 : index
    %c0_7 = arith.constant 0 : index
    %5 = vector.load %arg5[%c1, %c1_6, %c0_7] : memref<18x18x128xbf16, #tpu.memory_space<vmem>>, vector<16x16x128xbf16>
    tpu.vector_store %arg5[%c1, %c1_6, %c0_7], %4 {strides = array<i32>} : memref<18x18x128xbf16, #tpu.memory_space<vmem>>, vector<16x16x128xbf16>,
    %c0_8 = arith.constant 0 : index
    %c0_9 = arith.constant 0 : index
    %c0_10 = arith.constant 0 : index
    %6 = vector.load %arg5[%c0_8, %c0_9, %c0_10] : memref<18x18x128xbf16, #tpu.memory_space<vmem>>, vector<16x16x128xbf16>
    %7 = vector.shape_cast %6 : vector<16x16x128xbf16> to vector<256x128xbf16>
    %c0_11 = arith.constant 0 : index
    %c0_12 = arith.constant 0 : index
    %8 = vector.load %arg6[%c0_11, %c0_12] : memref<256x1152xbf16, #tpu.memory_space<vmem>>, vector<256x128xbf16>
    tpu.vector_store %arg6[%c0_11, %c0_12], %7 {strides = array<i32>} : memref<256x1152xbf16, #tpu.memory_space<vmem>>, vector<256x128xbf16>,
    %c0_13 = arith.constant 0 : index
    %c1_14 = arith.constant 1 : index
    %c0_15 = arith.constant 0 : index
    %9 = vector.load %arg5[%c0_13, %c1_14, %c0_15] : memref<18x18x128xbf16, #tpu.memory_space<vmem>>, vector<16x16x128xbf16>
    %10 = vector.shape_cast %9 : vector<16x16x128xbf16> to vector<256x128xbf16>
    %c0_16 = arith.constant 0 : index
    %c128 = arith.constant 128 : index
    %11 = vector.load %arg6[%c0_16, %c128] : memref<256x1152xbf16, #tpu.memory_space<vmem>>, vector<256x128xbf16>
    tpu.vector_store %arg6[%c0_16, %c128], %10 {strides = array<i32>} : memref<256x1152xbf16, #tpu.memory_space<vmem>>, vector<256x128xbf16>,
    %c0_17 = arith.constant 0 : index
    %c2 = arith.constant 2 : index
    %c0_18 = arith.constant 0 : index
    %12 = vector.load %arg5[%c0_17, %c2, %c0_18] : memref<18x18x128xbf16, #tpu.memory_space<vmem>>, vector<16x16x128xbf16>
    %13 = vector.shape_cast %12 : vector<16x16x128xbf16> to vector<256x128xbf16>
    %c0_19 = arith.constant 0 : index
    %c256 = arith.constant 256 : index
    %14 = vector.load %arg6[%c0_19, %c256] : memref<256x1152xbf16, #tpu.memory_space<vmem>>, vector<256x128xbf16>
    tpu.vector_store %arg6[%c0_19, %c256], %13 {strides = array<i32>} : memref<256x1152xbf16, #tpu.memory_space<vmem>>, vector<256x128xbf16>,
    %c1_20 = arith.constant 1 : index
    %c0_21 = arith.constant 0 : index
    %c0_22 = arith.constant 0 : index
    %15 = vector.load %arg5[%c1_20, %c0_21, %c0_22] : memref<18x18x128xbf16, #tpu.memory_space<vmem>>, vector<16x16x128xbf16>
    %16 = vector.shape_cast %15 : vector<16x16x128xbf16> to vector<256x128xbf16>
    %c0_23 = arith.constant 0 : index
    %c384 = arith.constant 384 : index
    %17 = vector.load %arg6[%c0_23, %c384] : memref<256x1152xbf16, #tpu.memory_space<vmem>>, vector<256x128xbf16>
    tpu.vector_store %arg6[%c0_23, %c384], %16 {strides = array<i32>} : memref<256x1152xbf16, #tpu.memory_space<vmem>>, vector<256x128xbf16>,
    %c1_24 = arith.constant 1 : index
    %c1_25 = arith.constant 1 : index
    %c0_26 = arith.constant 0 : index
    %18 = vector.load %arg5[%c1_24, %c1_25, %c0_26] : memref<18x18x128xbf16, #tpu.memory_space<vmem>>, vector<16x16x128xbf16>
    %19 = vector.shape_cast %18 : vector<16x16x128xbf16> to vector<256x128xbf16>
    %c0_27 = arith.constant 0 : index
    %c512 = arith.constant 512 : index
    %20 = vector.load %arg6[%c0_27, %c512] : memref<256x1152xbf16, #tpu.memory_space<vmem>>, vector<256x128xbf16>
    tpu.vector_store %arg6[%c0_27, %c512], %19 {strides = array<i32>} : memref<256x1152xbf16, #tpu.memory_space<vmem>>, vector<256x128xbf16>,
    %c1_28 = arith.constant 1 : index
    %c2_29 = arith.constant 2 : index
    %c0_30 = arith.constant 0 : index
    %21 = vector.load %arg5[%c1_28, %c2_29, %c0_30] : memref<18x18x128xbf16, #tpu.memory_space<vmem>>, vector<16x16x128xbf16>
    %22 = vector.shape_cast %21 : vector<16x16x128xbf16> to vector<256x128xbf16>
    %c0_31 = arith.constant 0 : index
    %c640 = arith.constant 640 : index
    %23 = vector.load %arg6[%c0_31, %c640] : memref<256x1152xbf16, #tpu.memory_space<vmem>>, vector<256x128xbf16>
    tpu.vector_store %arg6[%c0_31, %c640], %22 {strides = array<i32>} : memref<256x1152xbf16, #tpu.memory_space<vmem>>, vector<256x128xbf16>,
    %c2_32 = arith.constant 2 : index
    %c0_33 = arith.constant 0 : index
    %c0_34 = arith.constant 0 : index
    %24 = vector.load %arg5[%c2_32, %c0_33, %c0_34] : memref<18x18x128xbf16, #tpu.memory_space<vmem>>, vector<16x16x128xbf16>
    %25 = vector.shape_cast %24 : vector<16x16x128xbf16> to vector<256x128xbf16>
    %c0_35 = arith.constant 0 : index
    %c768 = arith.constant 768 : index
    %26 = vector.load %arg6[%c0_35, %c768] : memref<256x1152xbf16, #tpu.memory_space<vmem>>, vector<256x128xbf16>
    tpu.vector_store %arg6[%c0_35, %c768], %25 {strides = array<i32>} : memref<256x1152xbf16, #tpu.memory_space<vmem>>, vector<256x128xbf16>,
    %c2_36 = arith.constant 2 : index
    %c1_37 = arith.constant 1 : index
    %c0_38 = arith.constant 0 : index
    %27 = vector.load %arg5[%c2_36, %c1_37, %c0_38] : memref<18x18x128xbf16, #tpu.memory_space<vmem>>, vector<16x16x128xbf16>
    %28 = vector.shape_cast %27 : vector<16x16x128xbf16> to vector<256x128xbf16>
    %c0_39 = arith.constant 0 : index
    %c896 = arith.constant 896 : index
    %29 = vector.load %arg6[%c0_39, %c896] : memref<256x1152xbf16, #tpu.memory_space<vmem>>, vector<256x128xbf16>
    tpu.vector_store %arg6[%c0_39, %c896], %28 {strides = array<i32>} : memref<256x1152xbf16, #tpu.memory_space<vmem>>, vector<256x128xbf16>,
    %c2_40 = arith.constant 2 : index
    %c2_41 = arith.constant 2 : index
    %c0_42 = arith.constant 0 : index
    %30 = vector.load %arg5[%c2_40, %c2_41, %c0_42] : memref<18x18x128xbf16, #tpu.memory_space<vmem>>, vector<16x16x128xbf16>
    %31 = vector.shape_cast %30 : vector<16x16x128xbf16> to vector<256x128xbf16>
    %c0_43 = arith.constant 0 : index
    %c1024 = arith.constant 1024 : index
    %32 = vector.load %arg6[%c0_43, %c1024] : memref<256x1152xbf16, #tpu.memory_space<vmem>>, vector<256x128xbf16>
    tpu.vector_store %arg6[%c0_43, %c1024], %31 {strides = array<i32>} : memref<256x1152xbf16, #tpu.memory_space<vmem>>, vector<256x128xbf16>,
    %c0_44 = arith.constant 0 : index
    %c0_45 = arith.constant 0 : index
    %33 = vector.load %arg6[%c0_44, %c0_45] : memref<256x1152xbf16, #tpu.memory_space<vmem>>, vector<256x1152xbf16>
    %c0_46 = arith.constant 0 : index
    %c0_47 = arith.constant 0 : index
    %34 = vector.load %arg2[%c0_46, %c0_47] : memref<1152x128xbf16, #tpu.memory_space<vmem>>, vector<1152x128xbf16>
    %cst_48 = arith.constant dense<0.000000e+00> : vector<256x128xf32>
    %35 = tpu.matmul %33, %34, %cst_48 {dimension_numbers = #tpu.dot_dimension_numbers<[1], [0], [0], [1], [0, 0, 1, 1], [], []>} : vector<256x1152xbf16>, vector<1152x128xbf16>, vector<256x128xf32> -> vector<256x128xf32>
    %cst_49 = arith.constant dense<0.000000e+00> : vector<128xf32>
    %36 = vector.multi_reduction <add>, %35, %cst_49 [0] : vector<256x128xf32> to vector<128xf32>
    %37 = vector.shape_cast %36 : vector<128xf32> to vector<1x128xf32>
    %cst_50 = arith.constant 2.560000e+02 : f32
    %38 = vector.broadcast %cst_50 : f32 to vector<1x128xf32>
    %39 = arith.divf %37, %38 : vector<1x128xf32>
    %40 = vector.broadcast %39 : vector<1x128xf32> to vector<256x128xf32>
    %41 = arith.subf %35, %40 : vector<256x128xf32>
    %42 = arith.mulf %41, %41 : vector<256x128xf32>
    %cst_51 = arith.constant dense<0.000000e+00> : vector<128xf32>
    %43 = vector.multi_reduction <add>, %42, %cst_51 [0] : vector<256x128xf32> to vector<128xf32>
    %44 = vector.shape_cast %43 : vector<128xf32> to vector<1x128xf32>
    %cst_52 = arith.constant 2.560000e+02 : f32
    %45 = vector.broadcast %cst_52 : f32 to vector<1x128xf32>
    %46 = arith.divf %44, %45 : vector<1x128xf32>
    %cst_53 = arith.constant 9.99999974E-6 : f32
    %47 = vector.broadcast %cst_53 : f32 to vector<1x128xf32>
    %48 = arith.addf %46, %47 : vector<1x128xf32>
    %49 = math.rsqrt %48 : vector<1x128xf32>
    %50 = vector.broadcast %49 : vector<1x128xf32> to vector<256x128xf32>
    %51 = arith.mulf %41, %50 : vector<256x128xf32>
    %cst_54 = arith.constant 0.000000e+00 : f32
    %52 = vector.broadcast %cst_54 : f32 to vector<256x128xf32>
    %53 = arith.maximumf %51, %52 : vector<256x128xf32>
    %54 = vector.shape_cast %53 : vector<256x128xf32> to vector<16x16x128xf32>
    %55 = arith.truncf %54 : vector<16x16x128xf32> to vector<16x16x128xbf16>
    %c1_55 = arith.constant 1 : index
    %c1_56 = arith.constant 1 : index
    %c0_57 = arith.constant 0 : index
    %56 = vector.load %arg5[%c1_55, %c1_56, %c0_57] : memref<18x18x128xbf16, #tpu.memory_space<vmem>>, vector<16x16x128xbf16>
    tpu.vector_store %arg5[%c1_55, %c1_56, %c0_57], %55 {strides = array<i32>} : memref<18x18x128xbf16, #tpu.memory_space<vmem>>, vector<16x16x128xbf16>,
    %c0_58 = arith.constant 0 : index
    %c0_59 = arith.constant 0 : index
    %c0_60 = arith.constant 0 : index
    %57 = vector.load %arg5[%c0_58, %c0_59, %c0_60] : memref<18x18x128xbf16, #tpu.memory_space<vmem>>, vector<16x16x128xbf16>
    %58 = vector.shape_cast %57 : vector<16x16x128xbf16> to vector<256x128xbf16>
    %c0_61 = arith.constant 0 : index
    %c0_62 = arith.constant 0 : index
    %59 = vector.load %arg6[%c0_61, %c0_62] : memref<256x1152xbf16, #tpu.memory_space<vmem>>, vector<256x128xbf16>
    tpu.vector_store %arg6[%c0_61, %c0_62], %58 {strides = array<i32>} : memref<256x1152xbf16, #tpu.memory_space<vmem>>, vector<256x128xbf16>,
    %c0_63 = arith.constant 0 : index
    %c1_64 = arith.constant 1 : index
    %c0_65 = arith.constant 0 : index
    %60 = vector.load %arg5[%c0_63, %c1_64, %c0_65] : memref<18x18x128xbf16, #tpu.memory_space<vmem>>, vector<16x16x128xbf16>
    %61 = vector.shape_cast %60 : vector<16x16x128xbf16> to vector<256x128xbf16>
    %c0_66 = arith.constant 0 : index
    %c128_67 = arith.constant 128 : index
    %62 = vector.load %arg6[%c0_66, %c128_67] : memref<256x1152xbf16, #tpu.memory_space<vmem>>, vector<256x128xbf16>
    tpu.vector_store %arg6[%c0_66, %c128_67], %61 {strides = array<i32>} : memref<256x1152xbf16, #tpu.memory_space<vmem>>, vector<256x128xbf16>,
    %c0_68 = arith.constant 0 : index
    %c2_69 = arith.constant 2 : index
    %c0_70 = arith.constant 0 : index
    %63 = vector.load %arg5[%c0_68, %c2_69, %c0_70] : memref<18x18x128xbf16, #tpu.memory_space<vmem>>, vector<16x16x128xbf16>
    %64 = vector.shape_cast %63 : vector<16x16x128xbf16> to vector<256x128xbf16>
    %c0_71 = arith.constant 0 : index
    %c256_72 = arith.constant 256 : index
    %65 = vector.load %arg6[%c0_71, %c256_72] : memref<256x1152xbf16, #tpu.memory_space<vmem>>, vector<256x128xbf16>
    tpu.vector_store %arg6[%c0_71, %c256_72], %64 {strides = array<i32>} : memref<256x1152xbf16, #tpu.memory_space<vmem>>, vector<256x128xbf16>,
    %c1_73 = arith.constant 1 : index
    %c0_74 = arith.constant 0 : index
    %c0_75 = arith.constant 0 : index
    %66 = vector.load %arg5[%c1_73, %c0_74, %c0_75] : memref<18x18x128xbf16, #tpu.memory_space<vmem>>, vector<16x16x128xbf16>
    %67 = vector.shape_cast %66 : vector<16x16x128xbf16> to vector<256x128xbf16>
    %c0_76 = arith.constant 0 : index
    %c384_77 = arith.constant 384 : index
    %68 = vector.load %arg6[%c0_76, %c384_77] : memref<256x1152xbf16, #tpu.memory_space<vmem>>, vector<256x128xbf16>
    tpu.vector_store %arg6[%c0_76, %c384_77], %67 {strides = array<i32>} : memref<256x1152xbf16, #tpu.memory_space<vmem>>, vector<256x128xbf16>,
    %c1_78 = arith.constant 1 : index
    %c1_79 = arith.constant 1 : index
    %c0_80 = arith.constant 0 : index
    %69 = vector.load %arg5[%c1_78, %c1_79, %c0_80] : memref<18x18x128xbf16, #tpu.memory_space<vmem>>, vector<16x16x128xbf16>
    %70 = vector.shape_cast %69 : vector<16x16x128xbf16> to vector<256x128xbf16>
    %c0_81 = arith.constant 0 : index
    %c512_82 = arith.constant 512 : index
    %71 = vector.load %arg6[%c0_81, %c512_82] : memref<256x1152xbf16, #tpu.memory_space<vmem>>, vector<256x128xbf16>
    tpu.vector_store %arg6[%c0_81, %c512_82], %70 {strides = array<i32>} : memref<256x1152xbf16, #tpu.memory_space<vmem>>, vector<256x128xbf16>,
    %c1_83 = arith.constant 1 : index
    %c2_84 = arith.constant 2 : index
    %c0_85 = arith.constant 0 : index
    %72 = vector.load %arg5[%c1_83, %c2_84, %c0_85] : memref<18x18x128xbf16, #tpu.memory_space<vmem>>, vector<16x16x128xbf16>
    %73 = vector.shape_cast %72 : vector<16x16x128xbf16> to vector<256x128xbf16>
    %c0_86 = arith.constant 0 : index
    %c640_87 = arith.constant 640 : index
    %74 = vector.load %arg6[%c0_86, %c640_87] : memref<256x1152xbf16, #tpu.memory_space<vmem>>, vector<256x128xbf16>
    tpu.vector_store %arg6[%c0_86, %c640_87], %73 {strides = array<i32>} : memref<256x1152xbf16, #tpu.memory_space<vmem>>, vector<256x128xbf16>,
    %c2_88 = arith.constant 2 : index
    %c0_89 = arith.constant 0 : index
    %c0_90 = arith.constant 0 : index
    %75 = vector.load %arg5[%c2_88, %c0_89, %c0_90] : memref<18x18x128xbf16, #tpu.memory_space<vmem>>, vector<16x16x128xbf16>
    %76 = vector.shape_cast %75 : vector<16x16x128xbf16> to vector<256x128xbf16>
    %c0_91 = arith.constant 0 : index
    %c768_92 = arith.constant 768 : index
    %77 = vector.load %arg6[%c0_91, %c768_92] : memref<256x1152xbf16, #tpu.memory_space<vmem>>, vector<256x128xbf16>
    tpu.vector_store %arg6[%c0_91, %c768_92], %76 {strides = array<i32>} : memref<256x1152xbf16, #tpu.memory_space<vmem>>, vector<256x128xbf16>,
    %c2_93 = arith.constant 2 : index
    %c1_94 = arith.constant 1 : index
    %c0_95 = arith.constant 0 : index
    %78 = vector.load %arg5[%c2_93, %c1_94, %c0_95] : memref<18x18x128xbf16, #tpu.memory_space<vmem>>, vector<16x16x128xbf16>
    %79 = vector.shape_cast %78 : vector<16x16x128xbf16> to vector<256x128xbf16>
    %c0_96 = arith.constant 0 : index
    %c896_97 = arith.constant 896 : index
    %80 = vector.load %arg6[%c0_96, %c896_97] : memref<256x1152xbf16, #tpu.memory_space<vmem>>, vector<256x128xbf16>
    tpu.vector_store %arg6[%c0_96, %c896_97], %79 {strides = array<i32>} : memref<256x1152xbf16, #tpu.memory_space<vmem>>, vector<256x128xbf16>,
    %c2_98 = arith.constant 2 : index
    %c2_99 = arith.constant 2 : index
    %c0_100 = arith.constant 0 : index
    %81 = vector.load %arg5[%c2_98, %c2_99, %c0_100] : memref<18x18x128xbf16, #tpu.memory_space<vmem>>, vector<16x16x128xbf16>
    %82 = vector.shape_cast %81 : vector<16x16x128xbf16> to vector<256x128xbf16>
    %c0_101 = arith.constant 0 : index
    %c1024_102 = arith.constant 1024 : index
    %83 = vector.load %arg6[%c0_101, %c1024_102] : memref<256x1152xbf16, #tpu.memory_space<vmem>>, vector<256x128xbf16>
    tpu.vector_store %arg6[%c0_101, %c1024_102], %82 {strides = array<i32>} : memref<256x1152xbf16, #tpu.memory_space<vmem>>, vector<256x128xbf16>,
    %c0_103 = arith.constant 0 : index
    %c0_104 = arith.constant 0 : index
    %84 = vector.load %arg6[%c0_103, %c0_104] : memref<256x1152xbf16, #tpu.memory_space<vmem>>, vector<256x1152xbf16>
    %c0_105 = arith.constant 0 : index
    %c0_106 = arith.constant 0 : index
    %85 = vector.load %arg3[%c0_105, %c0_106] : memref<1152x128xbf16, #tpu.memory_space<vmem>>, vector<1152x128xbf16>
    %cst_107 = arith.constant dense<0.000000e+00> : vector<256x128xf32>
    %86 = tpu.matmul %84, %85, %cst_107 {dimension_numbers = #tpu.dot_dimension_numbers<[1], [0], [0], [1], [0, 0, 1, 1], [], []>} : vector<256x1152xbf16>, vector<1152x128xbf16>, vector<256x128xf32> -> vector<256x128xf32>
    %cst_108 = arith.constant dense<0.000000e+00> : vector<128xf32>
    %87 = vector.multi_reduction <add>, %86, %cst_108 [0] : vector<256x128xf32> to vector<128xf32>
    %88 = vector.shape_cast %87 : vector<128xf32> to vector<1x128xf32>
    %cst_109 = arith.constant 2.560000e+02 : f32
    %89 = vector.broadcast %cst_109 : f32 to vector<1x128xf32>
    %90 = arith.divf %88, %89 : vector<1x128xf32>
    %91 = vector.broadcast %90 : vector<1x128xf32> to vector<256x128xf32>
    %92 = arith.subf %86, %91 : vector<256x128xf32>
    %93 = arith.mulf %92, %92 : vector<256x128xf32>
    %cst_110 = arith.constant dense<0.000000e+00> : vector<128xf32>
    %94 = vector.multi_reduction <add>, %93, %cst_110 [0] : vector<256x128xf32> to vector<128xf32>
    %95 = vector.shape_cast %94 : vector<128xf32> to vector<1x128xf32>
    %cst_111 = arith.constant 2.560000e+02 : f32
    %96 = vector.broadcast %cst_111 : f32 to vector<1x128xf32>
    %97 = arith.divf %95, %96 : vector<1x128xf32>
    %cst_112 = arith.constant 9.99999974E-6 : f32
    %98 = vector.broadcast %cst_112 : f32 to vector<1x128xf32>
    %99 = arith.addf %97, %98 : vector<1x128xf32>
    %100 = math.rsqrt %99 : vector<1x128xf32>
    %101 = vector.broadcast %100 : vector<1x128xf32> to vector<256x128xf32>
    %102 = arith.mulf %92, %101 : vector<256x128xf32>
    %103 = vector.shape_cast %3 : vector<16x16x128xf32> to vector<256x128xf32>
    %104 = arith.addf %103, %102 : vector<256x128xf32>
    %cst_113 = arith.constant 0.000000e+00 : f32
    %105 = vector.broadcast %cst_113 : f32 to vector<256x128xf32>
    %106 = arith.maximumf %104, %105 : vector<256x128xf32>
    %107 = vector.shape_cast %106 : vector<256x128xf32> to vector<16x16x128xf32>
    %c0_114 = arith.constant 0 : index
    %c0_115 = arith.constant 0 : index
    %c0_116 = arith.constant 0 : index
    %c0_117 = arith.constant 0 : index
    %108 = vector.load %arg4[%c0_114, %c0_115, %c0_116, %c0_117] : memref<1x16x16x128xf32, #tpu.memory_space<vmem>>, vector<1x16x16x128xf32>
    %109 = vector.shape_cast %108 : vector<1x16x16x128xf32> to vector<16x16x128xf32>
    %110 = vector.shape_cast %107 : vector<16x16x128xf32> to vector<1x16x16x128xf32>
    tpu.vector_store %arg4[%c0_114, %c0_115, %c0_116, %c0_117], %110 {strides = array<i32>} : memref<1x16x16x128xf32, #tpu.memory_space<vmem>>, vector<1x16x16x128xf32>,
    return
  }
  func.func @transform_0(%arg0: i32) -> (i32, i32, i32, i32) {
    %c0_i32 = arith.constant 0 : i32
    %c0_i32_0 = arith.constant 0 : i32
    %c0_i32_1 = arith.constant 0 : i32
    %c0_i32_2 = arith.constant 0 : i32
    return %arg0, %c0_i32, %c0_i32_0, %c0_i32_1 : i32, i32, i32, i32
  }
  func.func @transform_1(%arg0: i32) -> (i32, i32) {
    %c0_i32 = arith.constant 0 : i32
    %c0_i32_0 = arith.constant 0 : i32
    %c0_i32_1 = arith.constant 0 : i32
    return %c0_i32, %c0_i32_0 : i32, i32
  }
  func.func @transform_2(%arg0: i32) -> (i32, i32) {
    %c0_i32 = arith.constant 0 : i32
    %c0_i32_0 = arith.constant 0 : i32
    %c0_i32_1 = arith.constant 0 : i32
    return %c0_i32, %c0_i32_0 : i32, i32
  }
  func.func @transform_3(%arg0: i32) -> (i32, i32, i32, i32) {
    %c0_i32 = arith.constant 0 : i32
    %c0_i32_0 = arith.constant 0 : i32
    %c0_i32_1 = arith.constant 0 : i32
    %c0_i32_2 = arith.constant 0 : i32
    return %arg0, %c0_i32, %c0_i32_0, %c0_i32_1 : i32, i32, i32, i32
  }
}

</mosaic_0001>

<bundles_post_ra>
// kernel: tpu_custom_call.1
= control target key start
LH: loop header
LB: loop body
LE: loop exit
PB: predicated region body
PF: predicated region fallthrough
CT: control target
= control target key end

     0   :  { %8 = vsyncpa [#allocation5], 0  ;;  %s16406_s0 = inlined_call_operand.hbm [shape: f32[2,16,16,128], index: 0, kind: input, shape index: {}]   ;;  %s16407_s1 = inlined_call_operand.hbm [shape: bf16[1152,128], index: 1, kind: input, shape index: {}]   ;;  %s16408_s2 = inlined_call_operand.hbm [shape: bf16[1152,128], index: 2, kind: input, shape index: {}]   ;;  %s16409_s3 = inlined_call_operand.hbm [shape: f32[2,16,16,128], index: 3, kind: output, shape index: {}]  }
   0x1   :  { %10 = vsyncpa [#allocation5 + $0x1], 0 }
   0x2   :  { %11 = vsyncpa [#allocation8], 0 }
   0x3   :  { %12 = vsyncpa [#allocation6], 0 }
   0x4   :  { %14 = vsyncpa [#allocation6 + $0x1], 0  ;;  %s12929_s12 = smov 0   ;;  %s12931_s13 = smov 0  }
   0x5   :  { %s12933_s14 = smov 0   ;;  %s12935_s15 = smov 0  }
   0x6 LB: > { %s12950_s16 = sadd.s32 4294967295, %s12896_s15   ;;  %s10674_s17 = sadd.s32 4294967294, %s12896_s15   ;;  %s12896_s15 = sphi %s12935_s15, %s16542_s15   ;;  %s12892_s14 = sphi %s12933_s14, %s16541_s14   ;;  %s12888_s13 = sphi %s12931_s13, %s16540_s13   ;;  %s12884_s12 = sphi %s12929_s12, %s16539_s12  }
   0x7   : > { %p40_p0 = scmp.ne.s32.totalorder %s12888_s13, %s12884_s12  ;;  %p16410_p1 = scmp.eq.s32.totalorder %s12950_s16, 0 }
   0x8   : > { %p112_p3 = scmp.eq.s32.totalorder %s10674_s17, 1  ;;  %p10675_p5 = scmp.ge.s32.totalorder %s12896_s15, 1 }
   0x9   : > { %p12959_p4 = por %p16410_p1, %p40_p0  ;;  %p119_p7 = scmp.lt.s32.totalorder %s12896_s15, 3 }
   0xa   : > { %p12964_p6 = por %p112_p3, %p40_p0  ;;  %s12898_s21 = smov [#allocation7]  }
   0xb   : > { %s16426_s18 = scalar_select %p12959_p4, 1, 0 }
   0xc   : > { %s16427_s19 = scalar_select %p12964_p6, 1, 0 }
   0xd   : > { %p12969_p8 = pnand %p10675_p5, %p119_p7  ;;  %s131_s22 = sshll.u32 %s12898_s21, 4  ;;  %s12973_s22 = int_to_ptr.vmem [resolvable:$true] %s131_s22 }
   0xe   : > { %s12899_s24 = smov [#allocation9]   ;;  %s12740_s28 = scalar_lea.hbm %s16407_s1, 9216 }
   0xf   : > { %p12402_p9 = pneg %p12969_p8  ;;  %s144_s25 = sshll.u32 %s12899_s24, 4  ;;  %s12984_s25 = int_to_ptr.vmem [resolvable:$true] %s144_s25 }
  0x10   : > { %p12741_p12 = scmp.ne.s32.totalorder %s16407_s1, %s12740_s28  ;;  %p12747_p5 = scmp.lt.u32.totalorder %s12740_s28, %s16407_s1 }
  0x11   : > { %p12980_p11 = pnand %p12402_p9, %p16410_p1 }
  0x13   : > { %p12742_p13 = pneg %p12980_p11 }
  0x15   : > { %p12743_p0 = pnand %p12742_p13, %p12741_p12 }
  0x17   : > { %p12744_p3 = pneg %p12743_p0 }
  0x19   : > { %p12749_p7 = pnand %p12747_p5, %p12744_p3 }
  0x1b   : > { %12752 = shalt.err (!%p12749_p7)
}
  0x1c   : > { %s12753_s6 = scalar_lea.vmem %s12973_s22, 9216  ;;  %p12761_p2 = scmp.lt.s32.totalorder %s12973_s22, %s12973_s22 }
  0x1d   : > { %p12754_p9 = scmp.ne.s32.totalorder %s12973_s22, %s12753_s6  ;;  %p12762_p12 = scmp.lt.s32.totalorder %s12753_s6, %s12753_s6 }
  0x1f   : > { %p12756_p10 = pnand %p12754_p9, %p12742_p13  ;;  %p12763_p0 = por %p12762_p12, %p12761_p2 }
  0x21   : > { %p12757_p1 = pneg %p12756_p10 }
  0x23   : > { %p12764_p6 = pnand %p12763_p0, %p12757_p1 }
  0x25   : > { %12767 = shalt.err (!%p12764_p6)
}
  0x26   : > { %s12900_s7 = smov 64   ;;  %s12901_s8 = smov 4  }
  0x27   : > { %12405 = dma.hbm_to_vmem [thread:$0]  (!%p12980_p11), %s16407_s1, 9216, %s12973_s22, [#allocation8], %s12900_s7, %s12900_s7, %s12901_s8  }
  0x28   : > { %s12768_s21 = scalar_lea.hbm %s16408_s2, 9216 }
  0x29   : > { %p12769_p2 = scmp.ne.s32.totalorder %s16408_s2, %s12768_s21  ;;  %p12775_p10 = scmp.lt.u32.totalorder %s12768_s21, %s16408_s2 }
  0x2b   : > { %p12771_p1 = pnand %p12769_p2, %p12742_p13 }
  0x2d   : > { %p12772_p6 = pneg %p12771_p1 }
  0x2f   : > { %p12777_p3 = pnand %p12775_p10, %p12772_p6 }
  0x31   : > { %12780 = shalt.err (!%p12777_p3)
}
  0x32   : > { %s12781_s22 = scalar_lea.vmem %s12984_s25, 9216  ;;  %p12789_p12 = scmp.lt.s32.totalorder %s12984_s25, %s12984_s25 }
  0x33   : > { %p12782_p5 = scmp.ne.s32.totalorder %s12984_s25, %s12781_s22  ;;  %p12790_p0 = scmp.lt.s32.totalorder %s12781_s22, %s12781_s22 }
  0x35   : > { %p12784_p7 = pnand %p12782_p5, %p12742_p13  ;;  %p12791_p2 = por %p12790_p0, %p12789_p12 }
  0x37   : > { %p12785_p9 = pneg %p12784_p7 }
  0x39   : > { %p12792_p1 = pnand %p12791_p2, %p12785_p9 }
  0x3b   : > { %12795 = shalt.err (!%p12792_p1)
}
  0x3c   : > { %12408 = dma.hbm_to_vmem [thread:$0]  (!%p12980_p11), %s16408_s2, 9216, %s12984_s25, [#allocation8], %s12900_s7, %s12900_s7, %s12901_s8  }
  0x3d   : > { %s13039_s4 = sadd.s32 1, %s12896_s15   ;;  %s27_s23 = sadd.s32 1, %s12892_s14 }
  0x3e   : > { %s24_s5 = ssub.s32 %s12896_s15, %s13039_s4  ;;  %p34_p13 = scmp.ne.s32.totalorder %s12892_s14, %s12888_s13 }
  0x3f   : > { %p25_p6 = scmp.eq.s32.totalorder %s24_s5, 0  ;;  %p35_p10 = scmp.eq.s32.totalorder %s12896_s15, 0 }
  0x40   : > { %p16430_p3 = scmp.eq.s32.totalorder %s12950_s16, 1  ;;  %p12419_p7 = scmp.lt.s32.totalorder %s12896_s15, 2 }
  0x41   : > { %s13055_s9 = scalar_select %p25_p6, %s12892_s14, %s27_s23  }
  0x42   : > { %p13049_p5 = por %p16430_p3, %p34_p13  ;;  %p36_p9 = por %p35_p10, %p34_p13 }
  0x43   : > { %s158_s10 = sand.u32 1, %s12892_s14   ;;  %s11284_s25 = sshll.u32 %s12896_s15, 12 }
  0x44   : > { %s16431_s6 = scalar_select %p13049_p5, 1, 0 }
  0x45   : > { %s10679_s11 = sshll.u32 %s158_s10, 8  ;;  %s13062_s17 = scalar_lea.hbm %s16406_s0, %s11284_s25 }
  0x46   : > { %s162_s21 = scalar_lea.vmem [#allocation4], %s10679_s11  ;;  %p13066_p11 = pnand %p12419_p7, %p36_p9 }
  0x47   : > { %s169_s24 = sshll.u32 %s162_s21, 4  ;;  %s13070_s27 = scalar_lea.sflag [#allocation5], %s158_s10  ;;  %s13064_s24 = int_to_ptr.vmem [resolvable:$true] %s169_s24 }
  0x48   : > { %s12796_s28 = scalar_lea.hbm %s13062_s17, 4096  ;;  %p12798_p0 = pneg %p13066_p11 }
  0x49   : > { %p12797_p12 = scmp.ne.s32.totalorder %s13062_s17, %s12796_s28  ;;  %s12801_s30 = scalar_lea.hbm %s16406_s0, 8192 }
  0x4a   : > { %p12802_p13 = scmp.lt.u32.totalorder %s13062_s17, %s16406_s0  ;;  %p12803_p6 = scmp.lt.u32.totalorder %s12801_s30, %s12796_s28 }
  0x4b   : > { %p12799_p2 = pnand %p12798_p0, %p12797_p12  ;;  %p12805_p3 = scmp.lt.u32.totalorder %s12796_s28, %s13062_s17 }
  0x4c   : > { %p12804_p10 = por %p12803_p6, %p12802_p13 }
  0x4d   : > { %p12800_p1 = pneg %p12799_p2 }
  0x4e   : > { %p12806_p7 = por %p12805_p3, %p12804_p10 }
  0x50   : > { %p12807_p9 = pnand %p12806_p7, %p12800_p1 }
  0x52   : > { %12810 = shalt.err (!%p12807_p9)
}
  0x53   : > { %s12811_s10 = scalar_lea.vmem %s13064_s24, 4096  ;;  %s12902_s11 = smov [#allocation4]  }
  0x54   : > { %p12812_p12 = scmp.ne.s32.totalorder %s13064_s24, %s12811_s10  ;;  %s12816_s25 = sshll.u32 %s12902_s11, 4  ;;  %s12817_s25 = int_to_ptr.vmem [resolvable:$false] %s12816_s25 }
  0x55   : > { %s12818_s7 = scalar_lea.vmem %s12817_s25, 8192  ;;  %p12819_p4 = scmp.lt.s32.totalorder %s13064_s24, %s12817_s25 }
  0x56   : > { %p12814_p2 = pnand %p12812_p12, %p12798_p0  ;;  %p12820_p13 = scmp.lt.s32.totalorder %s12818_s7, %s12811_s10 }
  0x58   : > { %p12815_p5 = pneg %p12814_p2  ;;  %p12821_p6 = por %p12820_p13, %p12819_p4 }
  0x5a   : > { %p12822_p10 = pnand %p12821_p6, %p12815_p5 }
  0x5c   : > { %12825 = shalt.err (!%p12822_p10)
}
  0x5d   : > { %s12903_s8 = smov 128   ;;  %s12904_s21 = smov 8  }
  0x5e   : > { %12412 = dma.hbm_to_vmem [thread:$0]  (!%p13066_p11), %s13062_s17, 4096, %s13064_s24, %s13070_s27, %s12903_s8, %s12903_s8, %s12904_s21  }
  0x5f   : > { %181 = sbr.rel (%p12969_p8) target bundleno = 1672 (0x688), region = 32 }
  0x66   : > { %s13101_s28 = sand.u32 1, %s12888_s13   ;;  %p16433_p4 = scmp.ne.s32.totalorder %s16426_s18, 0 }
  0x67   : > { %s10683_s22 = sshll.u32 %s13101_s28, 8  ;;  %s184_s29 = scalar_lea.sflag [#allocation5], %s13101_s28 }
  0x68   : > { %s13107_s30 = scalar_lea.vmem [#allocation4], %s10683_s22 }
  0x69   : > { %12871 = dma.done.wait (%p16433_p4), %s184_s29, 4096  }
  0x6a   : > { %12873 = vsyncadd (%p16433_p4), %s184_s29, 4294963200  ;;  %p16434_p5 = scmp.eq.s32.totalorder %s12950_s16, 0 }
  0x6c   : > { %12875 = dma.done.wait (%p16434_p5), [#allocation8], 18432   ;;  %p16435_p8 = pmov %p16434_p5 }
  0x6d   : > { %v12905_v0 = vmov 0   ;;  %v12464_v1 = vld [vmem:[#allocation7 + $0x40] sm:$0xff]   ;;  %v12468_v5 = vld [vmem:[#allocation7 + $0x48] sm:$0xff]   ;;  %v12472_v9 = vld [vmem:[#allocation7 + $0x50] sm:$0xff]   ;;  %vm1034_vm0 = vsmask.f32 3328 }
  0x6e   : > { %12877 = vsyncadd (%p16435_p8), [#allocation8], 4294948864  ;;  %219 = vst [vmem:[#allocation2] sm:$0xf] %v12905_v0  ;;  %v12465_v2 = vld [vmem:[#allocation7 + $0xc0] sm:$0xff]   ;;  %11350 = vmatprep.subr.bf16.mxu0 %v12464_v1  ;;  %v12469_v6 = vld [vmem:[#allocation7 + $0xc8] sm:$0xff]  }
  0x6f   : > { %220 = vst [vmem:[#allocation2 + $0x4] sm:$0xf] %v12905_v0  ;;  %221 = vst [vmem:[#allocation2 + $0x8] sm:$0x1] %v12905_v0  ;;  %v12466_v3 = vld [vmem:[#allocation7] sm:$0xff]   ;;  %11462 = vmatprep.subr.bf16.mxu1 %v12465_v2  ;;  %v12470_v7 = vld [vmem:[#allocation7 + $0x8] sm:$0xff]  }
  0x70   : > { %222 = vst [vmem:[#allocation2 + $0xc] sm:$0xf] %v12905_v0  ;;  %223 = vst [vmem:[#allocation2 + $0x10] sm:$0xf] %v12905_v0  ;;  %v12467_v4 = vld [vmem:[#allocation7 + $0x80] sm:$0xff]   ;;  %11351 = vmatpush3.bf16.msra.mxu0 %v12466_v3  ;;  %v12471_v8 = vld [vmem:[#allocation7 + $0x88] sm:$0xff]  }
  0x71   : > { %224 = vst [vmem:[#allocation2 + $0x14] sm:$0x1] %v12905_v0  ;;  %225 = vst [vmem:[#allocation2 + $0x18] sm:$0xf] %v12905_v0  ;;  %11463 = vmatpush3.bf16.msra.mxu1 %v12467_v4  ;;  %11352 = vmatprep.subr.bf16.mxu0 %v12468_v5  ;;  %v12473_v10 = vld [vmem:[#allocation7 + $0xd0] sm:$0xff]   ;;  %v12476_v13 = vld [vmem:[#allocation7 + $0x58] sm:$0xff]  }
  0x72   : > { %226 = vst [vmem:[#allocation2 + $0x1c] sm:$0xf] %v12905_v0  ;;  %227 = vst [vmem:[#allocation2 + $0x20] sm:$0x1] %v12905_v0  ;;  %11464 = vmatprep.subr.bf16.mxu1 %v12469_v6  ;;  %v12474_v11 = vld [vmem:[#allocation7 + $0x10] sm:$0xff]   ;;  %v12477_v14 = vld [vmem:[#allocation7 + $0xd8] sm:$0xff]  }
  0x73   : > { %228 = vst [vmem:[#allocation2 + $0x24] sm:$0xf] %v12905_v0  ;;  %229 = vst [vmem:[#allocation2 + $0x28] sm:$0xf] %v12905_v0  ;;  %v12475_v12 = vld [vmem:[#allocation7 + $0x90] sm:$0xff]   ;;  %v12478_v15 = vld [vmem:[#allocation7 + $0x18] sm:$0xff]  }
  0x74   : > { %230 = vst [vmem:[#allocation2 + $0x2c] sm:$0x1] %v12905_v0  ;;  %231 = vst [vmem:[#allocation2 + $0x30] sm:$0xf] %v12905_v0  ;;  %11353 = vmatpush3.bf16.msra.mxu0 %v12470_v7  ;;  %v12479_v16 = vld [vmem:[#allocation7 + $0x98] sm:$0xff]   ;;  %v12480_v17 = vld [vmem:[#allocation7 + $0x60] sm:$0xff]  }
  0x75   : > { %232 = vst [vmem:[#allocation2 + $0x34] sm:$0xf] %v12905_v0  ;;  %233 = vst [vmem:[#allocation2 + $0x38] sm:$0x1] %v12905_v0  ;;  %11465 = vmatpush3.bf16.msra.mxu1 %v12471_v8  ;;  %11354 = vmatprep.subr.bf16.mxu0 %v12472_v9  ;;  %v12481_v18 = vld [vmem:[#allocation7 + $0xe0] sm:$0xff]   ;;  %v12484_v21 = vld [vmem:[#allocation7 + $0x68] sm:$0xff]  }
  0x76   : > { %234 = vst [vmem:[#allocation2 + $0x3c] sm:$0xf] %v12905_v0  ;;  %235 = vst [vmem:[#allocation2 + $0x40] sm:$0xf] %v12905_v0  ;;  %11466 = vmatprep.subr.bf16.mxu1 %v12473_v10  ;;  %v12482_v19 = vld [vmem:[#allocation7 + $0x20] sm:$0xff]   ;;  %v12485_v22 = vld [vmem:[#allocation7 + $0xe8] sm:$0xff]  }
  0x77   : > { %236 = vst [vmem:[#allocation2 + $0x44] sm:$0x1] %v12905_v0  ;;  %237 = vst [vmem:[#allocation2 + $0x48] sm:$0xf] %v12905_v0  ;;  %v12483_v20 = vld [vmem:[#allocation7 + $0xa0] sm:$0xff]   ;;  %v12486_v23 = vld [vmem:[#allocation7 + $0x28] sm:$0xff]  }
  0x78   : > { %238 = vst [vmem:[#allocation2 + $0x4c] sm:$0xf] %v12905_v0  ;;  %239 = vst [vmem:[#allocation2 + $0x50] sm:$0x1] %v12905_v0  ;;  %11355 = vmatpush3.bf16.msra.mxu0 %v12474_v11  ;;  %v12487_v24 = vld [vmem:[#allocation7 + $0xa8] sm:$0xff]   ;;  %v12488_v25 = vld [vmem:[#allocation7 + $0x70] sm:$0xff]  }
  0x79   : > { %240 = vst [vmem:[#allocation2 + $0x54] sm:$0xf] %v12905_v0  ;;  %241 = vst [vmem:[#allocation2 + $0x58] sm:$0xf] %v12905_v0  ;;  %11467 = vmatpush3.bf16.msra.mxu1 %v12475_v12  ;;  %11356 = vmatprep.subr.bf16.mxu0 %v12476_v13  ;;  %v12489_v26 = vld [vmem:[#allocation7 + $0xf0] sm:$0xff]   ;;  %v12492_v29 = vld [vmem:[#allocation7 + $0x78] sm:$0xff]  }
  0x7a   : > { %242 = vst [vmem:[#allocation2 + $0x5c] sm:$0x1] %v12905_v0  ;;  %243 = vst [vmem:[#allocation2 + $0x60] sm:$0xf] %v12905_v0  ;;  %11468 = vmatprep.subr.bf16.mxu1 %v12477_v14  ;;  %vm1035_vm1 = vsmask.f32 7440 }
  0x7b   : > { %244 = vst [vmem:[#allocation2 + $0x64] sm:$0xf] %v12905_v0  ;;  %245 = vst [vmem:[#allocation2 + $0x68] sm:$0x1] %v12905_v0  ;;  %v12490_v27 = vld [vmem:[#allocation7 + $0x30] sm:$0xff]   ;;  %v12493_v30 = vld [vmem:[#allocation7 + $0xf8] sm:$0xff]  }
  0x7c   : > { %246 = vst [vmem:[#allocation2 + $0x6c] sm:$0xf] %v12905_v0  ;;  %247 = vst [vmem:[#allocation2 + $0x70] sm:$0xf] %v12905_v0  ;;  %11357 = vmatpush3.bf16.msra.mxu0 %v12478_v15  ;;  %vm401_vm2 = vsmask.f32 256 }
  0x7d   : > { %248 = vst [vmem:[#allocation2 + $0x74] sm:$0x1] %v12905_v0  ;;  %249 = vst [vmem:[#allocation2 + $0x78] sm:$0xf] %v12905_v0  ;;  %11469 = vmatpush3.bf16.msra.mxu1 %v12479_v16  ;;  %11358 = vmatprep.subr.bf16.mxu0 %v12480_v17  ;;  %vm402_vm3 = vsmask.f32 4368 }
  0x7e   : > { %250 = vst [vmem:[#allocation2 + $0x7c] sm:$0xf] %v12905_v0  ;;  %251 = vst [vmem:[#allocation2 + $0x80] sm:$0x1] %v12905_v0  ;;  %11470 = vmatprep.subr.bf16.mxu1 %v12481_v18  ;;  %v12491_v28 = vld [vmem:[#allocation7 + $0xb0] sm:$0xff]   ;;  %v12494_v31 = vld [vmem:[#allocation7 + $0x38] sm:$0xff]  }
  0x7f   : > { %252 = vst [vmem:[#allocation2 + $0x84] sm:$0xf] %v12905_v0  ;;  %253 = vst [vmem:[#allocation2 + $0x88] sm:$0xf] %v12905_v0  ;;  %vm726_vm4 = vsmask.f32 7938 }
  0x80   : > { %254 = vst [vmem:[#allocation2 + $0x8c] sm:$0x1] %v12905_v0  ;;  %255 = vst [vmem:[#allocation2 + $0x90] sm:$0xf] %v12905_v0  ;;  %11359 = vmatpush3.bf16.msra.mxu0 %v12482_v19  ;;  %vm725_vm5 = vcmask 1043456   ;;  %v12495_v32 = vld [vmem:[#allocation7 + $0xb8] sm:$0xff]  }
  0x81   : > { %256 = vst [vmem:[#allocation2 + $0x94] sm:$0xf] %v12905_v0  ;;  %257 = vst [vmem:[#allocation2 + $0x98] sm:$0x1] %v12905_v0  ;;  %11471 = vmatpush3.bf16.msra.mxu1 %v12483_v20  ;;  %11360 = vmatprep.subr.bf16.mxu0 %v12484_v21  ;;  %vm732_vm6 = vcmask 1040384   ;;  %v273_v40 = vld [vmem:[%s13107_s30] sm:$0xff] }
  0x82   : > { %258 = vst [vmem:[#allocation2 + $0x9c] sm:$0xf] %v12905_v0  ;;  %259 = vst [vmem:[#allocation2 + $0xa0] sm:$0xf] %v12905_v0  ;;  %11472 = vmatprep.subr.bf16.mxu1 %v12485_v22  ;;  %v986_v33 = vld [vmem:[#allocation2] sm:$0xf]  ;;  %v11285_v43 = vpack.c.bf16 %v273_v40, %v273_v40 }
  0x83   : > { %260 = vst [vmem:[#allocation2 + $0xa4] sm:$0x1] %v12905_v0  ;;  %261 = vst [vmem:[#allocation2 + $0xa8] sm:$0xf] %v12905_v0  ;;  %v987_v34 = vld [vmem:[#allocation2 + $0x4] sm:$0xf] }
  0x84   : > { %262 = vst [vmem:[#allocation2 + $0xac] sm:$0xf] %v12905_v0  ;;  %263 = vst [vmem:[#allocation2 + $0xb0] sm:$0x1] %v12905_v0  ;;  %11361 = vmatpush3.bf16.msra.mxu0 %v12486_v23  ;;  %v988_v35 = vld [vmem:[#allocation2 + $0x8] sm:$0x1] }
  0x85   : > { %264 = vst [vmem:[#allocation2 + $0xb4] sm:$0xf] %v12905_v0  ;;  %265 = vst [vmem:[#allocation2 + $0xb8] sm:$0xf] %v12905_v0  ;;  %11473 = vmatpush3.bf16.msra.mxu1 %v12487_v24  ;;  %11362 = vmatprep.subr.bf16.mxu0 %v12488_v25  ;;  %v1038_v36 = vshrl.u32 %v986_v33, 16  ;;  %v1041_v37 = vshll.u32 %v986_v33, 16 }
  0x86   : > { %266 = vst [vmem:[#allocation2 + $0xbc] sm:$0x1] %v12905_v0  ;;  %267 = vst [vmem:[#allocation2 + $0xc0] sm:$0xf] %v12905_v0  ;;  %11474 = vmatprep.subr.bf16.mxu1 %v12489_v26  ;;  %v1047_v38 = vshll.u32 %v987_v34, 16  ;;  %v1051_v39 = vshrl.u32 %v987_v34, 16 }
  0x87   : > { %268 = vst [vmem:[#allocation2 + $0xc4] sm:$0xf] %v12905_v0  ;;  %269 = vst [vmem:[#allocation2 + $0xc8] sm:$0x1] %v12905_v0  ;;  %v274_v41 = vld [vmem:[%s13107_s30 + $0x8] sm:$0xff]  ;;  %v1057_v42 = vshll.u32 %v988_v35, 16 }
  0x88   : > { %270 = vst [vmem:[#allocation2 + $0xcc] sm:$0xf] %v12905_v0  ;;  %271 = vst [vmem:[#allocation2 + $0xd0] sm:$0xf] %v12905_v0  ;;  %11363 = vmatpush3.bf16.msra.mxu0 %v12490_v27  ;;  %v11286_v44 = vpack.c.bf16 %v274_v41, %v274_v41  ;;  %vm1597_vm7 = vcmask 1042432   ;;  %v1040_v45 = vrot.slane %v1038_v36, 4 }
  0x89   : > { %272 = vst [vmem:[#allocation2 + $0xd4] sm:$0x1] %v12905_v0  ;;  %11475 = vmatpush3.bf16.msra.mxu1 %v12491_v28  ;;  %11364 = vmatprep.subr.bf16.mxu0 %v12492_v29  ;;  %v1043_v46 = vrot.slane %v1041_v37, 5  ;;  %v1049_v47 = vrot.slane %v1047_v38, 5  ;;  %v1053_v48 = vrot.slane %v1051_v39, 4  ;;  %vm13121_vm8 = vmor %vm1034_vm0, %vm1035_vm1  ;;  %v16436_v49 = vmov 0 }
  0x8a   : > { %11476 = vmatprep.subr.bf16.mxu1 %v12493_v30  ;;  %v16437_v49 = vsel %vm13121_vm8, 4294967295, %v16436_v49  ;;  %v405_v50 = vshrl.u32 %v11285_v43, 16  ;;  %v408_v51 = vshll.u32 %v11285_v43, 16  ;;  %v413_v52 = vshrl.u32 %v11286_v44, 16  ;;  %v1501_v53 = vld [vmem:[#allocation2] sm:$0xe]  ;;  %vm13127_vm10 = vmor %vm401_vm2, %vm402_vm3 }
  0x8b   : > { %16438 = vst [vmem:[#allocation14_spill] sm:$0xff] %v16437_v49  ;;  %vm1598_vm9 = vcmask 1046532   ;;  %v1044_v54 = vor.u32 %v1043_v46, %v1040_v45  ;;  %v1054_v55 = vor.u32 %v1053_v48, %v1049_v47  ;;  %v1059_v56 = vrot.slane %v1057_v42, 5  ;;  %v728_v59 = vld [vmem:[#allocation2 + $0xc] sm:$0xf]  ;;  %vm13133_vm11 = vmand %vm725_vm5, %vm726_vm4  ;;  %v12497_v6 = vld [vmem:[#allocation2] sm:$0xff]  }
  0x8c   : > { %11365 = vmatpush3.bf16.msra.mxu0 %v12494_v31  ;;  %v16439_v57 = vmov 0  ;;  %v416_v58 = vshll.u32 %v11286_v44, 16  ;;  %v1502_v60 = vld [vmem:[#allocation2 + $0x4] sm:$0xf]  ;;  %v1503_v61 = vld [vmem:[#allocation2 + $0x8] sm:$0x1]  ;;  %vm13139_vm12 = vmand %vm732_vm6, %vm401_vm2 }
  0x8d   : > { %11477 = vmatpush3.bf16.msra.mxu1 %v12495_v32  ;;  %v16440_v57 = vsel %vm13127_vm10, 4294967295, %v16439_v57  ;;  %v407_v62 = vrot.slane %v405_v50, 7  ;;  %v415_v63 = vrot.slane %v413_v52, 7  ;;  %v16442_v0 = vmov 0  ;;  %v12498_v8 = vld [vmem:[#allocation7 + $0x140] sm:$0xff]   ;;  %vm13145_vm13 = vmor %vm1597_vm7, %vm1598_vm9  ;;  %v275_v18 = vld [vmem:[%s13107_s30 + $0x10] sm:$0xff] }
  0x8e   : > { %16441 = vst [vmem:[#allocation15_spill] sm:$0xff] %v16440_v57  ;;  %v16443_v0 = vsel %vm13133_vm11, 4294967295, %v16442_v0  ;;  %v10751_v1 = vrot.slane %v1501_v53, 9  ;;  %v1602_v2 = vrot.slane %v1502_v60, 5  ;;  %v1045_v3 = vrot.slane %v1044_v54, 4  ;;  %11574 = vmatprep.subr.bf16.mxu0 %v12498_v8  ;;  %v276_v19 = vld [vmem:[%s13107_s30 + $0x18] sm:$0xff] }
  0x8f   : > { %16444 = vst [vmem:[#allocation16_spill] sm:$0xff] %v16443_v0  ;;  %v1055_v4 = vrot.slane %v1054_v55, 4  ;;  %v16445_v5 = vmov 0  ;;  %v1605_v7 = vrot.slane %v1503_v61, 5  ;;  %v410_v9 = vor.u32 %v408_v51, %v407_v62  ;;  %v734_v17 = vld [vmem:[#allocation2 + $0x14] sm:$0x1] }
  0x90   : > { %v16446_v5 = vsel %vm13139_vm12, 4294967295, %v16445_v5  ;;  %v411_v10 = vrot.slane %v407_v62, 4  ;;  %v418_v11 = vor.u32 %v416_v58, %v415_v63  ;;  %v420_v12 = vrot.slane %v415_v63, 4  ;;  %v12499_v23 = vld [vmem:[#allocation7 + $0x100] sm:$0xff]   ;;  %v278_v28 = vld [vmem:[%s13107_s30 + $0x28] sm:$0xff]  ;;  %v279_v51 = vld [vmem:[%s13107_s30 + $0x30] sm:$0xff] }
  0x91   : > { %16447 = vst [vmem:[#allocation17_spill] sm:$0xff] %v16446_v5  ;;  %v16448_v13 = vmov 0  ;;  %v1050_v14 = vsel %vm13121_vm8, %v1045_v3, %v1049_v47  ;;  %v1060_v15 = vsel %vm13121_vm8, %v1055_v4, %v1059_v56  ;;  %v1604_v16 = vrot.slane %v1602_v2, 4  ;;  %v277_v25 = vld [vmem:[%s13107_s30 + $0x20] sm:$0xff]  ;;  %v12504_v33 = vld [vmem:[#allocation7 + $0x148] sm:$0xff]   ;;  %v280_v58 = vld [vmem:[%s13107_s30 + $0x38] sm:$0xff] }
  0x92   : > { %v16449_v13 = vsel %vm13145_vm13, 4294967295, %v16448_v13  ;;  %v10735_v20 = vcombine.low %v1050_v14, %v1060_v15  ;;  %v419_v21 = vsel %vm13127_vm10, %v411_v10, %v418_v11  ;;  %v729_v22 = vsel %vm13133_vm11, %v410_v9, %v728_v59  ;;  %v12505_v42 = vld [vmem:[#allocation7 + $0x108] sm:$0xff]   ;;  %v737_v45 = vld [vmem:[#allocation2 + $0x18] sm:$0xf]  ;;  %v12510_v59 = vld [vmem:[#allocation7 + $0x150] sm:$0xff]   ;;  %s16187_s18 = scalar_lea.vmem [#allocation10], %s10683_s22 }
  0x93   : > { %16450 = vst [vmem:[#allocation18_spill] sm:$0xff] %v16449_v13  ;;  %v735_v24 = vsel %vm13139_vm12, %v420_v12, %v734_v17  ;;  %730 = vst [vmem:[#allocation2 + $0xc] sm:$0xf] %v729_v22  ;;  %v11287_v26 = vpack.c.bf16 %v275_v18, %v275_v18  ;;  %v11288_v27 = vpack.c.bf16 %v276_v19, %v276_v19  ;;  %v741_v47 = vld [vmem:[#allocation2 + $0x20] sm:$0x1]  ;;  %s11349_s20 = sshll.u32 %s12950_s16, 12 }
  0x94   : > { %731 = vst [vmem:[#allocation2 + $0x10] sm:$0xf] %v419_v21  ;;  %736 = vst [vmem:[#allocation2 + $0x14] sm:$0x1] %v735_v24  ;;  %v11289_v29 = vpack.c.bf16 %v277_v25, %v277_v25  ;;  %4433 = vmatprep.mubr.bf16.mxu0 %v10735_v20  ;;  %v1603_v30 = vsel %vm13145_vm13, %v10751_v1, %v1602_v2  ;;  %v1606_v31 = vsel %vm13145_vm13, %v1604_v16, %v1605_v7  ;;  %v744_v56 = vld [vmem:[#allocation2 + $0x24] sm:$0xf]  ;;  %s16344_s26 = scalar_lea.hbm %s16409_s3, %s11349_s20 }
  0x95   : > { %v11290_v32 = vpack.c.bf16 %v278_v28, %v278_v28  ;;  %4434 = vmatmul.mubr.bf16.vlgmr.msra.gmra.mrb[0].mxu0 %v12497_v6  ;;  %v422_v34 = vshrl.u32 %v11287_v26, 16  ;;  %v425_v35 = vshll.u32 %v11287_v26, 16  ;;  %v430_v36 = vshrl.u32 %v11288_v27, 16  ;;  %v748_v14 = vld [vmem:[#allocation2 + $0x2c] sm:$0x1]  ;;  %s10582_s17 = sshll.u32 %s16187_s18, 4  ;;  %s16346_s17 = int_to_ptr.vmem [resolvable:$true] %s10582_s17 }
  0x96   : > { %v433_v37 = vshll.u32 %v11288_v27, 16  ;;  %11575 = vmatpush3.bf16.msra.mxu0 %v12499_v23  ;;  %v439_v38 = vshrl.u32 %v11289_v29, 16  ;;  %v442_v39 = vshll.u32 %v11289_v29, 16  ;;  %v10767_v46 = vcombine.low %v1603_v30, %v1606_v31  ;;  %s10569_s27 = scalar_lea.sflag [#allocation6], %s13101_s28  ;;  %s12826_s23 = scalar_lea.vmem %s16346_s17, 4096 }
  0x97   : > { %v447_v40 = vshrl.u32 %v11290_v32, 16  ;;  %v450_v41 = vshll.u32 %v11290_v32, 16  ;;  %v424_v43 = vrot.slane %v422_v34, 7  ;;  %v432_v44 = vrot.slane %v430_v36, 7  ;;  %11576 = vmatprep.subr.bf16.mxu0 %v12504_v33  ;;  %p12827_p11 = scmp.ne.s32.totalorder %s16346_s17, %s12826_s23  ;;  %p16536_p0 = scmp.ne.s32.totalorder %s16431_s6, 0 }
  0x98   : > { %v441_v48 = vrot.slane %v439_v38, 7  ;;  %v11291_v8 = vpack.c.bf16 %v279_v51, %v279_v51  ;;  %v13179_v19 = vpack.c.bf16 %v280_v58, %v280_v58  ;;  %v751_v38 = vld [vmem:[#allocation2 + $0x30] sm:$0xf]  ;;  %s12906_s5 = smov [#allocation10]  }
  0x99   : > { %v449_v50 = vrot.slane %v447_v40, 7  ;;  %v427_v52 = vor.u32 %v425_v35, %v424_v43  ;;  %v428_v53 = vrot.slane %v424_v43, 4  ;;  %v435_v54 = vor.u32 %v433_v37, %v432_v44  ;;  %v12511_v43 = vld [vmem:[#allocation7 + $0x110] sm:$0xff]   ;;  %p12828_p1 = pnand %p12827_p11, %p16536_p0  ;;  %s12830_s10 = sshll.u32 %s12906_s5, 4  ;;  %s12831_s10 = int_to_ptr.vmem [resolvable:$false] %s12830_s10 }
  0x9a   : > { %v437_v55 = vrot.slane %v432_v44, 4  ;;  %v444_v61 = vor.u32 %v442_v39, %v441_v48  ;;  %v445_v62 = vrot.slane %v441_v48, 4  ;;  %11577 = vmatpush3.bf16.msra.mxu0 %v12505_v42  ;;  %v989_v1 = vld [vmem:[#allocation2 + $0xc] sm:$0xf]  ;;  %v456_v33 = vshrl.u32 %v11291_v8, 16  ;;  %s12832_s11 = scalar_lea.vmem %s12831_s10, 8192  ;;  %p12833_p7 = scmp.lt.s32.totalorder %s16346_s17, %s12831_s10 }
  0x9b   : > { %v12496_v60 = vld [vmem:[#allocation2 + $0xc] sm:$0xff]   ;;  %v452_v63 = vor.u32 %v450_v41, %v449_v50  ;;  %v991_v3 = vld [vmem:[#allocation2 + $0x14] sm:$0x1]  ;;  %v436_v4 = vsel %vm13127_vm10, %v428_v53, %v435_v54  ;;  %v738_v6 = vsel %vm13133_vm11, %v427_v52, %v737_v45  ;;  %11578 = vmatprep.subr.bf16.mxu0 %v12510_v59  ;;  %v1062_v9 = vshrl.u32 %v989_v1, 16  ;;  %p12829_p3 = pneg %p12828_p1  ;;  %p12834_p9 = scmp.lt.s32.totalorder %s12832_s11, %s12826_s23 }
  0x9c   : > { %v990_v2 = vld [vmem:[#allocation2 + $0x10] sm:$0xf]  ;;  %v742_v7 = vsel %vm13139_vm12, %v437_v55, %v741_v47  ;;  %4594 = vmatprep.mubr.bf16.mxu1 %v12496_v60  ;;  %v1065_v10 = vshll.u32 %v989_v1, 16  ;;  %739 = vst [vmem:[#allocation2 + $0x18] sm:$0xf] %v738_v6  ;;  %v1081_v15 = vshll.u32 %v991_v3, 16  ;;  %v745_v18 = vsel %vm13133_vm11, %v444_v61, %v744_v56 }
  0x9d   : > { %v1071_v11 = vshll.u32 %v990_v2, 16  ;;  %v1075_v12 = vshrl.u32 %v990_v2, 16  ;;  %740 = vst [vmem:[#allocation2 + $0x1c] sm:$0xf] %v436_v4  ;;  %743 = vst [vmem:[#allocation2 + $0x20] sm:$0x1] %v742_v7  ;;  %4595 = vmatmul.mubr.bf16.vlgmr.msra.gmra.mrb[0].mxu1 %v10767_v46  ;;  %v453_v17 = vsel %vm13127_vm10, %v445_v62, %v452_v63  ;;  %p12835_p12 = por %p12834_p9, %p12833_p7 }
  0x9e   : > { %v1504_v16 = vld [vmem:[#allocation2 + $0xc] sm:$0xe]  ;;  %v1064_v20 = vrot.slane %v1062_v9, 4  ;;  %v1067_v21 = vrot.slane %v1065_v10, 5  ;;  %v1505_v24 = vld [vmem:[#allocation2 + $0x10] sm:$0xf]  ;;  %11579 = vmatpush3.bf16.msra.mxu0 %v12511_v43 }
  0x9f   : > { %v1073_v22 = vrot.slane %v1071_v11, 5  ;;  %v1077_v23 = vrot.slane %v1075_v12, 4  ;;  %746 = vst [vmem:[#allocation2 + $0x24] sm:$0xf] %v745_v18  ;;  %747 = vst [vmem:[#allocation2 + $0x28] sm:$0xf] %v453_v17  ;;  %p12836_p2 = pnand %p12835_p12, %p12829_p3 }
  0xa0   : > { %v1083_v25 = vrot.slane %v1081_v15, 5  ;;  %v1506_v26 = vld [vmem:[#allocation2 + $0x14] sm:$0x1]  ;;  %v10752_v27 = vrot.slane %v1504_v16, 9  ;;  %v1609_v28 = vrot.slane %v1505_v24, 5  ;;  %v454_v29 = vrot.slane %v449_v50, 4 }
  0xa1   : > { %v1068_v30 = vor.u32 %v1067_v21, %v1064_v20  ;;  %v1078_v31 = vor.u32 %v1077_v23, %v1073_v22  ;;  %v1612_v32 = vrot.slane %v1506_v26, 5  ;;  %v459_v37 = vshll.u32 %v11291_v8, 16  ;;  %v12501_v41 = vld [vmem:[#allocation2 + $0xc] sm:$0xff]   ;;  %v281_v47 = vld [vmem:[%s13107_s30 + $0x40] sm:$0xff]  ;;  %v282_v56 = vld [vmem:[%s13107_s30 + $0x48] sm:$0xff] }
  0xa2   : > { %v1610_v34 = vsel %vm13145_vm13, %v10752_v27, %v1609_v28  ;;  %v1611_v35 = vrot.slane %v1609_v28, 4  ;;  %v749_v36 = vsel %vm13139_vm12, %v454_v29, %v748_v14  ;;  %v13185_v42 = vrot.slane %v456_v33, 7  ;;  %v283_v63 = vld [vmem:[%s13107_s30 + $0x50] sm:$0xff] }
  0xa3   : > { %v1069_v39 = vrot.slane %v1068_v30, 4  ;;  %v1079_v40 = vrot.slane %v1078_v31, 4  ;;  %750 = vst [vmem:[#allocation2 + $0x2c] sm:$0x1] %v749_v36  ;;  %v464_v46 = vshrl.u32 %v13179_v19, 16  ;;  %v467_v8 = vshll.u32 %v13179_v19, 16 }
  0xa4   : > { %v12500_v44 = vld [vmem:[#allocation2 + $0x18] sm:$0xff]   ;;  %v1613_v45 = vsel %vm13145_vm13, %v1611_v35, %v1612_v32  ;;  %v994_v54 = vld [vmem:[#allocation2 + $0x20] sm:$0x1]  ;;  %v461_v55 = vor.u32 %v459_v37, %v13185_v42  ;;  %v13201_v14 = vpack.c.bf16 %v281_v47, %v281_v47  ;;  %v13203_v21 = vpack.c.bf16 %v282_v56, %v282_v56 }
  0xa5   : > { %v1074_v48 = vsel %vm13121_vm8, %v1069_v39, %v1073_v22  ;;  %v1084_v50 = vsel %vm13121_vm8, %v1079_v40, %v1083_v25  ;;  %v10768_v51 = vcombine.low %v1610_v34, %v1613_v45  ;;  %v992_v52 = vld [vmem:[#allocation2 + $0x18] sm:$0xf]  ;;  %v993_v53 = vld [vmem:[#allocation2 + $0x1c] sm:$0xf]  ;;  %4602 = vmatprep.mubr.bf16.mxu1 %v12500_v44  ;;  %v1105_v2 = vshll.u32 %v994_v54, 16 }
  0xa6   : > { %v10736_v58 = vcombine.low %v1074_v48, %v1084_v50  ;;  %v1086_v59 = vshrl.u32 %v992_v52, 16  ;;  %v1089_v60 = vshll.u32 %v992_v52, 16  ;;  %v1095_v61 = vshll.u32 %v993_v53, 16  ;;  %v12502_v62 = vld [vmem:[#allocation2 + $0x24] sm:$0xff]   ;;  %v1507_v11 = vld [vmem:[#allocation2 + $0x18] sm:$0xe] }
  0xa7   : > { %4603 = vmatmul.mubr.bf16.gmra.mrb[4].mxu1 %v10768_v51  ;;  %v1099_v1 = vshrl.u32 %v993_v53, 16  ;;  %v752_v3 = vsel %vm13133_vm11, %v461_v55, %v751_v38  ;;  %v1107_v10 = vrot.slane %v1105_v2, 5  ;;  %v1508_v12 = vld [vmem:[#allocation2 + $0x1c] sm:$0xf]  ;;  %v1509_v16 = vld [vmem:[#allocation2 + $0x20] sm:$0x1]  ;;  %v13205_v27 = vpack.c.bf16 %v283_v63, %v283_v63 }
  0xa8   : > { %4441 = vmatprep.mubr.bf16.mxu0 %v10736_v58  ;;  %v1088_v4 = vrot.slane %v1086_v59, 4  ;;  %v1091_v6 = vrot.slane %v1089_v60, 5  ;;  %v1097_v7 = vrot.slane %v1095_v61, 5  ;;  %4610 = vmatprep.mubr.bf16.mxu1 %v12502_v62  ;;  %753 = vst [vmem:[#allocation2 + $0x30] sm:$0xf] %v752_v3  ;;  %v10753_v17 = vrot.slane %v1507_v11, 9 }
  0xa9   : > { %4442 = vmatmul.mubr.bf16.gmra.mrb[4].mxu0 %v12501_v41  ;;  %v1101_v9 = vrot.slane %v1099_v1, 4  ;;  %v1616_v18 = vrot.slane %v1508_v12, 5  ;;  %v995_v20 = vld [vmem:[#allocation2 + $0x24] sm:$0xf]  ;;  %v1619_v23 = vrot.slane %v1509_v16, 5  ;;  %v12503_v33 = vld [vmem:[#allocation2 + $0x18] sm:$0xff]  }
  0xaa   : > { %v1092_v15 = vor.u32 %v1091_v6, %v1088_v4  ;;  %v996_v24 = vld [vmem:[#allocation2 + $0x28] sm:$0xf]  ;;  %v997_v25 = vld [vmem:[#allocation2 + $0x2c] sm:$0x1]  ;;  %v1110_v26 = vshrl.u32 %v995_v20, 16  ;;  %v1113_v31 = vshll.u32 %v995_v20, 16 }
  0xab   : > { %v1102_v22 = vor.u32 %v1101_v9, %v1097_v7  ;;  %v1617_v29 = vsel %vm13145_vm13, %v10753_v17, %v1616_v18  ;;  %v1618_v30 = vrot.slane %v1616_v18, 4  ;;  %v1119_v35 = vshll.u32 %v996_v24, 16  ;;  %v1510_v41 = vld [vmem:[#allocation2 + $0x24] sm:$0xe]  ;;  %v1511_v43 = vld [vmem:[#allocation2 + $0x28] sm:$0xf] }
  0xac   : > { %v1093_v28 = vrot.slane %v1092_v15, 4  ;;  %v1112_v34 = vrot.slane %v1110_v26, 4  ;;  %v1123_v36 = vshrl.u32 %v996_v24, 16  ;;  %v1115_v39 = vrot.slane %v1113_v31, 5  ;;  %v1512_v50 = vld [vmem:[#allocation2 + $0x2c] sm:$0x1] }
  0xad   : > { %v1103_v32 = vrot.slane %v1102_v22, 4  ;;  %v1620_v38 = vsel %vm13145_vm13, %v1618_v30, %v1619_v23  ;;  %v1129_v40 = vshll.u32 %v997_v25, 16  ;;  %v1121_v47 = vrot.slane %v1119_v35, 5  ;;  %v755_v63 = vld [vmem:[#allocation2 + $0x38] sm:$0x1]  ;;  %v284_v16 = vld [vmem:[%s13107_s30 + $0x58] sm:$0xff] }
  0xae   : > { %v1098_v37 = vsel %vm13121_vm8, %v1093_v28, %v1097_v7  ;;  %v10769_v45 = vcombine.low %v1617_v29, %v1620_v38  ;;  %v1125_v48 = vrot.slane %v1123_v36, 4  ;;  %v1116_v52 = vor.u32 %v1115_v39, %v1112_v34  ;;  %v12517_v17 = vld [vmem:[#allocation7 + $0x118] sm:$0xff]   ;;  %v12507_v20 = vld [vmem:[#allocation2 + $0x24] sm:$0xff]   ;;  %v285_v29 = vld [vmem:[%s13107_s30 + $0x60] sm:$0xff] }
  0xaf   : > { %v1108_v44 = vsel %vm13121_vm8, %v1103_v32, %v1107_v10  ;;  %v1131_v53 = vrot.slane %v1129_v40, 5  ;;  %v462_v54 = vrot.slane %v13185_v42, 4  ;;  %v998_v55 = vld [vmem:[#allocation2 + $0x30] sm:$0xf]  ;;  %v466_v58 = vrot.slane %v464_v46, 7 }
  0xb0   : > { %v10737_v51 = vcombine.low %v1098_v37, %v1108_v44  ;;  %4611 = vmatmul.mubr.bf16.gmra.mrb[8].mxu1 %v10769_v45  ;;  %v1126_v56 = vor.u32 %v1125_v48, %v1121_v47  ;;  %v10754_v59 = vrot.slane %v1510_v41, 9  ;;  %v1623_v60 = vrot.slane %v1511_v43, 5  ;;  %v12516_v10 = vld [vmem:[#allocation7 + $0x158] sm:$0xff]   ;;  %v758_v31 = vld [vmem:[#allocation2 + $0x3c] sm:$0xf] }
  0xb1   : > { %v1117_v61 = vrot.slane %v1116_v52, 4  ;;  %v1626_v62 = vrot.slane %v1512_v50, 5  ;;  %v1134_v1 = vshrl.u32 %v998_v55, 16  ;;  %v1137_v2 = vshll.u32 %v998_v55, 16  ;;  %11580 = vmatprep.subr.bf16.mxu0 %v12516_v10  ;;  %v1513_v32 = vld [vmem:[#allocation2 + $0x30] sm:$0xe] }
  0xb2   : > { %4449 = vmatprep.mubr.bf16.mxu0 %v10737_v51  ;;  %v1127_v3 = vrot.slane %v1126_v56, 4  ;;  %v469_v4 = vor.u32 %v467_v8, %v466_v58  ;;  %v471_v6 = vrot.slane %v466_v58, 4  ;;  %v13220_v42 = vsel %vm13145_vm13, %v10754_v59, %v1623_v60  ;;  %11581 = vmatpush3.bf16.msra.mxu0 %v12517_v17  ;;  %v762_v37 = vld [vmem:[#allocation2 + $0x44] sm:$0x1]  ;;  %v12522_v44 = vld [vmem:[#allocation7 + $0x160] sm:$0xff]  }
  0xb3   : > { %4450 = vmatmul.mubr.bf16.gmra.mrb[8].mxu0 %v12503_v33  ;;  %v1122_v19 = vsel %vm13121_vm8, %v1117_v61, %v1121_v47  ;;  %v1625_v46 = vrot.slane %v1623_v60, 4  ;;  %v1136_v7 = vrot.slane %v1134_v1, 4  ;;  %v1139_v9 = vrot.slane %v1137_v2, 5  ;;  %v12523_v51 = vld [vmem:[#allocation7 + $0x1c0] sm:$0xff]   ;;  %11582 = vmatprep.subr.bf16.mxu0 %v12522_v44 }
  0xb4   : > { %v1132_v11 = vsel %vm13121_vm8, %v1127_v3, %v1131_v53  ;;  %v470_v12 = vsel %vm13127_vm10, %v462_v54, %v469_v4  ;;  %v756_v8 = vsel %vm13139_vm12, %v471_v6, %v755_v63  ;;  %v473_v15 = vshrl.u32 %v13201_v14, 16  ;;  %v12524_v55 = vld [vmem:[#allocation7 + $0x120] sm:$0xff]   ;;  %11686 = vmatprep.subr.bf16.mxu1 %v12523_v51  ;;  %v769_v4 = vld [vmem:[#allocation2 + $0x50] sm:$0x1] }
  0xb5   : > { %v10738_v18 = vcombine.low %v1122_v19, %v1132_v11  ;;  %754 = vst [vmem:[#allocation2 + $0x34] sm:$0xf] %v470_v12  ;;  %v1627_v22 = vsel %vm13145_vm13, %v1625_v46, %v1626_v62  ;;  %757 = vst [vmem:[#allocation2 + $0x38] sm:$0x1] %v756_v8  ;;  %v476_v23 = vshll.u32 %v13201_v14, 16  ;;  %v1140_v24 = vor.u32 %v1139_v9, %v1136_v7  ;;  %v12525_v17 = vld [vmem:[#allocation7 + $0x180] sm:$0xff]  }
  0xb6   : > { %v475_v25 = vrot.slane %v473_v15, 7  ;;  %v481_v26 = vshrl.u32 %v13203_v21, 16  ;;  %v484_v28 = vshll.u32 %v13203_v21, 16  ;;  %v10770_v30 = vcombine.low %v13220_v42, %v1627_v22  ;;  %v765_v21 = vld [vmem:[#allocation2 + $0x48] sm:$0xf]  ;;  %11583 = vmatpush3.bf16.msra.mxu0 %v12524_v55  ;;  %11687 = vmatpush3.bf16.msra.mxu1 %v12525_v17 }
  0xb7   : > { %4457 = vmatprep.mubr.bf16.mxu0 %v10738_v18  ;;  %v11296_v33 = vpack.c.bf16 %v284_v16, %v284_v16  ;;  %v490_v34 = vshrl.u32 %v13205_v27, 16  ;;  %v493_v38 = vshll.u32 %v13205_v27, 16  ;;  %v11297_v43 = vpack.c.bf16 %v285_v29, %v285_v29  ;;  %v772_v12 = vld [vmem:[#allocation2 + $0x54] sm:$0xf] }
  0xb8   : > { %v478_v35 = vor.u32 %v476_v23, %v475_v25  ;;  %v479_v36 = vrot.slane %v475_v25, 4  ;;  %v483_v14 = vrot.slane %v481_v26, 7  ;;  %v13241_v45 = vrot.slane %v1140_v24, 4  ;;  %v286_v24 = vld [vmem:[%s13107_s30 + $0x68] sm:$0xff] }
  0xb9   : > { %v492_v39 = vrot.slane %v490_v34, 7  ;;  %v498_v40 = vshrl.u32 %v11296_v33, 16  ;;  %v501_v41 = vshll.u32 %v11296_v33, 16  ;;  %v10755_v52 = vrot.slane %v1513_v32, 9 }
  0xba   : > { %v486_v47 = vor.u32 %v484_v28, %v483_v14  ;;  %v488_v48 = vrot.slane %v483_v14, 4  ;;  %v759_v50 = vsel %vm13133_vm11, %v478_v35, %v758_v31  ;;  %v507_v61 = vshrl.u32 %v11297_v43, 16 }
  0xbb   : > { %4458 = vmatmul.mubr.bf16.gmra.mrb[12].mxu0 %v12507_v20  ;;  %760 = vst [vmem:[#allocation2 + $0x3c] sm:$0xf] %v759_v50  ;;  %v495_v53 = vor.u32 %v493_v38, %v492_v39  ;;  %v496_v54 = vrot.slane %v492_v39, 4  ;;  %v500_v27 = vrot.slane %v498_v40, 7  ;;  %v510_v46 = vshll.u32 %v11297_v43, 16 }
  0xbc   : > { %v12506_v56 = vld [vmem:[#allocation2 + $0x30] sm:$0xff]   ;;  %v487_v59 = vsel %vm13127_vm10, %v479_v36, %v486_v47  ;;  %v763_v60 = vsel %vm13139_vm12, %v488_v48, %v762_v37  ;;  %v1000_v62 = vld [vmem:[#allocation2 + $0x38] sm:$0x1]  ;;  %v13253_v16 = vrot.slane %v507_v61, 7 }
  0xbd   : > { %v999_v58 = vld [vmem:[#allocation2 + $0x34] sm:$0xf]  ;;  %761 = vst [vmem:[#allocation2 + $0x40] sm:$0xf] %v487_v59  ;;  %764 = vst [vmem:[#allocation2 + $0x44] sm:$0x1] %v763_v60  ;;  %v503_v2 = vor.u32 %v501_v41, %v500_v27  ;;  %v766_v3 = vsel %vm13133_vm11, %v495_v53, %v765_v21  ;;  %4618 = vmatprep.mubr.bf16.mxu1 %v12506_v56 }
  0xbe   : > { %v1143_v63 = vshll.u32 %v999_v58, 16  ;;  %v1147_v1 = vshrl.u32 %v999_v58, 16  ;;  %v1153_v6 = vshll.u32 %v1000_v62, 16  ;;  %v1514_v42 = vld [vmem:[#allocation2 + $0x34] sm:$0xf]  ;;  %4619 = vmatmul.mubr.bf16.gmra.mrb[12].mxu1 %v10770_v30  ;;  %v505_v15 = vrot.slane %v500_v27, 4 }
  0xbf   : > { %v1515_v19 = vld [vmem:[#allocation2 + $0x38] sm:$0x1]  ;;  %767 = vst [vmem:[#allocation2 + $0x48] sm:$0xf] %v766_v3  ;;  %v1630_v10 = vrot.slane %v1514_v42, 5  ;;  %v504_v8 = vsel %vm13127_vm10, %v496_v54, %v503_v2  ;;  %v512_v29 = vor.u32 %v510_v46, %v13253_v16  ;;  %v287_v30 = vld [vmem:[%s13107_s30 + $0x70] sm:$0xff]  ;;  %v13274_v54 = vpack.c.bf16 %v286_v24, %v286_v24 }
  0xc0   : > { %v1145_v7 = vrot.slane %v1143_v63, 5  ;;  %v1149_v9 = vrot.slane %v1147_v1, 4  ;;  %v1633_v11 = vrot.slane %v1515_v19, 5  ;;  %v1155_v20 = vrot.slane %v1153_v6, 5  ;;  %768 = vst [vmem:[#allocation2 + $0x4c] sm:$0xf] %v504_v8 }
  0xc1   : > { %v1631_v22 = vsel %vm13145_vm13, %v10755_v52, %v1630_v10  ;;  %v1632_v23 = vrot.slane %v1630_v10, 4  ;;  %v770_v28 = vsel %vm13139_vm12, %v505_v15, %v769_v4  ;;  %v288_v36 = vld [vmem:[%s13107_s30 + $0x78] sm:$0xff]  ;;  %v773_v40 = vsel %vm13133_vm11, %v512_v29, %v772_v12  ;;  %v289_v41 = vld [vmem:[%s13107_s30 + $0x80] sm:$0xff]  ;;  %v290_v21 = vld [vmem:[%s13107_s30 + $0x88] sm:$0xff] }
  0xc2   : > { %v1150_v18 = vor.u32 %v1149_v9, %v1145_v7  ;;  %v1146_v25 = vsel %vm13121_vm8, %v13241_v45, %v1145_v7  ;;  %v1001_v26 = vld [vmem:[#allocation2 + $0x3c] sm:$0xf]  ;;  %771 = vst [vmem:[#allocation2 + $0x50] sm:$0x1] %v770_v28  ;;  %v12509_v44 = vld [vmem:[#allocation2 + $0x30] sm:$0xff]   ;;  %v513_v59 = vrot.slane %v13253_v16, 4  ;;  %v13277_v60 = vpack.c.bf16 %v287_v30, %v287_v30 }
  0xc3   : > { %v1634_v32 = vsel %vm13145_vm13, %v1632_v23, %v1633_v11  ;;  %v1158_v33 = vshrl.u32 %v1001_v26, 16  ;;  %v1161_v34 = vshll.u32 %v1001_v26, 16  ;;  %v1516_v35 = vld [vmem:[#allocation2 + $0x3c] sm:$0xe]  ;;  %774 = vst [vmem:[#allocation2 + $0x54] sm:$0xf] %v773_v40  ;;  %v13279_v2 = vpack.c.bf16 %v288_v36, %v288_v36 }
  0xc4   : > { %v1151_v31 = vrot.slane %v1150_v18, 4  ;;  %v12508_v14 = vld [vmem:[#allocation2 + $0x3c] sm:$0xff]   ;;  %v10771_v37 = vcombine.low %v1631_v22, %v1634_v32  ;;  %v10756_v39 = vrot.slane %v1516_v35, 9  ;;  %v1003_v45 = vld [vmem:[#allocation2 + $0x44] sm:$0x1]  ;;  %v13281_v19 = vpack.c.bf16 %v289_v41, %v289_v41 }
  0xc5   : > { %v1002_v38 = vld [vmem:[#allocation2 + $0x40] sm:$0xf]  ;;  %v1160_v47 = vrot.slane %v1158_v33, 4  ;;  %v1163_v48 = vrot.slane %v1161_v34, 5  ;;  %4626 = vmatprep.mubr.bf16.mxu1 %v12508_v14  ;;  %v1177_v53 = vshll.u32 %v1003_v45, 16  ;;  %v13283_v46 = vpack.c.bf16 %v290_v21, %v290_v21 }
  0xc6   : > { %v1156_v43 = vsel %vm13121_vm8, %v1151_v31, %v1155_v20  ;;  %v1167_v50 = vshll.u32 %v1002_v38, 16  ;;  %v1171_v52 = vshrl.u32 %v1002_v38, 16  ;;  %4627 = vmatmul.mubr.bf16.gmra.mrb[16].mxu1 %v10771_v37  ;;  %v1517_v56 = vld [vmem:[#allocation2 + $0x40] sm:$0xf]  ;;  %v1518_v58 = vld [vmem:[#allocation2 + $0x44] sm:$0x1] }
  0xc7   : > { %v10739_v51 = vcombine.low %v1146_v25, %v1156_v43  ;;  %v1164_v27 = vor.u32 %v1163_v48, %v1160_v47  ;;  %v1179_v62 = vrot.slane %v1177_v53, 5  ;;  %v12512_v63 = vld [vmem:[#allocation2 + $0x48] sm:$0xff]   ;;  %v1637_v1 = vrot.slane %v1517_v56, 5  ;;  %v12513_v25 = vld [vmem:[#allocation2 + $0x3c] sm:$0xff]  }
  0xc8   : > { %v1169_v55 = vrot.slane %v1167_v50, 5  ;;  %v1173_v61 = vrot.slane %v1171_v52, 4  ;;  %v1640_v4 = vrot.slane %v1518_v58, 5  ;;  %v1004_v6 = vld [vmem:[#allocation2 + $0x48] sm:$0xf]  ;;  %4634 = vmatprep.mubr.bf16.mxu1 %v12512_v63  ;;  %v515_v34 = vshrl.u32 %v13274_v54, 16 }
  0xc9   : > { %4465 = vmatprep.mubr.bf16.mxu0 %v10739_v51  ;;  %v1165_v3 = vrot.slane %v1164_v27, 4  ;;  %v1005_v42 = vld [vmem:[#allocation2 + $0x4c] sm:$0xf]  ;;  %v1638_v9 = vsel %vm13145_vm13, %v10756_v39, %v1637_v1  ;;  %v1639_v10 = vrot.slane %v1637_v1, 4  ;;  %v1006_v11 = vld [vmem:[#allocation2 + $0x50] sm:$0x1] }
  0xca   : > { %4466 = vmatmul.mubr.bf16.gmra.mrb[16].mxu0 %v12509_v44  ;;  %v1174_v7 = vor.u32 %v1173_v61, %v1169_v55  ;;  %v1182_v12 = vshrl.u32 %v1004_v6, 16  ;;  %v1185_v15 = vshll.u32 %v1004_v6, 16  ;;  %v1191_v17 = vshll.u32 %v1005_v42, 16  ;;  %v1519_v31 = vld [vmem:[#allocation2 + $0x48] sm:$0xe]  ;;  %v12530_v14 = vld [vmem:[#allocation7 + $0x168] sm:$0xff]  }
  0xcb   : > { %v1170_v8 = vsel %vm13121_vm8, %v1165_v3, %v1169_v55  ;;  %v1195_v18 = vshrl.u32 %v1005_v42, 16  ;;  %v1641_v22 = vsel %vm13145_vm13, %v1639_v10, %v1640_v4  ;;  %v1201_v24 = vshll.u32 %v1006_v11, 16  ;;  %v1520_v36 = vld [vmem:[#allocation2 + $0x4c] sm:$0xf]  ;;  %v1521_v40 = vld [vmem:[#allocation2 + $0x50] sm:$0x1]  ;;  %11584 = vmatprep.subr.bf16.mxu0 %v12530_v14 }
  0xcc   : > { %v1175_v20 = vrot.slane %v1174_v7, 4  ;;  %v1184_v23 = vrot.slane %v1182_v12, 4  ;;  %v10772_v26 = vcombine.low %v1638_v9, %v1641_v22  ;;  %v1187_v28 = vrot.slane %v1185_v15, 5  ;;  %v776_v21 = vld [vmem:[#allocation2 + $0x5c] sm:$0x1]  ;;  %v12531_v44 = vld [vmem:[#allocation7 + $0x1c8] sm:$0xff]  }
  0xcd   : > { %v1193_v29 = vrot.slane %v1191_v17, 5  ;;  %v1197_v30 = vrot.slane %v1195_v18, 4  ;;  %v1203_v33 = vrot.slane %v1201_v24, 5  ;;  %v518_v35 = vshll.u32 %v13274_v54, 16  ;;  %v1007_v43 = vld [vmem:[#allocation2 + $0x54] sm:$0xf]  ;;  %11688 = vmatprep.subr.bf16.mxu1 %v12531_v44 }
  0xce   : > { %v1180_v32 = vsel %vm13121_vm8, %v1175_v20, %v1179_v62  ;;  %4635 = vmatmul.mubr.bf16.gmra.mrb[20].mxu1 %v10772_v26  ;;  %v1188_v38 = vor.u32 %v1187_v28, %v1184_v23  ;;  %v10757_v41 = vrot.slane %v1519_v31, 9  ;;  %v517_v45 = vrot.slane %v515_v34, 7  ;;  %v291_v27 = vld [vmem:[%s13107_s30 + $0x90] sm:$0xff]  ;;  %v292_v55 = vld [vmem:[%s13107_s30 + $0x98] sm:$0xff]  ;;  %v779_v10 = vld [vmem:[#allocation2 + $0x60] sm:$0xf] }
  0xcf   : > { %v10740_v37 = vcombine.low %v1170_v8, %v1180_v32  ;;  %v1198_v39 = vor.u32 %v1197_v30, %v1193_v29  ;;  %v1644_v47 = vrot.slane %v1520_v36, 5  ;;  %v1647_v48 = vrot.slane %v1521_v40, 5  ;;  %v13316_v11 = vld [vmem:[#allocation2 + $0x54] sm:$0xe]  ;;  %v783_v26 = vld [vmem:[#allocation2 + $0x68] sm:$0x1] }
  0xd0   : > { %v1206_v50 = vshrl.u32 %v1007_v43, 16  ;;  %v1189_v51 = vrot.slane %v1188_v38, 4  ;;  %v1209_v53 = vshll.u32 %v1007_v43, 16  ;;  %v524_v54 = vshrl.u32 %v13277_v60, 16  ;;  %v786_v28 = vld [vmem:[#allocation2 + $0x6c] sm:$0xf] }
  0xd1   : > { %4473 = vmatprep.mubr.bf16.mxu0 %v10740_v37  ;;  %v1199_v52 = vrot.slane %v1198_v39, 4  ;;  %v520_v56 = vor.u32 %v518_v35, %v517_v45  ;;  %v522_v58 = vrot.slane %v517_v45, 4  ;;  %v13300_v61 = vsel %vm13145_vm13, %v10757_v41, %v1644_v47  ;;  %v12533_v14 = vld [vmem:[#allocation7 + $0x188] sm:$0xff]  }
  0xd2   : > { %4474 = vmatmul.mubr.bf16.gmra.mrb[20].mxu0 %v12513_v25  ;;  %v1646_v62 = vrot.slane %v1644_v47, 4  ;;  %v1194_v63 = vsel %vm13121_vm8, %v1189_v51, %v1193_v29  ;;  %v1208_v3 = vrot.slane %v1206_v50, 4  ;;  %v1211_v4 = vrot.slane %v1209_v53, 5  ;;  %v12532_v29 = vld [vmem:[#allocation7 + $0x128] sm:$0xff]   ;;  %11689 = vmatpush3.bf16.msra.mxu1 %v12533_v14 }
  0xd3   : > { %v1204_v1 = vsel %vm13121_vm8, %v1199_v52, %v1203_v33  ;;  %v521_v42 = vsel %vm13127_vm10, %v513_v59, %v520_v56  ;;  %v777_v9 = vsel %vm13139_vm12, %v522_v58, %v776_v21  ;;  %v526_v12 = vrot.slane %v524_v54, 7  ;;  %v12515_v59 = vld [vmem:[#allocation2 + $0x48] sm:$0xff]   ;;  %11585 = vmatpush3.bf16.msra.mxu0 %v12532_v29 }
  0xd4   : > { %v10741_v6 = vcombine.low %v1194_v63, %v1204_v1  ;;  %v13312_v7 = vsel %vm13145_vm13, %v1646_v62, %v1647_v48  ;;  %775 = vst [vmem:[#allocation2 + $0x58] sm:$0xf] %v521_v42  ;;  %778 = vst [vmem:[#allocation2 + $0x5c] sm:$0x1] %v777_v9  ;;  %v527_v8 = vshll.u32 %v13277_v60, 16  ;;  %v13319_v15 = vpack.c.bf16 %v291_v27, %v291_v27  ;;  %v12538_v29 = vld [vmem:[#allocation7 + $0x170] sm:$0xff]  }
  0xd5   : > { %v11304_v16 = vpack.c.bf16 %v292_v55, %v292_v55  ;;  %v10773_v17 = vcombine.low %v13300_v61, %v13312_v7  ;;  %v532_v18 = vshrl.u32 %v13279_v2, 16  ;;  %v535_v20 = vshll.u32 %v13279_v2, 16  ;;  %11586 = vmatprep.subr.bf16.mxu0 %v12538_v29 }
  0xd6   : > { %4481 = vmatprep.mubr.bf16.mxu0 %v10741_v6  ;;  %v541_v22 = vshrl.u32 %v13281_v19, 16  ;;  %v1212_v23 = vor.u32 %v1211_v4, %v1208_v3  ;;  %v529_v24 = vor.u32 %v527_v8, %v526_v12  ;;  %v10758_v25 = vrot.slane %v13316_v11, 9  ;;  %v790_v4 = vld [vmem:[#allocation2 + $0x74] sm:$0x1]  ;;  %v293_v11 = vld [vmem:[%s13107_s30 + $0xa0] sm:$0xff] }
  0xd7   : > { %v544_v60 = vshll.u32 %v13281_v19, 16  ;;  %v530_v30 = vrot.slane %v526_v12, 4  ;;  %v534_v31 = vrot.slane %v532_v18, 7  ;;  %v549_v33 = vshrl.u32 %v13283_v46, 16 }
  0xd8   : > { %v543_v32 = vrot.slane %v541_v22, 7  ;;  %v780_v34 = vsel %vm13133_vm11, %v529_v24, %v779_v10  ;;  %v552_v2 = vshll.u32 %v13283_v46, 16  ;;  %v558_v35 = vshrl.u32 %v13319_v15, 16  ;;  %v793_v10 = vld [vmem:[#allocation2 + $0x78] sm:$0xf] }
  0xd9   : > { %v566_v36 = vshrl.u32 %v11304_v16, 16  ;;  %v537_v37 = vor.u32 %v535_v20, %v534_v31  ;;  %v539_v19 = vrot.slane %v534_v31, 4  ;;  %781 = vst [vmem:[#allocation2 + $0x60] sm:$0xf] %v780_v34  ;;  %v561_v39 = vshll.u32 %v13319_v15, 16 }
  0xda   : > { %4482 = vmatmul.mubr.bf16.gmra.mrb[24].mxu0 %v12515_v59  ;;  %v546_v38 = vor.u32 %v544_v60, %v543_v32  ;;  %v547_v40 = vrot.slane %v543_v32, 4  ;;  %v551_v41 = vrot.slane %v549_v33, 7  ;;  %v569_v43 = vshll.u32 %v11304_v16, 16 }
  0xdb   : > { %v13334_v21 = vrot.slane %v566_v36, 7  ;;  %v12514_v44 = vld [vmem:[#allocation2 + $0x54] sm:$0xff]   ;;  %v538_v45 = vsel %vm13127_vm10, %v530_v30, %v537_v37  ;;  %v784_v47 = vsel %vm13139_vm12, %v539_v19, %v783_v26  ;;  %v560_v50 = vrot.slane %v558_v35, 7  ;;  %v1009_v51 = vld [vmem:[#allocation2 + $0x5c] sm:$0x1] }
  0xdc   : > { %v1008_v46 = vld [vmem:[#allocation2 + $0x58] sm:$0xf]  ;;  %v787_v48 = vsel %vm13133_vm11, %v546_v38, %v786_v28  ;;  %782 = vst [vmem:[#allocation2 + $0x64] sm:$0xf] %v538_v45  ;;  %785 = vst [vmem:[#allocation2 + $0x68] sm:$0x1] %v784_v47  ;;  %v554_v54 = vor.u32 %v552_v2, %v551_v41  ;;  %4642 = vmatprep.mubr.bf16.mxu1 %v12514_v44  ;;  %v13360_v35 = vpack.c.bf16 %v293_v11, %v293_v11 }
  0xdd   : > { %v1215_v52 = vshll.u32 %v1008_v46, 16  ;;  %v1219_v53 = vshrl.u32 %v1008_v46, 16  ;;  %788 = vst [vmem:[#allocation2 + $0x6c] sm:$0xf] %v787_v48  ;;  %v1213_v27 = vrot.slane %v1212_v23, 4  ;;  %v1225_v55 = vshll.u32 %v1009_v51, 16  ;;  %4643 = vmatmul.mubr.bf16.gmra.mrb[24].mxu1 %v10773_v17 }
  0xde   : > { %v1523_v56 = vld [vmem:[#allocation2 + $0x58] sm:$0xf]  ;;  %v1524_v58 = vld [vmem:[#allocation2 + $0x5c] sm:$0x1]  ;;  %v571_v61 = vor.u32 %v569_v43, %v13334_v21  ;;  %v555_v6 = vsel %vm13127_vm10, %v547_v40, %v554_v54  ;;  %v556_v42 = vrot.slane %v551_v41, 4  ;;  %v563_v7 = vor.u32 %v561_v39, %v560_v50  ;;  %v294_v2 = vld [vmem:[%s13107_s30 + $0xa8] sm:$0xff] }
  0xdf   : > { %v1217_v62 = vrot.slane %v1215_v52, 5  ;;  %v1221_v63 = vrot.slane %v1219_v53, 4  ;;  %v1651_v1 = vrot.slane %v1523_v56, 5  ;;  %v1654_v3 = vrot.slane %v1524_v58, 5  ;;  %789 = vst [vmem:[#allocation2 + $0x70] sm:$0xf] %v555_v6 }
  0xe0   : > { %v564_v9 = vrot.slane %v560_v50, 4  ;;  %v1227_v8 = vrot.slane %v1225_v55, 5  ;;  %v1010_v59 = vld [vmem:[#allocation2 + $0x60] sm:$0xf]  ;;  %v791_v20 = vsel %vm13139_vm12, %v556_v42, %v790_v4  ;;  %v573_v28 = vrot.slane %v13334_v21, 4  ;;  %v12519_v14 = vld [vmem:[#allocation2 + $0x54] sm:$0xff]  }
  0xe1   : > { %v1222_v12 = vor.u32 %v1221_v63, %v1217_v62  ;;  %v1652_v15 = vsel %vm13145_vm13, %v10758_v25, %v1651_v1  ;;  %v1653_v16 = vrot.slane %v1651_v1, 4  ;;  %v1230_v17 = vshrl.u32 %v1010_v59, 16  ;;  %v797_v23 = vld [vmem:[#allocation2 + $0x80] sm:$0x1]  ;;  %v1525_v60 = vld [vmem:[#allocation2 + $0x60] sm:$0xe] }
  0xe2   : > { %v1233_v18 = vshll.u32 %v1010_v59, 16  ;;  %v572_v22 = vsel %vm13127_vm10, %v564_v9, %v571_v61  ;;  %v1218_v24 = vsel %vm13121_vm8, %v1213_v27, %v1217_v62  ;;  %792 = vst [vmem:[#allocation2 + $0x74] sm:$0x1] %v791_v20  ;;  %v794_v34 = vsel %vm13133_vm11, %v563_v7, %v793_v10  ;;  %v295_v6 = vld [vmem:[%s13107_s30 + $0xb0] sm:$0xff] }
  0xe3   : > { %v1223_v26 = vrot.slane %v1222_v12, 4  ;;  %v1655_v25 = vsel %vm13145_vm13, %v1653_v16, %v1654_v3  ;;  %796 = vst [vmem:[#allocation2 + $0x7c] sm:$0xf] %v572_v22  ;;  %v12518_v30 = vld [vmem:[#allocation2 + $0x60] sm:$0xff]   ;;  %v1232_v33 = vrot.slane %v1230_v17, 4  ;;  %v10759_v21 = vrot.slane %v1525_v60, 9 }
  0xe4   : > { %v10774_v31 = vcombine.low %v1652_v15, %v1655_v25  ;;  %v1011_v32 = vld [vmem:[#allocation2 + $0x64] sm:$0xf]  ;;  %v1012_v37 = vld [vmem:[#allocation2 + $0x68] sm:$0x1]  ;;  %v1235_v19 = vrot.slane %v1233_v18, 5  ;;  %4650 = vmatprep.mubr.bf16.mxu1 %v12518_v30  ;;  %v798_v43 = vsel %vm13139_vm12, %v573_v28, %v797_v23  ;;  %v575_v53 = vshrl.u32 %v13360_v35, 16 }
  0xe5   : > { %v1228_v36 = vsel %vm13121_vm8, %v1223_v26, %v1227_v8  ;;  %v1239_v38 = vshll.u32 %v1011_v32, 16  ;;  %v1243_v39 = vshrl.u32 %v1011_v32, 16  ;;  %795 = vst [vmem:[#allocation2 + $0x78] sm:$0xf] %v794_v34  ;;  %v1249_v41 = vshll.u32 %v1012_v37, 16  ;;  %v12539_v42 = vld [vmem:[#allocation7 + $0x1d0] sm:$0xff]  }
  0xe6   : > { %v10742_v40 = vcombine.low %v1218_v24, %v1228_v36  ;;  %4651 = vmatmul.mubr.bf16.gmra.mrb[28].mxu1 %v10774_v31  ;;  %v1236_v44 = vor.u32 %v1235_v19, %v1232_v33  ;;  %v1526_v47 = vld [vmem:[#allocation2 + $0x64] sm:$0xf]  ;;  %v1527_v48 = vld [vmem:[#allocation2 + $0x68] sm:$0x1]  ;;  %799 = vst [vmem:[#allocation2 + $0x80] sm:$0x1] %v798_v43  ;;  %v13367_v61 = vpack.c.bf16 %v294_v2, %v294_v2 }
  0xe7   : > { %v1241_v46 = vrot.slane %v1239_v38, 5  ;;  %v1245_v45 = vrot.slane %v1243_v39, 4  ;;  %v12520_v50 = vld [vmem:[#allocation2 + $0x6c] sm:$0xff]   ;;  %v1658_v51 = vrot.slane %v1526_v47, 5  ;;  %v1661_v52 = vrot.slane %v1527_v48, 5  ;;  %v12521_v10 = vld [vmem:[#allocation2 + $0x60] sm:$0xff]   ;;  %11690 = vmatprep.subr.bf16.mxu1 %v12539_v42 }
  0xe8   : > { %4489 = vmatprep.mubr.bf16.mxu0 %v10742_v40  ;;  %v1237_v54 = vrot.slane %v1236_v44, 4  ;;  %v1251_v55 = vrot.slane %v1249_v41, 5  ;;  %v1013_v56 = vld [vmem:[#allocation2 + $0x6c] sm:$0xf]  ;;  %v1014_v58 = vld [vmem:[#allocation2 + $0x70] sm:$0xf]  ;;  %4658 = vmatprep.mubr.bf16.mxu1 %v12520_v50  ;;  %v13382_v37 = vpack.c.bf16 %v295_v6, %v295_v6 }
  0xe9   : > { %4490 = vmatmul.mubr.bf16.gmra.mrb[28].mxu0 %v12519_v14  ;;  %v1246_v27 = vor.u32 %v1245_v45, %v1241_v46  ;;  %v1659_v62 = vsel %vm13145_vm13, %v10759_v21, %v1658_v51  ;;  %v1660_v63 = vrot.slane %v1658_v51, 4  ;;  %v1015_v1 = vld [vmem:[#allocation2 + $0x74] sm:$0x1]  ;;  %v1254_v3 = vshrl.u32 %v1013_v56, 16  ;;  %v297_v15 = vld [vmem:[%s13107_s30 + $0xc0] sm:$0xff]  ;;  %v12540_v16 = vld [vmem:[#allocation7 + $0x130] sm:$0xff]  }
  0xea   : > { %v1257_v4 = vshll.u32 %v1013_v56, 16  ;;  %v1242_v7 = vsel %vm13121_vm8, %v1237_v54, %v1241_v46  ;;  %v1263_v11 = vshll.u32 %v1014_v58, 16  ;;  %v1267_v12 = vshrl.u32 %v1014_v58, 16  ;;  %v296_v8 = vld [vmem:[%s13107_s30 + $0xb8] sm:$0xff]  ;;  %11587 = vmatpush3.bf16.msra.mxu0 %v12540_v16  ;;  %v1528_v30 = vld [vmem:[#allocation2 + $0x6c] sm:$0xe] }
  0xeb   : > { %v1247_v9 = vrot.slane %v1246_v27, 4  ;;  %v1662_v59 = vsel %vm13145_vm13, %v1660_v63, %v1661_v52  ;;  %v1256_v17 = vrot.slane %v1254_v3, 4  ;;  %v1273_v20 = vshll.u32 %v1015_v1, 16  ;;  %v1529_v31 = vld [vmem:[#allocation2 + $0x70] sm:$0xf]  ;;  %v12541_v52 = vld [vmem:[#allocation7 + $0x190] sm:$0xff]  }
  0xec   : > { %v1259_v18 = vrot.slane %v1257_v4, 5  ;;  %v12526_v22 = vld [vmem:[#allocation2 + $0x78] sm:$0xff]   ;;  %v10775_v24 = vcombine.low %v1659_v62, %v1662_v59  ;;  %v1265_v26 = vrot.slane %v1263_v11, 5  ;;  %v1269_v25 = vrot.slane %v1267_v12, 4  ;;  %v1530_v34 = vld [vmem:[#allocation2 + $0x74] sm:$0x1]  ;;  %11691 = vmatpush3.bf16.msra.mxu1 %v12541_v52 }
  0xed   : > { %v1252_v23 = vsel %vm13121_vm8, %v1247_v9, %v1251_v55  ;;  %v1275_v29 = vrot.slane %v1273_v20, 5  ;;  %v13380_v32 = vrot.slane %v575_v53, 7  ;;  %v10760_v2 = vrot.slane %v1528_v30, 9  ;;  %v1016_v14 = vld [vmem:[#allocation2 + $0x78] sm:$0xf]  ;;  %v12527_v54 = vld [vmem:[#allocation2 + $0x6c] sm:$0xff]  }
  0xee   : > { %v10743_v60 = vcombine.low %v1242_v7, %v1252_v23  ;;  %v1260_v28 = vor.u32 %v1259_v18, %v1256_v17  ;;  %4659 = vmatmul.mubr.bf16.gmra.mrb[32].mxu1 %v10775_v24  ;;  %v1270_v33 = vor.u32 %v1269_v25, %v1265_v26  ;;  %v1665_v36 = vrot.slane %v1529_v31, 5  ;;  %v1017_v39 = vld [vmem:[#allocation2 + $0x7c] sm:$0xf]  ;;  %v1018_v40 = vld [vmem:[#allocation2 + $0x80] sm:$0x1] }
  0xef   : > { %4666 = vmatprep.mubr.bf16.mxu1 %v12526_v22  ;;  %v1668_v38 = vrot.slane %v1530_v34, 5  ;;  %v13384_v41 = vpack.c.bf16 %v296_v8, %v296_v8  ;;  %v13386_v21 = vpack.c.bf16 %v297_v15, %v297_v15  ;;  %v1278_v45 = vshrl.u32 %v1016_v14, 16  ;;  %v1531_v58 = vld [vmem:[#allocation2 + $0x78] sm:$0xe]  ;;  %v1532_v62 = vld [vmem:[#allocation2 + $0x7c] sm:$0xf] }
  0xf0   : > { %4497 = vmatprep.mubr.bf16.mxu0 %v10743_v60  ;;  %v1261_v19 = vrot.slane %v1260_v28, 4  ;;  %v1271_v43 = vrot.slane %v1270_v33, 4  ;;  %v1666_v44 = vsel %vm13145_vm13, %v10760_v2, %v1665_v36  ;;  %v1667_v46 = vrot.slane %v1665_v36, 4  ;;  %v800_v6 = vld [vmem:[#allocation2 + $0x84] sm:$0xf]  ;;  %v12544_v34 = vld [vmem:[#allocation7 + $0x1d8] sm:$0xff]  }
  0xf1   : > { %4498 = vmatmul.mubr.bf16.gmra.mrb[32].mxu0 %v12521_v10  ;;  %v1281_v48 = vshll.u32 %v1016_v14, 16  ;;  %v1287_v50 = vshll.u32 %v1017_v39, 16  ;;  %v1291_v51 = vshrl.u32 %v1017_v39, 16  ;;  %v1280_v55 = vrot.slane %v1278_v45, 4  ;;  %v1533_v42 = vld [vmem:[#allocation2 + $0x80] sm:$0x1]  ;;  %11692 = vmatprep.subr.bf16.mxu1 %v12544_v34 }
  0xf2   : > { %v1266_v47 = vsel %vm13121_vm8, %v1261_v19, %v1265_v26  ;;  %v1276_v53 = vsel %vm13121_vm8, %v1271_v43, %v1275_v29  ;;  %v1669_v27 = vsel %vm13145_vm13, %v1667_v46, %v1668_v38  ;;  %v1297_v56 = vshll.u32 %v1018_v40, 16  ;;  %v298_v59 = vld [vmem:[%s13107_s30 + $0xc8] sm:$0xff]  ;;  %v804_v23 = vld [vmem:[#allocation2 + $0x8c] sm:$0x1]  ;;  %v12529_v46 = vld [vmem:[#allocation2 + $0x78] sm:$0xff]  }
  0xf3   : > { %v10744_v63 = vcombine.low %v1266_v47, %v1276_v53  ;;  %v10776_v1 = vcombine.low %v1666_v44, %v1669_v27  ;;  %v1283_v3 = vrot.slane %v1281_v48, 5  ;;  %v1289_v4 = vrot.slane %v1287_v50, 5  ;;  %v299_v19 = vld [vmem:[%s13107_s30 + $0xd0] sm:$0xff]  ;;  %v807_v44 = vld [vmem:[#allocation2 + $0x90] sm:$0xf] }
  0xf4   : > { %v1293_v7 = vrot.slane %v1291_v51, 4  ;;  %v1299_v9 = vrot.slane %v1297_v56, 5  ;;  %v578_v10 = vshll.u32 %v13360_v35, 16  ;;  %v581_v11 = vrot.slane %v13380_v32, 4  ;;  %v811_v48 = vld [vmem:[#allocation2 + $0x98] sm:$0x1] }
  0xf5   : > { %4505 = vmatprep.mubr.bf16.mxu0 %v10744_v63  ;;  %v1284_v12 = vor.u32 %v1283_v3, %v1280_v55  ;;  %v583_v8 = vshrl.u32 %v13367_v61, 16  ;;  %v586_v15 = vshll.u32 %v13367_v61, 16  ;;  %v10761_v16 = vrot.slane %v1531_v58, 9  ;;  %v12546_v55 = vld [vmem:[#allocation7 + $0x198] sm:$0xff]   ;;  %v15019_v13 = vld [vmem:[#allocation2 + $0x6c] sm:$0xf] }
  0xf6   : > { %4667 = vmatmul.mubr.bf16.gmra.mrb[36].mxu1 %v10776_v1  ;;  %v1294_v17 = vor.u32 %v1293_v7, %v1289_v4  ;;  %v580_v18 = vor.u32 %v578_v10, %v13380_v32  ;;  %v1672_v20 = vrot.slane %v1532_v62, 5  ;;  %v1675_v22 = vrot.slane %v1533_v42, 5  ;;  %v300_v1 = vld [vmem:[%s13107_s30 + $0xd8] sm:$0xff] }
  0xf7   : > { %v1285_v24 = vrot.slane %v1284_v12, 4  ;;  %v585_v26 = vrot.slane %v583_v8, 7  ;;  %v592_v35 = vshrl.u32 %v13382_v37, 16  ;;  %v595_v25 = vshll.u32 %v13382_v37, 16  ;;  %11693 = vmatpush3.bf16.msra.mxu1 %v12546_v55  ;;  %v12548_v7 = vld [vmem:[#allocation7 + $0x178] sm:$0xff]  }
  0xf8   : > { %v1295_v60 = vrot.slane %v1294_v17, 4  ;;  %v801_v61 = vsel %vm13133_vm11, %v580_v18, %v800_v6  ;;  %v1674_v28 = vrot.slane %v1672_v20, 4  ;;  %v11310_v29 = vpack.c.bf16 %v298_v59, %v298_v59  ;;  %11588 = vmatprep.subr.bf16.mxu0 %v12548_v7  ;;  %v12549_v18 = vld [vmem:[#allocation7 + $0x138] sm:$0xff]  }
  0xf9   : > { %4506 = vmatmul.mubr.bf16.gmra.mrb[36].mxu0 %v12527_v54  ;;  %v1290_v30 = vsel %vm13121_vm8, %v1285_v24, %v1289_v4  ;;  %v588_v31 = vor.u32 %v586_v15, %v585_v26  ;;  %v590_v32 = vrot.slane %v585_v26, 4  ;;  %802 = vst [vmem:[#allocation2 + $0x84] sm:$0xf] %v801_v61  ;;  %v594_v33 = vrot.slane %v592_v35, 7  ;;  %v814_v54 = vld [vmem:[#allocation2 + $0x9c] sm:$0xf] }
  0xfa   : > { %v1300_v2 = vsel %vm13121_vm8, %v1295_v60, %v1299_v9  ;;  %v13412_v36 = vsel %vm13145_vm13, %v10761_v16, %v1672_v20  ;;  %v600_v14 = vshrl.u32 %v13384_v41, 16  ;;  %v603_v37 = vshll.u32 %v13384_v41, 16  ;;  %v818_v4 = vld [vmem:[#allocation2 + $0xa4] sm:$0x1]  ;;  %v12550_v26 = vld [vmem:[#allocation7 + $0x1e0] sm:$0xff]   ;;  %11589 = vmatpush3.bf16.msra.mxu0 %v12549_v18 }
  0xfb   : > { %v10745_v38 = vcombine.low %v1290_v30, %v1300_v2  ;;  %v589_v39 = vsel %vm13127_vm10, %v581_v11, %v588_v31  ;;  %v13421_v40 = vsel %vm13145_vm13, %v1674_v28, %v1675_v22  ;;  %v805_v43 = vsel %vm13139_vm12, %v590_v32, %v804_v23  ;;  %11694 = vmatprep.subr.bf16.mxu1 %v12550_v26 }
  0xfc   : > { %803 = vst [vmem:[#allocation2 + $0x88] sm:$0xf] %v589_v39  ;;  %806 = vst [vmem:[#allocation2 + $0x8c] sm:$0x1] %v805_v43  ;;  %v597_v45 = vor.u32 %v595_v25, %v594_v33  ;;  %v598_v41 = vrot.slane %v594_v33, 4  ;;  %v602_v47 = vrot.slane %v600_v14, 7  ;;  %v11311_v27 = vpack.c.bf16 %v299_v19, %v299_v19 }
  0xfd   : > { %v609_v50 = vshrl.u32 %v13386_v21, 16  ;;  %4513 = vmatprep.mubr.bf16.mxu0 %v10745_v38  ;;  %v612_v51 = vshll.u32 %v13386_v21, 16  ;;  %v617_v52 = vshrl.u32 %v11310_v29, 16  ;;  %v620_v53 = vshll.u32 %v11310_v29, 16  ;;  %v821_v29 = vld [vmem:[#allocation2 + $0xa8] sm:$0xf] }
  0xfe   : > { %v605_v56 = vor.u32 %v603_v37, %v602_v47  ;;  %v607_v58 = vrot.slane %v602_v47, 4  ;;  %v808_v62 = vsel %vm13133_vm11, %v597_v45, %v807_v44  ;;  %v626_v6 = vshrl.u32 %v11311_v27, 16 }
  0xff   : > { %v611_v63 = vrot.slane %v609_v50, 7  ;;  %809 = vst [vmem:[#allocation2 + $0x90] sm:$0xf] %v808_v62  ;;  %v619_v3 = vrot.slane %v617_v52, 7  ;;  %v629_v42 = vshll.u32 %v11311_v27, 16  ;;  %v10777_v21 = vcombine.low %v13412_v36, %v13421_v40 }
 0x100   : > { %v1019_v9 = vld [vmem:[#allocation2 + $0x84] sm:$0xf]  ;;  %v606_v10 = vsel %vm13127_vm10, %v598_v41, %v605_v56  ;;  %v812_v11 = vsel %vm13139_vm12, %v607_v58, %v811_v48  ;;  %v13438_v24 = vrot.slane %v626_v6, 7  ;;  %v13442_v28 = vpack.c.bf16 %v300_v1, %v300_v1 }
 0x101   : > { %4514 = vmatmul.mubr.bf16.gmra.mrb[40].mxu0 %v12529_v46  ;;  %v614_v12 = vor.u32 %v612_v51, %v611_v63  ;;  %v1302_v8 = vshrl.u32 %v1019_v9, 16  ;;  %v1305_v15 = vshll.u32 %v1019_v9, 16  ;;  %810 = vst [vmem:[#allocation2 + $0x94] sm:$0xf] %v606_v10  ;;  %v1534_v16 = vld [vmem:[#allocation2 + $0x84] sm:$0xe]  ;;  %v622_v17 = vor.u32 %v620_v53, %v619_v3 }
 0x102   : > { %813 = vst [vmem:[#allocation2 + $0x98] sm:$0x1] %v812_v11  ;;  %v615_v59 = vrot.slane %v611_v63, 4  ;;  %v10762_v20 = vrot.slane %v1534_v16, 9  ;;  %v624_v22 = vrot.slane %v619_v3, 4  ;;  %v631_v14 = vor.u32 %v629_v42, %v13438_v24  ;;  %v302_v6 = vld [vmem:[%s13107_s30 + $0xe8] sm:$0xff] }
 0x103   : > { %v815_v23 = vsel %vm13133_vm11, %v614_v12, %v814_v54  ;;  %v12528_v35 = vld [vmem:[#allocation2 + $0x84] sm:$0xff]   ;;  %v1304_v60 = vrot.slane %v1302_v8, 4  ;;  %v1021_v30 = vld [vmem:[#allocation2 + $0x8c] sm:$0x1]  ;;  %v1307_v31 = vrot.slane %v1305_v15, 5  ;;  %v632_v37 = vrot.slane %v13438_v24, 4 }
 0x104   : > { %v1020_v25 = vld [vmem:[#allocation2 + $0x88] sm:$0xf]  ;;  %v623_v61 = vsel %vm13127_vm10, %v615_v59, %v622_v17  ;;  %816 = vst [vmem:[#allocation2 + $0x9c] sm:$0xf] %v815_v23  ;;  %v819_v34 = vsel %vm13139_vm12, %v624_v22, %v818_v4  ;;  %4674 = vmatprep.mubr.bf16.mxu1 %v12528_v35  ;;  %v1321_v2 = vshll.u32 %v1021_v30, 16  ;;  %v634_v41 = vshrl.u32 %v13442_v28, 16 }
 0x105   : > { %v1311_v32 = vshll.u32 %v1020_v25, 16  ;;  %v1315_v33 = vshrl.u32 %v1020_v25, 16  ;;  %817 = vst [vmem:[#allocation2 + $0xa0] sm:$0xf] %v623_v61  ;;  %v1535_v36 = vld [vmem:[#allocation2 + $0x88] sm:$0xf]  ;;  %4675 = vmatmul.mubr.bf16.gmra.mrb[40].mxu1 %v10777_v21  ;;  %v1308_v19 = vor.u32 %v1307_v31, %v1304_v60  ;;  %v822_v52 = vsel %vm13133_vm11, %v631_v14, %v821_v29 }
 0x106   : > { %820 = vst [vmem:[#allocation2 + $0xa4] sm:$0x1] %v819_v34  ;;  %v1536_v40 = vld [vmem:[#allocation2 + $0x8c] sm:$0x1]  ;;  %v1323_v43 = vrot.slane %v1321_v2, 5  ;;  %v1679_v44 = vrot.slane %v1535_v36, 5  ;;  %v13463_v34 = vpack.c.bf16 %v302_v6, %v302_v6 }
 0x107   : > { %v1313_v38 = vrot.slane %v1311_v32, 5  ;;  %v1317_v39 = vrot.slane %v1315_v33, 4  ;;  %v1682_v46 = vrot.slane %v1536_v40, 5  ;;  %v1022_v45 = vld [vmem:[#allocation2 + $0x90] sm:$0xf]  ;;  %v1309_v47 = vrot.slane %v1308_v19, 4 }
 0x108   : > { %v12534_v50 = vld [vmem:[#allocation2 + $0x90] sm:$0xff]   ;;  %v1680_v53 = vsel %vm13145_vm13, %v10762_v20, %v1679_v44  ;;  %v1681_v54 = vrot.slane %v1679_v44, 4  ;;  %v1326_v55 = vshrl.u32 %v1022_v45, 16  ;;  %v1329_v56 = vshll.u32 %v1022_v45, 16  ;;  %823 = vst [vmem:[#allocation2 + $0xa8] sm:$0xf] %v822_v52 }
 0x109   : > { %v1318_v48 = vor.u32 %v1317_v39, %v1313_v38  ;;  %v1023_v51 = vld [vmem:[#allocation2 + $0x94] sm:$0xf]  ;;  %v1024_v27 = vld [vmem:[#allocation2 + $0x98] sm:$0x1]  ;;  %v1314_v58 = vsel %vm13121_vm8, %v1309_v47, %v1313_v38  ;;  %4682 = vmatprep.mubr.bf16.mxu1 %v12534_v50  ;;  %v12535_v63 = vld [vmem:[#allocation2 + $0x84] sm:$0xff]   ;;  %v636_v23 = vrot.slane %v634_v41, 7 }
 0x10a   : > { %v1335_v1 = vshll.u32 %v1023_v51, 16  ;;  %v1339_v3 = vshrl.u32 %v1023_v51, 16  ;;  %v301_v4 = vld [vmem:[%s13107_s30 + $0xe0] sm:$0xff]  ;;  %v1683_v7 = vsel %vm13145_vm13, %v1681_v54, %v1682_v46  ;;  %v1328_v21 = vrot.slane %v1326_v55, 4  ;;  %v1537_v20 = vld [vmem:[#allocation2 + $0x90] sm:$0xe] }
 0x10b   : > { %v1319_v62 = vrot.slane %v1318_v48, 4  ;;  %v12551_v42 = vld [vmem:[#allocation7 + $0x1a0] sm:$0xff]   ;;  %v1331_v9 = vrot.slane %v1329_v56, 5  ;;  %v1345_v10 = vshll.u32 %v1024_v27, 16  ;;  %v10778_v8 = vcombine.low %v1680_v53, %v1683_v7  ;;  %v1538_v22 = vld [vmem:[#allocation2 + $0x94] sm:$0xf] }
 0x10c   : > { %v12536_v11 = vld [vmem:[#allocation2 + $0x9c] sm:$0xff]   ;;  %v1337_v15 = vrot.slane %v1335_v1, 5  ;;  %v1341_v16 = vrot.slane %v1339_v3, 4  ;;  %11695 = vmatpush3.bf16.msra.mxu1 %v12551_v42  ;;  %v1539_v35 = vld [vmem:[#allocation2 + $0x98] sm:$0x1]  ;;  %v10763_v25 = vrot.slane %v1537_v20, 9  ;;  %v13461_v33 = vpack.c.bf16 %v301_v4, %v301_v4 }
 0x10d   : > { %v1324_v12 = vsel %vm13121_vm8, %v1319_v62, %v1323_v43  ;;  %v1332_v17 = vor.u32 %v1331_v9, %v1328_v21  ;;  %v1347_v18 = vrot.slane %v1345_v10, 5  ;;  %4683 = vmatmul.mubr.bf16.gmra.mrb[44].mxu1 %v10778_v8  ;;  %v1686_v60 = vrot.slane %v1538_v22, 5  ;;  %v1025_v61 = vld [vmem:[#allocation2 + $0x9c] sm:$0xf]  ;;  %v1026_v31 = vld [vmem:[#allocation2 + $0xa0] sm:$0xf] }
 0x10e   : > { %v10746_v59 = vcombine.low %v1314_v58, %v1324_v12  ;;  %v1342_v26 = vor.u32 %v1341_v16, %v1337_v15  ;;  %4690 = vmatprep.mubr.bf16.mxu1 %v12536_v11  ;;  %v1689_v30 = vrot.slane %v1539_v35, 5  ;;  %v1027_v32 = vld [vmem:[#allocation2 + $0xa4] sm:$0x1]  ;;  %v1350_v19 = vshrl.u32 %v1025_v61, 16  ;;  %v825_v44 = vld [vmem:[#allocation2 + $0xb0] sm:$0x1] }
 0x10f   : > { %v1333_v29 = vrot.slane %v1332_v17, 4  ;;  %v1687_v36 = vsel %vm13145_vm13, %v10763_v25, %v1686_v60  ;;  %v1688_v14 = vrot.slane %v1686_v60, 4  ;;  %v1353_v39 = vshll.u32 %v1025_v61, 16  ;;  %v12552_v46 = vld [vmem:[#allocation7 + $0x1e8] sm:$0xff]   ;;  %v12537_v41 = vld [vmem:[#allocation2 + $0x90] sm:$0xff]  }
 0x110   : > { %4521 = vmatprep.mubr.bf16.mxu0 %v10746_v59  ;;  %v1343_v2 = vrot.slane %v1342_v26, 4  ;;  %v1359_v40 = vshll.u32 %v1026_v31, 16  ;;  %v1363_v43 = vshrl.u32 %v1026_v31, 16  ;;  %v1352_v48 = vrot.slane %v1350_v19, 4  ;;  %v1540_v51 = vld [vmem:[#allocation2 + $0x9c] sm:$0xe]  ;;  %11696 = vmatprep.subr.bf16.mxu1 %v12552_v46 }
 0x111   : > { %4522 = vmatmul.mubr.bf16.gmra.mrb[44].mxu0 %v12535_v63  ;;  %v1338_v38 = vsel %vm13121_vm8, %v1333_v29, %v1337_v15  ;;  %v1690_v47 = vsel %vm13145_vm13, %v1688_v14, %v1689_v30  ;;  %v1369_v50 = vshll.u32 %v1027_v32, 16  ;;  %v1355_v54 = vrot.slane %v1353_v39, 5  ;;  %v1541_v55 = vld [vmem:[#allocation2 + $0xa0] sm:$0xf]  ;;  %v1542_v56 = vld [vmem:[#allocation2 + $0xa4] sm:$0x1] }
 0x112   : > { %v1348_v45 = vsel %vm13121_vm8, %v1343_v2, %v1347_v18  ;;  %v10779_v53 = vcombine.low %v1687_v36, %v1690_v47  ;;  %v1361_v27 = vrot.slane %v1359_v40, 5  ;;  %v1365_v58 = vrot.slane %v1363_v43, 4  ;;  %v1028_v3 = vld [vmem:[#allocation2 + $0xa8] sm:$0xf]  ;;  %v12554_v16 = vld [vmem:[#allocation7 + $0x1a8] sm:$0xff]   ;;  %v304_v22 = vld [vmem:[%s13107_s30 + $0xf8] sm:$0xff] }
 0x113   : > { %v10747_v52 = vcombine.low %v1338_v38, %v1348_v45  ;;  %v1371_v62 = vrot.slane %v1369_v50, 5  ;;  %v637_v63 = vshll.u32 %v13442_v28, 16  ;;  %v641_v1 = vrot.slane %v636_v23, 4  ;;  %v303_v15 = vld [vmem:[%s13107_s30 + $0xf0] sm:$0xff]  ;;  %v828_v61 = vld [vmem:[#allocation2 + $0xb4] sm:$0xf]  ;;  %11697 = vmatpush3.bf16.msra.mxu1 %v12554_v16 }
 0x114   : > { %v1356_v4 = vor.u32 %v1355_v54, %v1352_v48  ;;  %v10764_v6 = vrot.slane %v1540_v51, 9  ;;  %v1693_v42 = vrot.slane %v1541_v55, 5  ;;  %v1696_v7 = vrot.slane %v1542_v56, 5  ;;  %v12543_v32 = vld [vmem:[#allocation2 + $0x9c] sm:$0xff]   ;;  %v1543_v14 = vld [vmem:[#allocation2 + $0xa8] sm:$0xe] }
 0x115   : > { %4529 = vmatprep.mubr.bf16.mxu0 %v10747_v52  ;;  %4691 = vmatmul.mubr.bf16.gmra.mrb[48].mxu1 %v10779_v53  ;;  %v1366_v21 = vor.u32 %v1365_v58, %v1361_v27  ;;  %v639_v9 = vor.u32 %v637_v63, %v636_v23  ;;  %v826_v10 = vsel %vm13139_vm12, %v641_v1, %v825_v44  ;;  %v1374_v11 = vshrl.u32 %v1028_v3, 16  ;;  %v12556_v23 = vld [vmem:[#allocation7 + $0x1f0] sm:$0xff]   ;;  %v832_v19 = vld [vmem:[#allocation2 + $0xbc] sm:$0x1] }
 0x116   : > { %v1357_v12 = vrot.slane %v1356_v4, 4  ;;  %v1695_v8 = vrot.slane %v1693_v42, 4  ;;  %827 = vst [vmem:[#allocation2 + $0xb0] sm:$0x1] %v826_v10  ;;  %v1377_v28 = vshll.u32 %v1028_v3, 16  ;;  %v643_v20 = vshrl.u32 %v13461_v33, 16  ;;  %11698 = vmatprep.subr.bf16.mxu1 %v12556_v23 }
 0x117   : > { %v1367_v59 = vrot.slane %v1366_v21, 4  ;;  %v640_v17 = vsel %vm13127_vm10, %v632_v37, %v639_v9  ;;  %v1376_v18 = vrot.slane %v1374_v11, 4  ;;  %v1694_v35 = vsel %vm13145_vm13, %v10764_v6, %v1693_v42  ;;  %v12557_v46 = vld [vmem:[#allocation7 + $0x1b0] sm:$0xff]   ;;  %v12558_v11 = vld [vmem:[#allocation7 + $0x1f8] sm:$0xff]  }
 0x118   : > { %v1362_v26 = vsel %vm13121_vm8, %v1357_v12, %v1361_v27  ;;  %824 = vst [vmem:[#allocation2 + $0xac] sm:$0xf] %v640_v17  ;;  %v1379_v25 = vrot.slane %v1377_v28, 5  ;;  %v646_v60 = vshll.u32 %v13461_v33, 16  ;;  %v1697_v37 = vsel %vm13145_vm13, %v1695_v8, %v1696_v7  ;;  %v835_v27 = vld [vmem:[#allocation2 + $0xc0] sm:$0xf]  ;;  %11699 = vmatpush3.bf16.msra.mxu1 %v12557_v46 }
 0x119   : > { %4530 = vmatmul.mubr.bf16.gmra.mrb[48].mxu0 %v12537_v41  ;;  %v1372_v24 = vsel %vm13121_vm8, %v1367_v59, %v1371_v62  ;;  %v645_v29 = vrot.slane %v643_v20, 7  ;;  %v651_v30 = vshrl.u32 %v13463_v34, 16  ;;  %v654_v36 = vshll.u32 %v13463_v34, 16  ;;  %11700 = vmatprep.subr.bf16.mxu1 %v12558_v11  ;;  %v13507_v17 = vld [vmem:[#allocation7 + $0x200] sm:$0xff]  }
 0x11a   : > { %v10748_v31 = vcombine.low %v1362_v26, %v1372_v24  ;;  %v1380_v2 = vor.u32 %v1379_v25, %v1376_v18  ;;  %v11315_v40 = vpack.c.bf16 %v303_v15, %v303_v15  ;;  %v10780_v43 = vcombine.low %v1694_v35, %v1697_v37  ;;  %v12559_v15 = vld [vmem:[#allocation7 + $0x1b8] sm:$0xff]   ;;  %12294 = vmatprep.subr.bf16.mxu0 %v13507_v17 }
 0x11b   : > { %v648_v33 = vor.u32 %v646_v60, %v645_v29  ;;  %v649_v38 = vrot.slane %v645_v29, 4  ;;  %v653_v39 = vrot.slane %v651_v30, 7  ;;  %v11316_v44 = vpack.c.bf16 %v304_v22, %v304_v22  ;;  %v2448_v30 = vld [vmem:[#allocation2 + $0xc] sm:$0xe] }
 0x11c   : > { %4537 = vmatprep.mubr.bf16.mxu0 %v10748_v31  ;;  %v660_v51 = vshrl.u32 %v11315_v40, 16  ;;  %v13496_v52 = vrot.slane %v1380_v2, 4  ;;  %v10765_v34 = vrot.slane %v1543_v14, 9  ;;  %v663_v53 = vshll.u32 %v11315_v40, 16  ;;  %11701 = vmatpush3.bf16.msra.mxu1 %v12559_v15  ;;  %v2449_v14 = vld [vmem:[#allocation2 + $0x10] sm:$0xf] }
 0x11d   : > { %v1030_v45 = vld [vmem:[#allocation2 + $0xb0] sm:$0x1]  ;;  %v656_v41 = vor.u32 %v654_v36, %v653_v39  ;;  %v658_v47 = vrot.slane %v653_v39, 4  ;;  %v829_v48 = vsel %vm13133_vm11, %v648_v33, %v828_v61  ;;  %v668_v54 = vshrl.u32 %v11316_v44, 16 }
 0x11e   : > { %v1545_v50 = vld [vmem:[#allocation2 + $0xb0] sm:$0x1]  ;;  %830 = vst [vmem:[#allocation2 + $0xb4] sm:$0xf] %v829_v48  ;;  %v662_v63 = vrot.slane %v660_v51, 7  ;;  %v1393_v4 = vshll.u32 %v1030_v45, 16 }
 0x11f   : > { %v12542_v55 = vld [vmem:[#allocation2 + $0xa8] sm:$0xff]   ;;  %v657_v58 = vsel %vm13127_vm10, %v649_v38, %v656_v41  ;;  %v833_v62 = vsel %vm13139_vm12, %v658_v47, %v832_v19  ;;  %v1703_v6 = vrot.slane %v1545_v50, 5  ;;  %v13502_v9 = vrot.slane %v668_v54, 7  ;;  %v2919_v0 = vld [vmem:[#allocation2 + $0xb0] sm:$0x1] }
 0x120   : > { %v1029_v56 = vld [vmem:[#allocation2 + $0xac] sm:$0xf]  ;;  %831 = vst [vmem:[#allocation2 + $0xb8] sm:$0xf] %v657_v58  ;;  %834 = vst [vmem:[#allocation2 + $0xbc] sm:$0x1] %v833_v62  ;;  %4698 = vmatprep.mubr.bf16.mxu1 %v12542_v55  ;;  %v665_v7 = vor.u32 %v663_v53, %v662_v63 }
 0x121   : > { %4538 = vmatmul.mubr.bf16.gmra.mrb[52].mxu0 %v12543_v32  ;;  %v1383_v1 = vshll.u32 %v1029_v56, 16  ;;  %v1387_v3 = vshrl.u32 %v1029_v56, 16  ;;  %v1544_v42 = vld [vmem:[#allocation2 + $0xac] sm:$0xf]  ;;  %v666_v21 = vrot.slane %v662_v63, 4  ;;  %v671_v10 = vshll.u32 %v11316_v44, 16  ;;  %4699 = vmatmul.mubr.bf16.gmra.mrb[52].mxu1 %v10780_v43 }
 0x122   : > { %v1700_v28 = vrot.slane %v1544_v42, 5  ;;  %v836_v59 = vsel %vm13133_vm11, %v665_v7, %v835_v27  ;;  %v1395_v20 = vrot.slane %v1393_v4, 5  ;;  %v12547_v33 = vld [vmem:[#allocation2 + $0xa8] sm:$0xff]   ;;  %v10815_v27 = vrot.slane %v2448_v30, 9  ;;  %v2882_v30 = vld [vmem:[#allocation2 + $0x1c] sm:$0xf] }
 0x123   : > { %v1385_v12 = vrot.slane %v1383_v1, 5  ;;  %v1389_v8 = vrot.slane %v1387_v3, 4  ;;  %v673_v16 = vor.u32 %v671_v10, %v13502_v9  ;;  %837 = vst [vmem:[#allocation2 + $0xc0] sm:$0xf] %v836_v59  ;;  %v2546_v62 = vrot.slane %v2449_v14, 5 }
 0x124   : > { %v1701_v22 = vsel %vm13145_vm13, %v10765_v34, %v1700_v28  ;;  %v1702_v23 = vrot.slane %v1700_v28, 4  ;;  %v1937_v10 = vld [vmem:[#allocation2 + $0x10] sm:$0xf]  ;;  %v2939_v14 = vshll.u32 %v2882_v30, 16 }
 0x125   : > { %v1390_v18 = vor.u32 %v1389_v8, %v1385_v12  ;;  %v1386_v26 = vsel %vm13121_vm8, %v13496_v52, %v1385_v12  ;;  %v1031_v35 = vld [vmem:[#allocation2 + $0xb4] sm:$0xf]  ;;  %v674_v25 = vsel %vm13127_vm10, %v666_v21, %v673_v16  ;;  %v2547_v42 = vsel %vm13145_vm13, %v10815_v27, %v2546_v62  ;;  %v1936_v21 = vld [vmem:[#allocation2 + $0xc] sm:$0xf]  ;;  %v1939_v27 = vld [vmem:[#allocation2 + $0x18] sm:$0xf] }
 0x126   : > { %v1704_v61 = vsel %vm13145_vm13, %v1702_v23, %v1703_v6  ;;  %v1398_v24 = vshrl.u32 %v1031_v35, 16  ;;  %v1401_v37 = vshll.u32 %v1031_v35, 16  ;;  %838 = vst [vmem:[#allocation2 + $0xc4] sm:$0xf] %v674_v25  ;;  %v1546_v29 = vld [vmem:[#allocation2 + $0xb4] sm:$0xe] }
 0x127   : > { %v1391_v60 = vrot.slane %v1390_v18, 4  ;;  %v12545_v31 = vld [vmem:[#allocation2 + $0xb4] sm:$0xff]   ;;  %v10781_v32 = vcombine.low %v1701_v22, %v1704_v61  ;;  %v10766_v36 = vrot.slane %v1546_v29, 9  ;;  %v1033_v38 = vld [vmem:[#allocation2 + $0xbc] sm:$0x1]  ;;  %v2548_v7 = vrot.slane %v2546_v62, 4 }
 0x128   : > { %v1032_v2 = vld [vmem:[#allocation2 + $0xb8] sm:$0xf]  ;;  %v1400_v39 = vrot.slane %v1398_v24, 4  ;;  %v1403_v40 = vrot.slane %v1401_v37, 5  ;;  %4706 = vmatprep.mubr.bf16.mxu1 %v12545_v31  ;;  %v1417_v45 = vshll.u32 %v1033_v38, 16  ;;  %v1985_v28 = vshrl.u32 %v1936_v21, 16 }
 0x129   : > { %v1396_v19 = vsel %vm13121_vm8, %v1391_v60, %v1395_v20  ;;  %v1407_v43 = vshll.u32 %v1032_v2, 16  ;;  %v1411_v46 = vshrl.u32 %v1032_v2, 16  ;;  %v1547_v41 = vld [vmem:[#allocation2 + $0xb8] sm:$0xf]  ;;  %4707 = vmatmul.mubr.bf16.gmra.mrb[56].mxu1 %v10781_v32  ;;  %v1548_v50 = vld [vmem:[#allocation2 + $0xbc] sm:$0x1] }
 0x12a   : > { %v10749_v44 = vcombine.low %v1386_v26, %v1396_v19  ;;  %v1404_v47 = vor.u32 %v1403_v40, %v1400_v39  ;;  %v1707_v51 = vrot.slane %v1547_v41, 5  ;;  %v2450_v52 = vld [vmem:[#allocation2 + $0x14] sm:$0x1]  ;;  %v1419_v53 = vrot.slane %v1417_v45, 5  ;;  %v2881_v60 = vld [vmem:[#allocation2 + $0x18] sm:$0xf] }
 0x12b   : > { %v1409_v48 = vrot.slane %v1407_v43, 5  ;;  %v1413_v34 = vrot.slane %v1411_v46, 4  ;;  %v1710_v54 = vrot.slane %v1548_v50, 5  ;;  %v2549_v3 = vrot.slane %v2450_v52, 5  ;;  %v1938_v8 = vld [vmem:[#allocation2 + $0x14] sm:$0x1] }
 0x12c   : > { %4545 = vmatprep.mubr.bf16.mxu0 %v10749_v44  ;;  %v1405_v55 = vrot.slane %v1404_v47, 4  ;;  %v1708_v56 = vsel %vm13145_vm13, %v10766_v36, %v1707_v51  ;;  %v1709_v58 = vrot.slane %v1707_v51, 4  ;;  %v1988_v15 = vshll.u32 %v1936_v21, 16  ;;  %v12555_v16 = vld [vmem:[#allocation2 + $0xb4] sm:$0xff]   ;;  %v2883_v32 = vld [vmem:[#allocation2 + $0x20] sm:$0x1] }
 0x12d   : > { %4546 = vmatmul.mubr.bf16.gmra.mrb[56].mxu0 %v12547_v33  ;;  %v1414_v63 = vor.u32 %v1413_v34, %v1409_v48  ;;  %v12553_v1 = vld [vmem:[#allocation2 + $0xc0] sm:$0xff]   ;;  %v2550_v59 = vsel %vm13145_vm13, %v2548_v7, %v2549_v3  ;;  %v1994_v18 = vshll.u32 %v1937_v10, 16  ;;  %v1998_v20 = vshrl.u32 %v1937_v10, 16  ;;  %v2451_v46 = vld [vmem:[#allocation2 + $0x18] sm:$0xe] }
 0x12e   : > { %v1410_v4 = vsel %vm13121_vm8, %v1405_v55, %v1409_v48  ;;  %v1711_v6 = vsel %vm13145_vm13, %v1709_v58, %v1710_v54  ;;  %4714 = vmatprep.mubr.bf16.mxu1 %v12553_v1  ;;  %v2004_v22 = vshll.u32 %v1938_v8, 16  ;;  %v10831_v26 = vcombine.low %v2547_v42, %v2550_v59  ;;  %v2452_v48 = vld [vmem:[#allocation2 + $0x1c] sm:$0xf]  ;;  %v2884_v7 = vld [vmem:[#allocation2 + $0x24] sm:$0xf] }
 0x12f   : > { %v1415_v11 = vrot.slane %v1414_v63, 4  ;;  %v10782_v12 = vcombine.low %v1708_v56, %v1711_v6  ;;  %v1987_v35 = vrot.slane %v1985_v28, 4  ;;  %v1990_v25 = vrot.slane %v1988_v15, 5  ;;  %v1940_v62 = vld [vmem:[#allocation2 + $0x1c] sm:$0xf]  ;;  %v12563_v21 = vld [vmem:[#allocation7 + $0x208] sm:$0xff]  }
 0x130   : > { %v1996_v24 = vrot.slane %v1994_v18, 5  ;;  %v2000_v37 = vrot.slane %v1998_v20, 4  ;;  %v2006_v29 = vrot.slane %v2004_v22, 5  ;;  %v2930_v2 = vshrl.u32 %v2881_v60, 16  ;;  %v1941_v63 = vld [vmem:[#allocation2 + $0x20] sm:$0x1] }
 0x131   : > { %v1420_v23 = vsel %vm13121_vm8, %v1415_v11, %v1419_v53  ;;  %4715 = vmatmul.mubr.bf16.gmra.mrb[60].mxu1 %v10782_v12  ;;  %v1991_v31 = vor.u32 %v1990_v25, %v1987_v35  ;;  %v2933_v36 = vshll.u32 %v2881_v60, 16  ;;  %v2943_v33 = vshrl.u32 %v2882_v30, 16  ;;  %v2453_v53 = vld [vmem:[#allocation2 + $0x20] sm:$0x1]  ;;  %v12561_v11 = vld [vmem:[#allocation2 + $0x18] sm:$0xff]  }
 0x132   : > { %v10750_v61 = vcombine.low %v1410_v4, %v1420_v23  ;;  %v2001_v19 = vor.u32 %v2000_v37, %v1996_v24  ;;  %v2949_v38 = vshll.u32 %v2883_v32, 16  ;;  %v2932_v40 = vrot.slane %v2930_v2, 4  ;;  %v2885_v15 = vld [vmem:[#allocation2 + $0x28] sm:$0xf]  ;;  %v2886_v25 = vld [vmem:[#allocation2 + $0x2c] sm:$0x1] }
 0x133   : > { %v1992_v39 = vrot.slane %v1991_v31, 4  ;;  %v2935_v43 = vrot.slane %v2933_v36, 5  ;;  %v2941_v44 = vrot.slane %v2939_v14, 5  ;;  %v2945_v47 = vrot.slane %v2943_v33, 4  ;;  %v2454_v60 = vld [vmem:[#allocation2 + $0x24] sm:$0xe] }
 0x134   : > { %4553 = vmatprep.mubr.bf16.mxu0 %v10750_v61  ;;  %v2002_v41 = vrot.slane %v2001_v19, 4  ;;  %v10816_v50 = vrot.slane %v2451_v46, 9  ;;  %v2951_v34 = vrot.slane %v2949_v38, 5  ;;  %v2553_v54 = vrot.slane %v2452_v48, 5  ;;  %v2455_v30 = vld [vmem:[#allocation2 + $0x28] sm:$0xf] }
 0x135   : > { %4554 = vmatmul.mubr.bf16.gmra.mrb[60].mxu0 %v12555_v16  ;;  %v1997_v51 = vsel %vm13121_vm8, %v1992_v39, %v1996_v24  ;;  %v2936_v52 = vor.u32 %v2935_v43, %v2932_v40  ;;  %v2946_v56 = vor.u32 %v2945_v47, %v2941_v44  ;;  %v2556_v58 = vrot.slane %v2453_v53, 5  ;;  %v2456_v14 = vld [vmem:[#allocation2 + $0x2c] sm:$0x1]  ;;  %v1942_v40 = vld [vmem:[#allocation2 + $0x24] sm:$0xf] }
 0x136   : > { %4755 = vmatprep.mubr.bf16.mxu0 %v10831_v26  ;;  %v2007_v55 = vsel %vm13121_vm8, %v2002_v41, %v2006_v29  ;;  %v2009_v1 = vshrl.u32 %v1939_v27, 16  ;;  %v2554_v6 = vsel %vm13145_vm13, %v10816_v50, %v2553_v54  ;;  %v2555_v42 = vrot.slane %v2553_v54, 4  ;;  %v12566_v43 = vld [vmem:[#allocation7 + $0x210] sm:$0xff]  }
 0x137   : > { %v10799_v3 = vcombine.low %v1997_v51, %v2007_v55  ;;  %v2937_v4 = vrot.slane %v2936_v52, 4  ;;  %v2947_v10 = vrot.slane %v2946_v56, 4  ;;  %v2012_v8 = vshll.u32 %v1939_v27, 16  ;;  %v1944_v27 = vld [vmem:[#allocation2 + $0x2c] sm:$0x1] }
 0x138   : > { %v2011_v12 = vrot.slane %v2009_v1, 4  ;;  %v2018_v28 = vshll.u32 %v1940_v62, 16  ;;  %v2557_v59 = vsel %vm13145_vm13, %v2555_v42, %v2556_v58  ;;  %v2022_v18 = vshrl.u32 %v1940_v62, 16  ;;  %v2887_v1 = vld [vmem:[#allocation2 + $0x30] sm:$0xf] }
 0x139   : > { %v2942_v16 = vsel %vm13121_vm8, %v2937_v4, %v2941_v44  ;;  %v2028_v20 = vshll.u32 %v1941_v63, 16  ;;  %v2952_v22 = vsel %vm13121_vm8, %v2947_v10, %v2951_v34  ;;  %v10832_v23 = vcombine.low %v2554_v6, %v2557_v59  ;;  %v12569_v10 = vld [vmem:[#allocation7 + $0x218] sm:$0xff]  }
 0x13a   : > { %v2014_v26 = vrot.slane %v2012_v8, 5  ;;  %v2020_v35 = vrot.slane %v2018_v28, 5  ;;  %v10863_v61 = vcombine.low %v2942_v16, %v2952_v22  ;;  %v2024_v24 = vrot.slane %v2022_v18, 4  ;;  %v12562_v16 = vld [vmem:[#allocation2 + $0x24] sm:$0xff]   ;;  %v12572_v22 = vld [vmem:[#allocation7 + $0x220] sm:$0xff]  }
 0x13b   : > { %v2030_v37 = vrot.slane %v2028_v20, 5  ;;  %v2954_v29 = vshrl.u32 %v2884_v7, 16  ;;  %v2957_v32 = vshll.u32 %v2884_v7, 16  ;;  %v2963_v2 = vshll.u32 %v2885_v15, 16  ;;  %v2889_v20 = vld [vmem:[#allocation2 + $0x38] sm:$0x1] }
 0x13c   : > { %v2015_v31 = vor.u32 %v2014_v26, %v2011_v12  ;;  %v2967_v36 = vshrl.u32 %v2885_v15, 16  ;;  %4916 = vmatprep.mubr.bf16.mxu1 %v10863_v61  ;;  %v2025_v19 = vor.u32 %v2024_v24, %v2020_v35  ;;  %v2973_v38 = vshll.u32 %v2886_v25, 16  ;;  %v2458_v61 = vld [vmem:[#allocation2 + $0x34] sm:$0xf] }
 0x13d   : > { %4756 = vmatmul.mubr.bf16.vlgmr.msra.gmra.mrb[64].mxu0 %v10799_v3  ;;  %v2956_v33 = vrot.slane %v2954_v29, 4  ;;  %v10817_v39 = vrot.slane %v2454_v60, 9  ;;  %4917 = vmatmul.mubr.bf16.vlgmr.msra.gmra.mrb[64].mxu1 %v12561_v11  ;;  %v2959_v46 = vrot.slane %v2957_v32, 5  ;;  %v2965_v41 = vrot.slane %v2963_v2, 5  ;;  %v2888_v3 = vld [vmem:[#allocation2 + $0x34] sm:$0xf] }
 0x13e   : > { %12295 = vmatpush3.bf16.msra.mxu0 %v13507_v17  ;;  %4763 = vmatprep.mubr.bf16.mxu0 %v10832_v23  ;;  %v2016_v44 = vrot.slane %v2015_v31, 4  ;;  %v2969_v47 = vrot.slane %v2967_v36, 4  ;;  %v1943_v17 = vld [vmem:[#allocation2 + $0x28] sm:$0xf]  ;;  %v2026_v48 = vrot.slane %v2025_v19, 4  ;;  %v2975_v50 = vrot.slane %v2973_v38, 5 }
 0x13f   : > { %12296 = vmatprep.subr.bf16.mxu0 %v12563_v21  ;;  %v2560_v51 = vrot.slane %v2455_v30, 5  ;;  %v2563_v52 = vrot.slane %v2456_v14, 5  ;;  %v2960_v53 = vor.u32 %v2959_v46, %v2956_v33  ;;  %v2033_v55 = vshrl.u32 %v1942_v40, 16  ;;  %v2457_v60 = vld [vmem:[#allocation2 + $0x30] sm:$0xe] }
 0x140   : > { %v2021_v34 = vsel %vm13121_vm8, %v2016_v44, %v2020_v35  ;;  %v2970_v54 = vor.u32 %v2969_v47, %v2965_v41  ;;  %v2031_v56 = vsel %vm13121_vm8, %v2026_v48, %v2030_v37  ;;  %v2036_v63 = vshll.u32 %v1942_v40, 16  ;;  %v2459_v31 = vld [vmem:[#allocation2 + $0x38] sm:$0x1]  ;;  %v1945_v19 = vld [vmem:[#allocation2 + $0x30] sm:$0xf] }
 0x141   : > { %v2561_v58 = vsel %vm13145_vm13, %v10817_v39, %v2560_v51  ;;  %v2562_v62 = vrot.slane %v2560_v51, 4  ;;  %v10800_v4 = vcombine.low %v2021_v34, %v2031_v56  ;;  %v2961_v6 = vrot.slane %v2960_v53, 4  ;;  %v1946_v44 = vld [vmem:[#allocation2 + $0x34] sm:$0xf]  ;;  %v1947_v51 = vld [vmem:[#allocation2 + $0x38] sm:$0x1] }
 0x142   : > { %12297 = vmatpush3.bf16.msra.mxu0 %v12563_v21  ;;  %v2971_v42 = vrot.slane %v2970_v54, 4  ;;  %v2035_v7 = vrot.slane %v2033_v55, 4  ;;  %v2038_v21 = vrot.slane %v2036_v63, 5  ;;  %v2042_v12 = vshll.u32 %v1943_v17, 16  ;;  %v12575_v34 = vld [vmem:[#allocation7 + $0x228] sm:$0xff]  }
 0x143   : > { %12298 = vmatprep.subr.bf16.mxu0 %v12566_v43  ;;  %v2564_v11 = vsel %vm13145_vm13, %v2562_v62, %v2563_v52  ;;  %v2046_v8 = vshrl.u32 %v1943_v17, 16  ;;  %v2966_v28 = vsel %vm13121_vm8, %v2961_v6, %v2965_v41  ;;  %v2052_v18 = vshll.u32 %v1944_v27, 16 }
 0x144   : > { %v2976_v15 = vsel %vm13121_vm8, %v2971_v42, %v2975_v50  ;;  %v10833_v59 = vcombine.low %v2561_v58, %v2564_v11  ;;  %v2039_v26 = vor.u32 %v2038_v21, %v2035_v7  ;;  %v2044_v35 = vrot.slane %v2042_v12, 5 }
 0x145   : > { %4764 = vmatmul.mubr.bf16.gmra.mrb[68].mxu0 %v10800_v4  ;;  %v10864_v23 = vcombine.low %v2966_v28, %v2976_v15  ;;  %v2048_v25 = vrot.slane %v2046_v8, 4  ;;  %v2054_v24 = vrot.slane %v2052_v18, 5  ;;  %v2978_v37 = vshrl.u32 %v2887_v1, 16  ;;  %v2892_v28 = vld [vmem:[#allocation2 + $0x44] sm:$0x1] }
 0x146   : > { %12299 = vmatpush3.bf16.msra.mxu0 %v12566_v43  ;;  %4771 = vmatprep.mubr.bf16.mxu0 %v10833_v59  ;;  %v2981_v29 = vshll.u32 %v2887_v1, 16  ;;  %v2987_v30 = vshll.u32 %v2888_v3, 16  ;;  %v2040_v32 = vrot.slane %v2039_v26, 4  ;;  %v2991_v36 = vshrl.u32 %v2888_v3, 16  ;;  %v2890_v1 = vld [vmem:[#allocation2 + $0x3c] sm:$0xf] }
 0x147   : > { %12300 = vmatprep.subr.bf16.mxu0 %v12569_v10  ;;  %4924 = vmatprep.mubr.bf16.mxu1 %v10864_v23  ;;  %v2049_v2 = vor.u32 %v2048_v25, %v2044_v35  ;;  %v2997_v14 = vshll.u32 %v2889_v20, 16  ;;  %v2980_v33 = vrot.slane %v2978_v37, 4  ;;  %v10818_v40 = vrot.slane %v2457_v60, 9  ;;  %v2891_v3 = vld [vmem:[#allocation2 + $0x40] sm:$0xf]  ;;  %v12564_v59 = vld [vmem:[#allocation2 + $0x30] sm:$0xff]  }
 0x148   : > { %4925 = vmatmul.mubr.bf16.gmra.mrb[68].mxu1 %v12562_v16  ;;  %v2983_v38 = vrot.slane %v2981_v29, 5  ;;  %v2989_v39 = vrot.slane %v2987_v30, 5  ;;  %v2045_v43 = vsel %vm13121_vm8, %v2040_v32, %v2044_v35  ;;  %v2993_v41 = vrot.slane %v2991_v36, 4  ;;  %v2460_v15 = vld [vmem:[#allocation2 + $0x3c] sm:$0xe] }
 0x149   : > { %v2050_v46 = vrot.slane %v2049_v2, 4  ;;  %v2999_v47 = vrot.slane %v2997_v14, 5  ;;  %v2567_v48 = vrot.slane %v2458_v61, 5  ;;  %v2570_v50 = vrot.slane %v2459_v31, 5  ;;  %v2461_v23 = vld [vmem:[#allocation2 + $0x40] sm:$0xf] }
 0x14a   : > { %12301 = vmatpush3.bf16.msra.mxu0 %v12569_v10  ;;  %v2984_v17 = vor.u32 %v2983_v38, %v2980_v33  ;;  %v2057_v52 = vshrl.u32 %v1945_v19, 16  ;;  %v2994_v54 = vor.u32 %v2993_v41, %v2989_v39  ;;  %v2060_v27 = vshll.u32 %v1945_v19, 16  ;;  %v12578_v10 = vld [vmem:[#allocation7 + $0x230] sm:$0xff]   ;;  %v2462_v30 = vld [vmem:[#allocation2 + $0x44] sm:$0x1]  ;;  %v12581_v19 = vld [vmem:[#allocation7 + $0x238] sm:$0xff]  }
 0x14b   : > { %12302 = vmatprep.subr.bf16.mxu0 %v12572_v22  ;;  %v2055_v53 = vsel %vm13121_vm8, %v2050_v46, %v2054_v24  ;;  %v2066_v55 = vshll.u32 %v1946_v44, 16  ;;  %v2568_v62 = vsel %vm13145_vm13, %v10818_v40, %v2567_v48  ;;  %v2569_v63 = vrot.slane %v2567_v48, 4  ;;  %v1948_v14 = vld [vmem:[#allocation2 + $0x3c] sm:$0xf] }
 0x14c   : > { %v10801_v56 = vcombine.low %v2045_v43, %v2055_v53  ;;  %v2985_v58 = vrot.slane %v2984_v17, 4  ;;  %v2995_v4 = vrot.slane %v2994_v54, 4  ;;  %v2059_v6 = vrot.slane %v2057_v52, 4 }
 0x14d   : > { %v2062_v42 = vrot.slane %v2060_v27, 5  ;;  %v2068_v7 = vrot.slane %v2066_v55, 5  ;;  %v2571_v21 = vsel %vm13145_vm13, %v2569_v63, %v2570_v50  ;;  %v2070_v12 = vshrl.u32 %v1946_v44, 16  ;;  %v1949_v44 = vld [vmem:[#allocation2 + $0x40] sm:$0xf] }
 0x14e   : > { %12303 = vmatpush3.bf16.msra.mxu0 %v12572_v22  ;;  %v2990_v11 = vsel %vm13121_vm8, %v2985_v58, %v2989_v39  ;;  %v2076_v8 = vshll.u32 %v1947_v51, 16  ;;  %v3000_v16 = vsel %vm13121_vm8, %v2995_v4, %v2999_v47  ;;  %v10834_v18 = vcombine.low %v2568_v62, %v2571_v21  ;;  %v1950_v51 = vld [vmem:[#allocation2 + $0x44] sm:$0x1]  ;;  %v2893_v55 = vld [vmem:[#allocation2 + $0x48] sm:$0xf] }
 0x14f   : > { %4772 = vmatmul.mubr.bf16.gmra.mrb[72].mxu0 %v10801_v56  ;;  %12304 = vmatprep.subr.bf16.mxu0 %v12575_v34  ;;  %v2063_v20 = vor.u32 %v2062_v42, %v2059_v6  ;;  %v3002_v22 = vshrl.u32 %v2890_v1, 16  ;;  %v10865_v26 = vcombine.low %v2990_v11, %v3000_v16  ;;  %v2072_v35 = vrot.slane %v2070_v12, 4  ;;  %v12565_v11 = vld [vmem:[#allocation2 + $0x3c] sm:$0xff]  }
 0x150   : > { %v2078_v25 = vrot.slane %v2076_v8, 5  ;;  %v3005_v60 = vshll.u32 %v2890_v1, 16  ;;  %4779 = vmatprep.mubr.bf16.mxu0 %v10834_v18  ;;  %v3011_v37 = vshll.u32 %v2891_v3, 16  ;;  %v3015_v29 = vshrl.u32 %v2891_v3, 16  ;;  %v2894_v1 = vld [vmem:[#allocation2 + $0x4c] sm:$0xf] }
 0x151   : > { %v2064_v61 = vrot.slane %v2063_v20, 4  ;;  %v3004_v24 = vrot.slane %v3002_v22, 4  ;;  %4932 = vmatprep.mubr.bf16.mxu1 %v10865_v26  ;;  %v2073_v31 = vor.u32 %v2072_v35, %v2068_v7  ;;  %v3021_v2 = vshll.u32 %v2892_v28, 16  ;;  %v2463_v28 = vld [vmem:[#allocation2 + $0x48] sm:$0xe] }
 0x152   : > { %12305 = vmatpush3.bf16.msra.mxu0 %v12575_v34  ;;  %v3007_v32 = vrot.slane %v3005_v60, 5  ;;  %v10819_v36 = vrot.slane %v2460_v15, 9  ;;  %4933 = vmatmul.mubr.bf16.gmra.mrb[72].mxu1 %v12564_v59  ;;  %v3013_v38 = vrot.slane %v3011_v37, 5  ;;  %v3017_v39 = vrot.slane %v3015_v29, 4  ;;  %v2464_v20 = vld [vmem:[#allocation2 + $0x4c] sm:$0xf] }
 0x153   : > { %12306 = vmatprep.subr.bf16.mxu0 %v12578_v10  ;;  %v2069_v33 = vsel %vm13121_vm8, %v2064_v61, %v2068_v7  ;;  %v2574_v40 = vrot.slane %v2461_v23, 5  ;;  %v2074_v43 = vrot.slane %v2073_v31, 4  ;;  %v3023_v41 = vrot.slane %v3021_v2, 5  ;;  %v2895_v7 = vld [vmem:[#allocation2 + $0x50] sm:$0x1] }
 0x154   : > { %v3008_v46 = vor.u32 %v3007_v32, %v3004_v24  ;;  %v2577_v47 = vrot.slane %v2462_v30, 5  ;;  %v3018_v17 = vor.u32 %v3017_v39, %v3013_v38  ;;  %v2081_v52 = vshrl.u32 %v1948_v14, 16  ;;  %v2465_v22 = vld [vmem:[#allocation2 + $0x50] sm:$0x1]  ;;  %v1951_v60 = vld [vmem:[#allocation2 + $0x48] sm:$0xf] }
 0x155   : > { %v2575_v48 = vsel %vm13145_vm13, %v10819_v36, %v2574_v40  ;;  %v2576_v50 = vrot.slane %v2574_v40, 4  ;;  %v2079_v34 = vsel %vm13121_vm8, %v2074_v43, %v2078_v25  ;;  %v2084_v54 = vshll.u32 %v1948_v14, 16  ;;  %v1952_v36 = vld [vmem:[#allocation2 + $0x4c] sm:$0xf] }
 0x156   : > { %12307 = vmatpush3.bf16.msra.mxu0 %v12578_v10  ;;  %v3009_v53 = vrot.slane %v3008_v46, 4  ;;  %v2090_v27 = vshll.u32 %v1949_v44, 16  ;;  %v10802_v56 = vcombine.low %v2069_v33, %v2079_v34  ;;  %v3019_v58 = vrot.slane %v3018_v17, 4  ;;  %v1953_v46 = vld [vmem:[#allocation2 + $0x50] sm:$0x1] }
 0x157   : > { %12308 = vmatprep.subr.bf16.mxu0 %v12581_v19  ;;  %v2578_v62 = vsel %vm13145_vm13, %v2576_v50, %v2577_v47  ;;  %v2083_v63 = vrot.slane %v2081_v52, 4  ;;  %v2086_v6 = vrot.slane %v2084_v54, 5  ;;  %v2094_v21 = vshrl.u32 %v1949_v44, 16  ;;  %v2896_v50 = vld [vmem:[#allocation2 + $0x54] sm:$0xf] }
 0x158   : > { %v3014_v3 = vsel %vm13121_vm8, %v3009_v53, %v3013_v38  ;;  %v10835_v4 = vcombine.low %v2575_v48, %v2578_v62  ;;  %v2092_v42 = vrot.slane %v2090_v27, 5  ;;  %4780 = vmatmul.mubr.bf16.gmra.mrb[76].mxu0 %v10802_v56  ;;  %v3024_v10 = vsel %vm13121_vm8, %v3019_v58, %v3023_v41  ;;  %v2897_v58 = vld [vmem:[#allocation2 + $0x58] sm:$0xf]  ;;  %v2898_v62 = vld [vmem:[#allocation2 + $0x5c] sm:$0x1] }
 0x159   : > { %v2100_v12 = vshll.u32 %v1950_v51, 16  ;;  %v3026_v8 = vshrl.u32 %v2893_v55, 16  ;;  %v10866_v15 = vcombine.low %v3014_v3, %v3024_v10  ;;  %v2087_v16 = vor.u32 %v2086_v6, %v2083_v63 }
 0x15a   : > { %4787 = vmatprep.mubr.bf16.mxu0 %v10835_v4  ;;  %v3029_v59 = vshll.u32 %v2893_v55, 16  ;;  %v3035_v18 = vshll.u32 %v2894_v1, 16  ;;  %12309 = vmatpush3.bf16.msra.mxu0 %v12581_v19  ;;  %v2096_v23 = vrot.slane %v2094_v21, 4  ;;  %v3039_v25 = vshrl.u32 %v2894_v1, 16  ;;  %v12567_v1 = vld [vmem:[#allocation2 + $0x48] sm:$0xff]  }
 0x15b   : > { %v2102_v26 = vrot.slane %v2100_v12, 5  ;;  %v3028_v35 = vrot.slane %v3026_v8, 4  ;;  %4940 = vmatprep.mubr.bf16.mxu1 %v10866_v15  ;;  %v2088_v61 = vrot.slane %v2087_v16, 4  ;;  %v3045_v29 = vshll.u32 %v2895_v7, 16 }
 0x15c   : > { %v3031_v24 = vrot.slane %v3029_v59, 5  ;;  %v3037_v37 = vrot.slane %v3035_v18, 5  ;;  %4941 = vmatmul.mubr.bf16.gmra.mrb[76].mxu1 %v12565_v11  ;;  %v2097_v30 = vor.u32 %v2096_v23, %v2092_v42  ;;  %v3041_v31 = vrot.slane %v3039_v25, 4  ;;  %v2467_v59 = vld [vmem:[#allocation2 + $0x58] sm:$0xf] }
 0x15d   : > { %v10820_v32 = vrot.slane %v2463_v28, 9  ;;  %v2581_v2 = vrot.slane %v2464_v20, 5  ;;  %v2093_v14 = vsel %vm13121_vm8, %v2088_v61, %v2092_v42  ;;  %v3047_v33 = vrot.slane %v3045_v29, 5  ;;  %v2466_v42 = vld [vmem:[#allocation2 + $0x54] sm:$0xe] }
 0x15e   : > { %v3032_v19 = vor.u32 %v3031_v24, %v3028_v35  ;;  %v2584_v38 = vrot.slane %v2465_v22, 5  ;;  %v2098_v39 = vrot.slane %v2097_v30, 4  ;;  %v3042_v40 = vor.u32 %v3041_v31, %v3037_v37  ;;  %v1954_v24 = vld [vmem:[#allocation2 + $0x54] sm:$0xf] }
 0x15f   : > { %v2582_v44 = vsel %vm13145_vm13, %v10820_v32, %v2581_v2  ;;  %v2583_v43 = vrot.slane %v2581_v2, 4  ;;  %v2105_v47 = vshrl.u32 %v1951_v60, 16  ;;  %v2108_v17 = vshll.u32 %v1951_v60, 16  ;;  %v1955_v32 = vld [vmem:[#allocation2 + $0x58] sm:$0xf] }
 0x160   : > { %v3033_v41 = vrot.slane %v3032_v19, 4  ;;  %v2114_v48 = vshll.u32 %v1952_v36, 16  ;;  %v2103_v51 = vsel %vm13121_vm8, %v2098_v39, %v2102_v26  ;;  %v3043_v52 = vrot.slane %v3042_v40, 4  ;;  %v2468_v26 = vld [vmem:[#allocation2 + $0x5c] sm:$0x1] }
 0x161   : > { %v2585_v34 = vsel %vm13145_vm13, %v2583_v43, %v2584_v38  ;;  %v2118_v53 = vshrl.u32 %v1952_v36, 16  ;;  %v10803_v54 = vcombine.low %v2093_v14, %v2103_v51  ;;  %v2107_v56 = vrot.slane %v2105_v47, 4  ;;  %v1956_v38 = vld [vmem:[#allocation2 + $0x5c] sm:$0x1] }
 0x162   : > { %v3038_v27 = vsel %vm13121_vm8, %v3033_v41, %v3037_v37  ;;  %v10836_v55 = vcombine.low %v2582_v44, %v2585_v34  ;;  %v3048_v63 = vsel %vm13121_vm8, %v3043_v52, %v3047_v33  ;;  %v2110_v3 = vrot.slane %v2108_v17, 5  ;;  %v2899_v41 = vld [vmem:[#allocation2 + $0x60] sm:$0xf]  ;;  %v12568_v17 = vld [vmem:[#allocation2 + $0x54] sm:$0xff]   ;;  %v2900_v52 = vld [vmem:[#allocation2 + $0x64] sm:$0xf] }
 0x163   : > { %v2116_v4 = vrot.slane %v2114_v48, 5  ;;  %v2120_v6 = vrot.slane %v2118_v53, 4  ;;  %4788 = vmatmul.mubr.bf16.gmra.mrb[80].mxu0 %v10803_v54  ;;  %v10867_v7 = vcombine.low %v3038_v27, %v3048_v63  ;;  %v2124_v10 = vshll.u32 %v1953_v46, 16  ;;  %v2901_v63 = vld [vmem:[#allocation2 + $0x68] sm:$0x1] }
 0x164   : > { %v3050_v11 = vshrl.u32 %v2896_v50, 16  ;;  %v3053_v21 = vshll.u32 %v2896_v50, 16  ;;  %4795 = vmatprep.mubr.bf16.mxu0 %v10836_v55  ;;  %v2111_v8 = vor.u32 %v2110_v3, %v2107_v56  ;;  %v3059_v15 = vshll.u32 %v2897_v58, 16 }
 0x165   : > { %v2121_v28 = vor.u32 %v2120_v6, %v2116_v4  ;;  %v3063_v16 = vshrl.u32 %v2897_v58, 16  ;;  %4948 = vmatprep.mubr.bf16.mxu1 %v10867_v7  ;;  %v2126_v18 = vrot.slane %v2124_v10, 5  ;;  %v3069_v23 = vshll.u32 %v2898_v62, 16  ;;  %v2470_v7 = vld [vmem:[#allocation2 + $0x64] sm:$0xf] }
 0x166   : > { %v3052_v20 = vrot.slane %v3050_v11, 4  ;;  %v3055_v22 = vrot.slane %v3053_v21, 5  ;;  %4949 = vmatmul.mubr.bf16.gmra.mrb[80].mxu1 %v12567_v1  ;;  %v2112_v35 = vrot.slane %v2111_v8, 4  ;;  %v3061_v60 = vrot.slane %v3059_v15, 5  ;;  %v2469_v1 = vld [vmem:[#allocation2 + $0x60] sm:$0xe] }
 0x167   : > { %v2122_v25 = vrot.slane %v2121_v28, 4  ;;  %v3065_v61 = vrot.slane %v3063_v16, 4  ;;  %v3071_v29 = vrot.slane %v3069_v23, 5  ;;  %v10821_v30 = vrot.slane %v2466_v42, 9  ;;  %v2471_v15 = vld [vmem:[#allocation2 + $0x68] sm:$0x1] }
 0x168   : > { %v13595_v12 = vpop.f32.mrb[0].mxu0  ;;  %v3056_v37 = vor.u32 %v3055_v22, %v3052_v20  ;;  %v2588_v31 = vrot.slane %v2467_v59, 5  ;;  %v2117_v36 = vsel %vm13121_vm8, %v2112_v35, %v2116_v4  ;;  %v2591_v33 = vrot.slane %v2468_v26, 5  ;;  %v1957_v23 = vld [vmem:[#allocation2 + $0x60] sm:$0xf] }
 0x169   : > { %v13597_v2 = vpop.f32.mrb[1].mxu0  ;;  %v2127_v14 = vsel %vm13121_vm8, %v2122_v25, %v2126_v18  ;;  %v3066_v19 = vor.u32 %v3065_v61, %v3061_v60  ;;  %v2129_v48 = vshrl.u32 %v1954_v24, 16  ;;  %v2132_v50 = vshll.u32 %v1954_v24, 16 }
 0x16a   : > { %v13603_v39 = vpop.f32.mrb[2].mxu0  ;;  %v10804_v40 = vcombine.low %v2117_v36, %v2127_v14  ;;  %v3057_v44 = vrot.slane %v3056_v37, 4  ;;  %v2589_v43 = vsel %vm13145_vm13, %v10821_v30, %v2588_v31  ;;  %v2590_v46 = vrot.slane %v2588_v31, 4  ;;  %v1958_v14 = vld [vmem:[#allocation2 + $0x64] sm:$0xf] }
 0x16b   : > { %v3067_v47 = vrot.slane %v3066_v19, 4  ;;  %v2138_v51 = vshll.u32 %v1955_v32, 16  ;;  %v2142_v54 = vshrl.u32 %v1955_v32, 16  ;;  %v2148_v27 = vshll.u32 %v1956_v38, 16 }
 0x16c   : > { %4796 = vmatmul.mubr.bf16.gmra.mrb[84].mxu0 %v10804_v40  ;;  %v3062_v34 = vsel %vm13121_vm8, %v3057_v44, %v3061_v60  ;;  %v2592_v53 = vsel %vm13145_vm13, %v2590_v46, %v2591_v33  ;;  %v2131_v58 = vrot.slane %v2129_v48, 4  ;;  %v2134_v62 = vrot.slane %v2132_v50, 5  ;;  %v2902_v46 = vld [vmem:[#allocation2 + $0x6c] sm:$0xf] }
 0x16d   : > { %v3072_v55 = vsel %vm13121_vm8, %v3067_v47, %v3071_v29  ;;  %v10837_v56 = vcombine.low %v2589_v43, %v2592_v53  ;;  %v2140_v4 = vrot.slane %v2138_v51, 5  ;;  %v2144_v6 = vrot.slane %v2142_v54, 4  ;;  %v1959_v43 = vld [vmem:[#allocation2 + $0x68] sm:$0x1] }
 0x16e   : > { %v10868_v3 = vcombine.low %v3062_v34, %v3072_v55  ;;  %v2150_v42 = vrot.slane %v2148_v27, 5  ;;  %v2135_v11 = vor.u32 %v2134_v62, %v2131_v58  ;;  %v3074_v21 = vshrl.u32 %v2899_v41, 16  ;;  %v12570_v34 = vld [vmem:[#allocation2 + $0x60] sm:$0xff]  }
 0x16f   : > { %4803 = vmatprep.mubr.bf16.mxu0 %v10837_v56  ;;  %v3077_v8 = vshll.u32 %v2899_v41, 16  ;;  %v3083_v28 = vshll.u32 %v2900_v52, 16  ;;  %v2145_v59 = vor.u32 %v2144_v6, %v2140_v4  ;;  %v3087_v18 = vshrl.u32 %v2900_v52, 16  ;;  %v13625_v41 = vpop.f32.mrb[3].mxu0 }
 0x170   : > { %v13613_v10 = vpop.f32.mrb[0].mxu1  ;;  %4956 = vmatprep.mubr.bf16.mxu1 %v10868_v3  ;;  %v3093_v20 = vshll.u32 %v2901_v63, 16  ;;  %v10822_v22 = vrot.slane %v2469_v1, 9  ;;  %v2136_v35 = vrot.slane %v2135_v11, 4  ;;  %v3076_v25 = vrot.slane %v3074_v21, 4 }
 0x171   : > { %v13615_v16 = vpop.f32.mrb[1].mxu1  ;;  %4957 = vmatmul.mubr.bf16.gmra.mrb[84].mxu1 %v12568_v17  ;;  %v3079_v60 = vrot.slane %v3077_v8, 5  ;;  %v3085_v61 = vrot.slane %v3083_v28, 5  ;;  %v2146_v24 = vrot.slane %v2145_v59, 4  ;;  %v3089_v37 = vrot.slane %v3087_v18, 4 }
 0x172   : > { %v13617_v26 = vpop.f32.mrb[2].mxu1  ;;  %v3095_v29 = vrot.slane %v3093_v20, 5  ;;  %v2595_v30 = vrot.slane %v2470_v7, 5  ;;  %v2141_v31 = vsel %vm13121_vm8, %v2136_v35, %v2140_v4  ;;  %v2598_v36 = vrot.slane %v2471_v15, 5  ;;  %v2903_v1 = vld [vmem:[#allocation2 + $0x70] sm:$0xf] }
 0x173   : > { %v3080_v32 = vor.u32 %v3079_v60, %v3076_v25  ;;  %v2153_v19 = vshrl.u32 %v1957_v23, 16  ;;  %v2151_v33 = vsel %vm13121_vm8, %v2146_v24, %v2150_v42  ;;  %v3090_v38 = vor.u32 %v3089_v37, %v3085_v61  ;;  %v13627_v51 = vpop.f32.mrb[3].mxu1  ;;  %v2904_v3 = vld [vmem:[#allocation2 + $0x74] sm:$0x1]  ;;  %v2472_v11 = vld [vmem:[#allocation2 + $0x6c] sm:$0xe] }
 0x174   : > { %v2596_v40 = vsel %vm13145_vm13, %v10822_v22, %v2595_v30  ;;  %v2597_v44 = vrot.slane %v2595_v30, 4  ;;  %v10805_v47 = vcombine.low %v2141_v31, %v2151_v33  ;;  %v2156_v50 = vshll.u32 %v1957_v23, 16  ;;  %v2473_v18 = vld [vmem:[#allocation2 + $0x70] sm:$0xf]  ;;  %v2474_v25 = vld [vmem:[#allocation2 + $0x74] sm:$0x1] }
 0x175   : > { %v3081_v17 = vrot.slane %v3080_v32, 4  ;;  %v2155_v48 = vrot.slane %v2153_v19, 4  ;;  %v3091_v52 = vrot.slane %v3090_v38, 4  ;;  %v2162_v54 = vshll.u32 %v1958_v14, 16 }
 0x176   : > { %v2599_v53 = vsel %vm13145_vm13, %v2597_v44, %v2598_v36  ;;  %v2166_v27 = vshrl.u32 %v1958_v14, 16  ;;  %4804 = vmatmul.mubr.bf16.gmra.mrb[88].mxu0 %v10805_v47  ;;  %v2158_v62 = vrot.slane %v2156_v50, 5  ;;  %v2172_v63 = vshll.u32 %v1959_v43, 16  ;;  %v1960_v14 = vld [vmem:[#allocation2 + $0x6c] sm:$0xf] }
 0x177   : > { %v3086_v56 = vsel %vm13121_vm8, %v3081_v17, %v3085_v61  ;;  %v10838_v58 = vcombine.low %v2596_v40, %v2599_v53  ;;  %v3096_v4 = vsel %vm13121_vm8, %v3091_v52, %v3095_v29  ;;  %v2164_v6 = vrot.slane %v2162_v54, 5  ;;  %v1961_v44 = vld [vmem:[#allocation2 + $0x70] sm:$0xf] }
 0x178   : > { %v2168_v42 = vrot.slane %v2166_v27, 4  ;;  %v3098_v7 = vshrl.u32 %v2902_v46, 16  ;;  %v10869_v8 = vcombine.low %v3086_v56, %v3096_v4  ;;  %v2159_v28 = vor.u32 %v2158_v62, %v2155_v48  ;;  %v1962_v48 = vld [vmem:[#allocation2 + $0x74] sm:$0x1]  ;;  %v2905_v27 = vld [vmem:[#allocation2 + $0x78] sm:$0xf] }
 0x179   : > { %4811 = vmatprep.mubr.bf16.mxu0 %v10838_v58  ;;  %v2174_v15 = vrot.slane %v2172_v63, 5  ;;  %v3101_v59 = vshll.u32 %v2902_v46, 16  ;;  %v3107_v23 = vshll.u32 %v2903_v1, 16  ;;  %v3111_v35 = vshrl.u32 %v2903_v1, 16  ;;  %v12571_v62 = vld [vmem:[#allocation2 + $0x6c] sm:$0xff]  }
 0x17a   : > { %v13631_v55 = vpop.f32.mrb[4].mxu1  ;;  %v2169_v20 = vor.u32 %v2168_v42, %v2164_v6  ;;  %v3100_v22 = vrot.slane %v3098_v7, 4  ;;  %4964 = vmatprep.mubr.bf16.mxu1 %v10869_v8  ;;  %v2160_v61 = vrot.slane %v2159_v28, 4  ;;  %v3117_v37 = vshll.u32 %v2904_v3, 16  ;;  %v2906_v4 = vld [vmem:[#allocation2 + $0x7c] sm:$0xf] }
 0x17b   : > { %v3103_v24 = vrot.slane %v3101_v59, 5  ;;  %v10823_v29 = vrot.slane %v2472_v11, 9  ;;  %4965 = vmatmul.mubr.bf16.gmra.mrb[88].mxu1 %v12570_v34  ;;  %v3109_v31 = vrot.slane %v3107_v23, 5  ;;  %v3113_v32 = vrot.slane %v3111_v35, 4  ;;  %v13647_v50 = vpop.f32.mrb[5].mxu1 }
 0x17c   : > { %v13637_v21 = vpop.f32.mrb[4].mxu0  ;;  %v2170_v30 = vrot.slane %v2169_v20, 4  ;;  %v2602_v36 = vrot.slane %v2473_v18, 5  ;;  %v2165_v19 = vsel %vm13121_vm8, %v2160_v61, %v2164_v6  ;;  %v3119_v38 = vrot.slane %v3117_v37, 5  ;;  %v13653_v6 = vpop.f32.mrb[6].mxu1 }
 0x17d   : > { %v13639_v60 = vpop.f32.mrb[5].mxu0  ;;  %v3104_v33 = vor.u32 %v3103_v24, %v3100_v22  ;;  %v2605_v40 = vrot.slane %v2474_v25, 5  ;;  %v3114_v46 = vor.u32 %v3113_v32, %v3109_v31  ;;  %v2177_v53 = vshrl.u32 %v1960_v14, 16  ;;  %v2907_v28 = vld [vmem:[#allocation2 + $0x80] sm:$0x1] }
 0x17e   : > { %v2175_v43 = vsel %vm13121_vm8, %v2170_v30, %v2174_v15  ;;  %v2603_v47 = vsel %vm13145_vm13, %v10823_v29, %v2602_v36  ;;  %v2604_v17 = vrot.slane %v2602_v36, 4  ;;  %v2180_v54 = vshll.u32 %v1960_v14, 16  ;;  %v13649_v56 = vpop.f32.mrb[6].mxu0  ;;  %v2475_v15 = vld [vmem:[#allocation2 + $0x78] sm:$0xe]  ;;  %v13661_v14 = vpop.f32.mrb[7].mxu1 }
 0x17f   : > { %v10806_v52 = vcombine.low %v2165_v19, %v2175_v43  ;;  %v3105_v34 = vrot.slane %v3104_v33, 4  ;;  %v3115_v58 = vrot.slane %v3114_v46, 4  ;;  %v2186_v1 = vshll.u32 %v1961_v44, 16  ;;  %v2476_v23 = vld [vmem:[#allocation2 + $0x7c] sm:$0xf]  ;;  %v13659_v35 = vpop.f32.mrb[7].mxu0 }
 0x180   : > { %v2606_v63 = vsel %vm13145_vm13, %v2604_v17, %v2605_v40  ;;  %v2190_v3 = vshrl.u32 %v1961_v44, 16  ;;  %v2179_v11 = vrot.slane %v2177_v53, 4  ;;  %v2182_v8 = vrot.slane %v2180_v54, 5  ;;  %v2477_v36 = vld [vmem:[#allocation2 + $0x80] sm:$0x1] }
 0x181   : > { %4812 = vmatmul.mubr.bf16.gmra.mrb[92].mxu0 %v10806_v52  ;;  %v3110_v42 = vsel %vm13121_vm8, %v3105_v34, %v3109_v31  ;;  %v10839_v7 = vcombine.low %v2603_v47, %v2606_v63  ;;  %v3120_v59 = vsel %vm13121_vm8, %v3115_v58, %v3119_v38  ;;  %v2188_v18 = vrot.slane %v2186_v1, 5  ;;  %v1963_v44 = vld [vmem:[#allocation2 + $0x78] sm:$0xf]  ;;  %v1965_v1 = vld [vmem:[#allocation2 + $0x80] sm:$0x1] }
 0x182   : > { %v2192_v20 = vrot.slane %v2190_v3, 4  ;;  %v2196_v22 = vshll.u32 %v1962_v48, 16  ;;  %v10870_v25 = vcombine.low %v3110_v42, %v3120_v59  ;;  %v2183_v61 = vor.u32 %v2182_v8, %v2179_v11  ;;  %v1964_v48 = vld [vmem:[#allocation2 + $0x7c] sm:$0xf]  ;;  %v2908_v11 = vld [vmem:[#allocation2 + $0x84] sm:$0xf] }
 0x183   : > { %4819 = vmatprep.mubr.bf16.mxu0 %v10839_v7  ;;  %v3122_v24 = vshrl.u32 %v2905_v27, 16  ;;  %v3125_v37 = vshll.u32 %v2905_v27, 16  ;;  %v3131_v31 = vshll.u32 %v2906_v4, 16  ;;  %v3135_v32 = vshrl.u32 %v2906_v4, 16 }
 0x184   : > { %v2193_v29 = vor.u32 %v2192_v20, %v2188_v18  ;;  %v2198_v30 = vrot.slane %v2196_v22, 5  ;;  %4972 = vmatprep.mubr.bf16.mxu1 %v10870_v25  ;;  %v2184_v19 = vrot.slane %v2183_v61, 4  ;;  %v3141_v40 = vshll.u32 %v2907_v28, 16  ;;  %v12573_v28 = vld [vmem:[#allocation2 + $0x78] sm:$0xff]   ;;  %v2909_v20 = vld [vmem:[#allocation2 + $0x88] sm:$0xf] }
 0x185   : > { %v3124_v33 = vrot.slane %v3122_v24, 4  ;;  %v3127_v38 = vrot.slane %v3125_v37, 5  ;;  %4973 = vmatmul.mubr.bf16.gmra.mrb[92].mxu1 %v12571_v62  ;;  %v3133_v46 = vrot.slane %v3131_v31, 5  ;;  %v3137_v47 = vrot.slane %v3135_v32, 4  ;;  %v2910_v24 = vld [vmem:[#allocation2 + $0x8c] sm:$0x1] }
 0x186   : > { %v2194_v43 = vrot.slane %v2193_v29, 4  ;;  %v10824_v17 = vrot.slane %v2475_v15, 9  ;;  %v2189_v52 = vsel %vm13121_vm8, %v2184_v19, %v2188_v18  ;;  %v3143_v53 = vrot.slane %v3141_v40, 5  ;;  %v2478_v37 = vld [vmem:[#allocation2 + $0x84] sm:$0xe] }
 0x187   : > { %v3128_v34 = vor.u32 %v3127_v38, %v3124_v33  ;;  %v2609_v54 = vrot.slane %v2476_v23, 5  ;;  %v3138_v58 = vor.u32 %v3137_v47, %v3133_v46  ;;  %v2612_v63 = vrot.slane %v2477_v36, 5  ;;  %v2479_v36 = vld [vmem:[#allocation2 + $0x88] sm:$0xf]  ;;  %v2480_v19 = vld [vmem:[#allocation2 + $0x8c] sm:$0x1] }
 0x188   : > { %v2199_v27 = vsel %vm13121_vm8, %v2194_v43, %v2198_v30  ;;  %v2201_v3 = vshrl.u32 %v1963_v44, 16  ;;  %v2204_v59 = vshll.u32 %v1963_v44, 16  ;;  %v2210_v18 = vshll.u32 %v1964_v48, 16  ;;  %v13675_v43 = vpop.f32.mrb[8].mxu0 }
 0x189   : > { %v10807_v4 = vcombine.low %v2189_v52, %v2199_v27  ;;  %v3129_v62 = vrot.slane %v3128_v34, 4  ;;  %v2610_v42 = vsel %vm13145_vm13, %v10824_v17, %v2609_v54  ;;  %v2611_v7 = vrot.slane %v2609_v54, 4  ;;  %v13677_v52 = vpop.f32.mrb[8].mxu1 }
 0x18a   : > { %v3139_v8 = vrot.slane %v3138_v58, 4  ;;  %v2203_v15 = vrot.slane %v2201_v3, 4  ;;  %v2214_v25 = vshrl.u32 %v1964_v48, 16  ;;  %v2220_v61 = vshll.u32 %v1965_v1, 16  ;;  %v1966_v58 = vld [vmem:[#allocation2 + $0x84] sm:$0xf] }
 0x18b   : > { %4820 = vmatmul.mubr.bf16.gmra.mrb[96].mxu0 %v10807_v4  ;;  %v3134_v22 = vsel %vm13121_vm8, %v3129_v62, %v3133_v46  ;;  %v2613_v23 = vsel %vm13145_vm13, %v2611_v7, %v2612_v63  ;;  %v2206_v31 = vrot.slane %v2204_v59, 5  ;;  %v2212_v32 = vrot.slane %v2210_v18, 5  ;;  %v13679_v63 = vpop.f32.mrb[9].mxu0 }
 0x18c   : > { %v3144_v29 = vsel %vm13121_vm8, %v3139_v8, %v3143_v53  ;;  %v10840_v30 = vcombine.low %v2610_v42, %v2613_v23  ;;  %v2216_v38 = vrot.slane %v2214_v25, 4  ;;  %v2222_v40 = vrot.slane %v2220_v61, 5  ;;  %v13683_v25 = vpop.f32.mrb[9].mxu1 }
 0x18d   : > { %v10871_v33 = vcombine.low %v3134_v22, %v3144_v29  ;;  %v3146_v44 = vshrl.u32 %v2908_v11, 16  ;;  %v2207_v46 = vor.u32 %v2206_v31, %v2203_v15  ;;  %v3149_v47 = vshll.u32 %v2908_v11, 16  ;;  %v1968_v22 = vld [vmem:[#allocation2 + $0x8c] sm:$0x1]  ;;  %v2911_v29 = vld [vmem:[#allocation2 + $0x90] sm:$0xf] }
 0x18e   : > { %4827 = vmatprep.mubr.bf16.mxu0 %v10840_v30  ;;  %v3155_v17 = vshll.u32 %v2909_v20, 16  ;;  %v3159_v48 = vshrl.u32 %v2909_v20, 16  ;;  %v2217_v34 = vor.u32 %v2216_v38, %v2212_v32  ;;  %v3165_v54 = vshll.u32 %v2910_v24, 16  ;;  %v1967_v20 = vld [vmem:[#allocation2 + $0x88] sm:$0xf] }
 0x18f   : > { %4980 = vmatprep.mubr.bf16.mxu1 %v10871_v33  ;;  %v3148_v53 = vrot.slane %v3146_v44, 4  ;;  %v10825_v27 = vrot.slane %v2478_v37, 9  ;;  %v2208_v1 = vrot.slane %v2207_v46, 4  ;;  %v3151_v3 = vrot.slane %v3149_v47, 5  ;;  %v2912_v47 = vld [vmem:[#allocation2 + $0x94] sm:$0xf] }
 0x190   : > { %4981 = vmatmul.mubr.bf16.gmra.mrb[96].mxu1 %v12573_v28  ;;  %v3157_v4 = vrot.slane %v3155_v17, 5  ;;  %v3161_v62 = vrot.slane %v3159_v48, 4  ;;  %v2218_v42 = vrot.slane %v2217_v34, 4  ;;  %v3167_v7 = vrot.slane %v3165_v54, 5  ;;  %v12574_v34 = vld [vmem:[#allocation2 + $0x84] sm:$0xff]  }
 0x191   : > { %v2616_v11 = vrot.slane %v2479_v36, 5  ;;  %v2619_v8 = vrot.slane %v2480_v19, 5  ;;  %v2213_v15 = vsel %vm13121_vm8, %v2208_v1, %v2212_v32  ;;  %v3152_v59 = vor.u32 %v3151_v3, %v3148_v53  ;;  %v13689_v19 = vpop.f32.mrb[10].mxu0 }
 0x192   : > { %v3162_v18 = vor.u32 %v3161_v62, %v3157_v4  ;;  %v2225_v23 = vshrl.u32 %v1966_v58, 16  ;;  %v2223_v28 = vsel %vm13121_vm8, %v2218_v42, %v2222_v40  ;;  %v2228_v37 = vshll.u32 %v1966_v58, 16  ;;  %v13693_v40 = vpop.f32.mrb[10].mxu1  ;;  %v13699_v58 = vpop.f32.mrb[11].mxu0 }
 0x193   : > { %v2617_v61 = vsel %vm13145_vm13, %v10825_v27, %v2616_v11  ;;  %v2618_v24 = vrot.slane %v2616_v11, 4  ;;  %v10808_v30 = vcombine.low %v2213_v15, %v2223_v28  ;;  %v3153_v31 = vrot.slane %v3152_v59, 4  ;;  %v2913_v27 = vld [vmem:[#allocation2 + $0x98] sm:$0x1] }
 0x194   : > { %v3163_v36 = vrot.slane %v3162_v18, 4  ;;  %v2227_v32 = vrot.slane %v2225_v23, 4  ;;  %v2230_v38 = vrot.slane %v2228_v37, 5  ;;  %v2234_v44 = vshll.u32 %v1967_v20, 16  ;;  %v2481_v18 = vld [vmem:[#allocation2 + $0x90] sm:$0xe] }
 0x195   : > { %v2620_v33 = vsel %vm13145_vm13, %v2618_v24, %v2619_v8  ;;  %v2238_v46 = vshrl.u32 %v1967_v20, 16  ;;  %4828 = vmatmul.mubr.bf16.gmra.mrb[100].mxu0 %v10808_v30  ;;  %v3158_v17 = vsel %vm13121_vm8, %v3153_v31, %v3157_v4  ;;  %v2244_v54 = vshll.u32 %v1968_v22, 16  ;;  %v13701_v4 = vpop.f32.mrb[11].mxu1  ;;  %v13703_v20 = vpop.f32.mrb[12].mxu0 }
 0x196   : > { %v3168_v48 = vsel %vm13121_vm8, %v3163_v36, %v3167_v7  ;;  %v10841_v53 = vcombine.low %v2617_v61, %v2620_v33  ;;  %v2231_v3 = vor.u32 %v2230_v38, %v2227_v32  ;;  %v2236_v62 = vrot.slane %v2234_v44, 5  ;;  %v2482_v61 = vld [vmem:[#allocation2 + $0x94] sm:$0xf]  ;;  %v13705_v24 = vpop.f32.mrb[12].mxu1  ;;  %v2483_v36 = vld [vmem:[#allocation2 + $0x98] sm:$0x1] }
 0x197   : > { %v10872_v1 = vcombine.low %v3158_v17, %v3168_v48  ;;  %v2240_v42 = vrot.slane %v2238_v46, 4  ;;  %v2246_v11 = vrot.slane %v2244_v54, 5  ;;  %v3170_v8 = vshrl.u32 %v2911_v29, 16  ;;  %v13711_v32 = vpop.f32.mrb[13].mxu0  ;;  %v13715_v17 = vpop.f32.mrb[13].mxu1 }
 0x198   : > { %4835 = vmatprep.mubr.bf16.mxu0 %v10841_v53  ;;  %v3173_v15 = vshll.u32 %v2911_v29, 16  ;;  %v3179_v59 = vshll.u32 %v2912_v47, 16  ;;  %v2232_v7 = vrot.slane %v2231_v3, 4  ;;  %v3183_v23 = vshrl.u32 %v2912_v47, 16  ;;  %v1969_v47 = vld [vmem:[#allocation2 + $0x90] sm:$0xf] }
 0x199   : > { %4988 = vmatprep.mubr.bf16.mxu1 %v10872_v1  ;;  %v2241_v22 = vor.u32 %v2240_v42, %v2236_v62  ;;  %v3189_v28 = vshll.u32 %v2913_v27, 16  ;;  %v3172_v37 = vrot.slane %v3170_v8, 4  ;;  %v13709_v29 = vadd.f32 %v13597_v2, %v13595_v12  ;;  %v1970_v3 = vld [vmem:[#allocation2 + $0x94] sm:$0xf] }
 0x19a   : > { %4989 = vmatmul.mubr.bf16.gmra.mrb[100].mxu1 %v12574_v34  ;;  %v3175_v30 = vrot.slane %v3173_v15, 5  ;;  %v3181_v31 = vrot.slane %v3179_v59, 5  ;;  %v2237_v33 = vsel %vm13121_vm8, %v2232_v7, %v2236_v62  ;;  %v3185_v44 = vrot.slane %v3183_v23, 4  ;;  %v1971_v62 = vld [vmem:[#allocation2 + $0x98] sm:$0x1]  ;;  %v13731_v59 = vpop.f32.mrb[14].mxu0 }
 0x19b   : > { %16451 = vst [vmem:[#allocation19_spill] sm:$0xff] %v13709_v29  ;;  %v2242_v38 = vrot.slane %v2241_v22, 4  ;;  %v3191_v46 = vrot.slane %v3189_v28, 5  ;;  %v13719_v34 = vadd.f32 %v13615_v16, %v13613_v10  ;;  %v13723_v12 = vadd.f32 %v13625_v41, %v13603_v39  ;;  %v2914_v15 = vld [vmem:[#allocation2 + $0x9c] sm:$0xf]  ;;  %v12576_v41 = vld [vmem:[#allocation2 + $0x90] sm:$0xff]  }
 0x19c   : > { %v3176_v48 = vor.u32 %v3175_v30, %v3172_v37  ;;  %v13727_v2 = vadd.f32 %v13627_v51, %v13617_v26  ;;  %v3186_v54 = vor.u32 %v3185_v44, %v3181_v31  ;;  %v10826_v27 = vrot.slane %v2481_v18, 9  ;;  %v13735_v22 = vpop.f32.mrb[14].mxu1  ;;  %v13739_v37 = vpop.f32.mrb[15].mxu0  ;;  %v2916_v44 = vld [vmem:[#allocation2 + $0xa4] sm:$0x1] }
 0x19d   : > { %16452 = vst [vmem:[#allocation20_spill] sm:$0xff] %v13719_v34  ;;  %16453 = vst [vmem:[#allocation21_spill] sm:$0xff] %v13723_v12  ;;  %v2247_v53 = vsel %vm13121_vm8, %v2242_v38, %v2246_v11  ;;  %v2623_v1 = vrot.slane %v2482_v61, 5  ;;  %v2626_v10 = vrot.slane %v2483_v36, 5  ;;  %v2249_v16 = vshrl.u32 %v1969_v47, 16 }
 0x19e   : > { %16454 = vst [vmem:[#allocation22_spill] sm:$0xff] %v13727_v2  ;;  %v10809_v42 = vcombine.low %v2237_v33, %v2247_v53  ;;  %v3177_v8 = vrot.slane %v3176_v48, 4  ;;  %v3187_v39 = vrot.slane %v3186_v54, 4  ;;  %v2252_v7 = vshll.u32 %v1969_v47, 16  ;;  %v2915_v11 = vld [vmem:[#allocation2 + $0xa0] sm:$0xf] }
 0x19f   : > { %v2624_v26 = vsel %vm13145_vm13, %v10826_v27, %v2623_v1  ;;  %v2625_v51 = vrot.slane %v2623_v1, 4  ;;  %v2251_v23 = vrot.slane %v2249_v16, 4  ;;  %v2258_v28 = vshll.u32 %v1970_v3, 16  ;;  %v13745_v47 = vpop.f32.mrb[15].mxu1  ;;  %v13747_v48 = vpop.f32.mrb[16].mxu0 }
 0x1a0   : > { %4836 = vmatmul.mubr.bf16.gmra.mrb[104].mxu0 %v10809_v42  ;;  %v3182_v18 = vsel %vm13121_vm8, %v3177_v8, %v3181_v31  ;;  %v2262_v61 = vshrl.u32 %v1970_v3, 16  ;;  %v3192_v30 = vsel %vm13121_vm8, %v3187_v39, %v3191_v46  ;;  %v2254_v33 = vrot.slane %v2252_v7, 5  ;;  %v2484_v16 = vld [vmem:[#allocation2 + $0x9c] sm:$0xe]  ;;  %v13749_v46 = vpop.f32.mrb[16].mxu1  ;;  %v13751_v45 = vpop.f32.mrb[17].mxu0 }
 0x1a1   : > { %v2627_v36 = vsel %vm13145_vm13, %v2625_v51, %v2626_v10  ;;  %v2268_v38 = vshll.u32 %v1971_v62, 16  ;;  %v10873_v53 = vcombine.low %v3182_v18, %v3192_v30  ;;  %v2260_v54 = vrot.slane %v2258_v28, 5  ;;  %v2485_v7 = vld [vmem:[#allocation2 + $0xa0] sm:$0xf] }
 0x1a2   : > { %v10842_v31 = vcombine.low %v2624_v26, %v2627_v36  ;;  %v2264_v27 = vrot.slane %v2262_v61, 4  ;;  %v2255_v1 = vor.u32 %v2254_v33, %v2251_v23  ;;  %v3194_v42 = vshrl.u32 %v2914_v15, 16  ;;  %v13757_v61 = vpop.f32.mrb[17].mxu1 }
 0x1a3   : > { %v2270_v3 = vrot.slane %v2268_v38, 5  ;;  %v3197_v8 = vshll.u32 %v2914_v15, 16  ;;  %4996 = vmatprep.mubr.bf16.mxu1 %v10873_v53  ;;  %v3203_v62 = vshll.u32 %v2915_v11, 16  ;;  %v3207_v39 = vshrl.u32 %v2915_v11, 16  ;;  %v2486_v15 = vld [vmem:[#allocation2 + $0xa4] sm:$0x1] }
 0x1a4   : > { %4843 = vmatprep.mubr.bf16.mxu0 %v10842_v31  ;;  %v2265_v10 = vor.u32 %v2264_v27, %v2260_v54  ;;  %v3213_v51 = vshll.u32 %v2916_v44, 16  ;;  %4997 = vmatmul.mubr.bf16.gmra.mrb[104].mxu1 %v12576_v41  ;;  %v2256_v26 = vrot.slane %v2255_v1, 4  ;;  %v3196_v18 = vrot.slane %v3194_v42, 4  ;;  %v1974_v42 = vld [vmem:[#allocation2 + $0xa4] sm:$0x1] }
 0x1a5   : > { %v3199_v28 = vrot.slane %v3197_v8, 5  ;;  %v13755_v23 = vadd.f32 %v13639_v60, %v13637_v21  ;;  %v3205_v36 = vrot.slane %v3203_v62, 5  ;;  %v3209_v33 = vrot.slane %v3207_v39, 4  ;;  %v1972_v21 = vld [vmem:[#allocation2 + $0x9c] sm:$0xf]  ;;  %v13775_v8 = vpop.f32.mrb[18].mxu0 }
 0x1a6   : > { %v2266_v30 = vrot.slane %v2265_v10, 4  ;;  %v3215_v38 = vrot.slane %v3213_v51, 5  ;;  %v2261_v11 = vsel %vm13121_vm8, %v2256_v26, %v2260_v54  ;;  %v13763_v41 = vadd.f32 %v13647_v50, %v13631_v55  ;;  %v1973_v60 = vld [vmem:[#allocation2 + $0xa0] sm:$0xf] }
 0x1a7   : > { %16455 = vst [vmem:[#allocation23_spill] sm:$0xff] %v13755_v23  ;;  %v3200_v44 = vor.u32 %v3199_v28, %v3196_v18  ;;  %v13767_v53 = vadd.f32 %v13659_v35, %v13649_v56  ;;  %v3210_v27 = vor.u32 %v3209_v33, %v3205_v36  ;;  %v13773_v1 = vadd.f32 %v13661_v14, %v13653_v6  ;;  %v13777_v56 = vpop.f32.mrb[18].mxu1  ;;  %v12577_v14 = vld [vmem:[#allocation2 + $0x9c] sm:$0xff]  }
 0x1a8   : > { %16456 = vst [vmem:[#allocation24_spill] sm:$0xff] %v13763_v41  ;;  %v2271_v31 = vsel %vm13121_vm8, %v2266_v30, %v2270_v3  ;;  %v10827_v54 = vrot.slane %v2484_v16, 9  ;;  %v2630_v10 = vrot.slane %v2485_v7, 5  ;;  %v2633_v62 = vrot.slane %v2486_v15, 5  ;;  %v13779_v3 = vpop.f32.mrb[19].mxu0  ;;  %v13781_v18 = vpop.f32.mrb[19].mxu1 }
 0x1a9   : > { %16457 = vst [vmem:[#allocation25_spill] sm:$0xff] %v13767_v53  ;;  %16458 = vst [vmem:[#allocation26_spill] sm:$0xff] %v13773_v1  ;;  %v10810_v55 = vcombine.low %v2261_v11, %v2271_v31  ;;  %v3201_v50 = vrot.slane %v3200_v44, 4  ;;  %v3211_v35 = vrot.slane %v3210_v27, 4  ;;  %v2273_v39 = vshrl.u32 %v1972_v21, 16  ;;  %v13789_v31 = vpop.f32.mrb[20].mxu0 }
 0x1aa   : > { %v2276_v51 = vshll.u32 %v1972_v21, 16  ;;  %v2282_v26 = vshll.u32 %v1973_v60, 16  ;;  %v2631_v16 = vsel %vm13145_vm13, %v10827_v54, %v2630_v10  ;;  %v2632_v7 = vrot.slane %v2630_v10, 4  ;;  %v2917_v15 = vld [vmem:[#allocation2 + $0xa8] sm:$0xf]  ;;  %v13793_v53 = vpop.f32.mrb[20].mxu1 }
 0x1ab   : > { %4844 = vmatmul.mubr.bf16.gmra.mrb[108].mxu0 %v10810_v55  ;;  %v3206_v6 = vsel %vm13121_vm8, %v3201_v50, %v3205_v36  ;;  %v2286_v28 = vshrl.u32 %v1973_v60, 16  ;;  %v3216_v30 = vsel %vm13121_vm8, %v3211_v35, %v3215_v38  ;;  %v2275_v33 = vrot.slane %v2273_v39, 4  ;;  %v2918_v21 = vld [vmem:[#allocation2 + $0xac] sm:$0xf] }
 0x1ac   : > { %v2278_v11 = vrot.slane %v2276_v51, 5  ;;  %v2284_v44 = vrot.slane %v2282_v26, 5  ;;  %v10874_v27 = vcombine.low %v3206_v6, %v3216_v30  ;;  %v2634_v36 = vsel %vm13145_vm13, %v2632_v7, %v2633_v62  ;;  %v2487_v51 = vld [vmem:[#allocation2 + $0xa8] sm:$0xe]  ;;  %v2488_v26 = vld [vmem:[#allocation2 + $0xac] sm:$0xf] }
 0x1ad   : > { %v2288_v55 = vrot.slane %v2286_v28, 4  ;;  %v2292_v50 = vshll.u32 %v1974_v42, 16  ;;  %v10843_v54 = vcombine.low %v2631_v16, %v2634_v36  ;;  %v3218_v60 = vshrl.u32 %v2917_v15, 16  ;;  %v2489_v28 = vld [vmem:[#allocation2 + $0xb0] sm:$0x1] }
 0x1ae   : > { %v2279_v10 = vor.u32 %v2278_v11, %v2275_v33  ;;  %v3221_v57 = vshll.u32 %v2917_v15, 16  ;;  %5004 = vmatprep.mubr.bf16.mxu1 %v10874_v27  ;;  %v3227_v35 = vshll.u32 %v2918_v21, 16  ;;  %v3231_v39 = vshrl.u32 %v2918_v21, 16  ;;  %v13799_v11 = vpop.f32.mrb[21].mxu0  ;;  %v13801_v21 = vpop.f32.mrb[21].mxu1 }
 0x1af   : > { %v2289_v1 = vor.u32 %v2288_v55, %v2284_v44  ;;  %v2294_v38 = vrot.slane %v2292_v50, 5  ;;  %5005 = vmatmul.mubr.bf16.gmra.mrb[108].mxu1 %v12577_v14  ;;  %4851 = vmatprep.mubr.bf16.mxu0 %v10843_v54  ;;  %v3220_v62 = vrot.slane %v3218_v60, 4  ;;  %v3237_v42 = vshll.u32 %v2919_v0, 16  ;;  %v1975_v0 = vld [vmem:[#allocation2 + $0xa8] sm:$0xf]  ;;  %v13811_v55 = vpop.f32.mrb[22].mxu1 }
 0x1b0   : > { %v2280_v6 = vrot.slane %v2279_v10, 4  ;;  %v3223_v7 = vrot.slane %v3221_v57, 5  ;;  %v3229_v30 = vrot.slane %v3227_v35, 5  ;;  %v3233_v33 = vrot.slane %v3231_v39, 4  ;;  %v1976_v54 = vld [vmem:[#allocation2 + $0xac] sm:$0xf] }
 0x1b1   : > { %v2290_v16 = vrot.slane %v2289_v1, 4  ;;  %v13797_v15 = vadd.f32 %v13679_v63, %v13675_v43  ;;  %v3239_v36 = vrot.slane %v3237_v42, 5  ;;  %v13807_v57 = vadd.f32 %v13683_v25, %v13677_v52  ;;  %v13809_v1 = vpop.f32.mrb[22].mxu0  ;;  %v13825_v25 = vpop.f32.mrb[23].mxu1  ;;  %v2920_v42 = vld [vmem:[#allocation2 + $0xb4] sm:$0xf] }
 0x1b2   : > { %v2285_v14 = vsel %vm13121_vm8, %v2280_v6, %v2284_v44  ;;  %v3224_v27 = vor.u32 %v3223_v7, %v3220_v62  ;;  %v3234_v63 = vor.u32 %v3233_v33, %v3229_v30  ;;  %v13817_v50 = vadd.f32 %v13699_v58, %v13689_v19  ;;  %v13823_v52 = vpop.f32.mrb[23].mxu0  ;;  %v1977_v6 = vld [vmem:[#allocation2 + $0xb0] sm:$0x1] }
 0x1b3   : > { %16459 = vst [vmem:[#allocation27_spill] sm:$0xff] %v13797_v15  ;;  %16460 = vst [vmem:[#allocation28_spill] sm:$0xff] %v13807_v57  ;;  %v2295_v43 = vsel %vm13121_vm8, %v2290_v16, %v2294_v38  ;;  %v13821_v44 = vadd.f32 %v13701_v4, %v13693_v40  ;;  %v10828_v35 = vrot.slane %v2487_v51, 9  ;;  %v2637_v39 = vrot.slane %v2488_v26, 5  ;;  %v13827_v38 = vpop.f32.mrb[24].mxu0  ;;  %v13833_v51 = vpop.f32.mrb[24].mxu1 }
 0x1b4   : > { %16461 = vst [vmem:[#allocation29_spill] sm:$0xff] %v13817_v50  ;;  %v10811_v10 = vcombine.low %v2285_v14, %v2295_v43  ;;  %v3225_v60 = vrot.slane %v3224_v27, 4  ;;  %v3235_v62 = vrot.slane %v3234_v63, 4  ;;  %v2640_v7 = vrot.slane %v2489_v28, 5  ;;  %v2921_v14 = vld [vmem:[#allocation2 + $0xb8] sm:$0xf] }
 0x1b5   : > { %16462 = vst [vmem:[#allocation30_spill] sm:$0xff] %v13821_v44  ;;  %v2297_v19 = vshrl.u32 %v1975_v0, 16  ;;  %v2300_v58 = vshll.u32 %v1975_v0, 16  ;;  %v2638_v4 = vsel %vm13145_vm13, %v10828_v35, %v2637_v39  ;;  %v2639_v16 = vrot.slane %v2637_v39, 4  ;;  %v13835_v26 = vpop.f32.mrb[25].mxu0  ;;  %v12579_v27 = vld [vmem:[#allocation2 + $0xa8] sm:$0xff]  }
 0x1b6   : > { %4852 = vmatmul.mubr.bf16.gmra.mrb[112].mxu0 %v10811_v10  ;;  %v3230_v40 = vsel %vm13121_vm8, %v3225_v60, %v3229_v30  ;;  %v2306_v33 = vshll.u32 %v1976_v54, 16  ;;  %v3240_v28 = vsel %vm13121_vm8, %v3235_v62, %v3239_v36  ;;  %v2310_v63 = vshrl.u32 %v1976_v54, 16  ;;  %v13839_v10 = vpop.f32.mrb[25].mxu1  ;;  %v13841_v30 = vpop.f32.mrb[26].mxu0  ;;  %v2922_v50 = vld [vmem:[#allocation2 + $0xbc] sm:$0x1] }
 0x1b7   : > { %v2299_v0 = vrot.slane %v2297_v19, 4  ;;  %v2302_v43 = vrot.slane %v2300_v58, 5  ;;  %v10875_v60 = vcombine.low %v3230_v40, %v3240_v28  ;;  %v2641_v35 = vsel %vm13145_vm13, %v2639_v16, %v2640_v7  ;;  %v13845_v57 = vpop.f32.mrb[26].mxu1  ;;  %v13847_v15 = vpop.f32.mrb[27].mxu0  ;;  %v2490_v16 = vld [vmem:[#allocation2 + $0xb4] sm:$0xe] }
 0x1b8   : > { %v2308_v39 = vrot.slane %v2306_v33, 5  ;;  %v2316_v44 = vshll.u32 %v1977_v6, 16  ;;  %v10844_v36 = vcombine.low %v2638_v4, %v2641_v35  ;;  %v2312_v19 = vrot.slane %v2310_v63, 4  ;;  %v13849_v54 = vpop.f32.mrb[27].mxu1  ;;  %v2491_v4 = vld [vmem:[#allocation2 + $0xb8] sm:$0xf] }
 0x1b9   : > { %v2303_v62 = vor.u32 %v2302_v43, %v2299_v0  ;;  %v3242_v58 = vshrl.u32 %v2920_v42, 16  ;;  %5012 = vmatprep.mubr.bf16.mxu1 %v10875_v60  ;;  %v3245_v28 = vshll.u32 %v2920_v42, 16  ;;  %v3251_v23 = vshll.u32 %v2921_v14, 16  ;;  %v13853_v0 = vpop.f32.mrb[28].mxu1 }
 0x1ba   : > { %v2318_v40 = vrot.slane %v2316_v44, 5  ;;  %v3255_v7 = vshrl.u32 %v2921_v14, 16  ;;  %5013 = vmatmul.mubr.bf16.gmra.mrb[112].mxu1 %v12579_v27  ;;  %4859 = vmatprep.mubr.bf16.mxu0 %v10844_v36  ;;  %v2313_v33 = vor.u32 %v2312_v19, %v2308_v39  ;;  %v3261_v12 = vshll.u32 %v2922_v50, 16  ;;  %v2492_v44 = vld [vmem:[#allocation2 + $0xbc] sm:$0x1]  ;;  %v13867_v19 = vpop.f32.mrb[29].mxu1 }
 0x1bb   : > { %v2304_v6 = vrot.slane %v2303_v62, 4  ;;  %v3244_v2 = vrot.slane %v3242_v58, 4  ;;  %v3247_v43 = vrot.slane %v3245_v28, 5  ;;  %v3253_v63 = vrot.slane %v3251_v23, 5  ;;  %v1978_v62 = vld [vmem:[#allocation2 + $0xb4] sm:$0xf] }
 0x1bc   : > { %v13851_v41 = vpop.f32.mrb[28].mxu0  ;;  %v3257_v35 = vrot.slane %v3255_v7, 4  ;;  %v13857_v60 = vadd.f32 %v13711_v32, %v13703_v20  ;;  %v2314_v27 = vrot.slane %v2313_v33, 4  ;;  %v3263_v36 = vrot.slane %v3261_v12, 5  ;;  %v1979_v12 = vld [vmem:[#allocation2 + $0xb8] sm:$0xf] }
 0x1bd   : > { %v13859_v42 = vpop.f32.mrb[29].mxu0  ;;  %v2309_v14 = vsel %vm13121_vm8, %v2304_v6, %v2308_v39  ;;  %v13865_v50 = vadd.f32 %v13715_v17, %v13705_v24  ;;  %v3248_v58 = vor.u32 %v3247_v43, %v3244_v2  ;;  %v13873_v32 = vadd.f32 %v13739_v37, %v13731_v59  ;;  %v13879_v28 = vpop.f32.mrb[30].mxu1  ;;  %v1980_v33 = vld [vmem:[#allocation2 + $0xbc] sm:$0x1] }
 0x1be   : > { %16463 = vst [vmem:[#allocation31_spill] sm:$0xff] %v13857_v60  ;;  %v13869_v23 = vpop.f32.mrb[30].mxu0  ;;  %v3258_v20 = vor.u32 %v3257_v35, %v3253_v63  ;;  %v13877_v39 = vadd.f32 %v13745_v47, %v13735_v22  ;;  %v2319_v17 = vsel %vm13121_vm8, %v2314_v27, %v2318_v40  ;;  %v10829_v7 = vrot.slane %v2490_v16, 9  ;;  %v13885_v43 = vpop.f32.mrb[31].mxu1  ;;  %v839_v47 = vld [vmem:[#allocation2 + $0xc8] sm:$0x1] }
 0x1bf   : > { %16464 = vst [vmem:[#allocation32_spill] sm:$0xff] %v13865_v50  ;;  %16465 = vst [vmem:[#allocation33_spill] sm:$0xff] %v13873_v32  ;;  %v13881_v24 = vpop.f32.mrb[31].mxu0  ;;  %v2644_v6 = vrot.slane %v2491_v4, 5  ;;  %v2647_v2 = vrot.slane %v2492_v44, 5  ;;  %v10812_v59 = vcombine.low %v2309_v14, %v2319_v17  ;;  %v3249_v37 = vrot.slane %v3248_v58, 4 }
 0x1c0   : > { %16466 = vst [vmem:[#allocation34_spill] sm:$0xff] %v13877_v39  ;;  %v3259_v35 = vrot.slane %v3258_v20, 4  ;;  %v12580_v32 = vld [vmem:[#allocation2 + $0xb4] sm:$0xff]   ;;  %v2321_v22 = vshrl.u32 %v1978_v62, 16  ;;  %v2324_v34 = vshll.u32 %v1978_v62, 16  ;;  %v2330_v40 = vshll.u32 %v1979_v12, 16 }
 0x1c1   : > { %v2645_v50 = vsel %vm13145_vm13, %v10829_v7, %v2644_v6  ;;  %v2646_v60 = vrot.slane %v2644_v6, 4  ;;  %v2923_v16 = vld [vmem:[#allocation2 + $0xc0] sm:$0xf]  ;;  %v13891_v4 = vpop.f32.mrb[32].mxu1  ;;  %4860 = vmatmul.mubr.bf16.gmra.mrb[116].mxu0 %v10812_v59  ;;  %v3254_v44 = vsel %vm13121_vm8, %v3249_v37, %v3253_v63  ;;  %v2334_v58 = vshrl.u32 %v1979_v12, 16 }
 0x1c2   : > { %16468 = vst [vmem:[#allocation36_spill] sm:$0xff] %v13891_v4  ;;  %v3264_v14 = vsel %vm13121_vm8, %v3259_v35, %v3263_v36  ;;  %v2323_v27 = vrot.slane %v2321_v22, 4  ;;  %v2924_v20 = vld [vmem:[#allocation2 + $0xc4] sm:$0xf]  ;;  %v13899_v29 = vpop.f32.mrb[33].mxu1  ;;  %v2326_v6 = vrot.slane %v2324_v34, 5 }
 0x1c3   : > { %v10876_v7 = vcombine.low %v3254_v44, %v3264_v14  ;;  %v2648_v62 = vsel %vm13145_vm13, %v2646_v60, %v2647_v2  ;;  %v2332_v4 = vrot.slane %v2330_v40, 5  ;;  %v2336_v37 = vrot.slane %v2334_v58, 4  ;;  %v2494_v58 = vld [vmem:[#allocation2 + $0xc4] sm:$0xf] }
 0x1c4   : > { %v13887_v39 = vpop.f32.mrb[32].mxu0  ;;  %v10845_v63 = vcombine.low %v2645_v50, %v2648_v62  ;;  %v2340_v36 = vshll.u32 %v1980_v33, 16  ;;  %v16469_v12 = vrot.slane %v13502_v9, 4  ;;  %v2327_v60 = vor.u32 %v2326_v6, %v2323_v27  ;;  %v1981_v27 = vld [vmem:[#allocation2 + $0xc0] sm:$0xf] }
 0x1c5   : > { %16467 = vst [vmem:[#allocation35_spill] sm:$0xff] %v13887_v39  ;;  %v13897_v17 = vpop.f32.mrb[33].mxu0  ;;  %v13905_v39 = vpop.f32.mrb[34].mxu1  ;;  %5020 = vmatprep.mubr.bf16.mxu1 %v10876_v7  ;;  %v3266_v34 = vshrl.u32 %v2923_v16, 16  ;;  %v3269_v2 = vshll.u32 %v2923_v16, 16  ;;  %v3275_v40 = vshll.u32 %v2924_v20, 16  ;;  %v2337_v50 = vor.u32 %v2336_v37, %v2332_v4 }
 0x1c6   : > { %v13903_v59 = vpop.f32.mrb[34].mxu0  ;;  %v840_v35 = vsel %vm13139_vm12, %v16469_v12, %v839_v47  ;;  %v13913_v44 = vpop.f32.mrb[35].mxu1  ;;  %5021 = vmatmul.mubr.bf16.gmra.mrb[116].mxu1 %v12580_v32  ;;  %4867 = vmatprep.mubr.bf16.mxu0 %v10845_v63  ;;  %v2342_v14 = vrot.slane %v2340_v36, 5  ;;  %v3279_v33 = vshrl.u32 %v2924_v20, 16  ;;  %v13917_v9 = vadd.f32 %v13751_v45, %v13747_v48  ;;  %v2493_v47 = vld [vmem:[#allocation2 + $0xc0] sm:$0xe] }
 0x1c7   : > { %v13911_v22 = vpop.f32.mrb[35].mxu0  ;;  %841 = vst [vmem:[#allocation2 + $0xc8] sm:$0x1] %v840_v35  ;;  %v2328_v62 = vrot.slane %v2327_v60, 4  ;;  %v3268_v12 = vrot.slane %v3266_v34, 4  ;;  %v3271_v5 = vrot.slane %v3269_v2, 5  ;;  %v13923_v32 = vadd.f32 %v13757_v61, %v13749_v46 }
 0x1c8   : > { %16470 = vst [vmem:[#allocation37_spill] sm:$0xff] %v13917_v9  ;;  %v13919_v7 = vrot.slane %v3275_v40, 5  ;;  %v2338_v6 = vrot.slane %v2337_v50, 4  ;;  %v3281_v16 = vrot.slane %v3279_v33, 4  ;;  %v13927_v20 = vadd.f32 %v13779_v3, %v13775_v8  ;;  %v1982_v45 = vld [vmem:[#allocation2 + $0xc4] sm:$0xf] }
 0x1c9   : > { %16471 = vst [vmem:[#allocation38_spill] sm:$0xff] %v13923_v32  ;;  %v13931_v63 = vpop.f32.mrb[36].mxu1  ;;  %v2333_v37 = vsel %vm13121_vm8, %v2328_v62, %v2332_v4  ;;  %v3272_v36 = vor.u32 %v3271_v5, %v3268_v12  ;;  %v13937_v35 = vadd.f32 %v13781_v18, %v13777_v56  ;;  %v10830_v60 = vrot.slane %v2493_v47, 9  ;;  %v2926_v40 = vld [vmem:[#allocation2 + $0xcc] sm:$0xf] }
 0x1ca   : > { %16472 = vst [vmem:[#allocation39_spill] sm:$0xff] %v13927_v20  ;;  %v13941_v61 = vpop.f32.mrb[37].mxu1  ;;  %v2343_v8 = vsel %vm13121_vm8, %v2338_v6, %v2342_v14  ;;  %v3282_v3 = vor.u32 %v3281_v16, %v13919_v7  ;;  %v2651_v34 = vrot.slane %v2494_v58, 5  ;;  %v2345_v2 = vshrl.u32 %v1981_v27, 16 }
 0x1cb   : > { %16473 = vst [vmem:[#allocation40_spill] sm:$0xff] %v13937_v35  ;;  %v13948_v5 = vpop.f32.mrb[38].mxu1  ;;  %v10813_v4 = vcombine.low %v2333_v37, %v2343_v8  ;;  %v3273_v56 = vrot.slane %v3272_v36, 4  ;;  %v2348_v18 = vshll.u32 %v1981_v27, 16  ;;  %v2354_v33 = vshll.u32 %v1982_v45, 16 }
 0x1cc   : > { %v13929_v48 = vpop.f32.mrb[36].mxu0  ;;  %16475 = vst [vmem:[#allocation42_spill] sm:$0xff] %v13948_v5  ;;  %v13952_v62 = vpop.f32.mrb[39].mxu1  ;;  %v3283_v35 = vrot.slane %v3282_v3, 4  ;;  %v2652_v58 = vsel %vm13145_vm13, %v10830_v60, %v2651_v34  ;;  %v2653_v6 = vrot.slane %v2651_v34, 4  ;;  %v13958_v16 = vadd.f32 %v13799_v11, %v13789_v31 }
 0x1cd   : > { %v13939_v46 = vpop.f32.mrb[37].mxu0  ;;  %16477 = vst [vmem:[#allocation44_spill] sm:$0xff] %v13952_v62  ;;  %4868 = vmatmul.mubr.bf16.gmra.mrb[120].mxu0 %v10813_v4  ;;  %v3278_v27 = vsel %vm13121_vm8, %v3273_v56, %v13919_v7  ;;  %v2347_v20 = vrot.slane %v2345_v2, 4  ;;  %v2350_v32 = vrot.slane %v2348_v18, 5  ;;  %v2356_v3 = vrot.slane %v2354_v33, 5  ;;  %v12582_v4 = vld [vmem:[#allocation2 + $0xc0] sm:$0xff]  }
 0x1ce   : > { %v13946_v50 = vpop.f32.mrb[38].mxu0  ;;  %v2925_v12 = vld [vmem:[#allocation2 + $0xc8] sm:$0x1]  ;;  %16478 = vst [vmem:[#allocation45_spill] sm:$0xff] %v13958_v16  ;;  %v2358_v9 = vshrl.u32 %v1982_v45, 16  ;;  %v3290_v31 = vshrl.u32 %v2926_v40, 16 }
 0x1cf   : > { %16474 = vst [vmem:[#allocation41_spill] sm:$0xff] %v13946_v50  ;;  %v13950_v47 = vpop.f32.mrb[39].mxu0  ;;  %v2495_v14 = vld [vmem:[#allocation2 + $0xc8] sm:$0x1]  ;;  %v3285_v37 = vshll.u32 %v2925_v12, 16  ;;  %v3293_v11 = vshll.u32 %v2926_v40, 16 }
 0x1d0   : > { %16476 = vst [vmem:[#allocation43_spill] sm:$0xff] %v13950_v47  ;;  %v2654_v36 = vrot.slane %v2495_v14, 5  ;;  %v1983_v8 = vld [vmem:[#allocation2 + $0xc8] sm:$0x1]  ;;  %v2927_v5 = vld [vmem:[#allocation2 + $0xd0] sm:$0xf]  ;;  %v2351_v47 = vor.u32 %v2350_v32, %v2347_v20 }
 0x1d1   : > { %v2364_v62 = vshll.u32 %v1983_v8, 16  ;;  %v3287_v60 = vrot.slane %v3285_v37, 5  ;;  %v2360_v50 = vrot.slane %v2358_v9, 4  ;;  %v2928_v56 = vld [vmem:[#allocation2 + $0xd4] sm:$0x1]  ;;  %v3292_v45 = vrot.slane %v3290_v31, 4 }
 0x1d2   : > { %v2655_v34 = vsel %vm13145_vm13, %v2653_v6, %v2654_v36  ;;  %v3295_v18 = vrot.slane %v3293_v11, 5  ;;  %v3299_v33 = vshll.u32 %v2927_v5, 16  ;;  %v3393_v14 = vld [vmem:[#allocation2 + $0x18] sm:$0xe]  ;;  %v2352_v40 = vrot.slane %v2351_v47, 4 }
 0x1d3   : > { %v10846_v16 = vcombine.low %v2652_v58, %v2655_v34  ;;  %v2366_v7 = vrot.slane %v2364_v62, 5  ;;  %v3288_v2 = vsel %vm13121_vm8, %v3283_v35, %v3287_v60  ;;  %v2361_v36 = vor.u32 %v2360_v50, %v2356_v3  ;;  %v3394_v32 = vld [vmem:[#allocation2 + $0x1c] sm:$0xf]  ;;  %v3395_v60 = vld [vmem:[#allocation2 + $0x20] sm:$0x1] }
 0x1d4   : > { %v13965_v12 = vpop.f32.mrb[40].mxu0  ;;  %v10877_v6 = vcombine.low %v3278_v27, %v3288_v2  ;;  %v3303_v58 = vshrl.u32 %v2927_v5, 16  ;;  %v3296_v20 = vor.u32 %v3295_v18, %v3292_v45  ;;  %v3301_v62 = vrot.slane %v3299_v33, 5  ;;  %v3396_v27 = vld [vmem:[#allocation2 + $0x24] sm:$0xe] }
 0x1d5   : > { %v13969_v37 = vpop.f32.mrb[41].mxu0  ;;  %4875 = vmatprep.mubr.bf16.mxu0 %v10846_v16  ;;  %v3309_v8 = vshll.u32 %v2928_v56, 16  ;;  %v13975_v35 = vadd.f32 %v13801_v21, %v13793_v53  ;;  %v2357_v16 = vsel %vm13121_vm8, %v2352_v40, %v2356_v3  ;;  %v2362_v47 = vrot.slane %v2361_v36, 4  ;;  %v3397_v31 = vld [vmem:[#allocation2 + $0x28] sm:$0xf] }
 0x1d6   : > { %v13971_v9 = vpop.f32.mrb[42].mxu0  ;;  %5028 = vmatprep.mubr.bf16.mxu1 %v10877_v6  ;;  %v3305_v50 = vrot.slane %v3303_v58, 4  ;;  %v13983_v5 = vadd.f32 %v13823_v52, %v13809_v1  ;;  %v3297_v11 = vrot.slane %v3296_v20, 4  ;;  %v13987_v53 = vadd.f32 %v13825_v25, %v13811_v55  ;;  %v3398_v2 = vld [vmem:[#allocation2 + $0x2c] sm:$0x1] }
 0x1d7   : > { %v13977_v34 = vpop.f32.mrb[43].mxu0  ;;  %5029 = vmatmul.mubr.bf16.gmra.mrb[120].mxu1 %v12582_v4  ;;  %v3311_v56 = vrot.slane %v3309_v8, 5  ;;  %v10879_v21 = vrot.slane %v3393_v14, 9  ;;  %v2367_v3 = vsel %vm13121_vm8, %v2362_v47, %v2366_v7  ;;  %v3491_v18 = vrot.slane %v3394_v32, 5  ;;  %v3399_v36 = vld [vmem:[#allocation2 + $0x30] sm:$0xe] }
 0x1d8   : > { %v3306_v45 = vor.u32 %v3305_v50, %v3301_v62  ;;  %v3494_v33 = vrot.slane %v3395_v60, 5  ;;  %v13991_v6 = vpop.f32.mrb[40].mxu1  ;;  %v10814_v1 = vcombine.low %v2357_v16, %v2367_v3  ;;  %v3302_v52 = vsel %vm13121_vm8, %v3297_v11, %v3301_v62  ;;  %v3400_v20 = vld [vmem:[#allocation2 + $0x34] sm:$0xf]  ;;  %v3401_v47 = vld [vmem:[#allocation2 + $0x38] sm:$0x1] }
 0x1d9   : > { %v10880_v4 = vrot.slane %v3396_v27, 9  ;;  %v3498_v40 = vrot.slane %v3397_v31, 5  ;;  %v13995_v58 = vpop.f32.mrb[41].mxu1  ;;  %v3492_v25 = vsel %vm13145_vm13, %v10879_v21, %v3491_v18  ;;  %v3493_v14 = vrot.slane %v3491_v18, 4  ;;  %v3402_v50 = vld [vmem:[#allocation2 + $0x3c] sm:$0xe] }
 0x1da   : > { %v3307_v55 = vrot.slane %v3306_v45, 4  ;;  %v3501_v7 = vrot.slane %v3398_v2, 5  ;;  %v13999_v32 = vpop.f32.mrb[42].mxu1  ;;  %4876 = vmatmul.mubr.bf16.gmra.mrb[124].mxu0 %v10814_v1  ;;  %v14005_v62 = vadd.f32 %v13835_v26, %v13827_v38  ;;  %v14009_v16 = vadd.f32 %v13839_v10, %v13833_v51  ;;  %v12583_v11 = vld [vmem:[#allocation2 + $0xcc] sm:$0xff]   ;;  %v3403_v51 = vld [vmem:[#allocation2 + $0x40] sm:$0xf] }
 0x1db   : > { %v3499_v8 = vsel %vm13145_vm13, %v10880_v4, %v3498_v40  ;;  %v3500_v60 = vrot.slane %v3498_v40, 4  ;;  %v14011_v27 = vpop.f32.mrb[43].mxu1  ;;  %v3495_v21 = vsel %vm13145_vm13, %v3493_v14, %v3494_v33  ;;  %v14019_v2 = vadd.f32 %v13847_v15, %v13841_v30  ;;  %v3404_v26 = vld [vmem:[#allocation2 + $0x44] sm:$0x1]  ;;  %v3405_v18 = vld [vmem:[#allocation2 + $0x48] sm:$0xe] }
 0x1dc   : > { %v3312_v31 = vsel %vm13121_vm8, %v3307_v55, %v3311_v56  ;;  %v14023_v38 = vadd.f32 %v13849_v54, %v13845_v57  ;;  %v10895_v3 = vcombine.low %v3492_v25, %v3495_v21  ;;  %v10881_v56 = vrot.slane %v3399_v36, 9  ;;  %v3406_v1 = vld [vmem:[#allocation2 + $0x4c] sm:$0xf]  ;;  %v3407_v15 = vld [vmem:[#allocation2 + $0x50] sm:$0x1] }
 0x1dd   : > { %v10878_v10 = vcombine.low %v3302_v52, %v3312_v31  ;;  %v3502_v45 = vsel %vm13145_vm13, %v3500_v60, %v3501_v7  ;;  %v3505_v33 = vrot.slane %v3400_v20, 5  ;;  %v3508_v40 = vrot.slane %v3401_v47, 5  ;;  %v3408_v36 = vld [vmem:[#allocation2 + $0x54] sm:$0xe]  ;;  %v3409_v25 = vld [vmem:[#allocation2 + $0x58] sm:$0xf] }
 0x1de   : > { %v10896_v4 = vcombine.low %v3499_v8, %v3502_v45  ;;  %v10882_v55 = vrot.slane %v3402_v50, 9  ;;  %12310 = vmatprep.mubr.bf16.mxu0 %v10895_v3  ;;  %v3512_v30 = vrot.slane %v3403_v51, 5  ;;  %v3515_v57 = vrot.slane %v3404_v26, 5  ;;  %v3410_v60 = vld [vmem:[#allocation2 + $0x5c] sm:$0x1] }
 0x1df   : > { %5036 = vmatprep.mubr.bf16.mxu1 %v10878_v10  ;;  %v14029_v54 = vadd.f32 %v13859_v42, %v13851_v41  ;;  %v14033_v52 = vadd.f32 %v13867_v19, %v13853_v0  ;;  %v3506_v14 = vsel %vm13145_vm13, %v10881_v56, %v3505_v33  ;;  %v3507_v7 = vrot.slane %v3505_v33, 4  ;;  %v3412_v21 = vld [vmem:[#allocation2 + $0x64] sm:$0xf]  ;;  %v3411_v51 = vld [vmem:[#allocation2 + $0x60] sm:$0xe] }
 0x1e0   : > { %5037 = vmatmul.mubr.bf16.gmra.mrb[124].mxu1 %v12583_v11  ;;  %v14039_v20 = vadd.f32 %v13881_v24, %v13869_v23  ;;  %v14043_v8 = vadd.f32 %v13885_v43, %v13879_v28  ;;  %v14045_v41 = vpop.f32.mrb[44].mxu1  ;;  %v3514_v42 = vrot.slane %v3512_v30, 4  ;;  %v10883_v0 = vrot.slane %v3405_v18, 9 }
 0x1e1   : > { %v3519_v19 = vrot.slane %v3406_v1, 5  ;;  %v14047_v47 = vpop.f32.mrb[45].mxu1  ;;  %v3509_v50 = vsel %vm13145_vm13, %v3507_v7, %v3508_v40  ;;  %v3522_v31 = vrot.slane %v3407_v15, 5  ;;  %v3526_v11 = vrot.slane %v3409_v25, 5  ;;  %v3413_v1 = vld [vmem:[#allocation2 + $0x68] sm:$0x1] }
 0x1e2   : > { %v14053_v24 = vpop.f32.mrb[46].mxu1  ;;  %12311 = vmatmul.mubr.bf16.vlgmr.msra.gmra.mrb[128].mxu0 %v10896_v4  ;;  %v10897_v28 = vcombine.low %v3506_v14, %v3509_v50  ;;  %v3513_v3 = vsel %vm13145_vm13, %v10882_v55, %v3512_v30  ;;  %v3516_v45 = vsel %vm13145_vm13, %v3514_v42, %v3515_v57  ;;  %v10884_v18 = vrot.slane %v3408_v36, 9  ;;  %v16479_v40 = vld [vmem:[#allocation35_spill] sm:$0xff]  ;;  %v16480_v25 = vld [vmem:[#allocation36_spill] sm:$0xff]  ;;  %v3415_v57 = vld [vmem:[#allocation2 + $0x70] sm:$0xf] }
 0x1e3   : > { %v3521_v43 = vrot.slane %v3519_v19, 4  ;;  %v14057_v10 = vpop.f32.mrb[47].mxu1  ;;  %v3520_v56 = vsel %vm13145_vm13, %v10883_v0, %v3519_v19  ;;  %v11416_v15 = vadd.f32 %v13897_v17, %v16479_v40  ;;  %v11528_v55 = vadd.f32 %v13899_v29, %v16480_v25  ;;  %v3416_v25 = vld [vmem:[#allocation2 + $0x74] sm:$0x1] }
 0x1e4   : > { %v14051_v23 = vpop.f32.mrb[44].mxu0  ;;  %12314 = vmatprep.mubr.bf16.mxu0 %v10897_v28  ;;  %v11419_v30 = vadd.f32 %v13911_v22, %v13903_v59  ;;  %v3528_v36 = vrot.slane %v3526_v11, 4  ;;  %v3529_v7 = vrot.slane %v3410_v60, 5  ;;  %v11531_v42 = vadd.f32 %v13913_v44, %v13905_v39  ;;  %v3414_v59 = vld [vmem:[#allocation2 + $0x6c] sm:$0xe] }
 0x1e5   : > { %v14055_v26 = vpop.f32.mrb[45].mxu0  ;;  %v3523_v4 = vsel %vm13145_vm13, %v3521_v43, %v3522_v31  ;;  %v10898_v0 = vcombine.low %v3513_v3, %v3516_v45  ;;  %v14079_v19 = vadd.f32 %v11528_v55, %v11416_v15  ;;  %v3533_v50 = vrot.slane %v3412_v21, 5  ;;  %v14081_v31 = vld [vmem:[#allocation2 + $0x7c] sm:$0xf]  ;;  %v16481_v45 = vld [vmem:[#allocation41_spill] sm:$0xff]  ;;  %v16484_v15 = vld [vmem:[#allocation44_spill] sm:$0xff] }
 0x1e6   : > { %v14065_v33 = vpop.f32.mrb[46].mxu0  ;;  %v10899_v17 = vcombine.low %v3520_v56, %v3523_v4  ;;  %v14083_v28 = vadd.f32 %v11531_v42, %v11419_v30  ;;  %v10885_v29 = vrot.slane %v3411_v51, 9  ;;  %v3536_v43 = vrot.slane %v3413_v1, 5  ;;  %v16482_v56 = vld [vmem:[#allocation43_spill] sm:$0xff]  ;;  %v16483_v4 = vld [vmem:[#allocation42_spill] sm:$0xff] }
 0x1e7   : > { %v14075_v14 = vpop.f32.mrb[47].mxu0  ;;  %v3527_v60 = vsel %vm13145_vm13, %v10884_v18, %v3526_v11  ;;  %v3535_v40 = vrot.slane %v3533_v50, 4  ;;  %v11422_v39 = vadd.f32 %v13939_v46, %v13929_v48  ;;  %v11534_v44 = vadd.f32 %v13941_v61, %v13931_v63  ;;  %v3417_v18 = vld [vmem:[#allocation2 + $0x78] sm:$0xe]  ;;  %v3419_v55 = vld [vmem:[#allocation2 + $0x80] sm:$0x1] }
 0x1e8   : > { %v14085_v22 = vpop.f32.mrb[48].mxu1  ;;  %v3530_v51 = vsel %vm13145_vm13, %v3528_v36, %v3529_v7  ;;  %v3540_v3 = vrot.slane %v3415_v57, 5  ;;  %v11425_v1 = vadd.f32 %v16482_v56, %v16481_v45  ;;  %v11537_v11 = vadd.f32 %v16484_v15, %v16483_v4  ;;  %v14107_v46 = vld [vmem:[#allocation2 + $0x88] sm:$0xf]  ;;  %v3422_v4 = vld [vmem:[#allocation2 + $0x8c] sm:$0x1] }
 0x1e9   : > { %v14093_v21 = vpop.f32.mrb[49].mxu1  ;;  %v14105_v63 = vadd.f32 %v11534_v44, %v11422_v39  ;;  %v3547_v7 = vrot.slane %v14081_v31, 5  ;;  %v10900_v45 = vcombine.low %v3527_v60, %v3530_v51  ;;  %v3534_v56 = vsel %vm13145_vm13, %v10885_v29, %v3533_v50  ;;  %v3420_v44 = vld [vmem:[#allocation2 + $0x84] sm:$0xe]  ;;  %v14122_v15 = vld [vmem:[#allocation2 + $0x94] sm:$0xf] }
 0x1ea   : > { %v14103_v48 = vpop.f32.mrb[50].mxu1  ;;  %12315 = vmatmul.mubr.bf16.gmra.mrb[132].mxu0 %v10898_v0  ;;  %v14113_v36 = vadd.f32 %v11537_v11, %v11425_v1  ;;  %v3537_v0 = vsel %vm13145_vm13, %v3535_v40, %v3536_v43  ;;  %v10886_v39 = vrot.slane %v3414_v59, 9  ;;  %v3543_v1 = vrot.slane %v3416_v25, 5  ;;  %v3423_v51 = vld [vmem:[#allocation2 + $0x90] sm:$0xe] }
 0x1eb   : > { %v14111_v57 = vpop.f32.mrb[51].mxu1  ;;  %12318 = vmatprep.mubr.bf16.mxu0 %v10899_v17  ;;  %v3542_v17 = vrot.slane %v3540_v3, 4  ;;  %v11428_v31 = vadd.f32 %v13969_v37, %v13965_v12  ;;  %v11540_v60 = vadd.f32 %v13995_v58, %v13991_v6  ;;  %v10887_v50 = vrot.slane %v3417_v18, 9  ;;  %v3425_v6 = vld [vmem:[#allocation2 + $0x98] sm:$0x1] }
 0x1ec   : > { %v14101_v30 = vpop.f32.mrb[48].mxu0  ;;  %16485 = vst [vmem:[#allocation35_spill] sm:$0xff] %v14113_v36  ;;  %v3550_v29 = vrot.slane %v3419_v55, 5  ;;  %v11431_v43 = vadd.f32 %v13977_v34, %v13971_v9  ;;  %v11543_v59 = vadd.f32 %v14011_v27, %v13999_v32  ;;  %v10901_v40 = vcombine.low %v3534_v56, %v3537_v0  ;;  %v14141_v58 = vld [vmem:[#allocation2 + $0xa0] sm:$0xf] }
 0x1ed   : > { %v14109_v61 = vpop.f32.mrb[49].mxu0  ;;  %v3549_v11 = vrot.slane %v3547_v7, 4  ;;  %v3554_v36 = vrot.slane %v14107_v46, 5  ;;  %v14135_v25 = vadd.f32 %v11540_v60, %v11428_v31  ;;  %v3541_v12 = vsel %vm13145_vm13, %v10886_v39, %v3540_v3  ;;  %v14146_v32 = vld [vmem:[#allocation2 + $0xac] sm:$0xf] }
 0x1ee   : > { %v14116_v42 = vpop.f32.mrb[50].mxu0  ;;  %v14139_v37 = vadd.f32 %v11543_v59, %v11431_v43  ;;  %v10888_v18 = vrot.slane %v3420_v44, 9  ;;  %v3557_v55 = vrot.slane %v3422_v4, 5  ;;  %v3561_v9 = vrot.slane %v14122_v15, 5  ;;  %v3426_v0 = vld [vmem:[#allocation2 + $0x9c] sm:$0xe] }
 0x1ef   : > { %v14124_v49 = vpop.f32.mrb[51].mxu0  ;;  %v11434_v34 = vadd.f32 %v14055_v26, %v14051_v23  ;;  %v3544_v46 = vsel %vm13145_vm13, %v3542_v17, %v3543_v1  ;;  %v3548_v3 = vsel %vm13145_vm13, %v10887_v50, %v3547_v7  ;;  %v10889_v56 = vrot.slane %v3423_v51, 9  ;;  %v3428_v4 = vld [vmem:[#allocation2 + $0xa4] sm:$0x1]  ;;  %v3431_v43 = vld [vmem:[#allocation2 + $0xb0] sm:$0x1] }
 0x1f0   : > { %v11546_v39 = vadd.f32 %v14047_v47, %v14045_v41  ;;  %v3551_v23 = vsel %vm13145_vm13, %v3549_v11, %v3550_v29  ;;  %v3556_v26 = vrot.slane %v3554_v36, 4  ;;  %v11549_v15 = vadd.f32 %v14057_v10, %v14053_v24  ;;  %v14163_v41 = vld [vmem:[#allocation2 + $0xb8] sm:$0xf]  ;;  %v3429_v29 = vld [vmem:[#allocation2 + $0xa8] sm:$0xe] }
 0x1f1   : > { %v3564_v7 = vrot.slane %v3425_v6, 5  ;;  %v3568_v1 = vrot.slane %v14141_v58, 5  ;;  %v3563_v51 = vrot.slane %v3561_v9, 4  ;;  %v14169_v24 = vsel %vm13145_vm13, %v10888_v18, %v3554_v36  ;;  %v14174_v11 = vld [vmem:[#allocation2 + $0xbc] sm:$0x1] }
 0x1f2   : > { %12319 = vmatmul.mubr.bf16.gmra.mrb[136].mxu0 %v10900_v45  ;;  %v11437_v45 = vadd.f32 %v14075_v14, %v14065_v33  ;;  %v14161_v31 = vadd.f32 %v11546_v39, %v11434_v34  ;;  %v10902_v33 = vcombine.low %v3541_v12, %v3544_v46  ;;  %v10903_v14 = vcombine.low %v3548_v3, %v3551_v23  ;;  %v14182_v46 = vld [vmem:[#allocation2 + $0xc0] sm:$0xe] }
 0x1f3   : > { %12322 = vmatprep.mubr.bf16.mxu0 %v10901_v40  ;;  %v3575_v10 = vrot.slane %v14146_v32, 5  ;;  %v14172_v40 = vld [vmem:[#allocation2 + $0xb4] sm:$0xe]  ;;  %v3558_v58 = vsel %vm13145_vm13, %v3556_v26, %v3557_v55  ;;  %v10890_v34 = vrot.slane %v3426_v0, 9  ;;  %v11440_v39 = vadd.f32 %v14109_v61, %v14101_v30 }
 0x1f4   : > { %v11444_v27 = vpop.f32.mrb[52].mxu0  ;;  %v11556_v47 = vpop.f32.mrb[52].mxu1  ;;  %v14165_v50 = vadd.f32 %v11549_v15, %v11437_v45  ;;  %v11552_v12 = vadd.f32 %v14093_v21, %v14085_v22  ;;  %v3562_v18 = vsel %vm13145_vm13, %v10889_v56, %v3561_v9  ;;  %v3571_v32 = vrot.slane %v3428_v4, 5  ;;  %v16501_v45 = vld [vmem:[#allocation34_spill] sm:$0xff] }
 0x1f5   : > { %v11445_v44 = vpop.f32.mrb[53].mxu0  ;;  %v11557_v59 = vpop.f32.mrb[53].mxu1  ;;  %v11443_v3 = vadd.f32 %v14124_v49, %v14116_v42  ;;  %v11555_v55 = vadd.f32 %v14111_v57, %v14103_v48  ;;  %v3565_v0 = vsel %vm13145_vm13, %v3563_v51, %v3564_v7  ;;  %v3570_v30 = vrot.slane %v3568_v1, 4  ;;  %v14199_v48 = vld [vmem:[#allocation2 + $0xc4] sm:$0xf]  ;;  %v16503_v42 = vld [vmem:[#allocation38_spill] sm:$0xff] }
 0x1f6   : > { %v11447_v17 = vpop.f32.mrb[54].mxu0  ;;  %v11559_v6 = vpop.f32.mrb[54].mxu1  ;;  %v3582_v61 = vrot.slane %v14163_v41, 5  ;;  %v14193_v22 = vadd.f32 %v11552_v12, %v11440_v39  ;;  %v10891_v21 = vrot.slane %v3429_v29, 9  ;;  %v3577_v23 = vrot.slane %v3575_v10, 4  ;;  %v16487_v39 = vld [vmem:[#allocation20_spill] sm:$0xff] }
 0x1f7   : > { %v11448_v60 = vpop.f32.mrb[55].mxu0  ;;  %v11560_v36 = vpop.f32.mrb[55].mxu1  ;;  %v3578_v26 = vrot.slane %v3431_v43, 5  ;;  %v14195_v9 = vadd.f32 %v11555_v55, %v11443_v3  ;;  %v11446_v57 = vadd.f32 %v11445_v44, %v11444_v27  ;;  %v10904_v56 = vcombine.low %v14169_v24, %v3558_v58  ;;  %v3437_v3 = vld [vmem:[#allocation2 + $0xc8] sm:$0x1]  ;;  %v16506_v49 = vld [vmem:[#allocation45_spill] sm:$0xff] }
 0x1f8   : > { %v14204_v4 = vsel %vm13145_vm13, %v10890_v34, %v3568_v1  ;;  %v11558_v15 = vadd.f32 %v11557_v59, %v11556_v47  ;;  %v10905_v51 = vcombine.low %v3562_v18, %v3565_v0  ;;  %v14209_v29 = vrot.slane %v3582_v61, 4  ;;  %v16486_v34 = vld [vmem:[#allocation19_spill] sm:$0xff]  ;;  %v16489_v18 = vld [vmem:[#allocation22_spill] sm:$0xff] }
 0x1f9   : > { %v11449_v43 = vadd.f32 %v11448_v60, %v11447_v17  ;;  %v3572_v27 = vsel %vm13145_vm13, %v3570_v30, %v3571_v32  ;;  %v14217_v47 = vadd.f32 %v16487_v39, %v16486_v34  ;;  %v3576_v59 = vsel %vm13145_vm13, %v10891_v21, %v3575_v10  ;;  %v3438_v21 = vld [vmem:[#allocation2 + $0xcc] sm:$0xe] }
 0x1fa   : > { %12323 = vmatmul.mubr.bf16.gmra.mrb[140].mxu0 %v10902_v33  ;;  %v11561_v33 = vadd.f32 %v11560_v36, %v11559_v6  ;;  %v14213_v44 = vadd.f32 %v11558_v15, %v11446_v57  ;;  %v3579_v17 = vsel %vm13145_vm13, %v3577_v23, %v3578_v26  ;;  %v16488_v36 = vld [vmem:[#allocation21_spill] sm:$0xff]  ;;  %v3589_v55 = vrot.slane %v14199_v48, 5  ;;  %v16490_v15 = vld [vmem:[#allocation23_spill] sm:$0xff]  ;;  %v16495_v34 = vld [vmem:[#allocation28_spill] sm:$0xff] }
 0x1fb   : > { %12326 = vmatprep.mubr.bf16.mxu0 %v10903_v14  ;;  %v14227_v32 = vadd.f32 %v16489_v18, %v16488_v36  ;;  %v16492_v26 = vld [vmem:[#allocation25_spill] sm:$0xff]  ;;  %v16497_v18 = vld [vmem:[#allocation30_spill] sm:$0xff] }
 0x1fc   : > { %v11562_v7 = vpop.f32.mrb[56].mxu1  ;;  %v14223_v60 = vadd.f32 %v11561_v33, %v11449_v43  ;;  %v16493_v43 = vld [vmem:[#allocation26_spill] sm:$0xff]  ;;  %v16496_v36 = vld [vmem:[#allocation29_spill] sm:$0xff] }
 0x1fd   : > { %v11563_v14 = vpop.f32.mrb[57].mxu1  ;;  %v14236_v33 = vadd.f32 %v16493_v43, %v16492_v26  ;;  %v14244_v48 = vadd.f32 %v16497_v18, %v16496_v36  ;;  %v16502_v43 = vld [vmem:[#allocation37_spill] sm:$0xff]  ;;  %v16505_v36 = vld [vmem:[#allocation40_spill] sm:$0xff] }
 0x1fe   : > { %v11564_v1 = vadd.f32 %v11563_v14, %v11562_v7  ;;  %v11565_v58 = vpop.f32.mrb[58].mxu1  ;;  %v16491_v7 = vld [vmem:[#allocation24_spill] sm:$0xff]  ;;  %v16494_v14 = vld [vmem:[#allocation27_spill] sm:$0xff] }
 0x1ff   : > { %v11566_v12 = vpop.f32.mrb[59].mxu1  ;;  %v14232_v10 = vadd.f32 %v16491_v7, %v16490_v15  ;;  %v14240_v39 = vadd.f32 %v16495_v34, %v16494_v14  ;;  %v16500_v7 = vld [vmem:[#allocation33_spill] sm:$0xff]  ;;  %v14258_v14 = vadd.f32 %v16503_v42, %v16502_v43  ;;  %v16504_v34 = vld [vmem:[#allocation39_spill] sm:$0xff] }
 0x200   : > { %v11450_v24 = vpop.f32.mrb[56].mxu0  ;;  %v11567_v57 = vadd.f32 %v11566_v12, %v11565_v58  ;;  %v16499_v58 = vld [vmem:[#allocation32_spill] sm:$0xff]  ;;  %v14254_v26 = vadd.f32 %v16501_v45, %v16500_v7  ;;  %v14262_v18 = vadd.f32 %v16505_v36, %v16504_v34  ;;  %v14274_v45 = vadd.f32 %v14009_v16, %v14005_v62 }
 0x201   : > { %v11451_v6 = vpop.f32.mrb[57].mxu0  ;;  %v10906_v16 = vcombine.low %v14204_v4, %v3572_v27  ;;  %v16507_v4 = vrot.slane %v14172_v40, 9  ;;  %v16509_v36 = vrot.slane %v14182_v46, 9 }
 0x202   : > { %v11452_v0 = vadd.f32 %v11451_v6, %v11450_v24  ;;  %v11453_v30 = vpop.f32.mrb[58].mxu0  ;;  %v16498_v24 = vld [vmem:[#allocation31_spill] sm:$0xff]  ;;  %12327 = vmatmul.mubr.bf16.gmra.mrb[144].mxu0 %v10904_v56  ;;  %v14270_v56 = vadd.f32 %v13987_v53, %v13983_v5  ;;  %v14288_v5 = vadd.f32 %v14043_v8, %v14039_v20  ;;  %v3592_v53 = vrot.slane %v3437_v3, 5 }
 0x203   : > { %v11454_v23 = vpop.f32.mrb[59].mxu0  ;;  %v14248_v6 = vadd.f32 %v16499_v58, %v16498_v24  ;;  %12330 = vmatprep.mubr.bf16.mxu0 %v10905_v51  ;;  %v14266_v24 = vadd.f32 %v13975_v35, %v16506_v49  ;;  %v14284_v35 = vadd.f32 %v14033_v52, %v14029_v54  ;;  %v3440_v49 = vld [vmem:[#allocation2 + $0xd4] sm:$0x1]  ;;  %v10907_v58 = vcombine.low %v3576_v59, %v3579_v17 }
 0x204   : > { %v14250_v12 = vadd.f32 %v11564_v1, %v11452_v0  ;;  %v11455_v15 = vadd.f32 %v11454_v23, %v11453_v30  ;;  %v3439_v1 = vld [vmem:[#allocation2 + $0xd0] sm:$0xf]  ;;  %v11568_v51 = vpop.f32.mrb[60].mxu1  ;;  %v14280_v0 = vadd.f32 %v14023_v38, %v14019_v2  ;;  %v10894_v30 = vrot.slane %v3438_v21, 9 }
 0x205   : > { %v11569_v62 = vpop.f32.mrb[61].mxu1  ;;  %v3591_v38 = vrot.slane %v3589_v55, 4  ;;  %v3596_v54 = vrot.slane %v3439_v1, 5  ;;  %v3599_v20 = vrot.slane %v3440_v49, 5  ;;  %v3583_v27 = vsel %vm13145_vm13, %v16507_v4, %v3582_v61 }
 0x206   : > { %v14276_v42 = vadd.f32 %v11567_v57, %v11455_v15  ;;  %v11570_v57 = vadd.f32 %v11569_v62, %v11568_v51  ;;  %v11571_v23 = vpop.f32.mrb[62].mxu1  ;;  %v16508_v59 = vrot.slane %v14174_v11, 5  ;;  %v3590_v1 = vsel %vm13145_vm13, %v16509_v36, %v3589_v55 }
 0x207   : > { %v11572_v2 = vpop.f32.mrb[63].mxu1  ;;  %v3593_v41 = vsel %vm13145_vm13, %v3591_v38, %v3592_v53  ;;  %v3598_v11 = vrot.slane %v3596_v54, 4  ;;  %v3597_v46 = vsel %vm13145_vm13, %v10894_v30, %v3596_v54 }
 0x208   : > { %v11456_v15 = vpop.f32.mrb[60].mxu0  ;;  %v11573_v43 = vadd.f32 %v11572_v2, %v11571_v23  ;;  %v3586_v17 = vsel %vm13145_vm13, %v14209_v29, %v16508_v59  ;;  %v10909_v51 = vcombine.low %v3590_v1, %v3593_v41 }
 0x209   : > { %v11457_v7 = vpop.f32.mrb[61].mxu0  ;;  %v10908_v61 = vcombine.low %v3583_v27, %v3586_v17  ;;  %v3600_v55 = vsel %vm13145_vm13, %v3598_v11, %v3599_v20 }
 0x20a   : > { %v11458_v52 = vadd.f32 %v11457_v7, %v11456_v15  ;;  %v11459_v34 = vpop.f32.mrb[62].mxu0  ;;  %12331 = vmatmul.mubr.bf16.gmra.mrb[148].mxu0 %v10906_v16 }
 0x20b   : > { %v11460_v8 = vpop.f32.mrb[63].mxu0  ;;  %12334 = vmatprep.mubr.bf16.mxu0 %v10907_v58 }
 0x20c   : > { %v14302_v3 = vadd.f32 %v11570_v57, %v11458_v52  ;;  %v11461_v21 = vadd.f32 %v11460_v8, %v11459_v34  ;;  %v10910_v52 = vcombine.low %v3597_v46, %v3600_v55 }
 0x20e   : > { %v14310_v40 = vadd.f32 %v11573_v43, %v11461_v21 }
 0x210   : > { %v11590_v49 = vpop.f32.mrb[64].mxu0  ;;  %v11702_v57 = vpop.f32.mrb[64].mxu1 }
 0x211   : > { %v11591_v62 = vpop.f32.mrb[65].mxu0  ;;  %v11703_v15 = vpop.f32.mrb[65].mxu1 }
 0x212   : > { %v11592_v16 = vadd.f32 %v11591_v62, %v11590_v49  ;;  %v11593_v29 = vpop.f32.mrb[66].mxu0  ;;  %12335 = vmatmul.mubr.bf16.gmra.mrb[152].mxu0 %v10908_v61  ;;  %v11704_v2 = vadd.f32 %v11703_v15, %v11702_v57  ;;  %v11705_v38 = vpop.f32.mrb[66].mxu1 }
 0x213   : > { %v11594_v23 = vpop.f32.mrb[67].mxu0  ;;  %12338 = vmatprep.mubr.bf16.mxu0 %v10909_v51  ;;  %v11706_v43 = vpop.f32.mrb[67].mxu1 }
 0x214   : > { %v4758_v53 = vadd.f32 %v11592_v16, %v14217_v47  ;;  %v11595_v58 = vadd.f32 %v11594_v23, %v11593_v29  ;;  %v11707_v34 = vadd.f32 %v11706_v43, %v11705_v38 }
 0x216   : > { %v4761_v7 = vadd.f32 %v11595_v58, %v14227_v32  ;;  %v14318_v8 = vadd.f32 %v11704_v2, %v4758_v53 }
 0x218   : > { %v11596_v4 = vpop.f32.mrb[68].mxu0  ;;  %v14320_v27 = vadd.f32 %v11707_v34, %v4761_v7 }
 0x219   : > { %v11597_v30 = vpop.f32.mrb[69].mxu0 }
 0x21a   : > { %12339 = vmatmul.mubr.bf16.gmra.mrb[156].mxu0 %v10910_v52  ;;  %v11598_v54 = vadd.f32 %v11597_v30, %v11596_v4  ;;  %v11599_v20 = vpop.f32.mrb[70].mxu0 }
 0x21b   : > { %v11600_v59 = vpop.f32.mrb[71].mxu0  ;;  %v11708_v17 = vpop.f32.mrb[68].mxu1 }
 0x21c   : > { %v4766_v47 = vadd.f32 %v11598_v54, %v14232_v10  ;;  %v11601_v21 = vadd.f32 %v11600_v59, %v11599_v20  ;;  %v11709_v36 = vpop.f32.mrb[69].mxu1 }
 0x21d   : > { %v11710_v1 = vadd.f32 %v11709_v36, %v11708_v17  ;;  %v11711_v41 = vpop.f32.mrb[70].mxu1 }
 0x21e   : > { %v4769_v32 = vadd.f32 %v11601_v21, %v14236_v33  ;;  %v11712_v61 = vpop.f32.mrb[71].mxu1 }
 0x21f   : > { %v11713_v51 = vadd.f32 %v11712_v61, %v11711_v41  ;;  %v14324_v11 = vadd.f32 %v11710_v1, %v4766_v47 }
 0x221   : > { %v14326_v62 = vadd.f32 %v11713_v51, %v4769_v32 }
 0x222   : > { %v11602_v49 = vpop.f32.mrb[72].mxu0 }
 0x223   : > { %v11603_v16 = vpop.f32.mrb[73].mxu0 }
 0x224   : > { %v11604_v29 = vadd.f32 %v11603_v16, %v11602_v49  ;;  %v11605_v57 = vpop.f32.mrb[74].mxu0 }
 0x225   : > { %v11606_v23 = vpop.f32.mrb[75].mxu0  ;;  %v11714_v55 = vpop.f32.mrb[72].mxu1 }
 0x226   : > { %v4774_v10 = vadd.f32 %v11604_v29, %v14240_v39  ;;  %v11607_v46 = vadd.f32 %v11606_v23, %v11605_v57  ;;  %v11715_v33 = vpop.f32.mrb[73].mxu1 }
 0x227   : > { %v11716_v58 = vadd.f32 %v11715_v33, %v11714_v55  ;;  %v11717_v15 = vpop.f32.mrb[74].mxu1 }
 0x228   : > { %v4777_v53 = vadd.f32 %v11607_v46, %v14244_v48  ;;  %v11718_v2 = vpop.f32.mrb[75].mxu1 }
 0x229   : > { %v11719_v38 = vadd.f32 %v11718_v2, %v11717_v15  ;;  %v14330_v7 = vadd.f32 %v11716_v58, %v4774_v10 }
 0x22b   : > { %v11608_v43 = vpop.f32.mrb[76].mxu0  ;;  %v14332_v52 = vadd.f32 %v11719_v38, %v4777_v53 }
 0x22c   : > { %v11609_v34 = vpop.f32.mrb[77].mxu0 }
 0x22d   : > { %v11610_v4 = vadd.f32 %v11609_v34, %v11608_v43  ;;  %v11611_v30 = vpop.f32.mrb[78].mxu0 }
 0x22e   : > { %v11612_v54 = vpop.f32.mrb[79].mxu0 }
 0x22f   : > { %v4782_v39 = vadd.f32 %v11610_v4, %v14248_v6  ;;  %v11720_v20 = vpop.f32.mrb[76].mxu1  ;;  %v11613_v59 = vadd.f32 %v11612_v54, %v11611_v30 }
 0x230   : > { %v11721_v47 = vpop.f32.mrb[77].mxu1 }
 0x231   : > { %v4785_v48 = vadd.f32 %v11613_v59, %v14254_v26  ;;  %v11722_v17 = vadd.f32 %v11721_v47, %v11720_v20  ;;  %v11723_v21 = vpop.f32.mrb[78].mxu1 }
 0x232   : > { %v11724_v36 = vpop.f32.mrb[79].mxu1 }
 0x233   : > { %v11725_v32 = vadd.f32 %v11724_v36, %v11723_v21  ;;  %v14336_v1 = vadd.f32 %v11722_v17, %v4782_v39 }
 0x235   : > { %v14338_v41 = vadd.f32 %v11725_v32, %v4785_v48 }
 0x236   : > { %v11614_v61 = vpop.f32.mrb[80].mxu0 }
 0x237   : > { %v11615_v51 = vpop.f32.mrb[81].mxu0 }
 0x238   : > { %v11616_v49 = vadd.f32 %v11615_v51, %v11614_v61  ;;  %v11617_v16 = vpop.f32.mrb[82].mxu0 }
 0x239   : > { %v11726_v29 = vpop.f32.mrb[80].mxu1  ;;  %v11618_v57 = vpop.f32.mrb[83].mxu0 }
 0x23a   : > { %v4790_v6 = vadd.f32 %v11616_v49, %v14258_v14  ;;  %v11619_v23 = vadd.f32 %v11618_v57, %v11617_v16  ;;  %v11727_v10 = vpop.f32.mrb[81].mxu1 }
 0x23b   : > { %v11728_v46 = vadd.f32 %v11727_v10, %v11726_v29  ;;  %v11729_v26 = vpop.f32.mrb[82].mxu1 }
 0x23c   : > { %v4793_v55 = vadd.f32 %v11619_v23, %v14262_v18  ;;  %v11730_v53 = vpop.f32.mrb[83].mxu1 }
 0x23d   : > { %v11731_v33 = vadd.f32 %v11730_v53, %v11729_v26  ;;  %v14342_v58 = vadd.f32 %v11728_v46, %v4790_v6 }
 0x23f   : > { %v11620_v15 = vpop.f32.mrb[84].mxu0  ;;  %v14344_v38 = vadd.f32 %v11731_v33, %v4793_v55 }
 0x240   : > { %v11621_v2 = vpop.f32.mrb[85].mxu0 }
 0x241   : > { %v11622_v43 = vadd.f32 %v11621_v2, %v11620_v15  ;;  %v11623_v34 = vpop.f32.mrb[86].mxu0 }
 0x242   : > { %v11624_v4 = vpop.f32.mrb[87].mxu0 }
 0x243   : > { %v4798_v30 = vadd.f32 %v11622_v43, %v14266_v24  ;;  %v11625_v14 = vadd.f32 %v11624_v4, %v11623_v34 }
 0x244   : > { %v11732_v54 = vpop.f32.mrb[84].mxu1 }
 0x245   : > { %v4801_v39 = vadd.f32 %v11625_v14, %v14270_v56  ;;  %v11733_v20 = vpop.f32.mrb[85].mxu1 }
 0x246   : > { %v11734_v59 = vadd.f32 %v11733_v20, %v11732_v54  ;;  %v11735_v18 = vpop.f32.mrb[86].mxu1 }
 0x247   : > { %v11736_v47 = vpop.f32.mrb[87].mxu1 }
 0x248   : > { %v11737_v48 = vadd.f32 %v11736_v47, %v11735_v18  ;;  %v14348_v17 = vadd.f32 %v11734_v59, %v4798_v30 }
 0x249   : > { %v11626_v21 = vpop.f32.mrb[88].mxu0 }
 0x24a   : > { %v14350_v36 = vadd.f32 %v11737_v48, %v4801_v39  ;;  %v11627_v32 = vpop.f32.mrb[89].mxu0 }
 0x24b   : > { %v11628_v61 = vadd.f32 %v11627_v32, %v11626_v21  ;;  %v11629_v51 = vpop.f32.mrb[90].mxu0 }
 0x24c   : > { %v11630_v49 = vpop.f32.mrb[91].mxu0 }
 0x24d   : > { %v4806_v24 = vadd.f32 %v11628_v61, %v14274_v45  ;;  %v11631_v16 = vadd.f32 %v11630_v49, %v11629_v51 }
 0x24e   : > { %v11738_v29 = vpop.f32.mrb[88].mxu1 }
 0x24f   : > { %v4809_v56 = vadd.f32 %v11631_v16, %v14280_v0  ;;  %v11739_v57 = vpop.f32.mrb[89].mxu1 }
 0x250   : > { %v11740_v6 = vadd.f32 %v11739_v57, %v11738_v29  ;;  %v11741_v23 = vpop.f32.mrb[90].mxu1 }
 0x251   : > { %v11742_v10 = vpop.f32.mrb[91].mxu1 }
 0x252   : > { %v11743_v46 = vadd.f32 %v11742_v10, %v11741_v23  ;;  %v14354_v26 = vadd.f32 %v11740_v6, %v4806_v24 }
 0x254   : > { %v11632_v55 = vpop.f32.mrb[92].mxu0  ;;  %v14356_v33 = vadd.f32 %v11743_v46, %v4809_v56 }
 0x255   : > { %v11633_v53 = vpop.f32.mrb[93].mxu0 }
 0x256   : > { %v11634_v15 = vadd.f32 %v11633_v53, %v11632_v55  ;;  %v11635_v2 = vpop.f32.mrb[94].mxu0 }
 0x257   : > { %v11636_v43 = vpop.f32.mrb[95].mxu0 }
 0x258   : > { %v4814_v45 = vadd.f32 %v11634_v15, %v14284_v35  ;;  %v11637_v34 = vadd.f32 %v11636_v43, %v11635_v2  ;;  %v11744_v4 = vpop.f32.mrb[92].mxu1 }
 0x259   : > { %v11745_v30 = vpop.f32.mrb[93].mxu1 }
 0x25a   : > { %v4817_v0 = vadd.f32 %v11637_v34, %v14288_v5  ;;  %v11746_v14 = vadd.f32 %v11745_v30, %v11744_v4  ;;  %v11747_v54 = vpop.f32.mrb[94].mxu1 }
 0x25b   : > { %v11748_v39 = vpop.f32.mrb[95].mxu1 }
 0x25c   : > { %v11749_v20 = vadd.f32 %v11748_v39, %v11747_v54  ;;  %v14360_v59 = vadd.f32 %v11746_v14, %v4814_v45 }
 0x25e   : > { %v11638_v18 = vpop.f32.mrb[96].mxu0  ;;  %v14362_v48 = vadd.f32 %v11749_v20, %v4817_v0 }
 0x25f   : > { %v11639_v47 = vpop.f32.mrb[97].mxu0 }
 0x260   : > { %v11640_v21 = vadd.f32 %v11639_v47, %v11638_v18  ;;  %v11641_v32 = vpop.f32.mrb[98].mxu0 }
 0x261   : > { %v11642_v61 = vpop.f32.mrb[99].mxu0 }
 0x262   : > { %v4822_v35 = vadd.f32 %v11640_v21, %v14079_v19  ;;  %v11643_v51 = vadd.f32 %v11642_v61, %v11641_v32 }
 0x263   : > { %v11750_v49 = vpop.f32.mrb[96].mxu1 }
 0x264   : > { %v4825_v5 = vadd.f32 %v11643_v51, %v14083_v28  ;;  %v11751_v24 = vpop.f32.mrb[97].mxu1  ;;  %v16510_v28 = vld [vmem:[#allocation35_spill] sm:$0xff] }
 0x265   : > { %v11752_v16 = vadd.f32 %v11751_v24, %v11750_v49  ;;  %v11753_v29 = vpop.f32.mrb[98].mxu1 }
 0x266   : > { %v11754_v56 = vpop.f32.mrb[99].mxu1 }
 0x267   : > { %v11755_v57 = vadd.f32 %v11754_v56, %v11753_v29  ;;  %v14366_v6 = vadd.f32 %v11752_v16, %v4822_v35 }
 0x268   : > { %v11644_v23 = vpop.f32.mrb[100].mxu0 }
 0x269   : > { %v14368_v10 = vadd.f32 %v11755_v57, %v4825_v5  ;;  %v11645_v46 = vpop.f32.mrb[101].mxu0 }
 0x26a   : > { %v11646_v55 = vadd.f32 %v11645_v46, %v11644_v23  ;;  %v11647_v53 = vpop.f32.mrb[102].mxu0 }
 0x26b   : > { %v11648_v15 = vpop.f32.mrb[103].mxu0 }
 0x26c   : > { %v4830_v19 = vadd.f32 %v11646_v55, %v14105_v63  ;;  %v11649_v43 = vadd.f32 %v11648_v15, %v11647_v53 }
 0x26d   : > { %v11756_v2 = vpop.f32.mrb[100].mxu1 }
 0x26e   : > { %v11757_v45 = vpop.f32.mrb[101].mxu1  ;;  %v4833_v34 = vadd.f32 %v11649_v43, %v16510_v28 }
 0x26f   : > { %v11758_v4 = vadd.f32 %v11757_v45, %v11756_v2  ;;  %v11759_v0 = vpop.f32.mrb[102].mxu1 }
 0x270   : > { %v11760_v30 = vpop.f32.mrb[103].mxu1 }
 0x271   : > { %v11761_v14 = vadd.f32 %v11760_v30, %v11759_v0  ;;  %v14372_v54 = vadd.f32 %v11758_v4, %v4830_v19 }
 0x273   : > { %v11650_v39 = vpop.f32.mrb[104].mxu0  ;;  %v14374_v20 = vadd.f32 %v11761_v14, %v4833_v34 }
 0x274   : > { %v11651_v18 = vpop.f32.mrb[105].mxu0 }
 0x275   : > { %v11652_v47 = vadd.f32 %v11651_v18, %v11650_v39  ;;  %v11653_v21 = vpop.f32.mrb[106].mxu0 }
 0x276   : > { %v11654_v32 = vpop.f32.mrb[107].mxu0 }
 0x277   : > { %v4838_v63 = vadd.f32 %v11652_v47, %v14135_v25  ;;  %v11655_v61 = vadd.f32 %v11654_v32, %v11653_v21  ;;  %v11762_v35 = vpop.f32.mrb[104].mxu1 }
 0x278   : > { %v11763_v49 = vpop.f32.mrb[105].mxu1 }
 0x279   : > { %v4841_v51 = vadd.f32 %v11655_v61, %v14139_v37  ;;  %v11764_v5 = vadd.f32 %v11763_v49, %v11762_v35  ;;  %v11765_v24 = vpop.f32.mrb[106].mxu1 }
 0x27a   : > { %v11766_v16 = vpop.f32.mrb[107].mxu1 }
 0x27b   : > { %v11767_v29 = vadd.f32 %v11766_v16, %v11765_v24  ;;  %v14378_v56 = vadd.f32 %v11764_v5, %v4838_v63 }
 0x27d   : > { %v14380_v23 = vadd.f32 %v11767_v29, %v4841_v51 }
 0x27e   : > { %v11656_v57 = vpop.f32.mrb[108].mxu0 }
 0x27f   : > { %v11657_v46 = vpop.f32.mrb[109].mxu0 }
 0x280   : > { %v11658_v55 = vadd.f32 %v11657_v46, %v11656_v57  ;;  %v11659_v53 = vpop.f32.mrb[110].mxu0 }
 0x281   : > { %v11660_v15 = vpop.f32.mrb[111].mxu0 }
 0x282   : > { %v4846_v25 = vadd.f32 %v11658_v55, %v14161_v31  ;;  %v11661_v19 = vadd.f32 %v11660_v15, %v11659_v53  ;;  %v11768_v2 = vpop.f32.mrb[108].mxu1 }
 0x283   : > { %v11769_v43 = vpop.f32.mrb[109].mxu1 }
 0x284   : > { %v4849_v37 = vadd.f32 %v11661_v19, %v14165_v50  ;;  %v11770_v45 = vadd.f32 %v11769_v43, %v11768_v2  ;;  %v11771_v28 = vpop.f32.mrb[110].mxu1 }
 0x285   : > { %v11772_v34 = vpop.f32.mrb[111].mxu1 }
 0x286   : > { %v11773_v4 = vadd.f32 %v11772_v34, %v11771_v28  ;;  %v14384_v0 = vadd.f32 %v11770_v45, %v4846_v25 }
 0x288   : > { %v14386_v14 = vadd.f32 %v11773_v4, %v4849_v37 }
 0x289   : > { %v11662_v30 = vpop.f32.mrb[112].mxu0 }
 0x28a   : > { %v11663_v39 = vpop.f32.mrb[113].mxu0 }
 0x28b   : > { %v11664_v18 = vadd.f32 %v11663_v39, %v11662_v30  ;;  %v11665_v47 = vpop.f32.mrb[114].mxu0 }
 0x28c   : > { %v11666_v21 = vpop.f32.mrb[115].mxu0 }
 0x28d   : > { %v4854_v31 = vadd.f32 %v11664_v18, %v14193_v22  ;;  %v11667_v32 = vadd.f32 %v11666_v21, %v11665_v47  ;;  %v11774_v63 = vpop.f32.mrb[112].mxu1 }
 0x28e   : > { %v11775_v61 = vpop.f32.mrb[113].mxu1 }
 0x28f   : > { %v4857_v50 = vadd.f32 %v11667_v32, %v14195_v9  ;;  %v11776_v35 = vadd.f32 %v11775_v61, %v11774_v63  ;;  %v11777_v51 = vpop.f32.mrb[114].mxu1 }
 0x290   : > { %v11778_v49 = vpop.f32.mrb[115].mxu1 }
 0x291   : > { %v11779_v5 = vadd.f32 %v11778_v49, %v11777_v51  ;;  %v14390_v24 = vadd.f32 %v11776_v35, %v4854_v31 }
 0x293   : > { %v14392_v16 = vadd.f32 %v11779_v5, %v4857_v50 }
 0x294   : > { %v11668_v29 = vpop.f32.mrb[116].mxu0 }
 0x295   : > { %v11669_v57 = vpop.f32.mrb[117].mxu0 }
 0x296   : > { %v11670_v46 = vadd.f32 %v11669_v57, %v11668_v29  ;;  %v11671_v55 = vpop.f32.mrb[118].mxu0 }
 0x297   : > { %v11672_v53 = vpop.f32.mrb[119].mxu0 }
 0x298   : > { %v4862_v22 = vadd.f32 %v11670_v46, %v14213_v44  ;;  %v11673_v25 = vadd.f32 %v11672_v53, %v11671_v55 }
 0x299   : > { %v11780_v15 = vpop.f32.mrb[116].mxu1 }
 0x29a   : > { %v11781_v19 = vpop.f32.mrb[117].mxu1  ;;  %v4865_v9 = vadd.f32 %v11673_v25, %v14223_v60 }
 0x29b   : > { %v11782_v2 = vadd.f32 %v11781_v19, %v11780_v15  ;;  %v11783_v37 = vpop.f32.mrb[118].mxu1 }
 0x29c   : > { %v11784_v43 = vpop.f32.mrb[119].mxu1 }
 0x29d   : > { %v11785_v45 = vadd.f32 %v11784_v43, %v11783_v37  ;;  %v14396_v28 = vadd.f32 %v11782_v2, %v4862_v22 }
 0x29f   : > { %v14398_v34 = vadd.f32 %v11785_v45, %v4865_v9 }
 0x2a0   : > { %v11674_v4 = vpop.f32.mrb[120].mxu0 }
 0x2a1   : > { %v11675_v30 = vpop.f32.mrb[121].mxu0 }
 0x2a2   : > { %v11676_v39 = vadd.f32 %v11675_v30, %v11674_v4  ;;  %v11677_v18 = vpop.f32.mrb[122].mxu0 }
 0x2a3   : > { %v11678_v47 = vpop.f32.mrb[123].mxu0 }
 0x2a4   : > { %v4870_v44 = vadd.f32 %v11676_v39, %v14250_v12  ;;  %v11679_v21 = vadd.f32 %v11678_v47, %v11677_v18 }
 0x2a6   : > { %v4873_v31 = vadd.f32 %v11679_v21, %v14276_v42 }
 0x2aa   : > { %v11786_v32 = vpop.f32.mrb[120].mxu1 }
 0x2ab   : > { %v11787_v60 = vpop.f32.mrb[121].mxu1 }
 0x2ac   : > { %v11788_v63 = vadd.f32 %v11787_v60, %v11786_v32  ;;  %v11789_v50 = vpop.f32.mrb[122].mxu1 }
 0x2ad   : > { %v11790_v61 = vpop.f32.mrb[123].mxu1  ;;  %v11680_v51 = vpop.f32.mrb[124].mxu0 }
 0x2ae   : > { %v11791_v35 = vadd.f32 %v11790_v61, %v11789_v50  ;;  %v14402_v49 = vadd.f32 %v11788_v63, %v4870_v44  ;;  %v11681_v5 = vpop.f32.mrb[125].mxu0 }
 0x2af   : > { %v11682_v29 = vadd.f32 %v11681_v5, %v11680_v51  ;;  %v11683_v57 = vpop.f32.mrb[126].mxu0 }
 0x2b0   : > { %v14404_v46 = vadd.f32 %v11791_v35, %v4873_v31  ;;  %v11684_v55 = vpop.f32.mrb[127].mxu0 }
 0x2b1   : > { %v4878_v12 = vadd.f32 %v11682_v29, %v14302_v3  ;;  %v11685_v53 = vadd.f32 %v11684_v55, %v11683_v57 }
 0x2b3   : > { %v11792_v22 = vpop.f32.mrb[124].mxu1  ;;  %v4881_v42 = vadd.f32 %v11685_v53, %v14310_v40 }
 0x2b4   : > { %v11793_v15 = vpop.f32.mrb[125].mxu1 }
 0x2b5   : > { %v11794_v25 = vadd.f32 %v11793_v15, %v11792_v22  ;;  %v11795_v19 = vpop.f32.mrb[126].mxu1  ;;  %v12312_v2 = vpop.f32.mrb[128].mxu0 }
 0x2b6   : > { %v11796_v9 = vpop.f32.mrb[127].mxu1  ;;  %v14409_v43 = vadd.f32 %v12312_v2, %v14324_v11  ;;  %v5079_v45 = vpop.f32.mrb[129].mxu0 }
 0x2b7   : > { %v11797_v37 = vadd.f32 %v11796_v9, %v11795_v19  ;;  %v14411_v4 = vadd.f32 %v11794_v25, %v4878_v12  ;;  %v14414_v30 = vadd.f32 %v5079_v45, %v14318_v8  ;;  %v12313_v3 = vpop.f32.mrb[130].mxu0 }
 0x2b8   : > { %v14417_v39 = vadd.f32 %v12313_v3, %v14326_v62  ;;  %v5082_v40 = vpop.f32.mrb[131].mxu0 }
 0x2b9   : > { %v14419_v18 = vadd.f32 %v11797_v37, %v4881_v42  ;;  %v14422_v47 = vadd.f32 %v5082_v40, %v14320_v27 }
 0x2bb   : > { %v5206_v11 = vadd.f32 %v14422_v47, %v14414_v30 }
 0x2bd   : > { %v5207_v44 = vadd.f32 %v5206_v11, %v14409_v43  ;;  %v12316_v21 = vpop.f32.mrb[132].mxu0 }
 0x2be   : > { %v14428_v31 = vadd.f32 %v12316_v21, %v14336_v1  ;;  %v5095_v8 = vpop.f32.mrb[133].mxu0 }
 0x2bf   : > { %v14431_v32 = vadd.f32 %v5095_v8, %v14330_v7  ;;  %v5208_v62 = vadd.f32 %v5207_v44, %v14417_v39  ;;  %v12317_v60 = vpop.f32.mrb[134].mxu0 }
 0x2c0   : > { %v14435_v63 = vadd.f32 %v12317_v60, %v14338_v41  ;;  %v5098_v27 = vpop.f32.mrb[135].mxu0 }
 0x2c1   : > { %v5209_v50 = vadd.f32 %v5208_v62, %v14431_v32  ;;  %v14439_v61 = vadd.f32 %v5098_v27, %v14332_v52 }
 0x2c3   : > { %v5210_v35 = vadd.f32 %v5209_v50, %v14439_v61 }
 0x2c5   : > { %v5211_v1 = vadd.f32 %v5210_v35, %v14428_v31  ;;  %v12320_v51 = vpop.f32.mrb[136].mxu0 }
 0x2c6   : > { %v14444_v7 = vadd.f32 %v12320_v51, %v14348_v17  ;;  %v5111_v5 = vpop.f32.mrb[137].mxu0 }
 0x2c7   : > { %v14447_v29 = vadd.f32 %v5111_v5, %v14342_v58  ;;  %v5212_v41 = vadd.f32 %v5211_v1, %v14435_v63  ;;  %v12321_v57 = vpop.f32.mrb[138].mxu0 }
 0x2c8   : > { %v14451_v55 = vadd.f32 %v12321_v57, %v14350_v36  ;;  %v5114_v52 = vpop.f32.mrb[139].mxu0 }
 0x2c9   : > { %v5213_v12 = vadd.f32 %v5212_v41, %v14447_v29  ;;  %v14455_v53 = vadd.f32 %v5114_v52, %v14344_v38 }
 0x2cb   : > { %v5214_v22 = vadd.f32 %v5213_v12, %v14455_v53 }
 0x2cd   : > { %v5215_v17 = vadd.f32 %v5214_v22, %v14444_v7  ;;  %v12324_v42 = vpop.f32.mrb[140].mxu0 }
 0x2ce   : > { %v14460_v58 = vadd.f32 %v12324_v42, %v14360_v59  ;;  %v5127_v15 = vpop.f32.mrb[141].mxu0 }
 0x2cf   : > { %v14463_v25 = vadd.f32 %v5127_v15, %v14354_v26  ;;  %v5216_v36 = vadd.f32 %v5215_v17, %v14451_v55  ;;  %v12325_v19 = vpop.f32.mrb[142].mxu0 }
 0x2d0   : > { %v14467_v9 = vadd.f32 %v12325_v19, %v14362_v48  ;;  %v5130_v38 = vpop.f32.mrb[143].mxu0 }
 0x2d1   : > { %v5217_v2 = vadd.f32 %v5216_v36, %v14463_v25  ;;  %v14471_v37 = vadd.f32 %v5130_v38, %v14356_v33 }
 0x2d3   : > { %v5218_v45 = vadd.f32 %v5217_v2, %v14471_v37 }
 0x2d5   : > { %v5219_v59 = vadd.f32 %v5218_v45, %v14460_v58  ;;  %v12328_v3 = vpop.f32.mrb[144].mxu0 }
 0x2d6   : > { %v14476_v26 = vadd.f32 %v12328_v3, %v14372_v54  ;;  %v5143_v40 = vpop.f32.mrb[145].mxu0 }
 0x2d7   : > { %v5144_v11 = vadd.f32 %v5143_v40, %v14366_v6  ;;  %v5220_v48 = vadd.f32 %v5219_v59, %v14467_v9  ;;  %v12329_v44 = vpop.f32.mrb[146].mxu0 }
 0x2d8   : > { %v5155_v21 = vadd.f32 %v12329_v44, %v14374_v20  ;;  %v5146_v8 = vpop.f32.mrb[147].mxu0 }
 0x2d9   : > { %v5221_v62 = vadd.f32 %v5220_v48, %v5144_v11  ;;  %v5147_v33 = vadd.f32 %v5146_v8, %v14368_v10 }
 0x2db   : > { %v5222_v60 = vadd.f32 %v5221_v62, %v5147_v33 }
 0x2dd   : > { %v5223_v27 = vadd.f32 %v5222_v60, %v14476_v26  ;;  %v12332_v50 = vpop.f32.mrb[148].mxu0 }
 0x2de   : > { %v5168_v35 = vadd.f32 %v12332_v50, %v14384_v0  ;;  %v5159_v54 = vpop.f32.mrb[149].mxu0 }
 0x2df   : > { %v5160_v1 = vadd.f32 %v5159_v54, %v14378_v56  ;;  %v5224_v51 = vadd.f32 %v5223_v27, %v5155_v21  ;;  %v12333_v6 = vpop.f32.mrb[150].mxu0 }
 0x2e0   : > { %v5171_v5 = vadd.f32 %v12333_v6, %v14386_v14  ;;  %v5162_v41 = vpop.f32.mrb[151].mxu0 }
 0x2e1   : > { %v5225_v57 = vadd.f32 %v5224_v51, %v5160_v1  ;;  %v5163_v20 = vadd.f32 %v5162_v41, %v14380_v23 }
 0x2e3   : > { %v5226_v52 = vadd.f32 %v5225_v57, %v5163_v20 }
 0x2e5   : > { %v5227_v12 = vadd.f32 %v5226_v52, %v5168_v35  ;;  %v12336_v10 = vpop.f32.mrb[152].mxu0 }
 0x2e6   : > { %v5184_v22 = vadd.f32 %v12336_v10, %v14396_v28  ;;  %v5175_v17 = vpop.f32.mrb[153].mxu0 }
 0x2e7   : > { %v5176_v42 = vadd.f32 %v5175_v17, %v14390_v24  ;;  %v5228_v0 = vadd.f32 %v5227_v12, %v5171_v5  ;;  %v12337_v15 = vpop.f32.mrb[154].mxu0 }
 0x2e8   : > { %v5187_v56 = vadd.f32 %v12337_v15, %v14398_v34  ;;  %v5178_v36 = vpop.f32.mrb[155].mxu0 }
 0x2e9   : > { %v5229_v19 = vadd.f32 %v5228_v0, %v5176_v42  ;;  %v5179_v14 = vadd.f32 %v5178_v36, %v14392_v16 }
 0x2eb   : > { %v5230_v38 = vadd.f32 %v5229_v19, %v5179_v14 }
 0x2ed   : > { %v5231_v2 = vadd.f32 %v5230_v38, %v5184_v22  ;;  %v12340_v45 = vpop.f32.mrb[156].mxu0 }
 0x2ee   : > { %v5200_v23 = vadd.f32 %v12340_v45, %v14411_v4  ;;  %v5191_v59 = vpop.f32.mrb[157].mxu0 }
 0x2ef   : > { %v5192_v3 = vadd.f32 %v5191_v59, %v14402_v49  ;;  %v5232_v28 = vadd.f32 %v5231_v2, %v5187_v56  ;;  %v12341_v40 = vpop.f32.mrb[158].mxu0 }
 0x2f0   : > { %v5203_v24 = vadd.f32 %v12341_v40, %v14419_v18  ;;  %v5194_v48 = vpop.f32.mrb[159].mxu0 }
 0x2f1   : > { %v5233_v44 = vadd.f32 %v5232_v28, %v5192_v3  ;;  %v5195_v34 = vadd.f32 %v5194_v48, %v14404_v46  ;;  %v12585_v48 = vld [vmem:[#allocation9] sm:$0xff]  }
 0x2f3   : > { %v5234_v8 = vadd.f32 %v5233_v44, %v5195_v34 }
 0x2f5   : > { %v5235_v62 = vadd.f32 %v5234_v8, %v5200_v23  ;;  %v12598_v8 = vld [vmem:[#allocation9 + $0x80] sm:$0xff]  }
 0x2f7   : > { %v5236_v60 = vadd.f32 %v5235_v62, %v5203_v24 }
 0x2f9   : > { %v5237_v16 = vrot.slane %v5236_v60, 4 }
 0x2fb   : > { %v5238_v27 = vadd.f32 %v5237_v16, %v5236_v60  ;;  %v12586_v16 = vld [vmem:[#allocation9 + $0x48] sm:$0xff]  }
 0x2fd   : > { %v5239_v50 = vrot.slane %v5238_v27, 2 }
 0x2ff   : > { %v5240_v54 = vadd.f32 %v5239_v50, %v5238_v27  ;;  %v12587_v27 = vld [vmem:[#allocation9 + $0x8] sm:$0xff]  }
 0x300   : > { %v12600_v50 = vld [vmem:[#allocation9 + $0xc8] sm:$0xff]  }
 0x301   : > { %v5241_v51 = vrot.slane %v5240_v54, 1 }
 0x303   : > { %v5242_v4 = vadd.f32 %v5241_v51, %v5240_v54 }
 0x305   : > { %v5244_v6 = vmul.f32 0.00390625, %v5242_v4  ;;  %v12601_v4 = vld [vmem:[#allocation9 + $0x88] sm:$0xff]  }
 0x307   : > { %v14496_v49 = vsub.f32 %v14447_v29, %v5244_v6  ;;  %v14499_v41 = vsub.f32 %v14455_v53, %v5244_v6  ;;  %v14502_v18 = vsub.f32 %v14444_v7, %v5244_v6  ;;  %v14505_v46 = vsub.f32 %v14451_v55, %v5244_v6 }
 0x308   : > { %v14508_v57 = vsub.f32 %v14463_v25, %v5244_v6  ;;  %v14511_v52 = vsub.f32 %v14471_v37, %v5244_v6  ;;  %v14514_v12 = vsub.f32 %v14460_v58, %v5244_v6  ;;  %v14517_v29 = vsub.f32 %v14467_v9, %v5244_v6 }
 0x309   : > { %v14519_v53 = vsub.f32 %v5144_v11, %v5244_v6  ;;  %v14521_v10 = vsub.f32 %v5147_v33, %v5244_v6  ;;  %v14524_v7 = vsub.f32 %v14476_v26, %v5244_v6  ;;  %v14526_v55 = vsub.f32 %v5155_v21, %v5244_v6 }
 0x30a   : > { %v14528_v25 = vsub.f32 %v5160_v1, %v5244_v6  ;;  %v14530_v17 = vsub.f32 %v5163_v20, %v5244_v6  ;;  %v14532_v37 = vsub.f32 %v5168_v35, %v5244_v6  ;;  %v14534_v58 = vsub.f32 %v5171_v5, %v5244_v6 }
 0x30b   : > { %v14536_v0 = vsub.f32 %v5176_v42, %v5244_v6  ;;  %v14538_v9 = vsub.f32 %v5179_v14, %v5244_v6  ;;  %v14540_v11 = vsub.f32 %v5184_v22, %v5244_v6  ;;  %v14542_v33 = vsub.f32 %v5187_v56, %v5244_v6 }
 0x30c   : > { %v14544_v26 = vsub.f32 %v5192_v3, %v5244_v6  ;;  %v14546_v21 = vsub.f32 %v5195_v34, %v5244_v6  ;;  %v14548_v1 = vsub.f32 %v5200_v23, %v5244_v6  ;;  %v14550_v20 = vsub.f32 %v5203_v24, %v5244_v6  ;;  %v12584_v24 = vld [vmem:[#allocation9 + $0x40] sm:$0xff]  }
 0x30d   : > { %v14553_v35 = vsub.f32 %v14414_v30, %v5244_v6  ;;  %v14556_v5 = vsub.f32 %v14422_v47, %v5244_v6  ;;  %v14559_v42 = vsub.f32 %v14409_v43, %v5244_v6  ;;  %v14566_v56 = vsub.f32 %v14417_v39, %v5244_v6  ;;  %11822 = vmatprep.subr.bf16.mxu1 %v12584_v24 }
 0x30e   : > { %v14569_v36 = vsub.f32 %v14431_v32, %v5244_v6  ;;  %v14574_v19 = vsub.f32 %v14439_v61, %v5244_v6  ;;  %v14579_v38 = vsub.f32 %v14428_v31, %v5244_v6  ;;  %v14584_v32 = vsub.f32 %v14435_v63, %v5244_v6  ;;  %v12596_v63 = vld [vmem:[#allocation9 + $0xc0] sm:$0xff]   ;;  %11823 = vmatpush3.bf16.msra.mxu1 %v12585_v48 }
 0x30f   : > { %v5277_v22 = vmul.f32 %v14553_v35, %v14553_v35  ;;  %v5278_v15 = vmul.f32 %v14556_v5, %v14556_v5  ;;  %v5279_v30 = vmul.f32 %v14559_v42, %v14559_v42  ;;  %v5280_v43 = vmul.f32 %v14566_v56, %v14566_v56  ;;  %11934 = vmatprep.subr.bf16.mxu0 %v12596_v63  ;;  %v12592_v48 = vld [vmem:[#allocation9 + $0x60] sm:$0xff]  }
 0x310   : > { %v5281_v39 = vmul.f32 %v14569_v36, %v14569_v36  ;;  %v5282_v45 = vmul.f32 %v14574_v19, %v14574_v19  ;;  %v5283_v61 = vmul.f32 %v14579_v38, %v14579_v38  ;;  %v5284_v3 = vmul.f32 %v14584_v32, %v14584_v32  ;;  %11935 = vmatpush3.bf16.msra.mxu0 %v12598_v8  ;;  %v12593_v63 = vld [vmem:[#allocation9 + $0x20] sm:$0xff]  }
 0x311   : > { %v5309_v47 = vadd.f32 %v5278_v15, %v5277_v22  ;;  %v5285_v28 = vmul.f32 %v14496_v49, %v14496_v49  ;;  %v5286_v44 = vmul.f32 %v14499_v41, %v14499_v41  ;;  %v5287_v62 = vmul.f32 %v14502_v18, %v14502_v18  ;;  %11824 = vmatprep.subr.bf16.mxu1 %v12586_v16  ;;  %v12588_v15 = vld [vmem:[#allocation9 + $0x50] sm:$0xff]  }
 0x312   : > { %v5288_v54 = vmul.f32 %v14505_v46, %v14505_v46  ;;  %11825 = vmatpush3.bf16.msra.mxu1 %v12587_v27  ;;  %11936 = vmatprep.subr.bf16.mxu0 %v12600_v50  ;;  %v5289_v6 = vmul.f32 %v14508_v57, %v14508_v57  ;;  %v12594_v27 = vld [vmem:[#allocation9 + $0x68] sm:$0xff]  }
 0x313   : > { %v5310_v14 = vadd.f32 %v5309_v47, %v5279_v30  ;;  %v12589_v30 = vld [vmem:[#allocation9 + $0x10] sm:$0xff]   ;;  %11826 = vmatprep.subr.bf16.mxu1 %v12588_v15  ;;  %v12595_v50 = vld [vmem:[#allocation9 + $0x28] sm:$0xff]  }
 0x314   : > { %11937 = vmatpush3.bf16.msra.mxu0 %v12601_v4  ;;  %v12602_v47 = vld [vmem:[#allocation9 + $0xd0] sm:$0xff]   ;;  %v5296_v4 = vmul.f32 %v14526_v55, %v14526_v55  ;;  %v6086_v15 = vld [vmem:[#allocation2 + $0x4] sm:$0xf] }
 0x315   : > { %v5311_v2 = vadd.f32 %v5310_v14, %v5280_v43  ;;  %v5290_v43 = vmul.f32 %v14511_v52, %v14511_v52  ;;  %11938 = vmatprep.subr.bf16.mxu0 %v12602_v47 }
 0x316   : > { %11827 = vmatpush3.bf16.msra.mxu1 %v12589_v30 }
 0x317   : > { %v5312_v23 = vadd.f32 %v5311_v2, %v5281_v39  ;;  %v12603_v39 = vld [vmem:[#allocation9 + $0x90] sm:$0xff]   ;;  %v5291_v2 = vmul.f32 %v14514_v12, %v14514_v12 }
 0x318   : > { %11939 = vmatpush3.bf16.msra.mxu0 %v12603_v39  ;;  %v5297_v39 = vmul.f32 %v14528_v25, %v14528_v25 }
 0x319   : > { %v5313_v59 = vadd.f32 %v5312_v23, %v5282_v45  ;;  %v12590_v23 = vld [vmem:[#allocation9 + $0x58] sm:$0xff]  }
 0x31a   : > { %11828 = vmatprep.subr.bf16.mxu1 %v12590_v23 }
 0x31b   : > { %v5314_v31 = vadd.f32 %v5313_v59, %v5283_v61  ;;  %v12591_v61 = vld [vmem:[#allocation9 + $0x18] sm:$0xff]  }
 0x31c   : > { %v12604_v59 = vld [vmem:[#allocation9 + $0xd8] sm:$0xff]   ;;  %11829 = vmatpush3.bf16.msra.mxu1 %v12591_v61 }
 0x31d   : > { %v5315_v40 = vadd.f32 %v5314_v31, %v5284_v3  ;;  %v5292_v3 = vmul.f32 %v14517_v29, %v14517_v29  ;;  %11940 = vmatprep.subr.bf16.mxu0 %v12604_v59  ;;  %11830 = vmatprep.subr.bf16.mxu1 %v12592_v48  ;;  %v12599_v59 = vld [vmem:[#allocation9 + $0x30] sm:$0xff]  }
 0x31e   : > { %v12612_v48 = vld [vmem:[#allocation9 + $0xf0] sm:$0xff]  }
 0x31f   : > { %v5316_v34 = vadd.f32 %v5315_v40, %v5285_v28  ;;  %v12605_v28 = vld [vmem:[#allocation9 + $0x98] sm:$0xff]   ;;  %v5293_v40 = vmul.f32 %v14519_v53, %v14519_v53 }
 0x320   : > { %11941 = vmatpush3.bf16.msra.mxu0 %v12605_v28  ;;  %11831 = vmatpush3.bf16.msra.mxu1 %v12593_v63  ;;  %v12613_v63 = vld [vmem:[#allocation9 + $0xb0] sm:$0xff]  }
 0x321   : > { %v5317_v60 = vadd.f32 %v5316_v34, %v5286_v44  ;;  %v12606_v44 = vld [vmem:[#allocation9 + $0xe0] sm:$0xff]   ;;  %v5294_v34 = vmul.f32 %v14521_v10, %v14521_v10  ;;  %11832 = vmatprep.subr.bf16.mxu1 %v12594_v27 }
 0x322   : > { %11942 = vmatprep.subr.bf16.mxu0 %v12606_v44  ;;  %v12614_v44 = vld [vmem:[#allocation9 + $0xf8] sm:$0xff]  }
 0x323   : > { %v5318_v51 = vadd.f32 %v5317_v60, %v5287_v62  ;;  %v12608_v62 = vld [vmem:[#allocation9 + $0xa0] sm:$0xff]   ;;  %v5295_v60 = vmul.f32 %v14524_v7, %v14524_v7 }
 0x324   : > { %11943 = vmatpush3.bf16.msra.mxu0 %v12608_v62  ;;  %11833 = vmatpush3.bf16.msra.mxu1 %v12595_v50  ;;  %v6087_v62 = vld [vmem:[#allocation2 + $0x8] sm:$0x1] }
 0x325   : > { %v5319_v22 = vadd.f32 %v5318_v51, %v5288_v54  ;;  %v12610_v54 = vld [vmem:[#allocation9 + $0xe8] sm:$0xff]  }
 0x326   : > { %v6085_v51 = vld [vmem:[#allocation2] sm:$0xf]  ;;  %11944 = vmatprep.subr.bf16.mxu0 %v12610_v54  ;;  %v6153_v54 = vshll.u32 %v6087_v62, 16 }
 0x327   : > { %v5320_v14 = vadd.f32 %v5319_v22, %v5289_v6  ;;  %v12611_v22 = vld [vmem:[#allocation9 + $0xa8] sm:$0xff]   ;;  %v6134_v30 = vshrl.u32 %v6085_v51, 16  ;;  %v6137_v47 = vshll.u32 %v6085_v51, 16  ;;  %v12615_v51 = vld [vmem:[#allocation9 + $0xb8] sm:$0xff]  }
 0x328   : > { %11945 = vmatpush3.bf16.msra.mxu0 %v12611_v22  ;;  %v5300_v22 = vmul.f32 %v14534_v58, %v14534_v58 }
 0x329   : > { %v5321_v45 = vadd.f32 %v5320_v14, %v5290_v43  ;;  %v6143_v43 = vshll.u32 %v6086_v15, 16  ;;  %v6147_v14 = vshrl.u32 %v6086_v15, 16  ;;  %v6136_v23 = vrot.slane %v6134_v30, 4  ;;  %11946 = vmatprep.subr.bf16.mxu0 %v12612_v48 }
 0x32a   : > { %v6139_v61 = vrot.slane %v6137_v47, 5  ;;  %v5305_v48 = vmul.f32 %v14544_v26, %v14544_v26 }
 0x32b   : > { %v5322_v31 = vadd.f32 %v5321_v45, %v5291_v2  ;;  %v12597_v45 = vld [vmem:[#allocation9 + $0x70] sm:$0xff]   ;;  %v6149_v28 = vrot.slane %v6147_v14, 4  ;;  %v5301_v14 = vmul.f32 %v14536_v0, %v14536_v0 }
 0x32c   : > { %11834 = vmatprep.subr.bf16.mxu1 %v12597_v45  ;;  %11947 = vmatpush3.bf16.msra.mxu0 %v12613_v63  ;;  %v12616_v45 = vld [vmem:[#allocation2] sm:$0xff]  }
 0x32d   : > { %v5323_v24 = vadd.f32 %v5322_v31, %v5292_v3  ;;  %v12607_v3 = vld [vmem:[#allocation9 + $0x78] sm:$0xff]   ;;  %v6145_v31 = vrot.slane %v6143_v43, 5  ;;  %11835 = vmatpush3.bf16.msra.mxu1 %v12599_v59  ;;  %11948 = vmatprep.subr.bf16.mxu0 %v12614_v44  ;;  %v6155_v43 = vrot.slane %v6153_v54, 5  ;;  %v5302_v59 = vmul.f32 %v14538_v9, %v14538_v9  ;;  %v12626_v54 = vld [vmem:[#allocation9 + $0x108] sm:$0xff]  }
 0x32e   : > { %11836 = vmatprep.subr.bf16.mxu1 %v12607_v3  ;;  %v5306_v44 = vmul.f32 %v14546_v21, %v14546_v21 }
 0x32f   : > { %v5324_v8 = vadd.f32 %v5323_v24, %v5293_v40  ;;  %v5298_v40 = vmul.f32 %v14530_v17, %v14530_v17 }
 0x330   : > { %11949 = vmatpush3.bf16.msra.mxu0 %v12615_v51 }
 0x331   : > { %v5325_v16 = vadd.f32 %v5324_v8, %v5294_v34  ;;  %v6140_v34 = vor.u32 %v6139_v61, %v6136_v23  ;;  %v12609_v8 = vld [vmem:[#allocation9 + $0x38] sm:$0xff]   ;;  %v12620_v61 = vld [vmem:[#allocation9 + $0x100] sm:$0xff]  }
 0x332   : > { %11837 = vmatpush3.bf16.msra.mxu1 %v12609_v8  ;;  %v5307_v8 = vmul.f32 %v14548_v1, %v14548_v1 }
 0x333   : > { %v5326_v6 = vadd.f32 %v5325_v16, %v5295_v60  ;;  %v6150_v60 = vor.u32 %v6149_v28, %v6145_v31  ;;  %v5299_v16 = vmul.f32 %v14532_v37, %v14532_v37  ;;  %v6141_v50 = vrot.slane %v6140_v34, 4 }
 0x335   : > { %v5327_v2 = vadd.f32 %v5326_v6, %v5296_v4  ;;  %v6151_v4 = vrot.slane %v6150_v60, 4  ;;  %v12619_v6 = vld [vmem:[#allocation9 + $0x140] sm:$0xff]   ;;  %v6146_v47 = vsel %vm13121_vm8, %v6141_v50, %v6145_v31  ;;  %v5303_v31 = vmul.f32 %v14540_v11, %v14540_v11  ;;  %v12625_v60 = vld [vmem:[#allocation9 + $0x148] sm:$0xff]  }
 0x336   : > { %12046 = vmatprep.subr.bf16.mxu1 %v12619_v6 }
 0x337   : > { %v5328_v24 = vadd.f32 %v5327_v2, %v5297_v39  ;;  %v6156_v2 = vsel %vm13121_vm8, %v6151_v4, %v6155_v43  ;;  %v12631_v43 = vld [vmem:[#allocation9 + $0x150] sm:$0xff]  }
 0x338   : > { %v11031_v23 = vcombine.low %v6146_v47, %v6156_v2  ;;  %v12632_v2 = vld [vmem:[#allocation9 + $0x110] sm:$0xff]  }
 0x339   : > { %v5329_v27 = vadd.f32 %v5328_v24, %v5298_v40  ;;  %v5304_v40 = vmul.f32 %v14542_v33, %v14542_v33 }
 0x33a   : > { %9525 = vmatprep.mubr.bf16.mxu1 %v11031_v23 }
 0x33b   : > { %v5330_v15 = vadd.f32 %v5329_v27, %v5299_v16  ;;  %9526 = vmatmul.mubr.bf16.vlgmr.msra.gmra.mrb[128].mxu1 %v12616_v45  ;;  %v5308_v16 = vmul.f32 %v14550_v20, %v14550_v20 }
 0x33c   : > { %12047 = vmatpush3.bf16.msra.mxu1 %v12620_v61  ;;  %v6597_v61 = vld [vmem:[#allocation2] sm:$0xe] }
 0x33d   : > { %v5331_v39 = vadd.f32 %v5330_v15, %v5300_v22  ;;  %12048 = vmatprep.subr.bf16.mxu1 %v12625_v60  ;;  %v12637_v60 = vld [vmem:[#allocation9 + $0x158] sm:$0xff]  }
 0x33f   : > { %v5332_v3 = vadd.f32 %v5331_v39, %v5301_v14  ;;  %v6598_v39 = vld [vmem:[#allocation2 + $0x4] sm:$0xf] }
 0x340   : > { %12049 = vmatpush3.bf16.msra.mxu1 %v12626_v54  ;;  %v6695_v23 = vrot.slane %v6598_v39, 5 }
 0x341   : > { %v5333_v28 = vadd.f32 %v5332_v3, %v5302_v59  ;;  %12050 = vmatprep.subr.bf16.mxu1 %v12631_v43  ;;  %v6599_v59 = vld [vmem:[#allocation2 + $0x8] sm:$0x1]  ;;  %v11047_v3 = vrot.slane %v6597_v61, 9 }
 0x343   : > { %v5334_v24 = vadd.f32 %v5333_v28, %v5303_v31  ;;  %v6697_v31 = vrot.slane %v6695_v23, 4  ;;  %v6698_v28 = vrot.slane %v6599_v59, 5 }
 0x344   : > { %12051 = vmatpush3.bf16.msra.mxu1 %v12632_v2 }
 0x345   : > { %v5335_v63 = vadd.f32 %v5334_v24, %v5304_v40  ;;  %v14646_v40 = vsel %vm13145_vm13, %v11047_v3, %v6695_v23  ;;  %v14650_v24 = vsel %vm13145_vm13, %v6697_v31, %v6698_v28  ;;  %12052 = vmatprep.subr.bf16.mxu1 %v12637_v60 }
 0x346   : > { %16512 = vst [vmem:[#allocation36_spill] sm:$0xff] %v14646_v40  ;;  %16513 = vst [vmem:[#allocation41_spill] sm:$0xff] %v14650_v24  ;;  %v5889_v24 = vld [vmem:[#allocation2 + $0x74] sm:$0x1]  ;;  %v15034_v40 = vld [vmem:[#allocation2 + $0x84] sm:$0xf] }
 0x347   : > { %v5336_v34 = vadd.f32 %v5335_v63, %v5305_v48 }
 0x349   : > { %v5337_v62 = vadd.f32 %v5336_v34, %v5306_v44 }
 0x34b   : > { %v5338_v27 = vadd.f32 %v5337_v62, %v5307_v8 }
 0x34d   : > { %v5339_v50 = vadd.f32 %v5338_v27, %v5308_v16 }
 0x34f   : > { %v5340_v51 = vrot.slane %v5339_v50, 4 }
 0x351   : > { %v5341_v4 = vadd.f32 %v5340_v51, %v5339_v50 }
 0x353   : > { %v5342_v6 = vrot.slane %v5341_v4, 2 }
 0x355   : > { %v5343_v22 = vadd.f32 %v5342_v6, %v5341_v4 }
 0x357   : > { %v5344_v15 = vrot.slane %v5343_v22, 1 }
 0x359   : > { %v5345_v47 = vadd.f32 %v5344_v15, %v5343_v22 }
 0x35b   : > { %v5346_v14 = vmul.f32 0.00390625, %v5345_v47 }
 0x35d   : > { %v5347_v45 = vadd.f32 1e-05, %v5346_v14 }
 0x35f   : > { %12704 = vrsqrt.f32 %v5347_v45 }
 0x369   : > { %v12705_v48 = vpop.eup %12704 }
 0x36a   : > { %v5377_v44 = vmul.f32 %v12705_v48, %v14544_v26  ;;  %v5378_v34 = vmul.f32 %v12705_v48, %v14546_v21  ;;  %v14657_v8 = vmul.f32 %v12705_v48, %v14553_v35  ;;  %v14660_v62 = vmul.f32 %v12705_v48, %v14556_v5  ;;  %v12638_v21 = vld [vmem:[#allocation9 + $0x118] sm:$0xff]  }
 0x36b   : > { %v14663_v16 = vmul.f32 %v12705_v48, %v14559_v42  ;;  %v14666_v27 = vmul.f32 %v12705_v48, %v14566_v56  ;;  %v14669_v50 = vmul.f32 %v12705_v48, %v14569_v36  ;;  %v14672_v26 = vmul.f32 %v12705_v48, %v14574_v19  ;;  %12053 = vmatpush3.bf16.msra.mxu1 %v12638_v21 }
 0x36c   : > { %v5409_v54 = vmax.f32 %v5377_v44, 0.0  ;;  %v5410_v35 = vmax.f32 %v5378_v34, 0.0  ;;  %v14675_v51 = vmul.f32 %v12705_v48, %v14579_v38  ;;  %v14678_v5 = vmul.f32 %v12705_v48, %v14584_v32 }
 0x36d   : > { %v14681_v42 = vmul.f32 %v12705_v48, %v14496_v49  ;;  %v14684_v56 = vmul.f32 %v12705_v48, %v14499_v41  ;;  %v14687_v36 = vmul.f32 %v12705_v48, %v14502_v18  ;;  %v14690_v19 = vmul.f32 %v12705_v48, %v14505_v46 }
 0x36e   : > { %v14692_v4 = vpack.c.bf16 %v5409_v54, %v5409_v54  ;;  %v11346_v38 = vpack.c.bf16 %v5410_v35, %v5410_v35  ;;  %v14695_v32 = vmul.f32 %v12705_v48, %v14508_v57  ;;  %v14698_v6 = vmul.f32 %v12705_v48, %v14511_v52 }
 0x36f   : > { %v14701_v49 = vmul.f32 %v12705_v48, %v14514_v12  ;;  %v14704_v41 = vmul.f32 %v12705_v48, %v14517_v29  ;;  %v14707_v18 = vmul.f32 %v12705_v48, %v14519_v53  ;;  %v14710_v46 = vmul.f32 %v12705_v48, %v14521_v10 }
 0x370   : > { %v5748_v22 = vshrl.u32 %v14692_v4, 16  ;;  %v5756_v15 = vshrl.u32 %v11346_v38, 16  ;;  %v5759_v57 = vshll.u32 %v11346_v38, 16  ;;  %v14714_v47 = vmul.f32 %v12705_v48, %v14524_v7 }
 0x371   : > { %v14717_v52 = vmul.f32 %v12705_v48, %v14526_v55  ;;  %v14720_v12 = vmul.f32 %v12705_v48, %v14528_v25  ;;  %v14723_v29 = vmul.f32 %v12705_v48, %v14530_v17  ;;  %v14726_v53 = vmul.f32 %v12705_v48, %v14532_v37  ;;  %v5931_v55 = vld [vmem:[#allocation2 + $0xbc] sm:$0x1] }
 0x372   : > { %v14728_v10 = vrot.slane %v5748_v22, 7  ;;  %v5758_v43 = vrot.slane %v5756_v15, 7  ;;  %v14731_v14 = vmul.f32 %v12705_v48, %v14534_v58  ;;  %v14734_v7 = vmul.f32 %v12705_v48, %v14536_v0 }
 0x373   : > { %v14737_v39 = vmul.f32 %v12705_v48, %v14538_v9  ;;  %v14740_v25 = vmul.f32 %v12705_v48, %v14540_v11  ;;  %v14743_v17 = vmul.f32 %v12705_v48, %v14542_v33  ;;  %v14746_v37 = vmul.f32 %v12705_v48, %v14548_v1  ;;  %v5938_v33 = vld [vmem:[#allocation2 + $0xc8] sm:$0x1]  ;;  %v16532_v1 = vld [vmem:[#allocation41_spill] sm:$0xff] }
 0x374   : > { %v5754_v2 = vrot.slane %v14728_v10, 4  ;;  %v5761_v58 = vor.u32 %v5759_v57, %v5758_v43  ;;  %v5763_v45 = vrot.slane %v5758_v43, 4  ;;  %v14750_v0 = vmul.f32 %v12705_v48, %v14550_v20 }
 0x375   : > { %v5751_v23 = vshll.u32 %v14692_v4, 16  ;;  %v5381_v9 = vmax.f32 %v14657_v8, 0.0  ;;  %v5382_v11 = vmax.f32 %v14660_v62, 0.0  ;;  %v5383_v61 = vmax.f32 %v14663_v16, 0.0 }
 0x376   : > { %v5762_v59 = vsel %vm13127_vm10, %v5754_v2, %v5761_v58  ;;  %v5932_v3 = vsel %vm13139_vm12, %v5763_v45, %v5931_v55  ;;  %v5384_v31 = vmax.f32 %v14666_v27, 0.0  ;;  %v5385_v28 = vmax.f32 %v14669_v50, 0.0 }
 0x377   : > { %5930 = vst [vmem:[#allocation2 + $0xb8] sm:$0xf] %v5762_v59  ;;  %5933 = vst [vmem:[#allocation2 + $0xbc] sm:$0x1] %v5932_v3  ;;  %v5386_v20 = vmax.f32 %v14672_v26, 0.0  ;;  %v5387_v48 = vmax.f32 %v14675_v51, 0.0  ;;  %v11317_v15 = vpack.c.bf16 %v5381_v9, %v5381_v9  ;;  %v11318_v57 = vpack.c.bf16 %v5382_v11, %v5382_v11 }
 0x378   : > { %v5388_v44 = vmax.f32 %v14678_v5, 0.0  ;;  %v5389_v34 = vmax.f32 %v14681_v42, 0.0  ;;  %v5390_v8 = vmax.f32 %v14684_v56, 0.0  ;;  %v5391_v62 = vmax.f32 %v14687_v36, 0.0  ;;  %v12643_v42 = vld [vmem:[#allocation9 + $0x160] sm:$0xff]  }
 0x379   : > { %v5392_v60 = vmax.f32 %v14690_v19, 0.0  ;;  %v5393_v16 = vmax.f32 %v14695_v32, 0.0  ;;  %v5394_v27 = vmax.f32 %v14698_v6, 0.0  ;;  %v5395_v50 = vmax.f32 %v14701_v49, 0.0  ;;  %v12644_v56 = vld [vmem:[#allocation9 + $0x1c0] sm:$0xff]   ;;  %12054 = vmatprep.subr.bf16.mxu1 %v12643_v42 }
 0x37a   : > { %v5396_v26 = vmax.f32 %v14704_v41, 0.0  ;;  %v5397_v21 = vmax.f32 %v14707_v18, 0.0  ;;  %v5398_v54 = vmax.f32 %v14710_v46, 0.0  ;;  %v5399_v35 = vmax.f32 %v14714_v47, 0.0  ;;  %v12645_v6 = vld [vmem:[#allocation9 + $0x120] sm:$0xff]   ;;  %12158 = vmatprep.subr.bf16.mxu0 %v12644_v56 }
 0x37b   : > { %v5400_v51 = vmax.f32 %v14717_v52, 0.0  ;;  %v5401_v5 = vmax.f32 %v14720_v12, 0.0  ;;  %v5402_v36 = vmax.f32 %v14723_v29, 0.0  ;;  %v5403_v19 = vmax.f32 %v14726_v53, 0.0  ;;  %12055 = vmatpush3.bf16.msra.mxu1 %v12645_v6 }
 0x37c   : > { %v5404_v38 = vmax.f32 %v14731_v14, 0.0  ;;  %v5405_v32 = vmax.f32 %v14734_v7, 0.0  ;;  %v5406_v49 = vmax.f32 %v14737_v39, 0.0  ;;  %v5407_v41 = vmax.f32 %v14740_v25, 0.0 }
 0x37d   : > { %v5408_v18 = vmax.f32 %v14743_v17, 0.0  ;;  %v5411_v46 = vmax.f32 %v14746_v37, 0.0  ;;  %v5412_v22 = vmax.f32 %v14750_v0, 0.0  ;;  %v11319_v47 = vpack.c.bf16 %v5383_v61, %v5383_v61 }
 0x37e   : > { %v11320_v52 = vpack.c.bf16 %v5384_v31, %v5384_v31  ;;  %v11321_v12 = vpack.c.bf16 %v5385_v28, %v5385_v28  ;;  %v14787_v29 = vpack.c.bf16 %v5386_v20, %v5386_v20  ;;  %v14789_v53 = vpack.c.bf16 %v5387_v48, %v5387_v48 }
 0x37f   : > { %v14791_v43 = vpack.c.bf16 %v5388_v44, %v5388_v44  ;;  %v14793_v14 = vpack.c.bf16 %v5389_v34, %v5389_v34  ;;  %v14795_v7 = vpack.c.bf16 %v5390_v8, %v5390_v8  ;;  %v14797_v55 = vpack.c.bf16 %v5391_v62, %v5391_v62 }
 0x380   : > { %v14799_v39 = vpack.c.bf16 %v5392_v60, %v5392_v60  ;;  %v14801_v25 = vpack.c.bf16 %v5393_v16, %v5393_v16  ;;  %v14803_v17 = vpack.c.bf16 %v5394_v27, %v5394_v27  ;;  %v14805_v37 = vpack.c.bf16 %v5395_v50, %v5395_v50 }
 0x381   : > { %v14807_v2 = vpack.c.bf16 %v5396_v26, %v5396_v26  ;;  %v14809_v58 = vpack.c.bf16 %v5397_v21, %v5397_v21  ;;  %v14811_v45 = vpack.c.bf16 %v5398_v54, %v5398_v54  ;;  %v14813_v0 = vpack.c.bf16 %v5399_v35, %v5399_v35 }
 0x382   : > { %v14815_v9 = vpack.c.bf16 %v5400_v51, %v5400_v51  ;;  %v14817_v11 = vpack.c.bf16 %v5401_v5, %v5401_v5  ;;  %v14819_v61 = vpack.c.bf16 %v5402_v36, %v5402_v36  ;;  %v14821_v59 = vpack.c.bf16 %v5403_v19, %v5403_v19 }
 0x383   : > { %v14823_v3 = vpack.c.bf16 %v5404_v38, %v5404_v38  ;;  %v14825_v31 = vpack.c.bf16 %v5405_v32, %v5405_v32  ;;  %v14827_v28 = vpack.c.bf16 %v5406_v49, %v5406_v49  ;;  %v14829_v20 = vpack.c.bf16 %v5407_v41, %v5407_v41 }
 0x384   : > { %v14831_v48 = vpack.c.bf16 %v5408_v18, %v5408_v18  ;;  %v14833_v44 = vpack.c.bf16 %v5411_v46, %v5411_v46  ;;  %v14835_v34 = vpack.c.bf16 %v5412_v22, %v5412_v22  ;;  %v5510_v8 = vshrl.u32 %v11317_v15, 16 }
 0x385   : > { %v5513_v62 = vshll.u32 %v11317_v15, 16  ;;  %v5518_v60 = vshrl.u32 %v11318_v57, 16  ;;  %v5521_v16 = vshll.u32 %v11318_v57, 16  ;;  %v5527_v27 = vshrl.u32 %v11319_v47, 16  ;;  %v12651_v57 = vld [vmem:[#allocation9 + $0x168] sm:$0xff]  }
 0x386   : > { %v5512_v50 = vrot.slane %v5510_v8, 7  ;;  %v5530_v26 = vshll.u32 %v11319_v47, 16  ;;  %v5535_v21 = vshrl.u32 %v11320_v52, 16  ;;  %v5538_v54 = vshll.u32 %v11320_v52, 16  ;;  %12056 = vmatprep.subr.bf16.mxu1 %v12651_v57 }
 0x387   : > { %v14837_v35 = vrot.slane %v5518_v60, 7  ;;  %v5529_v51 = vrot.slane %v5527_v27, 7  ;;  %v5544_v5 = vshrl.u32 %v11321_v12, 16  ;;  %v5547_v42 = vshll.u32 %v11321_v12, 16 }
 0x388   : > { %v14839_v56 = vor.u32 %v5513_v62, %v5512_v50  ;;  %v5516_v36 = vrot.slane %v5512_v50, 4  ;;  %v14841_v19 = vrot.slane %v5535_v21, 7  ;;  %v5552_v38 = vshrl.u32 %v14787_v29, 16  ;;  %v12653_v62 = vld [vmem:[#allocation9 + $0x128] sm:$0xff]  }
 0x389   : > { %v5523_v32 = vor.u32 %v5521_v16, %v14837_v35  ;;  %v14846_v49 = vor.u32 %v5530_v26, %v5529_v51  ;;  %v5533_v41 = vrot.slane %v5529_v51, 4  ;;  %v5546_v22 = vrot.slane %v5544_v5, 7  ;;  %12057 = vmatpush3.bf16.msra.mxu1 %v12653_v62 }
 0x38a   : > { %v5540_v18 = vor.u32 %v5538_v54, %v14841_v19  ;;  %v14850_v15 = vrot.slane %v5552_v38, 7  ;;  %v5555_v52 = vshll.u32 %v14787_v29, 16  ;;  %v5561_v12 = vshrl.u32 %v14789_v53, 16 }
 0x38b   : > { %v5524_v47 = vsel %vm13127_vm10, %v5516_v36, %v5523_v32  ;;  %v5564_v8 = vshll.u32 %v14789_v53, 16  ;;  %v14859_v16 = vor.u32 %v5547_v42, %v5546_v22  ;;  %v5550_v27 = vrot.slane %v5546_v22, 4 }
 0x38c   : > { %v5541_v60 = vsel %vm13127_vm10, %v5533_v41, %v5540_v18  ;;  %5832 = vst [vmem:[#allocation2 + $0x10] sm:$0xf] %v5524_v47  ;;  %v5557_v26 = vor.u32 %v5555_v52, %v14850_v15  ;;  %v5563_v21 = vrot.slane %v5561_v12, 7  ;;  %v5569_v29 = vshrl.u32 %v14791_v43, 16 }
 0x38d   : > { %v5572_v54 = vshll.u32 %v14791_v43, 16  ;;  %5839 = vst [vmem:[#allocation2 + $0x1c] sm:$0xf] %v5541_v60  ;;  %v5578_v53 = vshrl.u32 %v14793_v14, 16  ;;  %v5581_v51 = vshll.u32 %v14793_v14, 16  ;;  %v5586_v5 = vshrl.u32 %v14795_v7, 16 }
 0x38e   : > { %v5589_v42 = vshll.u32 %v14795_v7, 16  ;;  %v5558_v36 = vsel %vm13127_vm10, %v5550_v27, %v5557_v26  ;;  %v14871_v38 = vor.u32 %v5564_v8, %v5563_v21  ;;  %v5567_v32 = vrot.slane %v5563_v21, 4  ;;  %v5850_v60 = vld [vmem:[#allocation2 + $0x30] sm:$0xf]  ;;  %v5861_v7 = vld [vmem:[#allocation2 + $0x44] sm:$0x1] }
 0x38f   : > { %v14873_v41 = vrot.slane %v5569_v29, 7  ;;  %v5580_v18 = vrot.slane %v5578_v53, 7  ;;  %v14875_v43 = vrot.slane %v5586_v5, 7  ;;  %v5595_v22 = vshrl.u32 %v14797_v55, 16  ;;  %5846 = vst [vmem:[#allocation2 + $0x28] sm:$0xf] %v5558_v36 }
 0x390   : > { %v5598_v57 = vshll.u32 %v14797_v55, 16  ;;  %v5603_v47 = vshrl.u32 %v14799_v39, 16  ;;  %v5606_v52 = vshll.u32 %v14799_v39, 16  ;;  %v5612_v21 = vshrl.u32 %v14801_v25, 16 }
 0x391   : > { %v5574_v14 = vor.u32 %v5572_v54, %v14873_v41  ;;  %v14883_v12 = vor.u32 %v5581_v51, %v5580_v18  ;;  %v5584_v8 = vrot.slane %v5580_v18, 4  ;;  %v5591_v62 = vor.u32 %v5589_v42, %v14875_v43 }
 0x392   : > { %v5597_v55 = vrot.slane %v5595_v22, 7  ;;  %v14889_v26 = vrot.slane %v5603_v47, 7  ;;  %v5615_v39 = vshll.u32 %v14801_v25, 16  ;;  %v5620_v54 = vshrl.u32 %v14803_v17, 16 }
 0x393   : > { %v5575_v27 = vsel %vm13127_vm10, %v5567_v32, %v5574_v14  ;;  %v5592_v29 = vsel %vm13127_vm10, %v5584_v8, %v5591_v62  ;;  %v5623_v53 = vshll.u32 %v14803_v17, 16  ;;  %v5614_v32 = vrot.slane %v5612_v21, 7 }
 0x394   : > { %5853 = vst [vmem:[#allocation2 + $0x34] sm:$0xf] %v5575_v27  ;;  %v14897_v51 = vor.u32 %v5598_v57, %v5597_v55  ;;  %v5601_v5 = vrot.slane %v5597_v55, 4  ;;  %v5608_v42 = vor.u32 %v5606_v52, %v14889_v26  ;;  %5860 = vst [vmem:[#allocation2 + $0x40] sm:$0xf] %v5592_v29  ;;  %v14901_v18 = vrot.slane %v5620_v54, 7 }
 0x395   : > { %v5629_v22 = vshrl.u32 %v14805_v37, 16  ;;  %v5632_v25 = vshll.u32 %v14805_v37, 16  ;;  %v5637_v17 = vshrl.u32 %v14807_v2, 16  ;;  %v5640_v57 = vshll.u32 %v14807_v2, 16  ;;  %v5847_v27 = vld [vmem:[#allocation2 + $0x2c] sm:$0x1] }
 0x396   : > { %v5609_v14 = vsel %vm13127_vm10, %v5601_v5, %v5608_v42  ;;  %v5646_v47 = vshrl.u32 %v14809_v58, 16  ;;  %v14910_v52 = vor.u32 %v5615_v39, %v5614_v32  ;;  %v5618_v8 = vrot.slane %v5614_v32, 4  ;;  %v12659_v42 = vld [vmem:[#allocation9 + $0x170] sm:$0xff]  }
 0x397   : > { %v5625_v62 = vor.u32 %v5623_v53, %v14901_v18  ;;  %5867 = vst [vmem:[#allocation2 + $0x4c] sm:$0xf] %v5609_v14  ;;  %v5631_v55 = vrot.slane %v5629_v22, 7  ;;  %v14914_v21 = vrot.slane %v5637_v17, 7  ;;  %v5649_v29 = vshll.u32 %v14809_v58, 16  ;;  %12058 = vmatprep.subr.bf16.mxu1 %v12659_v42 }
 0x398   : > { %v5648_v37 = vrot.slane %v5646_v47, 7  ;;  %v5654_v2 = vshrl.u32 %v14811_v45, 16  ;;  %v5657_v39 = vshll.u32 %v14811_v45, 16  ;;  %v5663_v5 = vshrl.u32 %v14813_v0, 16 }
 0x399   : > { %v5626_v54 = vsel %vm13127_vm10, %v5618_v8, %v5625_v62  ;;  %v14922_v53 = vor.u32 %v5632_v25, %v5631_v55  ;;  %v5635_v32 = vrot.slane %v5631_v55, 4  ;;  %v5642_v22 = vor.u32 %v5640_v57, %v14914_v21  ;;  %v12661_v57 = vld [vmem:[#allocation9 + $0x130] sm:$0xff]  }
 0x39a   : > { %5874 = vst [vmem:[#allocation2 + $0x58] sm:$0xf] %v5626_v54  ;;  %v14926_v17 = vor.u32 %v5649_v29, %v5648_v37  ;;  %v5652_v58 = vrot.slane %v5648_v37, 4  ;;  %v14928_v47 = vrot.slane %v5654_v2, 7  ;;  %v5665_v8 = vrot.slane %v5663_v5, 7  ;;  %12059 = vmatpush3.bf16.msra.mxu1 %v12661_v57 }
 0x39b   : > { %v5643_v45 = vsel %vm13127_vm10, %v5635_v32, %v5642_v22  ;;  %v5666_v62 = vshll.u32 %v14813_v0, 16  ;;  %v5671_v25 = vshrl.u32 %v14815_v9, 16  ;;  %v5674_v55 = vshll.u32 %v14815_v9, 16 }
 0x39c   : > { %v5659_v63 = vor.u32 %v5657_v39, %v14928_v47  ;;  %v5669_v54 = vrot.slane %v5665_v8, 4  ;;  %v5680_v37 = vshrl.u32 %v14817_v11, 16  ;;  %5881 = vst [vmem:[#allocation2 + $0x64] sm:$0xf] %v5643_v45  ;;  %v5683_v42 = vshll.u32 %v14817_v11, 16 }
 0x39d   : > { %v14938_v2 = vor.u32 %v5666_v62, %v5665_v8  ;;  %v14940_v5 = vrot.slane %v5671_v25, 7  ;;  %v5688_v0 = vshrl.u32 %v14819_v61, 16  ;;  %v5691_v39 = vshll.u32 %v14819_v61, 16 }
 0x39e   : > { %v5660_v9 = vsel %vm13127_vm10, %v5652_v58, %v5659_v63  ;;  %v5682_v32 = vrot.slane %v5680_v37, 7  ;;  %v5697_v22 = vshrl.u32 %v14821_v59, 16  ;;  %v5700_v62 = vshll.u32 %v14821_v59, 16 }
 0x39f   : > { %v5676_v29 = vor.u32 %v5674_v55, %v14940_v5  ;;  %v14950_v45 = vrot.slane %v5688_v0, 7  ;;  %5888 = vst [vmem:[#allocation2 + $0x70] sm:$0xf] %v5660_v9  ;;  %v5705_v63 = vshrl.u32 %v14823_v3, 16  ;;  %v5708_v37 = vshll.u32 %v14823_v3, 16 }
 0x3a0   : > { %v14953_v11 = vor.u32 %v5683_v42, %v5682_v32  ;;  %v5686_v25 = vrot.slane %v5682_v32, 4  ;;  %v5699_v57 = vrot.slane %v5697_v22, 7  ;;  %v5714_v42 = vshrl.u32 %v14825_v31, 16  ;;  %v5840_v55 = vld [vmem:[#allocation2 + $0x20] sm:$0x1] }
 0x3a1   : > { %v5677_v61 = vsel %vm13127_vm10, %v5669_v54, %v5676_v29  ;;  %v5693_v58 = vor.u32 %v5691_v39, %v14950_v45  ;;  %v14963_v59 = vrot.slane %v5705_v63, 7  ;;  %v5717_v32 = vshll.u32 %v14825_v31, 16 }
 0x3a2   : > { %v14961_v0 = vor.u32 %v5700_v62, %v5699_v57  ;;  %v5703_v8 = vrot.slane %v5699_v57, 4  ;;  %5895 = vst [vmem:[#allocation2 + $0x7c] sm:$0xf] %v5677_v61  ;;  %v5722_v29 = vshrl.u32 %v14827_v28, 16  ;;  %v5725_v54 = vshll.u32 %v14827_v28, 16 }
 0x3a3   : > { %v5694_v9 = vsel %vm13127_vm10, %v5686_v25, %v5693_v58  ;;  %v5710_v39 = vor.u32 %v5708_v37, %v14963_v59  ;;  %v5716_v22 = vrot.slane %v5714_v42, 7  ;;  %v5731_v62 = vshrl.u32 %v14829_v20, 16  ;;  %v5829_v57 = vld [vmem:[#allocation2 + $0xc] sm:$0xf]  ;;  %v5836_v58 = vld [vmem:[#allocation2 + $0x18] sm:$0xf] }
 0x3a4   : > { %5902 = vst [vmem:[#allocation2 + $0x88] sm:$0xf] %v5694_v9  ;;  %v14974_v63 = vrot.slane %v5722_v29, 7  ;;  %v5734_v61 = vshll.u32 %v14829_v20, 16  ;;  %v5739_v25 = vshrl.u32 %v14831_v48, 16  ;;  %v5742_v31 = vshll.u32 %v14831_v48, 16 }
 0x3a5   : > { %v5833_v28 = vld [vmem:[#allocation2 + $0x14] sm:$0x1]  ;;  %v5711_v37 = vsel %vm13127_vm10, %v5703_v8, %v5710_v39  ;;  %v14981_v3 = vor.u32 %v5717_v32, %v5716_v22  ;;  %v5720_v42 = vrot.slane %v5716_v22, 4  ;;  %v5733_v14 = vrot.slane %v5731_v62, 7  ;;  %v5843_v9 = vld [vmem:[#allocation2 + $0x24] sm:$0xf] }
 0x3a6   : > { %v5727_v29 = vor.u32 %v5725_v54, %v14974_v63  ;;  %v14985_v36 = vrot.slane %v5739_v25, 7  ;;  %v14990_v48 = vor.u32 %v5751_v23, %v14728_v10  ;;  %5909 = vst [vmem:[#allocation2 + $0x94] sm:$0xf] %v5711_v37  ;;  %v5854_v8 = vld [vmem:[#allocation2 + $0x38] sm:$0x1]  ;;  %v5765_v22 = vshrl.u32 %v14833_v44, 16 }
 0x3a7   : > { %v14992_v32 = vor.u32 %v5734_v61, %v5733_v14  ;;  %v5737_v39 = vrot.slane %v5733_v14, 4  ;;  %v5768_v62 = vshll.u32 %v14833_v44, 16  ;;  %v14996_v54 = vld [vmem:[#allocation2 + $0x48] sm:$0xf]  ;;  %v14998_v20 = vld [vmem:[#allocation2 + $0x3c] sm:$0xf]  ;;  %v5830_v30 = vsel %vm13133_vm11, %v14839_v56, %v5829_v57 }
 0x3a8   : > { %v5868_v25 = vld [vmem:[#allocation2 + $0x50] sm:$0x1]  ;;  %v5728_v4 = vsel %vm13127_vm10, %v5720_v42, %v5727_v29  ;;  %v5744_v10 = vor.u32 %v5742_v31, %v14985_v36  ;;  %v5773_v61 = vshrl.u32 %v14835_v34, 16  ;;  %v15005_v14 = vld [vmem:[#allocation2 + $0x60] sm:$0xf]  ;;  %v5767_v50 = vrot.slane %v5765_v22, 7 }
 0x3a9   : > { %v15007_v37 = vld [vmem:[#allocation2 + $0x54] sm:$0xf]  ;;  %v5875_v44 = vld [vmem:[#allocation2 + $0x5c] sm:$0x1]  ;;  %v5776_v46 = vshll.u32 %v14835_v34, 16  ;;  %v16517_v42 = vrot.slane %v14837_v35, 4  ;;  %v5837_v35 = vsel %vm13133_vm11, %v14846_v49, %v5836_v58  ;;  %v5844_v49 = vsel %vm13133_vm11, %v14859_v16, %v5843_v9 }
 0x3aa   : > { %5916 = vst [vmem:[#allocation2 + $0xa0] sm:$0xf] %v5728_v4  ;;  %v5882_v29 = vld [vmem:[#allocation2 + $0x68] sm:$0x1]  ;;  %v15017_v23 = vld [vmem:[#allocation2 + $0x78] sm:$0xf]  ;;  %v5745_v22 = vsel %vm13127_vm10, %v5737_v39, %v5744_v10  ;;  %v15036_v10 = vor.u32 %v5768_v62, %v5767_v50  ;;  %v5851_v16 = vsel %vm13133_vm11, %v14871_v38, %v5850_v60 }
 0x3ab   : > { %v5834_v31 = vsel %vm13139_vm12, %v16517_v42, %v5833_v28  ;;  %v15023_v34 = vrot.slane %v5773_v61, 7  ;;  %v16518_v56 = vrot.slane %v14841_v19, 4  ;;  %5831 = vst [vmem:[#allocation2 + $0xc] sm:$0xf] %v5830_v30  ;;  %v12670_v28 = vld [vmem:[#allocation9 + $0x178] sm:$0xff]   ;;  %v5771_v61 = vrot.slane %v5767_v50, 4 }
 0x3ac   : > { %5835 = vst [vmem:[#allocation2 + $0x14] sm:$0x1] %v5834_v31  ;;  %v5896_v4 = vld [vmem:[#allocation2 + $0x80] sm:$0x1]  ;;  %v15032_v42 = vld [vmem:[#allocation2 + $0x90] sm:$0xf]  ;;  %12060 = vmatprep.subr.bf16.mxu1 %v12670_v28 }
 0x3ad   : > { %v5841_v57 = vsel %vm13139_vm12, %v16518_v56, %v5840_v55  ;;  %v5903_v39 = vld [vmem:[#allocation2 + $0x8c] sm:$0x1]  ;;  %v16519_v19 = vrot.slane %v14850_v15, 4  ;;  %5838 = vst [vmem:[#allocation2 + $0x18] sm:$0xf] %v5837_v35  ;;  %v5778_v62 = vor.u32 %v5776_v46, %v15023_v34  ;;  %v5780_v50 = vrot.slane %v15023_v34, 4 }
 0x3ae   : > { %5842 = vst [vmem:[#allocation2 + $0x20] sm:$0x1] %v5841_v57  ;;  %5923 = vst [vmem:[#allocation2 + $0xac] sm:$0xf] %v5745_v22  ;;  %v5910_v30 = vld [vmem:[#allocation2 + $0x98] sm:$0x1]  ;;  %v5858_v46 = vsel %vm13133_vm11, %v14883_v12, %v14998_v20 }
 0x3af   : > { %v5848_v55 = vsel %vm13139_vm12, %v16519_v19, %v5847_v27  ;;  %v15045_v58 = vld [vmem:[#allocation2 + $0xa8] sm:$0xf]  ;;  %v15047_v31 = vld [vmem:[#allocation2 + $0x9c] sm:$0xf]  ;;  %v16520_v15 = vrot.slane %v14873_v41, 4  ;;  %v12672_v9 = vld [vmem:[#allocation9 + $0x138] sm:$0xff]   ;;  %v5865_v41 = vsel %vm13133_vm11, %v14897_v51, %v14996_v54  ;;  %v5879_v51 = vsel %vm13133_vm11, %v14922_v53, %v15005_v14 }
 0x3b0   : > { %5845 = vst [vmem:[#allocation2 + $0x24] sm:$0xf] %v5844_v49  ;;  %5849 = vst [vmem:[#allocation2 + $0x2c] sm:$0x1] %v5848_v55  ;;  %v5924_v22 = vld [vmem:[#allocation2 + $0xb0] sm:$0x1]  ;;  %12061 = vmatpush3.bf16.msra.mxu1 %v12672_v9 }
 0x3b1   : > { %v5855_v27 = vsel %vm13139_vm12, %v16520_v15, %v5854_v8  ;;  %v5917_v35 = vld [vmem:[#allocation2 + $0xa4] sm:$0x1]  ;;  %v16521_v34 = vrot.slane %v14875_v43, 4  ;;  %v16522_v60 = vrot.slane %v14889_v26, 4  ;;  %5852 = vst [vmem:[#allocation2 + $0x30] sm:$0xf] %v5851_v16  ;;  %v5779_v43 = vsel %vm13127_vm10, %v5771_v61, %v5778_v62 }
 0x3b2   : > { %5856 = vst [vmem:[#allocation2 + $0x38] sm:$0x1] %v5855_v27  ;;  %v5934_v56 = vld [vmem:[#allocation2 + $0xc0] sm:$0xf]  ;;  %v5927_v57 = vld [vmem:[#allocation2 + $0xb4] sm:$0xf] }
 0x3b3   : > { %v5862_v38 = vsel %vm13139_vm12, %v16521_v34, %v5861_v7  ;;  %v5869_v8 = vsel %vm13139_vm12, %v16522_v60, %v5868_v25  ;;  %v5872_v7 = vsel %vm13133_vm11, %v14910_v52, %v15007_v37  ;;  %v16523_v12 = vrot.slane %v14901_v18, 4  ;;  %5859 = vst [vmem:[#allocation2 + $0x3c] sm:$0xf] %v5858_v46  ;;  %5866 = vst [vmem:[#allocation2 + $0x48] sm:$0xf] %v5865_v41  ;;  %v12652_v37 = vld [vmem:[#allocation9 + $0x1c8] sm:$0xff]  }
 0x3b4   : > { %5863 = vst [vmem:[#allocation2 + $0x44] sm:$0x1] %v5862_v38  ;;  %5870 = vst [vmem:[#allocation2 + $0x50] sm:$0x1] %v5869_v8  ;;  %v16524_v20 = vrot.slane %v14914_v21, 4  ;;  %v5886_v18 = vsel %vm13133_vm11, %v14926_v17, %v15019_v13  ;;  %v16525_v54 = vrot.slane %v14928_v47, 4  ;;  %v5893_v25 = vsel %vm13133_vm11, %v14938_v2, %v15017_v23 }
 0x3b5   : > { %v5876_v26 = vsel %vm13139_vm12, %v16523_v12, %v5875_v44  ;;  %5937 = vst [vmem:[#allocation2 + $0xc4] sm:$0xf] %v5779_v43  ;;  %5873 = vst [vmem:[#allocation2 + $0x54] sm:$0xf] %v5872_v7  ;;  %v12646_v21 = vld [vmem:[#allocation9 + $0x180] sm:$0xff]   ;;  %v16526_v14 = vrot.slane %v14940_v5, 4  ;;  %v5907_v2 = vsel %vm13133_vm11, %v14961_v0, %v15032_v42  ;;  %v5935_v42 = vsel %vm13133_vm11, %v15036_v10, %v5934_v56 }
 0x3b6   : > { %v5883_v52 = vsel %vm13139_vm12, %v16524_v20, %v5882_v29  ;;  %v5890_v53 = vsel %vm13139_vm12, %v16525_v54, %v5889_v24  ;;  %5877 = vst [vmem:[#allocation2 + $0x5c] sm:$0x1] %v5876_v26  ;;  %5880 = vst [vmem:[#allocation2 + $0x60] sm:$0xf] %v5879_v51  ;;  %v5900_v24 = vsel %vm13133_vm11, %v14953_v11, %v15034_v40  ;;  %v16527_v17 = vrot.slane %v14950_v45, 4  ;;  %v16531_v55 = vld [vmem:[#allocation36_spill] sm:$0xff] }
 0x3b7   : > { %v5897_v13 = vsel %vm13139_vm12, %v16526_v14, %v5896_v4  ;;  %5884 = vst [vmem:[#allocation2 + $0x68] sm:$0x1] %v5883_v52  ;;  %5887 = vst [vmem:[#allocation2 + $0x6c] sm:$0xf] %v5886_v18  ;;  %v6089_v5 = vld [vmem:[#allocation2 + $0x10] sm:$0xf]  ;;  %v5914_v45 = vsel %vm13133_vm11, %v14981_v3, %v15047_v31  ;;  %v5921_v29 = vsel %vm13133_vm11, %v14992_v32, %v15045_v58 }
 0x3b8   : > { %v5904_v47 = vsel %vm13139_vm12, %v16527_v17, %v5903_v39  ;;  %5891 = vst [vmem:[#allocation2 + $0x74] sm:$0x1] %v5890_v53  ;;  %5894 = vst [vmem:[#allocation2 + $0x78] sm:$0xf] %v5893_v25  ;;  %v6601_v23 = vld [vmem:[#allocation2 + $0x10] sm:$0xf]  ;;  %v5939_v32 = vsel %vm13139_vm12, %v5780_v50, %v5938_v33 }
 0x3b9   : > { %v16528_v44 = vrot.slane %v14963_v59, 4  ;;  %v16529_v11 = vrot.slane %v14974_v63, 4  ;;  %5898 = vst [vmem:[#allocation2 + $0x80] sm:$0x1] %v5897_v13  ;;  %5901 = vst [vmem:[#allocation2 + $0x84] sm:$0xf] %v5900_v24  ;;  %v5928_v63 = vsel %vm13133_vm11, %v14990_v48, %v5927_v57 }
 0x3ba   : > { %5905 = vst [vmem:[#allocation2 + $0x8c] sm:$0x1] %v5904_v47  ;;  %5908 = vst [vmem:[#allocation2 + $0x90] sm:$0xf] %v5907_v2  ;;  %v12617_v59 = vld [vmem:[#allocation2 + $0xc] sm:$0xff]   ;;  %v16530_v4 = vrot.slane %v14985_v36, 4 }
 0x3bb   : > { %v5911_v40 = vsel %vm13139_vm12, %v16528_v44, %v5910_v30  ;;  %v5918_v0 = vsel %vm13139_vm12, %v16529_v11, %v5917_v35  ;;  %v6088_v28 = vld [vmem:[#allocation2 + $0xc] sm:$0xf]  ;;  %5915 = vst [vmem:[#allocation2 + $0x9c] sm:$0xf] %v5914_v45  ;;  %5922 = vst [vmem:[#allocation2 + $0xa8] sm:$0xf] %v5921_v29  ;;  %9686 = vmatprep.mubr.bf16.mxu0 %v12617_v59  ;;  %v16533_v30 = vcombine.low %v16531_v55, %v16532_v1 }
 0x3bc   : > { %v5925_v3 = vsel %vm13139_vm12, %v16530_v4, %v5924_v22  ;;  %5912 = vst [vmem:[#allocation2 + $0x98] sm:$0x1] %v5911_v40  ;;  %5919 = vst [vmem:[#allocation2 + $0xa4] sm:$0x1] %v5918_v0  ;;  %v12618_v39 = vld [vmem:[#allocation2 + $0x18] sm:$0xff]   ;;  %v6158_v48 = vshrl.u32 %v6088_v28, 16 }
 0x3bd   : > { %v6090_v36 = vld [vmem:[#allocation2 + $0x14] sm:$0x1]  ;;  %v6092_v61 = vld [vmem:[#allocation2 + $0x1c] sm:$0xf]  ;;  %5940 = vst [vmem:[#allocation2 + $0xc8] sm:$0x1] %v5939_v32  ;;  %9687 = vmatmul.mubr.bf16.vlgmr.msra.gmra.mrb[160].mxu0 %v16533_v30 }
 0x3be   : > { %5926 = vst [vmem:[#allocation2 + $0xb0] sm:$0x1] %v5925_v3  ;;  %5929 = vst [vmem:[#allocation2 + $0xb4] sm:$0xf] %v5928_v63  ;;  %v6161_v49 = vshll.u32 %v6088_v28, 16  ;;  %v6167_v19 = vshll.u32 %v6089_v5, 16  ;;  %9694 = vmatprep.mubr.bf16.mxu0 %v12618_v39  ;;  %12159 = vmatpush3.bf16.msra.mxu0 %v12646_v21 }
 0x3bf   : > { %5936 = vst [vmem:[#allocation2 + $0xc0] sm:$0xf] %v5935_v42  ;;  %v6171_v6 = vshrl.u32 %v6089_v5, 16  ;;  %v6600_v10 = vld [vmem:[#allocation2 + $0xc] sm:$0xe]  ;;  %v6177_v58 = vshll.u32 %v6090_v36, 16  ;;  %12160 = vmatprep.subr.bf16.mxu0 %v12652_v37 }
 0x3c0   : > { %v6602_v31 = vld [vmem:[#allocation2 + $0x14] sm:$0x1]  ;;  %v11048_v62 = vrot.slane %v6600_v10, 9  ;;  %v6702_v50 = vrot.slane %v6601_v23, 5  ;;  %v12654_v16 = vld [vmem:[#allocation9 + $0x188] sm:$0xff]   ;;  %v6160_v15 = vrot.slane %v6158_v48, 4 }
 0x3c1   : > { %v6163_v27 = vrot.slane %v6161_v49, 5  ;;  %v6169_v9 = vrot.slane %v6167_v19, 5  ;;  %v6173_v22 = vrot.slane %v6171_v6, 4  ;;  %v6179_v35 = vrot.slane %v6177_v58, 5  ;;  %v6604_v60 = vld [vmem:[#allocation2 + $0x1c] sm:$0xf] }
 0x3c2   : > { %v6703_v34 = vsel %vm13145_vm13, %v11048_v62, %v6702_v50  ;;  %v6704_v38 = vrot.slane %v6702_v50, 4  ;;  %v6705_v41 = vrot.slane %v6602_v31, 5  ;;  %v12660_v8 = vld [vmem:[#allocation9 + $0x1d0] sm:$0xff]   ;;  %v6091_v43 = vld [vmem:[#allocation2 + $0x18] sm:$0xf]  ;;  %v6191_v12 = vshll.u32 %v6092_v61, 16  ;;  %12161 = vmatpush3.bf16.msra.mxu0 %v12654_v16 }
 0x3c3   : > { %v6164_v56 = vor.u32 %v6163_v27, %v6160_v15  ;;  %v6174_v57 = vor.u32 %v6173_v22, %v6169_v9  ;;  %v6093_v7 = vld [vmem:[#allocation2 + $0x20] sm:$0x1]  ;;  %v6195_v26 = vshrl.u32 %v6092_v61, 16  ;;  %v12662_v51 = vld [vmem:[#allocation9 + $0x190] sm:$0xff]   ;;  %v6182_v20 = vshrl.u32 %v6091_v43, 16  ;;  %v12665_v53 = vld [vmem:[#allocation9 + $0x1d8] sm:$0xff]   ;;  %12162 = vmatprep.subr.bf16.mxu0 %v12660_v8 }
 0x3c4   : > { %v6706_v33 = vsel %vm13145_vm13, %v6704_v38, %v6705_v41  ;;  %v6185_v52 = vshll.u32 %v6091_v43, 16  ;;  %v6201_v18 = vshll.u32 %v6093_v7, 16  ;;  %v6603_v54 = vld [vmem:[#allocation2 + $0x18] sm:$0xe]  ;;  %v12622_v13 = vld [vmem:[#allocation2 + $0x24] sm:$0xff]   ;;  %v6193_v24 = vrot.slane %v6191_v12, 5 }
 0x3c5   : > { %v6165_v25 = vrot.slane %v6164_v56, 4  ;;  %v6175_v21 = vrot.slane %v6174_v57, 4  ;;  %v11064_v14 = vcombine.low %v6703_v34, %v6706_v33  ;;  %v6605_v17 = vld [vmem:[#allocation2 + $0x20] sm:$0x1]  ;;  %v6095_v47 = vld [vmem:[#allocation2 + $0x28] sm:$0xf] }
 0x3c6   : > { %v6184_v2 = vrot.slane %v6182_v20, 4  ;;  %v6187_v5 = vrot.slane %v6185_v52, 5  ;;  %v6197_v23 = vrot.slane %v6195_v26, 4  ;;  %v6203_v37 = vrot.slane %v6201_v18, 5  ;;  %v6094_v29 = vld [vmem:[#allocation2 + $0x24] sm:$0xf]  ;;  %12163 = vmatpush3.bf16.msra.mxu0 %v12662_v51 }
 0x3c7   : > { %v6170_v40 = vsel %vm13121_vm8, %v6165_v25, %v6169_v9  ;;  %v6180_v45 = vsel %vm13121_vm8, %v6175_v21, %v6179_v35  ;;  %v11049_v11 = vrot.slane %v6603_v54, 9  ;;  %v6709_v0 = vrot.slane %v6604_v60, 5  ;;  %9695 = vmatmul.mubr.bf16.gmra.mrb[164].mxu0 %v11064_v14  ;;  %v6096_v63 = vld [vmem:[#allocation2 + $0x2c] sm:$0x1]  ;;  %v12666_v42 = vld [vmem:[#allocation9 + $0x198] sm:$0xff]   ;;  %v12667_v32 = vld [vmem:[#allocation9 + $0x1e0] sm:$0xff]   ;;  %12164 = vmatprep.subr.bf16.mxu0 %v12665_v53 }
 0x3c8   : > { %v11032_v59 = vcombine.low %v6170_v40, %v6180_v45  ;;  %v6188_v28 = vor.u32 %v6187_v5, %v6184_v2  ;;  %v6198_v4 = vor.u32 %v6197_v23, %v6193_v24  ;;  %v6712_v3 = vrot.slane %v6605_v17, 5  ;;  %v12621_v39 = vld [vmem:[#allocation2 + $0xc] sm:$0xff]   ;;  %9702 = vmatprep.mubr.bf16.mxu0 %v12622_v13  ;;  %v6606_v19 = vld [vmem:[#allocation2 + $0x24] sm:$0xe]  ;;  %v6607_v6 = vld [vmem:[#allocation2 + $0x28] sm:$0xf] }
 0x3c9   : > { %v6710_v36 = vsel %vm13145_vm13, %v11049_v11, %v6709_v0  ;;  %v6711_v61 = vrot.slane %v6709_v0, 4  ;;  %v6206_v48 = vshrl.u32 %v6094_v29, 16  ;;  %v6209_v49 = vshll.u32 %v6094_v29, 16  ;;  %v6608_v10 = vld [vmem:[#allocation2 + $0x2c] sm:$0x1]  ;;  %v12671_v38 = vld [vmem:[#allocation9 + $0x1a0] sm:$0xff]  }
 0x3ca   : > { %9533 = vmatprep.mubr.bf16.mxu1 %v11032_v59  ;;  %v6189_v55 = vrot.slane %v6188_v28, 4  ;;  %v6199_v1 = vrot.slane %v6198_v4, 4  ;;  %v6215_v30 = vshll.u32 %v6095_v47, 16  ;;  %v6219_v58 = vshrl.u32 %v6095_v47, 16  ;;  %v6098_v31 = vld [vmem:[#allocation2 + $0x34] sm:$0xf]  ;;  %12165 = vmatpush3.bf16.msra.mxu0 %v12666_v42 }
 0x3cb   : > { %9534 = vmatmul.mubr.bf16.gmra.mrb[132].mxu1 %v12621_v39  ;;  %v6713_v62 = vsel %vm13145_vm13, %v6711_v61, %v6712_v3  ;;  %v6208_v50 = vrot.slane %v6206_v48, 4  ;;  %v6211_v16 = vrot.slane %v6209_v49, 5  ;;  %v6225_v15 = vshll.u32 %v6096_v63, 16  ;;  %v6097_v34 = vld [vmem:[#allocation2 + $0x30] sm:$0xf]  ;;  %v12673_v41 = vld [vmem:[#allocation9 + $0x1e8] sm:$0xff]   ;;  %12166 = vmatprep.subr.bf16.mxu0 %v12667_v32 }
 0x3cc   : > { %v6194_v27 = vsel %vm13121_vm8, %v6189_v55, %v6193_v24  ;;  %v6204_v9 = vsel %vm13121_vm8, %v6199_v1, %v6203_v37  ;;  %v11065_v22 = vcombine.low %v6710_v36, %v6713_v62  ;;  %v6217_v35 = vrot.slane %v6215_v30, 5  ;;  %v6099_v43 = vld [vmem:[#allocation2 + $0x38] sm:$0x1]  ;;  %v6609_v7 = vld [vmem:[#allocation2 + $0x30] sm:$0xe]  ;;  %v12628_v48 = vld [vmem:[#allocation2 + $0x3c] sm:$0xff]  }
 0x3cd   : > { %v11033_v60 = vcombine.low %v6194_v27, %v6204_v9  ;;  %v6212_v8 = vor.u32 %v6211_v16, %v6208_v50  ;;  %v6221_v56 = vrot.slane %v6219_v58, 4  ;;  %v6227_v57 = vrot.slane %v6225_v15, 5  ;;  %v12624_v20 = vld [vmem:[#allocation2 + $0x30] sm:$0xff]   ;;  %v12623_v17 = vld [vmem:[#allocation2 + $0x18] sm:$0xff]   ;;  %v6101_v63 = vld [vmem:[#allocation2 + $0x40] sm:$0xf] }
 0x3ce   : > { %v11050_v12 = vrot.slane %v6606_v19, 9  ;;  %v6716_v26 = vrot.slane %v6607_v6, 5  ;;  %v6719_v51 = vrot.slane %v6608_v10, 5  ;;  %v6230_v33 = vshrl.u32 %v6097_v34, 16  ;;  %v6610_v24 = vld [vmem:[#allocation2 + $0x34] sm:$0xf]  ;;  %12167 = vmatpush3.bf16.msra.mxu0 %v12671_v38 }
 0x3cf   : > { %9541 = vmatprep.mubr.bf16.mxu1 %v11033_v60  ;;  %v6213_v52 = vrot.slane %v6212_v8, 4  ;;  %v6222_v18 = vor.u32 %v6221_v56, %v6217_v35  ;;  %v6233_v54 = vshll.u32 %v6097_v34, 16  ;;  %v6239_v53 = vshll.u32 %v6098_v31, 16  ;;  %9703 = vmatmul.mubr.bf16.gmra.mrb[168].mxu0 %v11065_v22  ;;  %v6611_v37 = vld [vmem:[#allocation2 + $0x38] sm:$0x1]  ;;  %v12627_v8 = vld [vmem:[#allocation2 + $0x24] sm:$0xff]  }
 0x3d0   : > { %v6717_v25 = vsel %vm13145_vm13, %v11050_v12, %v6716_v26  ;;  %v6718_v21 = vrot.slane %v6716_v26, 4  ;;  %v6232_v14 = vrot.slane %v6230_v33, 4  ;;  %v6243_v13 = vshrl.u32 %v6098_v31, 16  ;;  %9710 = vmatprep.mubr.bf16.mxu0 %v12624_v20  ;;  %v6100_v29 = vld [vmem:[#allocation2 + $0x3c] sm:$0xf]  ;;  %12168 = vmatprep.subr.bf16.mxu0 %v12673_v41 }
 0x3d1   : > { %v6218_v47 = vsel %vm13121_vm8, %v6213_v52, %v6217_v35  ;;  %v6223_v2 = vrot.slane %v6222_v18, 4  ;;  %v6235_v5 = vrot.slane %v6233_v54, 5  ;;  %v6241_v23 = vrot.slane %v6239_v53, 5  ;;  %v6102_v61 = vld [vmem:[#allocation2 + $0x44] sm:$0x1] }
 0x3d2   : > { %v6720_v40 = vsel %vm13145_vm13, %v6718_v21, %v6719_v51  ;;  %v6245_v45 = vrot.slane %v6243_v13, 4  ;;  %v6249_v11 = vshll.u32 %v6099_v43, 16  ;;  %v11051_v0 = vrot.slane %v6609_v7, 9  ;;  %v6612_v55 = vld [vmem:[#allocation2 + $0x3c] sm:$0xe] }
 0x3d3   : > { %9542 = vmatmul.mubr.bf16.gmra.mrb[136].mxu1 %v12623_v17  ;;  %v6228_v59 = vsel %vm13121_vm8, %v6223_v2, %v6227_v57  ;;  %v11066_v28 = vcombine.low %v6717_v25, %v6720_v40  ;;  %v6236_v4 = vor.u32 %v6235_v5, %v6232_v14  ;;  %v6723_v3 = vrot.slane %v6610_v24, 5  ;;  %v6613_v1 = vld [vmem:[#allocation2 + $0x40] sm:$0xf]  ;;  %v6614_v50 = vld [vmem:[#allocation2 + $0x44] sm:$0x1] }
 0x3d4   : > { %v11034_v42 = vcombine.low %v6218_v47, %v6228_v59  ;;  %v6246_v32 = vor.u32 %v6245_v45, %v6241_v23  ;;  %v6251_v39 = vrot.slane %v6249_v11, 5  ;;  %v6726_v36 = vrot.slane %v6611_v37, 5  ;;  %v6103_v22 = vld [vmem:[#allocation2 + $0x48] sm:$0xf]  ;;  %v6104_v60 = vld [vmem:[#allocation2 + $0x4c] sm:$0xf] }
 0x3d5   : > { %v6237_v49 = vrot.slane %v6236_v4, 4  ;;  %v6724_v19 = vsel %vm13145_vm13, %v11051_v0, %v6723_v3  ;;  %v6725_v6 = vrot.slane %v6723_v3, 4  ;;  %v6254_v10 = vshrl.u32 %v6100_v29, 16  ;;  %v6105_v12 = vld [vmem:[#allocation2 + $0x50] sm:$0x1]  ;;  %v12630_v59 = vld [vmem:[#allocation2 + $0x48] sm:$0xff]  }
 0x3d6   : > { %9549 = vmatprep.mubr.bf16.mxu1 %v11034_v42  ;;  %v6247_v30 = vrot.slane %v6246_v32, 4  ;;  %v6257_v58 = vshll.u32 %v6100_v29, 16  ;;  %v6263_v31 = vshll.u32 %v6101_v63, 16  ;;  %v6267_v62 = vshrl.u32 %v6101_v63, 16  ;;  %v6615_v52 = vld [vmem:[#allocation2 + $0x48] sm:$0xe] }
 0x3d7   : > { %v6242_v16 = vsel %vm13121_vm8, %v6237_v49, %v6241_v23  ;;  %v6727_v15 = vsel %vm13145_vm13, %v6725_v6, %v6726_v36  ;;  %v6256_v27 = vrot.slane %v6254_v10, 4  ;;  %v6273_v9 = vshll.u32 %v6102_v61, 16  ;;  %9711 = vmatmul.mubr.bf16.gmra.mrb[172].mxu0 %v11066_v28  ;;  %v6616_v21 = vld [vmem:[#allocation2 + $0x4c] sm:$0xf]  ;;  %v6617_v14 = vld [vmem:[#allocation2 + $0x50] sm:$0x1] }
 0x3d8   : > { %v6252_v35 = vsel %vm13121_vm8, %v6247_v30, %v6251_v39  ;;  %v11067_v34 = vcombine.low %v6724_v19, %v6727_v15  ;;  %v6259_v38 = vrot.slane %v6257_v58, 5  ;;  %v6265_v41 = vrot.slane %v6263_v31, 5  ;;  %9718 = vmatprep.mubr.bf16.mxu0 %v12628_v48  ;;  %v6106_v29 = vld [vmem:[#allocation2 + $0x54] sm:$0xf]  ;;  %v6107_v42 = vld [vmem:[#allocation2 + $0x58] sm:$0xf] }
 0x3d9   : > { %v11035_v56 = vcombine.low %v6242_v16, %v6252_v35  ;;  %v6269_v57 = vrot.slane %v6267_v62, 4  ;;  %v6275_v43 = vrot.slane %v6273_v9, 5  ;;  %v11052_v7 = vrot.slane %v6612_v55, 9  ;;  %v12629_v32 = vld [vmem:[#allocation2 + $0x30] sm:$0xff]   ;;  %v6108_v6 = vld [vmem:[#allocation2 + $0x5c] sm:$0x1] }
 0x3da   : > { %v6260_v26 = vor.u32 %v6259_v38, %v6256_v27  ;;  %v6730_v51 = vrot.slane %v6613_v1, 5  ;;  %v6733_v33 = vrot.slane %v6614_v50, 5  ;;  %v6278_v20 = vshrl.u32 %v6103_v22, 16  ;;  %v6619_v1 = vld [vmem:[#allocation2 + $0x58] sm:$0xf] }
 0x3db   : > { %9550 = vmatmul.mubr.bf16.gmra.mrb[140].mxu1 %v12627_v8  ;;  %v6270_v18 = vor.u32 %v6269_v57, %v6265_v41  ;;  %v6281_v54 = vshll.u32 %v6103_v22, 16  ;;  %v6287_v53 = vshll.u32 %v6104_v60, 16  ;;  %v6291_v25 = vshrl.u32 %v6104_v60, 16  ;;  %v6618_v50 = vld [vmem:[#allocation2 + $0x54] sm:$0xe] }
 0x3dc   : > { %9557 = vmatprep.mubr.bf16.mxu1 %v11035_v56  ;;  %v6261_v13 = vrot.slane %v6260_v26, 4  ;;  %v15185_v24 = vsel %vm13145_vm13, %v11052_v7, %v6730_v51  ;;  %v6732_v17 = vrot.slane %v6730_v51, 4  ;;  %v6280_v47 = vrot.slane %v6278_v20, 4  ;;  %v6110_v16 = vld [vmem:[#allocation2 + $0x64] sm:$0xf]  ;;  %v12634_v26 = vld [vmem:[#allocation2 + $0x54] sm:$0xff]  }
 0x3dd   : > { %v6271_v2 = vrot.slane %v6270_v18, 4  ;;  %v6283_v5 = vrot.slane %v6281_v54, 5  ;;  %v6289_v23 = vrot.slane %v6287_v53, 5  ;;  %v6293_v37 = vrot.slane %v6291_v25, 4  ;;  %v6620_v35 = vld [vmem:[#allocation2 + $0x5c] sm:$0x1] }
 0x3de   : > { %v6266_v40 = vsel %vm13121_vm8, %v6261_v13, %v6265_v41  ;;  %v6734_v45 = vsel %vm13145_vm13, %v6732_v17, %v6733_v33  ;;  %v6297_v11 = vshll.u32 %v6105_v12, 16  ;;  %v11053_v0 = vrot.slane %v6615_v52, 9  ;;  %v6111_v12 = vld [vmem:[#allocation2 + $0x68] sm:$0x1]  ;;  %v6621_v18 = vld [vmem:[#allocation2 + $0x60] sm:$0xe] }
 0x3df   : > { %v6276_v28 = vsel %vm13121_vm8, %v6271_v2, %v6275_v43  ;;  %v11068_v4 = vcombine.low %v15185_v24, %v6734_v45  ;;  %v6284_v3 = vor.u32 %v6283_v5, %v6280_v47  ;;  %v6294_v63 = vor.u32 %v6293_v37, %v6289_v23  ;;  %9719 = vmatmul.mubr.bf16.gmra.mrb[176].mxu0 %v11067_v34  ;;  %v6109_v34 = vld [vmem:[#allocation2 + $0x60] sm:$0xf]  ;;  %v6623_v13 = vld [vmem:[#allocation2 + $0x68] sm:$0x1]  ;;  %v6112_v24 = vld [vmem:[#allocation2 + $0x6c] sm:$0xf] }
 0x3e0   : > { %v11036_v39 = vcombine.low %v6266_v40, %v6276_v28  ;;  %v6299_v36 = vrot.slane %v6297_v11, 5  ;;  %v6737_v61 = vrot.slane %v6616_v21, 5  ;;  %v6740_v48 = vrot.slane %v6617_v14, 5  ;;  %9726 = vmatprep.mubr.bf16.mxu0 %v12630_v59  ;;  %v6622_v14 = vld [vmem:[#allocation2 + $0x64] sm:$0xf] }
 0x3e1   : > { %v6285_v49 = vrot.slane %v6284_v3, 4  ;;  %v6295_v19 = vrot.slane %v6294_v63, 4  ;;  %v6302_v10 = vshrl.u32 %v6106_v29, 16  ;;  %v6305_v55 = vshll.u32 %v6106_v29, 16  ;;  %v8495_v44 = vld [vmem:[#allocation2 + $0x40] sm:$0xf] }
 0x3e2   : > { %v15196_v30 = vsel %vm13145_vm13, %v11053_v0, %v6737_v61  ;;  %v6739_v58 = vrot.slane %v6737_v61, 4  ;;  %v6311_v31 = vshll.u32 %v6107_v42, 16  ;;  %v6315_v62 = vshrl.u32 %v6107_v42, 16 }
 0x3e3   : > { %9558 = vmatmul.mubr.bf16.gmra.mrb[144].mxu1 %v12629_v32  ;;  %v6290_v15 = vsel %vm13121_vm8, %v6285_v49, %v6289_v23  ;;  %v6300_v27 = vsel %vm13121_vm8, %v6295_v19, %v6299_v36  ;;  %v6304_v9 = vrot.slane %v6302_v10, 4  ;;  %v6307_v22 = vrot.slane %v6305_v55, 5  ;;  %v12633_v23 = vld [vmem:[#allocation2 + $0x3c] sm:$0xff]   ;;  %v6624_v36 = vld [vmem:[#allocation2 + $0x6c] sm:$0xe] }
 0x3e4   : > { %9565 = vmatprep.mubr.bf16.mxu1 %v11036_v39  ;;  %v11037_v38 = vcombine.low %v6290_v15, %v6300_v27  ;;  %v15204_v41 = vsel %vm13145_vm13, %v6739_v58, %v6740_v48  ;;  %v6313_v60 = vrot.slane %v6311_v31, 5  ;;  %v6317_v8 = vrot.slane %v6315_v62, 4  ;;  %v6114_v39 = vld [vmem:[#allocation2 + $0x74] sm:$0x1] }
 0x3e5   : > { %v11069_v56 = vcombine.low %v15196_v30, %v15204_v41  ;;  %v6308_v57 = vor.u32 %v6307_v22, %v6304_v9  ;;  %v6321_v43 = vshll.u32 %v6108_v6, 16  ;;  %v11054_v7 = vrot.slane %v6618_v50, 9  ;;  %v6625_v50 = vld [vmem:[#allocation2 + $0x70] sm:$0xf] }
 0x3e6   : > { %v6318_v51 = vor.u32 %v6317_v8, %v6313_v60  ;;  %v6744_v33 = vrot.slane %v6619_v1, 5  ;;  %v6747_v20 = vrot.slane %v6620_v35, 5  ;;  %v6326_v52 = vshrl.u32 %v6109_v34, 16  ;;  %v6626_v35 = vld [vmem:[#allocation2 + $0x74] sm:$0x1] }
 0x3e7   : > { %v6309_v54 = vrot.slane %v6308_v57, 4  ;;  %v6323_v53 = vrot.slane %v6321_v43, 5  ;;  %v6329_v25 = vshll.u32 %v6109_v34, 16  ;;  %v6335_v21 = vshll.u32 %v6110_v16, 16  ;;  %9727 = vmatmul.mubr.bf16.gmra.mrb[180].mxu0 %v11068_v4  ;;  %v6113_v4 = vld [vmem:[#allocation2 + $0x70] sm:$0xf] }
 0x3e8   : > { %v6319_v17 = vrot.slane %v6318_v51, 4  ;;  %v15210_v47 = vsel %vm13145_vm13, %v11054_v7, %v6744_v33  ;;  %v6746_v2 = vrot.slane %v6744_v33, 4  ;;  %v6328_v5 = vrot.slane %v6326_v52, 4  ;;  %9734 = vmatprep.mubr.bf16.mxu0 %v12634_v26  ;;  %v6116_v34 = vld [vmem:[#allocation2 + $0x7c] sm:$0xf] }
 0x3e9   : > { %v6314_v37 = vsel %vm13121_vm8, %v6309_v54, %v6313_v60  ;;  %v6331_v40 = vrot.slane %v6329_v25, 5  ;;  %v6337_v45 = vrot.slane %v6335_v21, 5  ;;  %v6339_v11 = vshrl.u32 %v6110_v16, 16  ;;  %v12636_v16 = vld [vmem:[#allocation2 + $0x60] sm:$0xff]   ;;  %v6115_v43 = vld [vmem:[#allocation2 + $0x78] sm:$0xf] }
 0x3ea   : > { %v6324_v0 = vsel %vm13121_vm8, %v6319_v17, %v6323_v53  ;;  %v15218_v29 = vsel %vm13145_vm13, %v6746_v2, %v6747_v20  ;;  %v6345_v59 = vshll.u32 %v6111_v12, 16  ;;  %v11055_v28 = vrot.slane %v6621_v18, 9  ;;  %v6117_v33 = vld [vmem:[#allocation2 + $0x80] sm:$0x1] }
 0x3eb   : > { %9566 = vmatmul.mubr.bf16.gmra.mrb[148].mxu1 %v12633_v23  ;;  %v11038_v3 = vcombine.low %v6314_v37, %v6324_v0  ;;  %v11070_v63 = vcombine.low %v15210_v47, %v15218_v29  ;;  %v6332_v42 = vor.u32 %v6331_v40, %v6328_v5  ;;  %v6341_v32 = vrot.slane %v6339_v11, 4  ;;  %v6627_v37 = vld [vmem:[#allocation2 + $0x78] sm:$0xe]  ;;  %v6119_v40 = vld [vmem:[#allocation2 + $0x88] sm:$0xf] }
 0x3ec   : > { %9573 = vmatprep.mubr.bf16.mxu1 %v11037_v38  ;;  %v6347_v61 = vrot.slane %v6345_v59, 5  ;;  %v6751_v48 = vrot.slane %v6622_v14, 5  ;;  %v6754_v49 = vrot.slane %v6623_v13, 5  ;;  %v6350_v19 = vshrl.u32 %v6112_v24, 16  ;;  %v12635_v38 = vld [vmem:[#allocation2 + $0x48] sm:$0xff]  }
 0x3ed   : > { %v6333_v6 = vrot.slane %v6332_v42, 4  ;;  %v6342_v10 = vor.u32 %v6341_v32, %v6337_v45  ;;  %v6353_v55 = vshll.u32 %v6112_v24, 16  ;;  %v6359_v1 = vshll.u32 %v6113_v4, 16  ;;  %v6628_v13 = vld [vmem:[#allocation2 + $0x7c] sm:$0xf]  ;;  %v12675_v24 = vld [vmem:[#allocation9 + $0x1f0] sm:$0xff]  }
 0x3ee   : > { %v15224_v30 = vsel %vm13145_vm13, %v11055_v28, %v6751_v48  ;;  %v6753_v58 = vrot.slane %v6751_v48, 4  ;;  %v6352_v31 = vrot.slane %v6350_v19, 4  ;;  %v6363_v62 = vshrl.u32 %v6113_v4, 16  ;;  %v6629_v28 = vld [vmem:[#allocation2 + $0x80] sm:$0x1] }
 0x3ef   : > { %v6338_v15 = vsel %vm13121_vm8, %v6333_v6, %v6337_v45  ;;  %v6343_v27 = vrot.slane %v6342_v10, 4  ;;  %v6355_v9 = vrot.slane %v6353_v55, 5  ;;  %v6361_v22 = vrot.slane %v6359_v1, 5  ;;  %9735 = vmatmul.mubr.bf16.gmra.mrb[184].mxu0 %v11069_v56  ;;  %v12674_v56 = vld [vmem:[#allocation9 + $0x1a8] sm:$0xff]  }
 0x3f0   : > { %v15230_v41 = vsel %vm13145_vm13, %v6753_v58, %v6754_v49  ;;  %v6365_v60 = vrot.slane %v6363_v62, 4  ;;  %v6369_v8 = vshll.u32 %v6114_v39, 16  ;;  %v11056_v57 = vrot.slane %v6624_v36, 9  ;;  %9742 = vmatprep.mubr.bf16.mxu0 %v12636_v16  ;;  %12169 = vmatpush3.bf16.msra.mxu0 %v12674_v56  ;;  %v6118_v4 = vld [vmem:[#allocation2 + $0x84] sm:$0xf]  ;;  %v12639_v36 = vld [vmem:[#allocation2 + $0x54] sm:$0xff]  }
 0x3f1   : > { %v6348_v7 = vsel %vm13121_vm8, %v6343_v27, %v6347_v61  ;;  %v11071_v12 = vcombine.low %v15224_v30, %v15230_v41  ;;  %v6356_v26 = vor.u32 %v6355_v9, %v6352_v31  ;;  %v6758_v51 = vrot.slane %v6625_v50, 5  ;;  %12170 = vmatprep.subr.bf16.mxu0 %v12675_v24  ;;  %v12640_v61 = vld [vmem:[#allocation2 + $0x6c] sm:$0xff]   ;;  %v6630_v9 = vld [vmem:[#allocation2 + $0x84] sm:$0xe]  ;;  %v6124_v41 = vld [vmem:[#allocation2 + $0x9c] sm:$0xf] }
 0x3f2   : > { %v15236_v20 = vcombine.low %v6338_v15, %v6348_v7  ;;  %v6366_v52 = vor.u32 %v6365_v60, %v6361_v22  ;;  %v6371_v18 = vrot.slane %v6369_v8, 5  ;;  %v6761_v54 = vrot.slane %v6626_v35, 5  ;;  %v6120_v58 = vld [vmem:[#allocation2 + $0x8c] sm:$0x1] }
 0x3f3   : > { %9574 = vmatmul.mubr.bf16.gmra.mrb[152].mxu1 %v12635_v38  ;;  %v6357_v53 = vrot.slane %v6356_v26, 4  ;;  %v15240_v25 = vsel %vm13145_vm13, %v11056_v57, %v6758_v51  ;;  %v6760_v21 = vrot.slane %v6758_v51, 4  ;;  %v6374_v14 = vshrl.u32 %v6115_v43, 16  ;;  %v12677_v62 = vld [vmem:[#allocation9 + $0x1b0] sm:$0xff]   ;;  %v12679_v38 = vld [vmem:[#allocation9 + $0x1b8] sm:$0xff]  }
 0x3f4   : > { %9581 = vmatprep.mubr.bf16.mxu1 %v11038_v3  ;;  %v6367_v17 = vrot.slane %v6366_v52, 4  ;;  %v6377_v2 = vshll.u32 %v6115_v43, 16  ;;  %v6383_v5 = vshll.u32 %v6116_v34, 16  ;;  %v6387_v23 = vshrl.u32 %v6116_v34, 16  ;;  %12171 = vmatpush3.bf16.msra.mxu0 %v12677_v62  ;;  %v6632_v7 = vld [vmem:[#allocation2 + $0x8c] sm:$0x1] }
 0x3f5   : > { %v6362_v45 = vsel %vm13121_vm8, %v6357_v53, %v6361_v22  ;;  %v15246_v11 = vsel %vm13145_vm13, %v6760_v21, %v6761_v54  ;;  %v6376_v0 = vrot.slane %v6374_v14, 4  ;;  %v6393_v59 = vshll.u32 %v6117_v33, 16  ;;  %v12678_v22 = vld [vmem:[#allocation9 + $0x1f8] sm:$0xff]  }
 0x3f6   : > { %v6372_v3 = vsel %vm13121_vm8, %v6367_v17, %v6371_v18  ;;  %v11072_v42 = vcombine.low %v15240_v25, %v15246_v11  ;;  %v6379_v32 = vrot.slane %v6377_v2, 5  ;;  %v6385_v39 = vrot.slane %v6383_v5, 5  ;;  %12172 = vmatprep.subr.bf16.mxu0 %v12678_v22  ;;  %v6121_v52 = vld [vmem:[#allocation2 + $0x90] sm:$0xf]  ;;  %v6122_v18 = vld [vmem:[#allocation2 + $0x94] sm:$0xf] }
 0x3f7   : > { %v15252_v48 = vcombine.low %v6362_v45, %v6372_v3  ;;  %v6389_v49 = vrot.slane %v6387_v23, 4  ;;  %v6395_v19 = vrot.slane %v6393_v59, 5  ;;  %v11057_v6 = vrot.slane %v6627_v37, 9  ;;  %9743 = vmatmul.mubr.bf16.gmra.mrb[188].mxu0 %v11070_v63  ;;  %v6631_v63 = vld [vmem:[#allocation2 + $0x88] sm:$0xf]  ;;  %v12641_v23 = vld [vmem:[#allocation2 + $0x60] sm:$0xff]  }
 0x3f8   : > { %v6380_v10 = vor.u32 %v6379_v32, %v6376_v0  ;;  %v6765_v55 = vrot.slane %v6628_v13, 5  ;;  %v6768_v1 = vrot.slane %v6629_v28, 5  ;;  %v6398_v31 = vshrl.u32 %v6118_v4, 16  ;;  %9750 = vmatprep.mubr.bf16.mxu0 %v12640_v61  ;;  %v6123_v5 = vld [vmem:[#allocation2 + $0x98] sm:$0x1]  ;;  %12173 = vmatpush3.bf16.msra.mxu0 %v12679_v38 }
 0x3f9   : > { %v6390_v50 = vor.u32 %v6389_v49, %v6385_v39  ;;  %v6401_v16 = vshll.u32 %v6118_v4, 16  ;;  %v6407_v15 = vshll.u32 %v6119_v40, 16  ;;  %v6411_v27 = vshrl.u32 %v6119_v40, 16  ;;  %v6633_v59 = vld [vmem:[#allocation2 + $0x90] sm:$0xe]  ;;  %v15281_v61 = vld [vmem:[#allocation9 + $0x200] sm:$0xff]  }
 0x3fa   : > { %v6381_v35 = vrot.slane %v6380_v10, 4  ;;  %v15259_v34 = vsel %vm13145_vm13, %v11057_v6, %v6765_v55  ;;  %v6767_v47 = vrot.slane %v6765_v55, 4  ;;  %v6400_v29 = vrot.slane %v6398_v31, 4  ;;  %v6634_v28 = vld [vmem:[#allocation2 + $0x94] sm:$0xf]  ;;  %12342 = vmatprep.subr.bf16.mxu1 %v15281_v61 }
 0x3fb   : > { %9582 = vmatmul.mubr.bf16.gmra.mrb[156].mxu1 %v12639_v36  ;;  %v6391_v60 = vrot.slane %v6390_v50, 4  ;;  %v6403_v8 = vrot.slane %v6401_v16, 5  ;;  %v6409_v57 = vrot.slane %v6407_v15, 5  ;;  %v6413_v43 = vrot.slane %v6411_v27, 4  ;;  %v6635_v36 = vld [vmem:[#allocation2 + $0x98] sm:$0x1] }
 0x3fc   : > { %9589 = vmatprep.mubr.bf16.mxu1 %v15236_v20  ;;  %v6386_v26 = vsel %vm13121_vm8, %v6381_v35, %v6385_v39  ;;  %v15266_v51 = vsel %vm13145_vm13, %v6767_v47, %v6768_v1  ;;  %v6417_v33 = vshll.u32 %v6120_v58, 16  ;;  %v11058_v56 = vrot.slane %v6630_v9, 9  ;;  %v12642_v20 = vld [vmem:[#allocation2 + $0x78] sm:$0xff]   ;;  %v6125_v58 = vld [vmem:[#allocation2 + $0xa0] sm:$0xf] }
 0x3fd   : > { %v6396_v54 = vsel %vm13121_vm8, %v6391_v60, %v6395_v19  ;;  %v11073_v53 = vcombine.low %v15259_v34, %v15266_v51  ;;  %v6404_v21 = vor.u32 %v6403_v8, %v6400_v29  ;;  %v6414_v14 = vor.u32 %v6413_v43, %v6409_v57  ;;  %v6126_v15 = vld [vmem:[#allocation2 + $0xa4] sm:$0x1]  ;;  %v6636_v47 = vld [vmem:[#allocation2 + $0x9c] sm:$0xe]  ;;  %v6637_v8 = vld [vmem:[#allocation2 + $0xa0] sm:$0xf] }
 0x3fe   : > { %v15272_v13 = vcombine.low %v6386_v26, %v6396_v54  ;;  %v6419_v24 = vrot.slane %v6417_v33, 5  ;;  %v6772_v17 = vrot.slane %v6631_v63, 5  ;;  %v6775_v2 = vrot.slane %v6632_v7, 5  ;;  %v6129_v11 = vld [vmem:[#allocation2 + $0xb0] sm:$0x1] }
 0x3ff   : > { %v6405_v37 = vrot.slane %v6404_v21, 4  ;;  %v6415_v40 = vrot.slane %v6414_v14, 4  ;;  %v6422_v45 = vshrl.u32 %v6121_v52, 16  ;;  %v6425_v0 = vshll.u32 %v6121_v52, 16  ;;  %9751 = vmatmul.mubr.bf16.gmra.mrb[192].mxu0 %v11071_v12  ;;  %v6127_v21 = vld [vmem:[#allocation2 + $0xa8] sm:$0xf] }
 0x400   : > { %v15279_v4 = vsel %vm13145_vm13, %v11058_v56, %v6772_v17  ;;  %v6774_v3 = vrot.slane %v6772_v17, 4  ;;  %v6431_v32 = vshll.u32 %v6122_v18, 16  ;;  %v6435_v39 = vshrl.u32 %v6122_v18, 16  ;;  %9758 = vmatprep.mubr.bf16.mxu0 %v12642_v20  ;;  %v12648_v56 = vld [vmem:[#allocation2 + $0x84] sm:$0xff]  }
 0x401   : > { %v6410_v49 = vsel %vm13121_vm8, %v6405_v37, %v6409_v57  ;;  %v6420_v19 = vsel %vm13121_vm8, %v6415_v40, %v6419_v24  ;;  %v6424_v6 = vrot.slane %v6422_v45, 4  ;;  %v6427_v30 = vrot.slane %v6425_v0, 5  ;;  %v6638_v57 = vld [vmem:[#allocation2 + $0xa4] sm:$0x1] }
 0x402   : > { %v15287_v12 = vcombine.low %v6410_v49, %v6420_v19  ;;  %v15291_v10 = vsel %vm13145_vm13, %v6774_v3, %v6775_v2  ;;  %v6433_v55 = vrot.slane %v6431_v32, 5  ;;  %v6437_v1 = vrot.slane %v6435_v39, 4  ;;  %v6128_v2 = vld [vmem:[#allocation2 + $0xac] sm:$0xf] }
 0x403   : > { %9590 = vmatmul.mubr.bf16.gmra.mrb[160].mxu1 %v12641_v23  ;;  %v11074_v31 = vcombine.low %v15279_v4, %v15291_v10  ;;  %v6428_v62 = vor.u32 %v6427_v30, %v6424_v6  ;;  %v6441_v50 = vshll.u32 %v6123_v5, 16  ;;  %v11059_v16 = vrot.slane %v6633_v59, 9  ;;  %v12647_v5 = vld [vmem:[#allocation2 + $0x6c] sm:$0xff]  }
 0x404   : > { %9597 = vmatprep.mubr.bf16.mxu1 %v15252_v48  ;;  %v6438_v27 = vor.u32 %v6437_v1, %v6433_v55  ;;  %v6779_v9 = vrot.slane %v6634_v28, 5  ;;  %v6782_v22 = vrot.slane %v6635_v36, 5  ;;  %v6446_v35 = vshrl.u32 %v6124_v41, 16  ;;  %v6639_v28 = vld [vmem:[#allocation2 + $0xa8] sm:$0xe] }
 0x405   : > { %v6429_v29 = vrot.slane %v6428_v62, 4  ;;  %v6443_v63 = vrot.slane %v6441_v50, 5  ;;  %v6449_v38 = vshll.u32 %v6124_v41, 16  ;;  %v6455_v60 = vshll.u32 %v6125_v58, 16  ;;  %v6640_v49 = vld [vmem:[#allocation2 + $0xac] sm:$0xf] }
 0x406   : > { %v6439_v43 = vrot.slane %v6438_v27, 4  ;;  %v15299_v7 = vsel %vm13145_vm13, %v11059_v16, %v6779_v9  ;;  %v6781_v26 = vrot.slane %v6779_v9, 4  ;;  %v6448_v33 = vrot.slane %v6446_v35, 4  ;;  %v6130_v16 = vld [vmem:[#allocation2 + $0xb4] sm:$0xf] }
 0x407   : > { %v6434_v48 = vsel %vm13121_vm8, %v6429_v29, %v6433_v55  ;;  %v6451_v52 = vrot.slane %v6449_v38, 5  ;;  %v6457_v18 = vrot.slane %v6455_v60, 5  ;;  %v6459_v54 = vshrl.u32 %v6125_v58, 16  ;;  %9759 = vmatmul.mubr.bf16.gmra.mrb[196].mxu0 %v11072_v42  ;;  %v6641_v55 = vld [vmem:[#allocation2 + $0xb0] sm:$0x1] }
 0x408   : > { %v6444_v14 = vsel %vm13121_vm8, %v6439_v43, %v6443_v63  ;;  %v15310_v20 = vsel %vm13145_vm13, %v6781_v26, %v6782_v22  ;;  %v6465_v24 = vshll.u32 %v6126_v15, 16  ;;  %v11060_v17 = vrot.slane %v6636_v47, 9  ;;  %9766 = vmatprep.mubr.bf16.mxu0 %v12648_v56  ;;  %v12650_v22 = vld [vmem:[#allocation2 + $0x90] sm:$0xff]   ;;  %v6131_v38 = vld [vmem:[#allocation2 + $0xb8] sm:$0xf] }
 0x409   : > { %v15312_v23 = vcombine.low %v6434_v48, %v6444_v14  ;;  %v11075_v37 = vcombine.low %v15299_v7, %v15310_v20  ;;  %v6452_v40 = vor.u32 %v6451_v52, %v6448_v33  ;;  %v6461_v25 = vrot.slane %v6459_v54, 4  ;;  %v6132_v26 = vld [vmem:[#allocation2 + $0xbc] sm:$0x1]  ;;  %v6643_v54 = vld [vmem:[#allocation2 + $0xb8] sm:$0xf] }
 0x40a   : > { %v6467_v42 = vrot.slane %v6465_v24, 5  ;;  %v6786_v45 = vrot.slane %v6637_v8, 5  ;;  %v6789_v0 = vrot.slane %v6638_v57, 5  ;;  %v6470_v59 = vshrl.u32 %v6127_v21, 16  ;;  %v12649_v33 = vld [vmem:[#allocation2 + $0x78] sm:$0xff]  }
 0x40b   : > { %9598 = vmatmul.mubr.bf16.gmra.mrb[164].mxu1 %v12647_v5  ;;  %v6453_v3 = vrot.slane %v6452_v40, 4  ;;  %v6462_v32 = vor.u32 %v6461_v25, %v6457_v18  ;;  %v6473_v39 = vshll.u32 %v6127_v21, 16  ;;  %v6479_v36 = vshll.u32 %v6128_v2, 16  ;;  %v6644_v40 = vld [vmem:[#allocation2 + $0xbc] sm:$0x1] }
 0x40c   : > { %9605 = vmatprep.mubr.bf16.mxu1 %v15272_v13  ;;  %v15319_v19 = vsel %vm13145_vm13, %v11060_v17, %v6786_v45  ;;  %v6788_v6 = vrot.slane %v6786_v45, 4  ;;  %v6472_v30 = vrot.slane %v6470_v59, 4  ;;  %v6483_v41 = vshrl.u32 %v6128_v2, 16  ;;  %v7973_v25 = vld [vmem:[#allocation2 + $0x18] sm:$0xf] }
 0x40d   : > { %v6458_v1 = vsel %vm13121_vm8, %v6453_v3, %v6457_v18  ;;  %v6463_v58 = vrot.slane %v6462_v32, 4  ;;  %v6475_v62 = vrot.slane %v6473_v39, 5  ;;  %v6481_v50 = vrot.slane %v6479_v36, 5  ;;  %v7974_v59 = vld [vmem:[#allocation2 + $0x1c] sm:$0xf] }
 0x40e   : > { %v15325_v15 = vsel %vm13145_vm13, %v6788_v6, %v6789_v0  ;;  %v6485_v13 = vrot.slane %v6483_v41, 4  ;;  %v6489_v27 = vshll.u32 %v6129_v11, 16  ;;  %v11061_v9 = vrot.slane %v6639_v28, 9  ;;  %v7975_v36 = vld [vmem:[#allocation2 + $0x20] sm:$0x1] }
 0x40f   : > { %v6468_v35 = vsel %vm13121_vm8, %v6463_v58, %v6467_v42  ;;  %v11076_v47 = vcombine.low %v15319_v19, %v15325_v15  ;;  %v6476_v29 = vor.u32 %v6475_v62, %v6472_v30  ;;  %v6793_v63 = vrot.slane %v6640_v49, 5  ;;  %9767 = vmatmul.mubr.bf16.gmra.mrb[200].mxu0 %v11073_v53  ;;  %v6642_v53 = vld [vmem:[#allocation2 + $0xb4] sm:$0xe]  ;;  %v7545_v7 = vld [vmem:[#allocation2 + $0x1c] sm:$0xf] }
 0x410   : > { %v15334_v60 = vcombine.low %v6458_v1, %v6468_v35  ;;  %v6486_v8 = vor.u32 %v6485_v13, %v6481_v50  ;;  %v6491_v57 = vrot.slane %v6489_v27, 5  ;;  %v6796_v43 = vrot.slane %v6641_v55, 5  ;;  %9774 = vmatprep.mubr.bf16.mxu0 %v12650_v22  ;;  %v7542_v35 = vld [vmem:[#allocation2 + $0x10] sm:$0xf] }
 0x411   : > { %v6477_v56 = vrot.slane %v6476_v29, 4  ;;  %v15338_v48 = vsel %vm13145_vm13, %v11061_v9, %v6793_v63  ;;  %v6795_v52 = vrot.slane %v6793_v63, 4  ;;  %v6494_v18 = vshrl.u32 %v6130_v16, 16 }
 0x412   : > { %v6487_v21 = vrot.slane %v6486_v8, 4  ;;  %v6497_v14 = vshll.u32 %v6130_v16, 16  ;;  %v6503_v34 = vshll.u32 %v6131_v38, 16  ;;  %v6507_v51 = vshrl.u32 %v6131_v38, 16  ;;  %v12655_v16 = vld [vmem:[#allocation2 + $0x84] sm:$0xff]  }
 0x413   : > { %9606 = vmatmul.mubr.bf16.gmra.mrb[168].mxu1 %v12649_v33  ;;  %v6482_v24 = vsel %vm13121_vm8, %v6477_v56, %v6481_v50  ;;  %v15344_v17 = vsel %vm13145_vm13, %v6795_v52, %v6796_v43  ;;  %v6496_v2 = vrot.slane %v6494_v18, 4  ;;  %v6513_v5 = vshll.u32 %v6132_v26, 16  ;;  %v7541_v50 = vld [vmem:[#allocation2 + $0xc] sm:$0xe] }
 0x414   : > { %9613 = vmatprep.mubr.bf16.mxu1 %v15287_v12  ;;  %v6492_v11 = vsel %vm13121_vm8, %v6487_v21, %v6491_v57  ;;  %v11077_v42 = vcombine.low %v15338_v48, %v15344_v17  ;;  %v6499_v45 = vrot.slane %v6497_v14, 5  ;;  %v6505_v0 = vrot.slane %v6503_v34, 5  ;;  %v12656_v12 = vld [vmem:[#allocation2 + $0x9c] sm:$0xff]   ;;  %v7543_v57 = vld [vmem:[#allocation2 + $0x14] sm:$0x1] }
 0x415   : > { %v15351_v28 = vcombine.low %v6482_v24, %v6492_v11  ;;  %v6509_v3 = vrot.slane %v6507_v51, 4  ;;  %v6515_v32 = vrot.slane %v6513_v5, 5  ;;  %v11062_v39 = vrot.slane %v6642_v53, 9  ;;  %v7029_v26 = vld [vmem:[#allocation2 + $0xc] sm:$0xf] }
 0x416   : > { %v6500_v49 = vor.u32 %v6499_v45, %v6496_v2  ;;  %v6800_v6 = vrot.slane %v6643_v54, 5  ;;  %v6803_v30 = vrot.slane %v6644_v40, 5  ;;  %v8022_v41 = vshrl.u32 %v7973_v25, 16  ;;  %v7030_v54 = vld [vmem:[#allocation2 + $0x10] sm:$0xf] }
 0x417   : > { %v6510_v55 = vor.u32 %v6509_v3, %v6505_v0  ;;  %v8025_v1 = vshll.u32 %v7973_v25, 16  ;;  %v8031_v58 = vshll.u32 %v7974_v59, 16  ;;  %v8035_v62 = vshrl.u32 %v7974_v59, 16  ;;  %9775 = vmatmul.mubr.bf16.gmra.mrb[204].mxu0 %v11074_v31  ;;  %v7031_v53 = vld [vmem:[#allocation2 + $0x14] sm:$0x1]  ;;  %v15377_v3 = vpop.f32.mrb[128].mxu1 }
 0x418   : > { %v6501_v13 = vrot.slane %v6500_v49, 4  ;;  %v15358_v27 = vsel %vm13145_vm13, %v11062_v39, %v6800_v6  ;;  %v6802_v9 = vrot.slane %v6800_v6, 4  ;;  %v8024_v22 = vrot.slane %v8022_v41, 4  ;;  %9782 = vmatprep.mubr.bf16.mxu0 %v12656_v12  ;;  %v7976_v24 = vld [vmem:[#allocation2 + $0x24] sm:$0xf] }
 0x419   : > { %v6511_v29 = vrot.slane %v6510_v55, 4  ;;  %v8027_v63 = vrot.slane %v8025_v1, 5  ;;  %v8033_v38 = vrot.slane %v8031_v58, 5  ;;  %v8037_v8 = vrot.slane %v8035_v62, 4  ;;  %v7977_v6 = vld [vmem:[#allocation2 + $0x28] sm:$0xf] }
 0x41a   : > { %v6506_v43 = vsel %vm13121_vm8, %v6501_v13, %v6505_v0  ;;  %v15364_v4 = vsel %vm13145_vm13, %v6802_v9, %v6803_v30  ;;  %v8041_v10 = vshll.u32 %v7975_v36, 16  ;;  %v11111_v31 = vrot.slane %v7541_v50, 9  ;;  %v12657_v30 = vld [vmem:[#allocation2 + $0x90] sm:$0xff]   ;;  %v7978_v58 = vld [vmem:[#allocation2 + $0x2c] sm:$0x1] }
 0x41b   : > { %9614 = vmatmul.mubr.bf16.gmra.mrb[172].mxu1 %v12655_v16  ;;  %v6516_v33 = vsel %vm13121_vm8, %v6511_v29, %v6515_v32  ;;  %v11078_v56 = vcombine.low %v15358_v27, %v15364_v4  ;;  %v8028_v52 = vor.u32 %v8027_v63, %v8024_v22  ;;  %v8038_v18 = vor.u32 %v8037_v8, %v8033_v38  ;;  %v7544_v9 = vld [vmem:[#allocation2 + $0x18] sm:$0xe]  ;;  %v7546_v29 = vld [vmem:[#allocation2 + $0x20] sm:$0x1]  ;;  %v15394_v63 = vpop.f32.mrb[129].mxu1 }
 0x41c   : > { %9621 = vmatprep.mubr.bf16.mxu1 %v15312_v23  ;;  %v15371_v21 = vcombine.low %v6506_v43, %v6516_v33  ;;  %v8043_v14 = vrot.slane %v8041_v10, 5  ;;  %v7639_v34 = vrot.slane %v7542_v35, 5  ;;  %v7642_v51 = vrot.slane %v7543_v57, 5  ;;  %v12658_v23 = vld [vmem:[#allocation2 + $0xa8] sm:$0xff]   ;;  %v7032_v10 = vld [vmem:[#allocation2 + $0x18] sm:$0xf] }
 0x41d   : > { %v8029_v2 = vrot.slane %v8028_v52, 4  ;;  %v8039_v5 = vrot.slane %v8038_v18, 4  ;;  %v7078_v40 = vshrl.u32 %v7029_v26, 16  ;;  %v7081_v25 = vshll.u32 %v7029_v26, 16  ;;  %v7033_v18 = vld [vmem:[#allocation2 + $0x1c] sm:$0xf] }
 0x41e   : > { %v15375_v11 = vsel %vm13145_vm13, %v11111_v31, %v7639_v34  ;;  %v7641_v45 = vrot.slane %v7639_v34, 4  ;;  %v7087_v0 = vshll.u32 %v7030_v54, 16  ;;  %v7091_v59 = vshrl.u32 %v7030_v54, 16  ;;  %v7037_v48 = vld [vmem:[#allocation2 + $0x2c] sm:$0x1] }
 0x41f   : > { %v8034_v32 = vsel %vm13121_vm8, %v8029_v2, %v8033_v38  ;;  %v8044_v39 = vsel %vm13121_vm8, %v8039_v5, %v8043_v14  ;;  %v7080_v36 = vrot.slane %v7078_v40, 4  ;;  %v7083_v49 = vrot.slane %v7081_v25, 5  ;;  %9783 = vmatmul.mubr.bf16.gmra.mrb[208].mxu0 %v11075_v37  ;;  %v7039_v27 = vld [vmem:[#allocation2 + $0x34] sm:$0xf] }
 0x420   : > { %v15386_v41 = vcombine.low %v8034_v32, %v8044_v39  ;;  %v15390_v12 = vsel %vm13145_vm13, %v7641_v45, %v7642_v51  ;;  %v7089_v55 = vrot.slane %v7087_v0, 5  ;;  %v7093_v1 = vrot.slane %v7091_v59, 4  ;;  %9790 = vmatprep.mubr.bf16.mxu0 %v12658_v23  ;;  %v12664_v45 = vld [vmem:[#allocation2 + $0xb4] sm:$0xff]   ;;  %v7979_v39 = vld [vmem:[#allocation2 + $0x30] sm:$0xf] }
 0x421   : > { %v11127_v62 = vcombine.low %v15375_v11, %v15390_v12  ;;  %v7084_v50 = vor.u32 %v7083_v49, %v7080_v36  ;;  %v7097_v16 = vshll.u32 %v7031_v53, 16  ;;  %v8046_v13 = vshrl.u32 %v7976_v24, 16  ;;  %v15399_v53 = vpop.f32.mrb[130].mxu1 }
 0x422   : > { %v7094_v20 = vor.u32 %v7093_v1, %v7089_v55  ;;  %v8049_v37 = vshll.u32 %v7976_v24, 16  ;;  %v8055_v22 = vshll.u32 %v7977_v6, 16  ;;  %v8059_v35 = vshrl.u32 %v7977_v6, 16  ;;  %v15403_v25 = vpop.f32.mrb[131].mxu1  ;;  %v12663_v1 = vld [vmem:[#allocation2 + $0x9c] sm:$0xff]  }
 0x423   : > { %9622 = vmatmul.mubr.bf16.gmra.mrb[176].mxu1 %v12657_v30  ;;  %v7085_v38 = vrot.slane %v7084_v50, 4  ;;  %v7099_v8 = vrot.slane %v7097_v16, 5  ;;  %v8048_v57 = vrot.slane %v8046_v13, 4  ;;  %v8065_v43 = vshll.u32 %v7978_v58, 16 }
 0x424   : > { %9629 = vmatprep.mubr.bf16.mxu1 %v15334_v60  ;;  %v7095_v31 = vrot.slane %v7094_v20, 4  ;;  %v8051_v26 = vrot.slane %v8049_v37, 5  ;;  %v8057_v33 = vrot.slane %v8055_v22, 5  ;;  %v8061_v52 = vrot.slane %v8059_v35, 4  ;;  %v7034_v60 = vld [vmem:[#allocation2 + $0x20] sm:$0x1] }
 0x425   : > { %v7090_v54 = vsel %vm13121_vm8, %v7085_v38, %v7089_v55  ;;  %v8067_v14 = vrot.slane %v8065_v43, 5  ;;  %v11112_v34 = vrot.slane %v7544_v9, 9  ;;  %v7646_v51 = vrot.slane %v7545_v7, 5  ;;  %v7980_v55 = vld [vmem:[#allocation2 + $0x34] sm:$0xf] }
 0x426   : > { %v7100_v24 = vsel %vm13121_vm8, %v7095_v31, %v7099_v8  ;;  %v8052_v2 = vor.u32 %v8051_v26, %v8048_v57  ;;  %v8062_v5 = vor.u32 %v8061_v52, %v8057_v33  ;;  %v7649_v40 = vrot.slane %v7546_v29, 5  ;;  %v7981_v9 = vld [vmem:[#allocation2 + $0x38] sm:$0x1]  ;;  %v7547_v20 = vld [vmem:[#allocation2 + $0x24] sm:$0xe] }
 0x427   : > { %v15405_v0 = vcombine.low %v7090_v54, %v7100_v24  ;;  %v15409_v59 = vsel %vm13145_vm13, %v11112_v34, %v7646_v51  ;;  %v7648_v23 = vrot.slane %v7646_v51, 4  ;;  %v7102_v32 = vshrl.u32 %v7032_v10, 16  ;;  %9791 = vmatmul.mubr.bf16.gmra.mrb[212].mxu0 %v11076_v47  ;;  %v7548_v37 = vld [vmem:[#allocation2 + $0x28] sm:$0xf]  ;;  %v7549_v8 = vld [vmem:[#allocation2 + $0x2c] sm:$0x1] }
 0x428   : > { %v8053_v36 = vrot.slane %v8052_v2, 4  ;;  %v8063_v49 = vrot.slane %v8062_v5, 4  ;;  %v7105_v6 = vshll.u32 %v7032_v10, 16  ;;  %v7111_v30 = vshll.u32 %v7033_v18, 16  ;;  %9798 = vmatprep.mubr.bf16.mxu0 %v12664_v45  ;;  %v7035_v26 = vld [vmem:[#allocation2 + $0x24] sm:$0xf] }
 0x429   : > { %v15416_v58 = vsel %vm13145_vm13, %v7648_v23, %v7649_v40  ;;  %v7104_v50 = vrot.slane %v7102_v32, 4  ;;  %v7115_v16 = vshrl.u32 %v7033_v18, 16  ;;  %v7121_v13 = vshll.u32 %v7034_v60, 16  ;;  %v12669_v2 = vld [vmem:[#allocation2 + $0xc0] sm:$0xff]  }
 0x42a   : > { %v8058_v7 = vsel %vm13121_vm8, %v8053_v36, %v8057_v33  ;;  %v8068_v19 = vsel %vm13121_vm8, %v8063_v49, %v8067_v14  ;;  %v11128_v15 = vcombine.low %v15409_v59, %v15416_v58  ;;  %v7107_v47 = vrot.slane %v7105_v6, 5  ;;  %v12668_v49 = vld [vmem:[#allocation2 + $0xa8] sm:$0xff]  }
 0x42b   : > { %9630 = vmatmul.mubr.bf16.gmra.mrb[180].mxu1 %v12663_v1  ;;  %v15424_v22 = vcombine.low %v8058_v7, %v8068_v19  ;;  %v7113_v35 = vrot.slane %v7111_v30, 5  ;;  %v7117_v29 = vrot.slane %v7115_v16, 4  ;;  %v7123_v38 = vrot.slane %v7121_v13, 5  ;;  %v7982_v13 = vld [vmem:[#allocation2 + $0x3c] sm:$0xf] }
 0x42c   : > { %9637 = vmatprep.mubr.bf16.mxu1 %v15351_v28  ;;  %v7108_v57 = vor.u32 %v7107_v47, %v7104_v50  ;;  %v8070_v43 = vshrl.u32 %v7979_v39, 16  ;;  %v8073_v10 = vshll.u32 %v7979_v39, 16  ;;  %v8079_v31 = vshll.u32 %v7980_v55, 16  ;;  %v7036_v39 = vld [vmem:[#allocation2 + $0x28] sm:$0xf] }
 0x42d   : > { %v7118_v33 = vor.u32 %v7117_v29, %v7113_v35  ;;  %v8083_v52 = vshrl.u32 %v7980_v55, 16  ;;  %v8089_v18 = vshll.u32 %v7981_v9, 16  ;;  %v11113_v54 = vrot.slane %v7547_v20, 9  ;;  %v7983_v20 = vld [vmem:[#allocation2 + $0x40] sm:$0xf] }
 0x42e   : > { %v7109_v14 = vrot.slane %v7108_v57, 4  ;;  %v8072_v34 = vrot.slane %v8070_v43, 4  ;;  %v8075_v51 = vrot.slane %v8073_v10, 5  ;;  %v8081_v24 = vrot.slane %v8079_v31, 5  ;;  %v7550_v57 = vld [vmem:[#allocation2 + $0x30] sm:$0xe] }
 0x42f   : > { %v7119_v5 = vrot.slane %v7118_v33, 4  ;;  %v8085_v40 = vrot.slane %v8083_v52, 4  ;;  %v8091_v60 = vrot.slane %v8089_v18, 5  ;;  %v7653_v45 = vrot.slane %v7548_v37, 5  ;;  %9799 = vmatmul.mubr.bf16.gmra.mrb[216].mxu0 %v11077_v42 }
 0x430   : > { %v7114_v28 = vsel %vm13121_vm8, %v7109_v14, %v7113_v35  ;;  %v8076_v23 = vor.u32 %v8075_v51, %v8072_v34  ;;  %v7656_v32 = vrot.slane %v7549_v8, 5  ;;  %v7126_v36 = vshrl.u32 %v7035_v26, 16  ;;  %9806 = vmatprep.mubr.bf16.mxu0 %v12669_v2  ;;  %v7984_v8 = vld [vmem:[#allocation2 + $0x44] sm:$0x1]  ;;  %v7552_v2 = vld [vmem:[#allocation2 + $0x38] sm:$0x1] }
 0x431   : > { %v7124_v6 = vsel %vm13121_vm8, %v7119_v5, %v7123_v38  ;;  %v8086_v30 = vor.u32 %v8085_v40, %v8081_v24  ;;  %v15436_v55 = vsel %vm13145_vm13, %v11113_v54, %v7653_v45  ;;  %v7655_v1 = vrot.slane %v7653_v45, 4  ;;  %v7551_v54 = vld [vmem:[#allocation2 + $0x34] sm:$0xf] }
 0x432   : > { %v15438_v17 = vcombine.low %v7114_v28, %v7124_v6  ;;  %v8077_v42 = vrot.slane %v8076_v23, 4  ;;  %v7128_v50 = vrot.slane %v7126_v36, 4  ;;  %v7129_v16 = vshll.u32 %v7035_v26, 16  ;;  %v12676_v5 = vld [vmem:[#allocation2 + $0xb4] sm:$0xff]  }
 0x433   : > { %9638 = vmatmul.mubr.bf16.gmra.mrb[184].mxu1 %v12668_v49  ;;  %v8087_v9 = vrot.slane %v8086_v30, 4  ;;  %v15442_v7 = vsel %vm13145_vm13, %v7655_v1, %v7656_v32  ;;  %v7135_v19 = vshll.u32 %v7036_v39, 16  ;;  %v7139_v47 = vshrl.u32 %v7036_v39, 16  ;;  %v7038_v49 = vld [vmem:[#allocation2 + $0x30] sm:$0xf] }
 0x434   : > { %9645 = vmatprep.mubr.bf16.mxu1 %v15371_v21  ;;  %v8082_v37 = vsel %vm13121_vm8, %v8077_v42, %v8081_v24  ;;  %v11129_v35 = vcombine.low %v15436_v55, %v15442_v7  ;;  %v7131_v29 = vrot.slane %v7129_v16, 5  ;;  %v7145_v38 = vshll.u32 %v7037_v48, 16 }
 0x435   : > { %v8092_v43 = vsel %vm13121_vm8, %v8087_v9, %v8091_v60  ;;  %v7137_v10 = vrot.slane %v7135_v19, 5  ;;  %v7141_v31 = vrot.slane %v7139_v47, 4  ;;  %v8094_v26 = vshrl.u32 %v7982_v13, 16  ;;  %v7985_v47 = vld [vmem:[#allocation2 + $0x48] sm:$0xf] }
 0x436   : > { %v15451_v33 = vcombine.low %v8082_v37, %v8092_v43  ;;  %v7132_v52 = vor.u32 %v7131_v29, %v7128_v50  ;;  %v7147_v21 = vrot.slane %v7145_v38, 5  ;;  %v8097_v18 = vshll.u32 %v7982_v13, 16  ;;  %v7040_v50 = vld [vmem:[#allocation2 + $0x38] sm:$0x1]  ;;  %v7986_v43 = vld [vmem:[#allocation2 + $0x4c] sm:$0xf] }
 0x437   : > { %v7142_v14 = vor.u32 %v7141_v31, %v7137_v10  ;;  %v8096_v34 = vrot.slane %v8094_v26, 4  ;;  %v8103_v51 = vshll.u32 %v7983_v20, 16  ;;  %v8107_v24 = vshrl.u32 %v7983_v20, 16  ;;  %9807 = vmatmul.mubr.bf16.gmra.mrb[220].mxu0 %v11078_v56  ;;  %v12680_v20 = vld [vmem:[#allocation2 + $0x18] sm:$0xff]  }
 0x438   : > { %v7133_v40 = vrot.slane %v7132_v52, 4  ;;  %v8099_v60 = vrot.slane %v8097_v18, 5  ;;  %v8113_v45 = vshll.u32 %v7984_v8, 16  ;;  %v11114_v28 = vrot.slane %v7550_v57, 9  ;;  %10008 = vmatprep.mubr.bf16.mxu0 %v15386_v41 }
 0x439   : > { %v7143_v23 = vrot.slane %v7142_v14, 4  ;;  %v8105_v32 = vrot.slane %v8103_v51, 5  ;;  %v8109_v39 = vrot.slane %v8107_v24, 4  ;;  %v7660_v36 = vrot.slane %v7551_v54, 5  ;;  %v7553_v51 = vld [vmem:[#allocation2 + $0x3c] sm:$0xe] }
 0x43a   : > { %v7138_v6 = vsel %vm13121_vm8, %v7133_v40, %v7137_v10  ;;  %v8100_v30 = vor.u32 %v8099_v60, %v8096_v34  ;;  %v8115_v1 = vrot.slane %v8113_v45, 5  ;;  %v7663_v48 = vrot.slane %v7552_v2, 5  ;;  %v7554_v24 = vld [vmem:[#allocation2 + $0x40] sm:$0xf] }
 0x43b   : > { %9646 = vmatmul.mubr.bf16.gmra.mrb[188].mxu1 %v12676_v5  ;;  %v7148_v4 = vsel %vm13121_vm8, %v7143_v23, %v7147_v21  ;;  %v8110_v56 = vor.u32 %v8109_v39, %v8105_v32  ;;  %v15463_v41 = vsel %vm13145_vm13, %v11114_v28, %v7660_v36  ;;  %v7662_v42 = vrot.slane %v7660_v36, 4  ;;  %v7987_v21 = vld [vmem:[#allocation2 + $0x50] sm:$0x1]  ;;  %v12684_v2 = vld [vmem:[#allocation9 + $0x208] sm:$0xff]  }
 0x43c   : > { %9847 = vmatprep.mubr.bf16.mxu1 %v11127_v62  ;;  %v15468_v16 = vcombine.low %v7138_v6, %v7148_v4  ;;  %v8101_v13 = vrot.slane %v8100_v30, 4  ;;  %v7150_v9 = vshrl.u32 %v7038_v49, 16  ;;  %v7153_v19 = vshll.u32 %v7038_v49, 16  ;;  %v7555_v28 = vld [vmem:[#allocation2 + $0x44] sm:$0x1] }
 0x43d   : > { %v8111_v37 = vrot.slane %v8110_v56, 4  ;;  %v15472_v29 = vsel %vm13145_vm13, %v7662_v42, %v7663_v48  ;;  %v7159_v38 = vshll.u32 %v7039_v27, 16  ;;  %v7163_v8 = vshrl.u32 %v7039_v27, 16  ;;  %v7041_v49 = vld [vmem:[#allocation2 + $0x3c] sm:$0xf]  ;;  %v12687_v27 = vld [vmem:[#allocation9 + $0x210] sm:$0xff]  }
 0x43e   : > { %v8106_v57 = vsel %vm13121_vm8, %v8101_v13, %v8105_v32  ;;  %v11130_v11 = vcombine.low %v15463_v41, %v15472_v29  ;;  %v7152_v12 = vrot.slane %v7150_v9, 4  ;;  %v7155_v62 = vrot.slane %v7153_v19, 5  ;;  %v7043_v13 = vld [vmem:[#allocation2 + $0x44] sm:$0x1]  ;;  %v7047_v41 = vld [vmem:[#allocation2 + $0x54] sm:$0xf] }
 0x43f   : > { %v8116_v10 = vsel %vm13121_vm8, %v8111_v37, %v8115_v1  ;;  %v7161_v31 = vrot.slane %v7159_v38, 5  ;;  %v7165_v26 = vrot.slane %v7163_v8, 4  ;;  %v7169_v52 = vshll.u32 %v7040_v50, 16  ;;  %10009 = vmatmul.mubr.bf16.vlgmr.msra.gmra.mrb[224].mxu0 %v12680_v20  ;;  %v7042_v50 = vld [vmem:[#allocation2 + $0x40] sm:$0xf]  ;;  %v12682_v20 = vld [vmem:[#allocation2 + $0x24] sm:$0xff]  }
 0x440   : > { %v15480_v18 = vcombine.low %v8106_v57, %v8116_v10  ;;  %v7156_v54 = vor.u32 %v7155_v62, %v7152_v12  ;;  %v8118_v14 = vshrl.u32 %v7985_v47, 16  ;;  %v8121_v34 = vshll.u32 %v7985_v47, 16  ;;  %10016 = vmatprep.mubr.bf16.mxu0 %v15424_v22  ;;  %v7988_v12 = vld [vmem:[#allocation2 + $0x54] sm:$0xf] }
 0x441   : > { %v7166_v5 = vor.u32 %v7165_v26, %v7161_v31  ;;  %v7171_v40 = vrot.slane %v7169_v52, 5  ;;  %v8127_v60 = vshll.u32 %v7986_v43, 16  ;;  %v8131_v45 = vshrl.u32 %v7986_v43, 16  ;;  %v12690_v62 = vld [vmem:[#allocation9 + $0x218] sm:$0xff]   ;;  %v7989_v52 = vld [vmem:[#allocation2 + $0x58] sm:$0xf] }
 0x442   : > { %v7157_v23 = vrot.slane %v7156_v54, 4  ;;  %v8120_v32 = vrot.slane %v8118_v14, 4  ;;  %v8123_v39 = vrot.slane %v8121_v34, 5  ;;  %v8137_v36 = vshll.u32 %v7987_v21, 16  ;;  %v7990_v21 = vld [vmem:[#allocation2 + $0x5c] sm:$0x1] }
 0x443   : > { %9848 = vmatmul.mubr.bf16.vlgmr.msra.gmra.mrb[192].mxu1 %v15405_v0  ;;  %v7167_v6 = vrot.slane %v7166_v5, 4  ;;  %v8129_v30 = vrot.slane %v8127_v60, 5  ;;  %v8133_v1 = vrot.slane %v8131_v45, 4  ;;  %v11115_v48 = vrot.slane %v7553_v51, 9 }
 0x444   : > { %9855 = vmatprep.mubr.bf16.mxu1 %v11128_v15  ;;  %12343 = vmatpush3.bf16.msra.mxu1 %v15281_v61  ;;  %v7162_v22 = vsel %vm13121_vm8, %v7157_v23, %v7161_v31  ;;  %v8124_v4 = vor.u32 %v8123_v39, %v8120_v32  ;;  %v8139_v56 = vrot.slane %v8137_v36, 5  ;;  %v7667_v42 = vrot.slane %v7554_v24, 5  ;;  %v7556_v24 = vld [vmem:[#allocation2 + $0x48] sm:$0xe] }
 0x445   : > { %12344 = vmatprep.subr.bf16.mxu1 %v12684_v2  ;;  %v7172_v0 = vsel %vm13121_vm8, %v7167_v6, %v7171_v40  ;;  %v8134_v9 = vor.u32 %v8133_v1, %v8129_v30  ;;  %v7670_v19 = vrot.slane %v7555_v28, 5  ;;  %v7174_v47 = vshrl.u32 %v7041_v49, 16  ;;  %v7558_v28 = vld [vmem:[#allocation2 + $0x50] sm:$0x1]  ;;  %v7044_v36 = vld [vmem:[#allocation2 + $0x48] sm:$0xf] }
 0x446   : > { %v15492_v59 = vcombine.low %v7162_v22, %v7172_v0  ;;  %v8125_v58 = vrot.slane %v8124_v4, 4  ;;  %v15496_v61 = vsel %vm13145_vm13, %v11115_v48, %v7667_v42  ;;  %v7669_v15 = vrot.slane %v7667_v42, 4  ;;  %v12693_v48 = vld [vmem:[#allocation9 + $0x220] sm:$0xff]  }
 0x447   : > { %v8135_v37 = vrot.slane %v8134_v9, 4  ;;  %v7176_v38 = vrot.slane %v7174_v47, 4  ;;  %v7177_v8 = vshll.u32 %v7041_v49, 16  ;;  %v7183_v57 = vshll.u32 %v7042_v50, 16  ;;  %10017 = vmatmul.mubr.bf16.gmra.mrb[228].mxu0 %v12682_v20 }
 0x448   : > { %12345 = vmatpush3.bf16.msra.mxu1 %v12684_v2  ;;  %v8130_v43 = vsel %vm13121_vm8, %v8125_v58, %v8129_v30  ;;  %v15502_v10 = vsel %vm13145_vm13, %v7669_v15, %v7670_v19  ;;  %v7187_v31 = vshrl.u32 %v7042_v50, 16  ;;  %v7193_v26 = vshll.u32 %v7043_v13, 16  ;;  %10024 = vmatprep.mubr.bf16.mxu0 %v15451_v33  ;;  %v7557_v2 = vld [vmem:[#allocation2 + $0x4c] sm:$0xf]  ;;  %v7046_v15 = vld [vmem:[#allocation2 + $0x50] sm:$0x1] }
 0x449   : > { %v8140_v54 = vsel %vm13121_vm8, %v8135_v37, %v8139_v56  ;;  %v11131_v14 = vcombine.low %v15496_v61, %v15502_v10  ;;  %v7179_v34 = vrot.slane %v7177_v8, 5  ;;  %v7185_v51 = vrot.slane %v7183_v57, 5  ;;  %12346 = vmatprep.subr.bf16.mxu1 %v12687_v27  ;;  %v7045_v19 = vld [vmem:[#allocation2 + $0x4c] sm:$0xf] }
 0x44a   : > { %v15509_v5 = vcombine.low %v8130_v43, %v8140_v54  ;;  %v7189_v40 = vrot.slane %v7187_v31, 4  ;;  %v7195_v60 = vrot.slane %v7193_v26, 5  ;;  %v8142_v45 = vshrl.u32 %v7988_v12, 16  ;;  %v7991_v43 = vld [vmem:[#allocation2 + $0x60] sm:$0xf] }
 0x44b   : > { %9856 = vmatmul.mubr.bf16.gmra.mrb[196].mxu1 %v15438_v17  ;;  %v7180_v33 = vor.u32 %v7179_v34, %v7176_v38  ;;  %v8145_v23 = vshll.u32 %v7988_v12, 16  ;;  %v8151_v32 = vshll.u32 %v7989_v52, 16  ;;  %v8155_v39 = vshrl.u32 %v7989_v52, 16  ;;  %v12683_v17 = vld [vmem:[#allocation2 + $0x30] sm:$0xff]   ;;  %v12696_v31 = vld [vmem:[#allocation9 + $0x228] sm:$0xff]  }
 0x44c   : > { %9863 = vmatprep.mubr.bf16.mxu1 %v11129_v35  ;;  %v7190_v49 = vor.u32 %v7189_v40, %v7185_v51  ;;  %v8144_v6 = vrot.slane %v8142_v45, 4  ;;  %v8161_v30 = vshll.u32 %v7990_v21, 16  ;;  %v11116_v1 = vrot.slane %v7556_v24, 9  ;;  %12347 = vmatpush3.bf16.msra.mxu1 %v12687_v27  ;;  %v7992_v34 = vld [vmem:[#allocation2 + $0x64] sm:$0xf] }
 0x44d   : > { %v7181_v22 = vrot.slane %v7180_v33, 4  ;;  %v8147_v4 = vrot.slane %v8145_v23, 5  ;;  %v8153_v56 = vrot.slane %v8151_v32, 5  ;;  %v8157_v42 = vrot.slane %v8155_v39, 4  ;;  %12348 = vmatprep.subr.bf16.mxu1 %v12690_v62  ;;  %v7559_v40 = vld [vmem:[#allocation2 + $0x54] sm:$0xe] }
 0x44e   : > { %v7191_v50 = vrot.slane %v7190_v49, 4  ;;  %v8163_v13 = vrot.slane %v8161_v30, 5  ;;  %v7674_v0 = vrot.slane %v7557_v2, 5  ;;  %v7677_v9 = vrot.slane %v7558_v28, 5  ;;  %v7993_v2 = vld [vmem:[#allocation2 + $0x68] sm:$0x1] }
 0x44f   : > { %v7186_v55 = vsel %vm13121_vm8, %v7181_v22, %v7185_v51  ;;  %v8148_v7 = vor.u32 %v8147_v4, %v8144_v6  ;;  %v8158_v35 = vor.u32 %v8157_v42, %v8153_v56  ;;  %v7198_v47 = vshrl.u32 %v7044_v36, 16  ;;  %10025 = vmatmul.mubr.bf16.gmra.mrb[232].mxu0 %v12683_v17  ;;  %v7560_v23 = vld [vmem:[#allocation2 + $0x58] sm:$0xf]  ;;  %v7561_v6 = vld [vmem:[#allocation2 + $0x5c] sm:$0x1] }
 0x450   : > { %v7196_v27 = vsel %vm13121_vm8, %v7191_v50, %v7195_v60  ;;  %v15521_v20 = vsel %vm13145_vm13, %v11116_v1, %v7674_v0  ;;  %v7676_v58 = vrot.slane %v7674_v0, 4  ;;  %v7201_v37 = vshll.u32 %v7044_v36, 16  ;;  %12349 = vmatpush3.bf16.msra.mxu1 %v12690_v62  ;;  %10032 = vmatprep.mubr.bf16.mxu0 %v15480_v18  ;;  %v12699_v60 = vld [vmem:[#allocation9 + $0x230] sm:$0xff]   ;;  %v12685_v30 = vld [vmem:[#allocation2 + $0x3c] sm:$0xff]   ;;  %v7048_v50 = vld [vmem:[#allocation2 + $0x58] sm:$0xf] }
 0x451   : > { %v15524_v38 = vcombine.low %v7186_v55, %v7196_v27  ;;  %v8149_v8 = vrot.slane %v8148_v7, 4  ;;  %v8159_v57 = vrot.slane %v8158_v35, 4  ;;  %v7200_v12 = vrot.slane %v7198_v47, 4  ;;  %12350 = vmatprep.subr.bf16.mxu1 %v12693_v48  ;;  %v12702_v47 = vld [vmem:[#allocation9 + $0x238] sm:$0xff]  }
 0x452   : > { %v15528_v26 = vsel %vm13145_vm13, %v7676_v58, %v7677_v9  ;;  %v7203_v52 = vrot.slane %v7201_v37, 5  ;;  %v7207_v21 = vshll.u32 %v7045_v19, 16  ;;  %v7211_v54 = vshrl.u32 %v7045_v19, 16 }
 0x453   : > { %9864 = vmatmul.mubr.bf16.gmra.mrb[200].mxu1 %v15468_v16  ;;  %v8154_v18 = vsel %vm13121_vm8, %v8149_v8, %v8153_v56  ;;  %v8164_v62 = vsel %vm13121_vm8, %v8159_v57, %v8163_v13  ;;  %v11132_v51 = vcombine.low %v15521_v20, %v15528_v26  ;;  %v7217_v24 = vshll.u32 %v7046_v15, 16  ;;  %v7049_v15 = vld [vmem:[#allocation2 + $0x5c] sm:$0x1] }
 0x454   : > { %9871 = vmatprep.mubr.bf16.mxu1 %v11130_v11  ;;  %v15540_v45 = vcombine.low %v8154_v18, %v8164_v62  ;;  %v7204_v16 = vor.u32 %v7203_v52, %v7200_v12  ;;  %v7209_v28 = vrot.slane %v7207_v21, 5  ;;  %v7213_v33 = vrot.slane %v7211_v54, 4  ;;  %12351 = vmatpush3.bf16.msra.mxu1 %v12693_v48 }
 0x455   : > { %v7219_v32 = vrot.slane %v7217_v24, 5  ;;  %v8166_v39 = vshrl.u32 %v7991_v43, 16  ;;  %v8169_v36 = vshll.u32 %v7991_v43, 16  ;;  %v8175_v49 = vshll.u32 %v7992_v34, 16  ;;  %12352 = vmatprep.subr.bf16.mxu1 %v12696_v31 }
 0x456   : > { %v7205_v1 = vrot.slane %v7204_v16, 4  ;;  %v7214_v22 = vor.u32 %v7213_v33, %v7209_v28  ;;  %v8179_v4 = vshrl.u32 %v7992_v34, 16  ;;  %v8185_v56 = vshll.u32 %v7993_v2, 16  ;;  %v7995_v2 = vld [vmem:[#allocation2 + $0x70] sm:$0xf] }
 0x457   : > { %v8168_v29 = vrot.slane %v8166_v39, 4  ;;  %v8171_v11 = vrot.slane %v8169_v36, 5  ;;  %v8177_v42 = vrot.slane %v8175_v49, 5  ;;  %v11117_v17 = vrot.slane %v7559_v40, 9  ;;  %10033 = vmatmul.mubr.bf16.gmra.mrb[236].mxu0 %v12685_v30  ;;  %v12686_v40 = vld [vmem:[#allocation2 + $0x48] sm:$0xff]  }
 0x458   : > { %v7210_v48 = vsel %vm13121_vm8, %v7205_v1, %v7209_v28  ;;  %v7215_v13 = vrot.slane %v7214_v22, 4  ;;  %v8181_v0 = vrot.slane %v8179_v4, 4  ;;  %v8187_v9 = vrot.slane %v8185_v56, 5  ;;  %12353 = vmatpush3.bf16.msra.mxu1 %v12696_v31  ;;  %10040 = vmatprep.mubr.bf16.mxu0 %v15509_v5  ;;  %v7994_v31 = vld [vmem:[#allocation2 + $0x6c] sm:$0xf] }
 0x459   : > { %v8172_v55 = vor.u32 %v8171_v11, %v8168_v29  ;;  %v7681_v7 = vrot.slane %v7560_v23, 5  ;;  %v7684_v35 = vrot.slane %v7561_v6, 5  ;;  %v7222_v19 = vshrl.u32 %v7047_v41, 16  ;;  %12354 = vmatprep.subr.bf16.mxu1 %v12699_v60  ;;  %v7562_v28 = vld [vmem:[#allocation2 + $0x60] sm:$0xe] }
 0x45a   : > { %v7220_v27 = vsel %vm13121_vm8, %v7215_v13, %v7219_v32  ;;  %v8182_v58 = vor.u32 %v8181_v0, %v8177_v42  ;;  %v7225_v37 = vshll.u32 %v7047_v41, 16  ;;  %v7231_v8 = vshll.u32 %v7048_v50, 16  ;;  %v7563_v36 = vld [vmem:[#allocation2 + $0x64] sm:$0xf]  ;;  %v7564_v22 = vld [vmem:[#allocation2 + $0x68] sm:$0x1] }
 0x45b   : > { %9872 = vmatmul.mubr.bf16.gmra.mrb[204].mxu1 %v15492_v59  ;;  %v15548_v57 = vcombine.low %v7210_v48, %v7220_v27  ;;  %v8173_v12 = vrot.slane %v8172_v55, 4  ;;  %v15552_v5 = vsel %vm13145_vm13, %v11117_v17, %v7681_v7  ;;  %v7683_v43 = vrot.slane %v7681_v7, 4  ;;  %v7050_v11 = vld [vmem:[#allocation2 + $0x60] sm:$0xf]  ;;  %v7051_v13 = vld [vmem:[#allocation2 + $0x64] sm:$0xf] }
 0x45c   : > { %9879 = vmatprep.mubr.bf16.mxu1 %v11131_v14  ;;  %v8183_v52 = vrot.slane %v8182_v58, 4  ;;  %v7224_v21 = vrot.slane %v7222_v19, 4  ;;  %v7227_v54 = vrot.slane %v7225_v37, 5  ;;  %v7233_v34 = vrot.slane %v7231_v8, 5  ;;  %12355 = vmatpush3.bf16.msra.mxu1 %v12699_v60  ;;  %v7996_v60 = vld [vmem:[#allocation2 + $0x74] sm:$0x1] }
 0x45d   : > { %v8178_v59 = vsel %vm13121_vm8, %v8173_v12, %v8177_v42  ;;  %v15561_v18 = vsel %vm13145_vm13, %v7683_v43, %v7684_v35  ;;  %v7235_v62 = vshrl.u32 %v7048_v50, 16  ;;  %v7241_v24 = vshll.u32 %v7049_v15, 16  ;;  %12356 = vmatprep.subr.bf16.mxu1 %v12702_v47  ;;  %v7052_v35 = vld [vmem:[#allocation2 + $0x68] sm:$0x1]  ;;  %v7997_v58 = vld [vmem:[#allocation2 + $0x78] sm:$0xf] }
 0x45e   : > { %v8188_v61 = vsel %vm13121_vm8, %v8183_v52, %v8187_v9  ;;  %v11133_v10 = vcombine.low %v15552_v5, %v15561_v18  ;;  %v7228_v14 = vor.u32 %v7227_v54, %v7224_v21  ;;  %v8190_v16 = vshrl.u32 %v7994_v31, 16  ;;  %v12688_v12 = vld [vmem:[#allocation2 + $0x54] sm:$0xff]  }
 0x45f   : > { %v11165_v33 = vcombine.low %v8178_v59, %v8188_v61  ;;  %v7237_v23 = vrot.slane %v7235_v62, 4  ;;  %v7243_v32 = vrot.slane %v7241_v24, 5  ;;  %v8193_v39 = vshll.u32 %v7994_v31, 16  ;;  %10041 = vmatmul.mubr.bf16.gmra.mrb[240].mxu0 %v12686_v40  ;;  %v7999_v59 = vld [vmem:[#allocation2 + $0x80] sm:$0x1] }
 0x460   : > { %v7229_v49 = vrot.slane %v7228_v14, 4  ;;  %v8192_v6 = vrot.slane %v8190_v16, 4  ;;  %v8199_v30 = vshll.u32 %v7995_v2, 16  ;;  %v8203_v1 = vshrl.u32 %v7995_v2, 16  ;;  %12357 = vmatpush3.bf16.msra.mxu1 %v12702_v47  ;;  %10048 = vmatprep.mubr.bf16.mxu0 %v15540_v45  ;;  %v7565_v61 = vld [vmem:[#allocation2 + $0x6c] sm:$0xe] }
 0x461   : > { %v7238_v4 = vor.u32 %v7237_v23, %v7233_v34  ;;  %v8195_v56 = vrot.slane %v8193_v39, 5  ;;  %v8209_v41 = vshll.u32 %v7996_v60, 16  ;;  %v11118_v29 = vrot.slane %v7562_v28, 9  ;;  %v7566_v23 = vld [vmem:[#allocation2 + $0x70] sm:$0xf] }
 0x462   : > { %v7234_v42 = vsel %vm13121_vm8, %v7229_v49, %v7233_v34  ;;  %v8201_v17 = vrot.slane %v8199_v30, 5  ;;  %v8205_v50 = vrot.slane %v8203_v1, 4  ;;  %v7688_v48 = vrot.slane %v7563_v36, 5  ;;  %v7053_v30 = vld [vmem:[#allocation2 + $0x6c] sm:$0xf] }
 0x463   : > { %9880 = vmatmul.mubr.bf16.gmra.mrb[208].mxu1 %v15524_v38  ;;  %v7239_v0 = vrot.slane %v7238_v4, 4  ;;  %v8196_v9 = vor.u32 %v8195_v56, %v8192_v6  ;;  %v8211_v55 = vrot.slane %v8209_v41, 5  ;;  %v7691_v7 = vrot.slane %v7564_v22, 5  ;;  %v7054_v41 = vld [vmem:[#allocation2 + $0x70] sm:$0xf] }
 0x464   : > { %9887 = vmatprep.mubr.bf16.mxu1 %v11132_v51  ;;  %v8206_v45 = vor.u32 %v8205_v50, %v8201_v17  ;;  %v15576_v19 = vsel %vm13145_vm13, %v11118_v29, %v7688_v48  ;;  %v7690_v47 = vrot.slane %v7688_v48, 4  ;;  %v7246_v27 = vshrl.u32 %v7050_v11, 16  ;;  %v7998_v51 = vld [vmem:[#allocation2 + $0x7c] sm:$0xf] }
 0x465   : > { %v7244_v38 = vsel %vm13121_vm8, %v7239_v0, %v7243_v32  ;;  %v8197_v15 = vrot.slane %v8196_v9, 4  ;;  %v7249_v37 = vshll.u32 %v7050_v11, 16  ;;  %v7255_v8 = vshll.u32 %v7051_v13, 16  ;;  %v7567_v32 = vld [vmem:[#allocation2 + $0x74] sm:$0x1] }
 0x466   : > { %v15580_v43 = vcombine.low %v7234_v42, %v7244_v38  ;;  %v8207_v31 = vrot.slane %v8206_v45, 4  ;;  %v15584_v20 = vsel %vm13145_vm13, %v7690_v47, %v7691_v7  ;;  %v7248_v26 = vrot.slane %v7246_v27, 4 }
 0x467   : > { %v8202_v52 = vsel %vm13121_vm8, %v8197_v15, %v8201_v17  ;;  %v11134_v21 = vcombine.low %v15576_v19, %v15584_v20  ;;  %v7251_v54 = vrot.slane %v7249_v37, 5  ;;  %v7257_v34 = vrot.slane %v7255_v8, 5  ;;  %10049 = vmatmul.mubr.bf16.gmra.mrb[244].mxu0 %v12688_v12  ;;  %v8000_v15 = vld [vmem:[#allocation2 + $0x84] sm:$0xf] }
 0x468   : > { %v8212_v62 = vsel %vm13121_vm8, %v8207_v31, %v8211_v55  ;;  %v7259_v24 = vshrl.u32 %v7051_v13, 16  ;;  %v7265_v2 = vshll.u32 %v7052_v35, 16  ;;  %v8214_v40 = vshrl.u32 %v7997_v58, 16  ;;  %10056 = vmatprep.mubr.bf16.mxu0 %v11165_v33 }
 0x469   : > { %v11166_v14 = vcombine.low %v8202_v52, %v8212_v62  ;;  %v7252_v60 = vor.u32 %v7251_v54, %v7248_v26  ;;  %v8217_v16 = vshll.u32 %v7997_v58, 16  ;;  %v8223_v28 = vshll.u32 %v7998_v51, 16  ;;  %v7055_v58 = vld [vmem:[#allocation2 + $0x74] sm:$0x1]  ;;  %v8001_v26 = vld [vmem:[#allocation2 + $0x88] sm:$0xf] }
 0x46a   : > { %v7261_v39 = vrot.slane %v7259_v24, 4  ;;  %v7267_v36 = vrot.slane %v7265_v2, 5  ;;  %v8216_v49 = vrot.slane %v8214_v40, 4  ;;  %v8227_v6 = vshrl.u32 %v7998_v51, 16  ;;  %v8002_v51 = vld [vmem:[#allocation2 + $0x8c] sm:$0x1] }
 0x46b   : > { %9888 = vmatmul.mubr.bf16.gmra.mrb[212].mxu1 %v15548_v57  ;;  %v7253_v1 = vrot.slane %v7252_v60, 4  ;;  %v8219_v22 = vrot.slane %v8217_v16, 5  ;;  %v8225_v4 = vrot.slane %v8223_v28, 5  ;;  %v8233_v56 = vshll.u32 %v7999_v59, 16  ;;  %v12689_v57 = vld [vmem:[#allocation2 + $0x60] sm:$0xff]  }
 0x46c   : > { %9895 = vmatprep.mubr.bf16.mxu1 %v11133_v10  ;;  %v7262_v33 = vor.u32 %v7261_v39, %v7257_v34  ;;  %v8229_v29 = vrot.slane %v8227_v6, 4  ;;  %v11119_v11 = vrot.slane %v7565_v61, 9  ;;  %v7695_v42 = vrot.slane %v7566_v23, 5  ;;  %v12691_v61 = vld [vmem:[#allocation2 + $0x6c] sm:$0xff]   ;;  %v7568_v23 = vld [vmem:[#allocation2 + $0x78] sm:$0xe] }
 0x46d   : > { %v7258_v17 = vsel %vm13121_vm8, %v7253_v1, %v7257_v34  ;;  %v8220_v50 = vor.u32 %v8219_v22, %v8216_v49  ;;  %v8235_v48 = vrot.slane %v8233_v56, 5  ;;  %v7698_v13 = vrot.slane %v7567_v32, 5  ;;  %v7569_v32 = vld [vmem:[#allocation2 + $0x7c] sm:$0xf]  ;;  %v7056_v56 = vld [vmem:[#allocation2 + $0x78] sm:$0xf] }
 0x46e   : > { %v7263_v0 = vrot.slane %v7262_v33, 4  ;;  %v8230_v9 = vor.u32 %v8229_v29, %v8225_v4  ;;  %v15600_v55 = vsel %vm13145_vm13, %v11119_v11, %v7695_v42  ;;  %v7697_v7 = vrot.slane %v7695_v42, 4  ;;  %v7057_v33 = vld [vmem:[#allocation2 + $0x7c] sm:$0xf] }
 0x46f   : > { %v8221_v5 = vrot.slane %v8220_v50, 4  ;;  %v7270_v18 = vshrl.u32 %v7053_v30, 16  ;;  %v7273_v10 = vshll.u32 %v7053_v30, 16  ;;  %v7279_v35 = vshll.u32 %v7054_v41, 16  ;;  %10057 = vmatmul.mubr.bf16.gmra.mrb[248].mxu0 %v12689_v57  ;;  %v7058_v50 = vld [vmem:[#allocation2 + $0x80] sm:$0x1] }
 0x470   : > { %v7268_v45 = vsel %vm13121_vm8, %v7263_v0, %v7267_v36  ;;  %v8231_v47 = vrot.slane %v8230_v9, 4  ;;  %v15606_v27 = vsel %vm13145_vm13, %v7697_v7, %v7698_v13  ;;  %v7283_v38 = vshrl.u32 %v7054_v41, 16  ;;  %10064 = vmatprep.mubr.bf16.mxu0 %v11166_v14 }
 0x471   : > { %v11102_v37 = vcombine.low %v7258_v17, %v7268_v45  ;;  %v8226_v8 = vsel %vm13121_vm8, %v8221_v5, %v8225_v4  ;;  %v11135_v12 = vcombine.low %v15600_v55, %v15606_v27  ;;  %v7272_v31 = vrot.slane %v7270_v18, 4  ;;  %v8004_v27 = vld [vmem:[#allocation2 + $0x94] sm:$0xf] }
 0x472   : > { %v8236_v52 = vsel %vm13121_vm8, %v8231_v47, %v8235_v48  ;;  %v7275_v54 = vrot.slane %v7273_v10, 5  ;;  %v7281_v34 = vrot.slane %v7279_v35, 5  ;;  %v7285_v59 = vrot.slane %v7283_v38, 4  ;;  %v8003_v47 = vld [vmem:[#allocation2 + $0x90] sm:$0xf] }
 0x473   : > { %9896 = vmatmul.mubr.bf16.gmra.mrb[216].mxu1 %v15580_v43  ;;  %v11167_v62 = vcombine.low %v8226_v8, %v8236_v52  ;;  %v7289_v24 = vshll.u32 %v7055_v58, 16  ;;  %v8238_v2 = vshrl.u32 %v8000_v15, 16  ;;  %v8241_v40 = vshll.u32 %v8000_v15, 16  ;;  %v7570_v43 = vld [vmem:[#allocation2 + $0x80] sm:$0x1] }
 0x474   : > { %9903 = vmatprep.mubr.bf16.mxu1 %v11134_v21  ;;  %v7276_v14 = vor.u32 %v7275_v54, %v7272_v31  ;;  %v7286_v60 = vor.u32 %v7285_v59, %v7281_v34  ;;  %v8247_v16 = vshll.u32 %v8001_v26, 16  ;;  %v8251_v28 = vshrl.u32 %v8001_v26, 16  ;;  %v8005_v31 = vld [vmem:[#allocation2 + $0x98] sm:$0x1]  ;;  %v7571_v26 = vld [vmem:[#allocation2 + $0x84] sm:$0xe] }
 0x475   : > { %v7291_v39 = vrot.slane %v7289_v24, 5  ;;  %v8240_v36 = vrot.slane %v8238_v2, 4  ;;  %v8243_v49 = vrot.slane %v8241_v40, 5  ;;  %v8257_v6 = vshll.u32 %v8002_v51, 16  ;;  %v12692_v59 = vld [vmem:[#allocation2 + $0x78] sm:$0xff]  }
 0x476   : > { %v7277_v30 = vrot.slane %v7276_v14, 4  ;;  %v7287_v1 = vrot.slane %v7286_v60, 4  ;;  %v8249_v22 = vrot.slane %v8247_v16, 5  ;;  %v8253_v4 = vrot.slane %v8251_v28, 4  ;;  %v7059_v28 = vld [vmem:[#allocation2 + $0x84] sm:$0xf] }
 0x477   : > { %v8244_v41 = vor.u32 %v8243_v49, %v8240_v36  ;;  %v8259_v19 = vrot.slane %v8257_v6, 5  ;;  %v11120_v20 = vrot.slane %v7568_v23, 9  ;;  %v7702_v21 = vrot.slane %v7569_v32, 5  ;;  %10065 = vmatmul.mubr.bf16.gmra.mrb[252].mxu0 %v12691_v61  ;;  %v7573_v61 = vld [vmem:[#allocation2 + $0x8c] sm:$0x1] }
 0x478   : > { %v7282_v29 = vsel %vm13121_vm8, %v7277_v30, %v7281_v34  ;;  %v7292_v11 = vsel %vm13121_vm8, %v7287_v1, %v7291_v39  ;;  %v8254_v42 = vor.u32 %v8253_v4, %v8249_v22  ;;  %v7705_v17 = vrot.slane %v7570_v43, 5  ;;  %10072 = vmatprep.mubr.bf16.mxu0 %v11167_v62  ;;  %v7572_v34 = vld [vmem:[#allocation2 + $0x88] sm:$0xf] }
 0x479   : > { %v11103_v48 = vcombine.low %v7282_v29, %v7292_v11  ;;  %v8245_v13 = vrot.slane %v8244_v41, 4  ;;  %v7703_v57 = vsel %vm13145_vm13, %v11120_v20, %v7702_v21  ;;  %v7704_v0 = vrot.slane %v7702_v21, 4  ;;  %v7061_v29 = vld [vmem:[#allocation2 + $0x8c] sm:$0x1] }
 0x47a   : > { %v8255_v9 = vrot.slane %v8254_v42, 4  ;;  %v7294_v55 = vshrl.u32 %v7056_v56, 16  ;;  %v7297_v7 = vshll.u32 %v7056_v56, 16  ;;  %v7303_v5 = vshll.u32 %v7057_v33, 16  ;;  %v7060_v56 = vld [vmem:[#allocation2 + $0x88] sm:$0xf] }
 0x47b   : > { %9904 = vmatmul.mubr.bf16.gmra.mrb[220].mxu1 %v11102_v37  ;;  %v8250_v18 = vsel %vm13121_vm8, %v8245_v13, %v8249_v22  ;;  %v7706_v10 = vsel %vm13145_vm13, %v7704_v0, %v7705_v17  ;;  %v7307_v35 = vshrl.u32 %v7057_v33, 16  ;;  %v7313_v45 = vshll.u32 %v7058_v50, 16  ;;  %v8006_v13 = vld [vmem:[#allocation2 + $0x9c] sm:$0xf] }
 0x47c   : > { %9911 = vmatprep.mubr.bf16.mxu1 %v11135_v12  ;;  %v8260_v58 = vsel %vm13121_vm8, %v8255_v9, %v8259_v19  ;;  %v11136_v38 = vcombine.low %v7703_v57, %v7706_v10  ;;  %v7296_v15 = vrot.slane %v7294_v55, 4  ;;  %v7299_v8 = vrot.slane %v7297_v7, 5  ;;  %v12694_v57 = vld [vmem:[#allocation2 + $0x84] sm:$0xff]  }
 0x47d   : > { %v11168_v37 = vcombine.low %v8250_v18, %v8260_v58  ;;  %v7305_v51 = vrot.slane %v7303_v5, 5  ;;  %v7309_v52 = vrot.slane %v7307_v35, 4  ;;  %v7315_v54 = vrot.slane %v7313_v45, 5  ;;  %v8007_v35 = vld [vmem:[#allocation2 + $0xa0] sm:$0xf] }
 0x47e   : > { %v7300_v62 = vor.u32 %v7299_v8, %v7296_v15  ;;  %v8262_v24 = vshrl.u32 %v8003_v47, 16  ;;  %v8265_v2 = vshll.u32 %v8003_v47, 16  ;;  %v8271_v40 = vshll.u32 %v8004_v27, 16  ;;  %v8008_v45 = vld [vmem:[#allocation2 + $0xa4] sm:$0x1] }
 0x47f   : > { %v7310_v12 = vor.u32 %v7309_v52, %v7305_v51  ;;  %v8275_v14 = vshrl.u32 %v8004_v27, 16  ;;  %v8281_v60 = vshll.u32 %v8005_v31, 16  ;;  %v11121_v16 = vrot.slane %v7571_v26, 9  ;;  %10073 = vmatmul.mubr.bf16.gmra.mrb[0].mxu0 %v12692_v59  ;;  %v7574_v15 = vld [vmem:[#allocation2 + $0x90] sm:$0xe] }
 0x480   : > { %v7301_v23 = vrot.slane %v7300_v62, 4  ;;  %v8264_v32 = vrot.slane %v8262_v24, 4  ;;  %v8267_v39 = vrot.slane %v8265_v2, 5  ;;  %v8273_v36 = vrot.slane %v8271_v40, 5  ;;  %10080 = vmatprep.mubr.bf16.mxu0 %v11168_v37  ;;  %v7576_v62 = vld [vmem:[#allocation2 + $0x98] sm:$0x1] }
 0x481   : > { %v7311_v49 = vrot.slane %v7310_v12, 4  ;;  %v8277_v6 = vrot.slane %v8275_v14, 4  ;;  %v8283_v43 = vrot.slane %v8281_v60, 5  ;;  %v7709_v30 = vrot.slane %v7572_v34, 5 }
 0x482   : > { %v7306_v1 = vsel %vm13121_vm8, %v7301_v23, %v7305_v51  ;;  %v8268_v22 = vor.u32 %v8267_v39, %v8264_v32  ;;  %v7712_v4 = vrot.slane %v7573_v61, 5  ;;  %v7318_v41 = vshrl.u32 %v7059_v28, 16  ;;  %v7575_v51 = vld [vmem:[#allocation2 + $0x94] sm:$0xf] }
 0x483   : > { %9912 = vmatmul.mubr.bf16.gmra.mrb[224].mxu1 %v11103_v48  ;;  %v7316_v19 = vsel %vm13121_vm8, %v7311_v49, %v7315_v54  ;;  %v8278_v20 = vor.u32 %v8277_v6, %v8273_v36  ;;  %v7710_v21 = vsel %vm13145_vm13, %v11121_v16, %v7709_v30  ;;  %v7711_v33 = vrot.slane %v7709_v30, 4 }
 0x484   : > { %9919 = vmatprep.mubr.bf16.mxu1 %v11136_v38  ;;  %v11104_v11 = vcombine.low %v7306_v1, %v7316_v19  ;;  %v8269_v42 = vrot.slane %v8268_v22, 4  ;;  %v7320_v17 = vrot.slane %v7318_v41, 4  ;;  %v7321_v50 = vshll.u32 %v7059_v28, 16  ;;  %v7063_v1 = vld [vmem:[#allocation2 + $0x94] sm:$0xf] }
 0x485   : > { %v8279_v0 = vrot.slane %v8278_v20, 4  ;;  %v7713_v48 = vsel %vm13145_vm13, %v7711_v33, %v7712_v4  ;;  %v7327_v9 = vshll.u32 %v7060_v56, 16  ;;  %v7331_v55 = vshrl.u32 %v7060_v56, 16  ;;  %v12695_v22 = vld [vmem:[#allocation2 + $0x90] sm:$0xff]   ;;  %v7064_v20 = vld [vmem:[#allocation2 + $0x98] sm:$0x1] }
 0x486   : > { %v8274_v7 = vsel %vm13121_vm8, %v8269_v42, %v8273_v36  ;;  %v11137_v5 = vcombine.low %v7710_v21, %v7713_v48  ;;  %v7323_v18 = vrot.slane %v7321_v50, 5  ;;  %v7337_v10 = vshll.u32 %v7061_v29, 16  ;;  %v7062_v36 = vld [vmem:[#allocation2 + $0x90] sm:$0xf]  ;;  %v8009_v42 = vld [vmem:[#allocation2 + $0xa8] sm:$0xf] }
 0x487   : > { %v8284_v47 = vsel %vm13121_vm8, %v8279_v0, %v8283_v43  ;;  %v7329_v27 = vrot.slane %v7327_v9, 5  ;;  %v7333_v58 = vrot.slane %v7331_v55, 4  ;;  %v8286_v38 = vshrl.u32 %v8006_v13, 16  ;;  %10081 = vmatmul.mubr.bf16.gmra.mrb[4].mxu0 %v12694_v57  ;;  %v8010_v0 = vld [vmem:[#allocation2 + $0xac] sm:$0xf] }
 0x488   : > { %v11169_v8 = vcombine.low %v8274_v7, %v8284_v47  ;;  %v7324_v31 = vor.u32 %v7323_v18, %v7320_v17  ;;  %v7339_v26 = vrot.slane %v7337_v10, 5  ;;  %v8289_v37 = vshll.u32 %v8006_v13, 16  ;;  %v8011_v48 = vld [vmem:[#allocation2 + $0xb0] sm:$0x1]  ;;  %v7577_v18 = vld [vmem:[#allocation2 + $0x9c] sm:$0xe] }
 0x489   : > { %v7334_v52 = vor.u32 %v7333_v58, %v7329_v27  ;;  %v8288_v54 = vrot.slane %v8286_v38, 4  ;;  %v8295_v34 = vshll.u32 %v8007_v35, 16  ;;  %v8299_v59 = vshrl.u32 %v8007_v35, 16  ;;  %v7578_v58 = vld [vmem:[#allocation2 + $0xa0] sm:$0xf] }
 0x48a   : > { %10088 = vmatprep.mubr.bf16.mxu0 %v11169_v8  ;;  %v7325_v24 = vrot.slane %v7324_v31, 4  ;;  %v8291_v2 = vrot.slane %v8289_v37, 5  ;;  %v8305_v40 = vshll.u32 %v8008_v45, 16  ;;  %v11122_v61 = vrot.slane %v7574_v15, 9  ;;  %v7579_v37 = vld [vmem:[#allocation2 + $0xa4] sm:$0x1] }
 0x48b   : > { %9920 = vmatmul.mubr.bf16.gmra.mrb[228].mxu1 %v11104_v11  ;;  %v7335_v12 = vrot.slane %v7334_v52, 4  ;;  %v8297_v14 = vrot.slane %v8295_v34, 5  ;;  %v8301_v60 = vrot.slane %v8299_v59, 4  ;;  %v7716_v16 = vrot.slane %v7575_v51, 5 }
 0x48c   : > { %9927 = vmatprep.mubr.bf16.mxu1 %v11137_v5  ;;  %v7330_v28 = vsel %vm13121_vm8, %v7325_v24, %v7329_v27  ;;  %v8292_v23 = vor.u32 %v8291_v2, %v8288_v54  ;;  %v8307_v32 = vrot.slane %v8305_v40, 5  ;;  %v7719_v39 = vrot.slane %v7576_v62, 5  ;;  %v7065_v62 = vld [vmem:[#allocation2 + $0x9c] sm:$0xf] }
 0x48d   : > { %v7340_v49 = vsel %vm13121_vm8, %v7335_v12, %v7339_v26  ;;  %v8302_v6 = vor.u32 %v8301_v60, %v8297_v14  ;;  %v7717_v43 = vsel %vm13145_vm13, %v11122_v61, %v7716_v16  ;;  %v7718_v30 = vrot.slane %v7716_v16, 4  ;;  %v12697_v2 = vld [vmem:[#allocation2 + $0x9c] sm:$0xff]  }
 0x48e   : > { %v11105_v4 = vcombine.low %v7330_v28, %v7340_v49  ;;  %v8293_v56 = vrot.slane %v8292_v23, 4  ;;  %v11840_v41 = vadd.f32 %v15394_v63, %v15377_v3  ;;  %v11843_v19 = vadd.f32 %v15403_v25, %v15399_v53 }
 0x48f   : > { %v8303_v21 = vrot.slane %v8302_v6, 4  ;;  %v7720_v33 = vsel %vm13145_vm13, %v7718_v30, %v7719_v39  ;;  %v7342_v29 = vshrl.u32 %v7062_v36, 16  ;;  %v7345_v11 = vshll.u32 %v7062_v36, 16  ;;  %10089 = vmatmul.mubr.bf16.gmra.mrb[8].mxu0 %v12695_v22  ;;  %v7066_v6 = vld [vmem:[#allocation2 + $0xa0] sm:$0xf] }
 0x490   : > { %v8298_v17 = vsel %vm13121_vm8, %v8293_v56, %v8297_v14  ;;  %v11138_v50 = vcombine.low %v7717_v43, %v7720_v33  ;;  %v7351_v13 = vshll.u32 %v7063_v1, 16  ;;  %v7355_v57 = vshrl.u32 %v7063_v1, 16  ;;  %v11950_v10 = vpop.f32.mrb[160].mxu0  ;;  %v7067_v22 = vld [vmem:[#allocation2 + $0xa4] sm:$0x1] }
 0x491   : > { %v8308_v3 = vsel %vm13121_vm8, %v8303_v21, %v8307_v32  ;;  %v7344_v63 = vrot.slane %v7342_v29, 4  ;;  %v7347_v53 = vrot.slane %v7345_v11, 5  ;;  %v7361_v25 = vshll.u32 %v7064_v20, 16  ;;  %v11951_v38 = vpop.f32.mrb[161].mxu0 }
 0x492   : > { %v11170_v9 = vcombine.low %v8298_v17, %v8308_v3  ;;  %v7353_v55 = vrot.slane %v7351_v13, 5  ;;  %v7357_v7 = vrot.slane %v7355_v57, 4  ;;  %v8310_v5 = vshrl.u32 %v8009_v42, 16  ;;  %v11953_v52 = vpop.f32.mrb[162].mxu0 }
 0x493   : > { %9928 = vmatmul.mubr.bf16.gmra.mrb[232].mxu1 %v11105_v4  ;;  %v7348_v35 = vor.u32 %v7347_v53, %v7344_v63  ;;  %v7363_v45 = vrot.slane %v7361_v25, 5  ;;  %v8313_v47 = vshll.u32 %v8009_v42, 16  ;;  %v8319_v27 = vshll.u32 %v8010_v0, 16  ;;  %v11954_v24 = vpop.f32.mrb[163].mxu0  ;;  %v8013_v63 = vld [vmem:[#allocation2 + $0xb8] sm:$0xf] }
 0x494   : > { %10096 = vmatprep.mubr.bf16.mxu0 %v11170_v9  ;;  %9935 = vmatprep.mubr.bf16.mxu1 %v11138_v50  ;;  %v7358_v15 = vor.u32 %v7357_v7, %v7353_v55  ;;  %v8312_v8 = vrot.slane %v8310_v5, 4  ;;  %v8323_v31 = vshrl.u32 %v8010_v0, 16  ;;  %v8329_v26 = vshll.u32 %v8011_v48, 16  ;;  %v8014_v7 = vld [vmem:[#allocation2 + $0xbc] sm:$0x1] }
 0x495   : > { %v11952_v51 = vadd.f32 %v11951_v38, %v11950_v10  ;;  %v7349_v54 = vrot.slane %v7348_v35, 4  ;;  %v8315_v34 = vrot.slane %v8313_v47, 5  ;;  %v8321_v59 = vrot.slane %v8319_v27, 5  ;;  %v12698_v10 = vld [vmem:[#allocation2 + $0xa8] sm:$0xff]  }
 0x496   : > { %v7359_v40 = vrot.slane %v7358_v15, 4  ;;  %v8325_v61 = vrot.slane %v8323_v31, 4  ;;  %v8331_v12 = vrot.slane %v8329_v26, 5  ;;  %v11123_v14 = vrot.slane %v7577_v18, 9 }
 0x497   : > { %v15658_v60 = vadd.f32 %v11952_v51, %v11840_v41  ;;  %v11955_v16 = vadd.f32 %v11954_v24, %v11953_v52  ;;  %v7354_v28 = vsel %vm13121_vm8, %v7349_v54, %v7353_v55  ;;  %v8316_v23 = vor.u32 %v8315_v34, %v8312_v8  ;;  %10097 = vmatmul.mubr.bf16.gmra.mrb[12].mxu0 %v12697_v2 }
 0x498   : > { %v7364_v32 = vsel %vm13121_vm8, %v7359_v40, %v7363_v45  ;;  %v8326_v39 = vor.u32 %v8325_v61, %v8321_v59  ;;  %v7723_v36 = vrot.slane %v7578_v58, 5  ;;  %v7726_v49 = vrot.slane %v7579_v37, 5  ;;  %v7580_v58 = vld [vmem:[#allocation2 + $0xa8] sm:$0xe]  ;;  %v7581_v37 = vld [vmem:[#allocation2 + $0xac] sm:$0xf] }
 0x499   : > { %v15664_v43 = vadd.f32 %v11955_v16, %v11843_v19  ;;  %v11106_v30 = vcombine.low %v7354_v28, %v7364_v32  ;;  %v8317_v1 = vrot.slane %v8316_v23, 4  ;;  %v7366_v4 = vshrl.u32 %v7065_v62, 16  ;;  %v8012_v19 = vld [vmem:[#allocation2 + $0xb4] sm:$0xf] }
 0x49a   : > { %v8327_v56 = vrot.slane %v8326_v39, 4  ;;  %v7724_v41 = vsel %vm13145_vm13, %v11123_v14, %v7723_v36  ;;  %v7725_v20 = vrot.slane %v7723_v36, 4  ;;  %v7369_v21 = vshll.u32 %v7065_v62, 16  ;;  %v11956_v29 = vpop.f32.mrb[164].mxu0  ;;  %v7582_v62 = vld [vmem:[#allocation2 + $0xb0] sm:$0x1] }
 0x49b   : > { %9936 = vmatmul.mubr.bf16.gmra.mrb[236].mxu1 %v11106_v30  ;;  %v8322_v33 = vsel %vm13121_vm8, %v8317_v1, %v8321_v59  ;;  %v7368_v11 = vrot.slane %v7366_v4, 4  ;;  %v7375_v42 = vshll.u32 %v7066_v6, 16  ;;  %v7379_v17 = vshrl.u32 %v7066_v6, 16  ;;  %v11957_v57 = vpop.f32.mrb[165].mxu0  ;;  %v7068_v30 = vld [vmem:[#allocation2 + $0xa8] sm:$0xf] }
 0x49c   : > { %v8332_v50 = vsel %vm13121_vm8, %v8327_v56, %v8331_v12  ;;  %v7727_v13 = vsel %vm13145_vm13, %v7725_v20, %v7726_v49  ;;  %v7371_v0 = vrot.slane %v7369_v21, 5  ;;  %v7385_v3 = vshll.u32 %v7067_v22, 16  ;;  %v11959_v9 = vpop.f32.mrb[166].mxu0  ;;  %v7069_v20 = vld [vmem:[#allocation2 + $0xac] sm:$0xf] }
 0x49d   : > { %v11171_v53 = vcombine.low %v8322_v33, %v8332_v50  ;;  %v11139_v25 = vcombine.low %v7724_v41, %v7727_v13  ;;  %v11958_v48 = vadd.f32 %v11957_v57, %v11956_v29  ;;  %v7377_v55 = vrot.slane %v7375_v42, 5  ;;  %v11960_v18 = vpop.f32.mrb[167].mxu0 }
 0x49e   : > { %v11844_v5 = vpop.f32.mrb[132].mxu1  ;;  %v7372_v35 = vor.u32 %v7371_v0, %v7368_v11  ;;  %v7381_v45 = vrot.slane %v7379_v17, 4  ;;  %v7387_v47 = vrot.slane %v7385_v3, 5  ;;  %v8334_v27 = vshrl.u32 %v8012_v19, 16 }
 0x49f   : > { %10104 = vmatprep.mubr.bf16.mxu0 %v11171_v53  ;;  %9943 = vmatprep.mubr.bf16.mxu1 %v11139_v25  ;;  %v11845_v38 = vpop.f32.mrb[133].mxu1  ;;  %v11961_v15 = vadd.f32 %v11960_v18, %v11959_v9  ;;  %v8337_v8 = vshll.u32 %v8012_v19, 16  ;;  %v8343_v31 = vshll.u32 %v8013_v63, 16  ;;  %v8347_v26 = vshrl.u32 %v8013_v63, 16 }
 0x4a0   : > { %v11846_v51 = vadd.f32 %v11845_v38, %v11844_v5  ;;  %v11847_v52 = vpop.f32.mrb[134].mxu1  ;;  %10105 = vmatmul.mubr.bf16.gmra.mrb[16].mxu0 %v12698_v10  ;;  %v7373_v54 = vrot.slane %v7372_v35, 4  ;;  %v7382_v34 = vor.u32 %v7381_v45, %v7377_v55  ;;  %v8336_v59 = vrot.slane %v8334_v27, 4  ;;  %v8016_v45 = vld [vmem:[#allocation2 + $0xc4] sm:$0xf] }
 0x4a1   : > { %v11848_v24 = vpop.f32.mrb[135].mxu1  ;;  %v8339_v2 = vrot.slane %v8337_v8, 5  ;;  %v8345_v40 = vrot.slane %v8343_v31, 5  ;;  %v8349_v61 = vrot.slane %v8347_v26, 4  ;;  %v8353_v12 = vshll.u32 %v8014_v7, 16 }
 0x4a2   : > { %v15674_v14 = vadd.f32 %v11958_v48, %v11846_v51  ;;  %v11849_v16 = vadd.f32 %v11848_v24, %v11847_v52  ;;  %v7378_v28 = vsel %vm13121_vm8, %v7373_v54, %v7377_v55  ;;  %v7383_v23 = vrot.slane %v7382_v34, 4  ;;  %v11962_v6 = vpop.f32.mrb[168].mxu0  ;;  %v7070_v48 = vld [vmem:[#allocation2 + $0xb0] sm:$0x1]  ;;  %v8015_v55 = vld [vmem:[#allocation2 + $0xc0] sm:$0xf] }
 0x4a3   : > { %v8340_v32 = vor.u32 %v8339_v2, %v8336_v59  ;;  %v8350_v39 = vor.u32 %v8349_v61, %v8345_v40  ;;  %v8355_v36 = vrot.slane %v8353_v12, 5  ;;  %v11124_v49 = vrot.slane %v7580_v58, 9  ;;  %v11963_v41 = vpop.f32.mrb[169].mxu0  ;;  %v12700_v58 = vld [vmem:[#allocation2 + $0xb4] sm:$0xff]   ;;  %v8017_v51 = vld [vmem:[#allocation2 + $0xc8] sm:$0x1] }
 0x4a4   : > { %v15678_v1 = vadd.f32 %v11961_v15, %v11849_v16  ;;  %v7388_v22 = vsel %vm13121_vm8, %v7383_v23, %v7387_v47  ;;  %v7730_v4 = vrot.slane %v7581_v37, 5  ;;  %v7733_v56 = vrot.slane %v7582_v62, 5  ;;  %v11965_v42 = vpop.f32.mrb[170].mxu0  ;;  %v7583_v54 = vld [vmem:[#allocation2 + $0xb4] sm:$0xe] }
 0x4a5   : > { %v11107_v21 = vcombine.low %v7378_v28, %v7388_v22  ;;  %v8341_v33 = vrot.slane %v8340_v32, 4  ;;  %v8351_v29 = vrot.slane %v8350_v39, 4  ;;  %v11964_v11 = vadd.f32 %v11963_v41, %v11962_v6  ;;  %v11966_v13 = vpop.f32.mrb[171].mxu0  ;;  %v7584_v2 = vld [vmem:[#allocation2 + $0xb8] sm:$0xf] }
 0x4a6   : > { %v7731_v17 = vsel %vm13145_vm13, %v11124_v49, %v7730_v4  ;;  %v7732_v19 = vrot.slane %v7730_v4, 4  ;;  %v11850_v50 = vpop.f32.mrb[136].mxu1  ;;  %v7390_v57 = vshrl.u32 %v7068_v30, 16  ;;  %v7393_v0 = vshll.u32 %v7068_v30, 16  ;;  %v7585_v23 = vld [vmem:[#allocation2 + $0xbc] sm:$0x1] }
 0x4a7   : > { %9944 = vmatmul.mubr.bf16.gmra.mrb[240].mxu1 %v11107_v21  ;;  %v8346_v3 = vsel %vm13121_vm8, %v8341_v33, %v8345_v40  ;;  %v8356_v63 = vsel %vm13121_vm8, %v8351_v29, %v8355_v36  ;;  %v11851_v53 = vpop.f32.mrb[137].mxu1  ;;  %v11967_v25 = vadd.f32 %v11966_v13, %v11965_v42  ;;  %v7399_v9 = vshll.u32 %v7069_v20, 16 }
 0x4a8   : > { %v11172_v7 = vcombine.low %v8346_v3, %v8356_v63  ;;  %v7734_v5 = vsel %vm13145_vm13, %v7732_v19, %v7733_v56  ;;  %v11852_v18 = vadd.f32 %v11851_v53, %v11850_v50  ;;  %v11853_v10 = vpop.f32.mrb[138].mxu1  ;;  %v7392_v35 = vrot.slane %v7390_v57, 4 }
 0x4a9   : > { %v11140_v47 = vcombine.low %v7731_v17, %v7734_v5  ;;  %v11854_v27 = vpop.f32.mrb[139].mxu1  ;;  %v7395_v38 = vrot.slane %v7393_v0, 5  ;;  %v7401_v15 = vrot.slane %v7399_v9, 5  ;;  %v7403_v8 = vshrl.u32 %v7069_v20, 16  ;;  %v7071_v9 = vld [vmem:[#allocation2 + $0xb4] sm:$0xf] }
 0x4aa   : > { %10112 = vmatprep.mubr.bf16.mxu0 %v11172_v7  ;;  %v15690_v31 = vadd.f32 %v11964_v11, %v11852_v18  ;;  %v11855_v26 = vadd.f32 %v11854_v27, %v11853_v10  ;;  %v7409_v37 = vshll.u32 %v7070_v48, 16  ;;  %v8358_v52 = vshrl.u32 %v8015_v55, 16  ;;  %v11968_v40 = vpop.f32.mrb[172].mxu0 }
 0x4ab   : > { %9951 = vmatprep.mubr.bf16.mxu1 %v11140_v47  ;;  %10113 = vmatmul.mubr.bf16.gmra.mrb[20].mxu0 %v12700_v58  ;;  %v7396_v34 = vor.u32 %v7395_v38, %v7392_v35  ;;  %v7405_v59 = vrot.slane %v7403_v8, 4  ;;  %v8361_v62 = vshll.u32 %v8015_v55, 16  ;;  %v8367_v24 = vshll.u32 %v8016_v45, 16  ;;  %v11969_v32 = vpop.f32.mrb[173].mxu0  ;;  %v7072_v55 = vld [vmem:[#allocation2 + $0xb8] sm:$0xf] }
 0x4ac   : > { %v15692_v61 = vadd.f32 %v11967_v25, %v11855_v26  ;;  %v7411_v12 = vrot.slane %v7409_v37, 5  ;;  %v8360_v16 = vrot.slane %v8358_v52, 4  ;;  %v8371_v28 = vshrl.u32 %v8016_v45, 16  ;;  %v11971_v30 = vpop.f32.mrb[174].mxu0  ;;  %v7073_v35 = vld [vmem:[#allocation2 + $0xbc] sm:$0x1] }
 0x4ad   : > { %v7397_v39 = vrot.slane %v7396_v34, 4  ;;  %v7406_v36 = vor.u32 %v7405_v59, %v7401_v15  ;;  %v8363_v49 = vrot.slane %v8361_v62, 5  ;;  %v8369_v6 = vrot.slane %v8367_v24, 5  ;;  %v11972_v21 = vpop.f32.mrb[175].mxu0  ;;  %v7586_v38 = vld [vmem:[#allocation2 + $0xc0] sm:$0xe] }
 0x4ae   : > { %v8373_v22 = vrot.slane %v8371_v28, 4  ;;  %v8377_v4 = vshll.u32 %v8017_v51, 16  ;;  %v11125_v56 = vrot.slane %v7583_v54, 9  ;;  %v7737_v41 = vrot.slane %v7584_v2, 5  ;;  %v11856_v20 = vpop.f32.mrb[140].mxu1  ;;  %v12701_v24 = vld [vmem:[#allocation2 + $0xc0] sm:$0xff]  }
 0x4af   : > { %v7402_v33 = vsel %vm13121_vm8, %v7397_v39, %v7401_v15  ;;  %v7407_v29 = vrot.slane %v7406_v36, 4  ;;  %v8364_v11 = vor.u32 %v8363_v49, %v8360_v16  ;;  %v7740_v42 = vrot.slane %v7585_v23, 5  ;;  %v11857_v17 = vpop.f32.mrb[141].mxu1  ;;  %v7587_v15 = vld [vmem:[#allocation2 + $0xc4] sm:$0xf] }
 0x4b0   : > { %v8374_v19 = vor.u32 %v8373_v22, %v8369_v6  ;;  %v8379_v50 = vrot.slane %v8377_v4, 5  ;;  %v7738_v13 = vsel %vm13145_vm13, %v11125_v56, %v7737_v41  ;;  %v7739_v57 = vrot.slane %v7737_v41, 4  ;;  %v11859_v0 = vpop.f32.mrb[142].mxu1  ;;  %v7588_v54 = vld [vmem:[#allocation2 + $0xc8] sm:$0x1] }
 0x4b1   : > { %v7412_v3 = vsel %vm13121_vm8, %v7407_v29, %v7411_v12  ;;  %v8365_v63 = vrot.slane %v8364_v11, 4  ;;  %v11970_v53 = vadd.f32 %v11969_v32, %v11968_v40  ;;  %v11858_v25 = vadd.f32 %v11857_v17, %v11856_v20  ;;  %v11860_v48 = vpop.f32.mrb[143].mxu1  ;;  %v7074_v16 = vld [vmem:[#allocation2 + $0xc0] sm:$0xf]  ;;  %v7075_v11 = vld [vmem:[#allocation2 + $0xc4] sm:$0xf] }
 0x4b2   : > { %v11108_v7 = vcombine.low %v7402_v33, %v7412_v3  ;;  %v8375_v5 = vrot.slane %v8374_v19, 4  ;;  %v7741_v18 = vsel %vm13145_vm13, %v7739_v57, %v7740_v42  ;;  %v11973_v10 = vadd.f32 %v11972_v21, %v11971_v30  ;;  %v11974_v8 = vpop.f32.mrb[176].mxu0 }
 0x4b3   : > { %v8370_v45 = vsel %vm13121_vm8, %v8365_v63, %v8369_v6  ;;  %v11141_v47 = vcombine.low %v7738_v13, %v7741_v18  ;;  %v15704_v27 = vadd.f32 %v11970_v53, %v11858_v25  ;;  %v11861_v58 = vadd.f32 %v11860_v48, %v11859_v0  ;;  %v11975_v34 = vpop.f32.mrb[177].mxu0  ;;  %v7076_v63 = vld [vmem:[#allocation2 + $0xc8] sm:$0x1]  ;;  %v8018_v25 = vld [vmem:[#allocation2 + $0xcc] sm:$0xf] }
 0x4b4   : > { %9952 = vmatmul.mubr.bf16.gmra.mrb[244].mxu1 %v11108_v7  ;;  %v8380_v26 = vsel %vm13121_vm8, %v8375_v5, %v8379_v50  ;;  %v7414_v37 = vshrl.u32 %v7071_v9, 16  ;;  %v7417_v51 = vshll.u32 %v7071_v9, 16  ;;  %v7423_v52 = vshll.u32 %v7072_v55, 16  ;;  %v11977_v12 = vpop.f32.mrb[178].mxu0  ;;  %v8019_v5 = vld [vmem:[#allocation2 + $0xd0] sm:$0xf] }
 0x4b5   : > { %v11173_v59 = vcombine.low %v8370_v45, %v8380_v26  ;;  %9959 = vmatprep.mubr.bf16.mxu1 %v11141_v47  ;;  %v15708_v62 = vadd.f32 %v11973_v10, %v11861_v58  ;;  %v7427_v2 = vshrl.u32 %v7072_v55, 16  ;;  %v7433_v40 = vshll.u32 %v7073_v35, 16  ;;  %v11978_v49 = vpop.f32.mrb[179].mxu0  ;;  %v8020_v58 = vld [vmem:[#allocation2 + $0xd4] sm:$0x1] }
 0x4b6   : > { %v7416_v28 = vrot.slane %v7414_v37, 4  ;;  %v7419_v23 = vrot.slane %v7417_v51, 5  ;;  %v7425_v32 = vrot.slane %v7423_v52, 5  ;;  %v11126_v39 = vrot.slane %v7586_v38, 9  ;;  %v11862_v36 = vpop.f32.mrb[144].mxu1 }
 0x4b7   : > { %10120 = vmatprep.mubr.bf16.mxu0 %v11173_v59  ;;  %v7429_v6 = vrot.slane %v7427_v2, 4  ;;  %v7435_v30 = vrot.slane %v7433_v40, 5  ;;  %v7744_v22 = vrot.slane %v7587_v15, 5  ;;  %v7747_v4 = vrot.slane %v7588_v54, 5  ;;  %v11863_v56 = vpop.f32.mrb[145].mxu1 }
 0x4b8   : > { %10121 = vmatmul.mubr.bf16.gmra.mrb[24].mxu0 %v12701_v24  ;;  %v7420_v41 = vor.u32 %v7419_v23, %v7416_v28  ;;  %v11976_v20 = vadd.f32 %v11975_v34, %v11974_v8  ;;  %v11864_v21 = vadd.f32 %v11863_v56, %v11862_v36  ;;  %v11865_v33 = vpop.f32.mrb[146].mxu1  ;;  %v11979_v29 = vadd.f32 %v11978_v49, %v11977_v12  ;;  %v8485_v38 = vld [vmem:[#allocation2 + $0x18] sm:$0xe]  ;;  %v8486_v52 = vld [vmem:[#allocation2 + $0x1c] sm:$0xf] }
 0x4b9   : > { %v7430_v42 = vor.u32 %v7429_v6, %v7425_v32  ;;  %v7745_v17 = vsel %vm13145_vm13, %v11126_v39, %v7744_v22  ;;  %v7746_v19 = vrot.slane %v7744_v22, 4  ;;  %v11866_v50 = vpop.f32.mrb[147].mxu1  ;;  %v7438_v13 = vshrl.u32 %v7074_v16, 16  ;;  %v8487_v40 = vld [vmem:[#allocation2 + $0x20] sm:$0x1] }
 0x4ba   : > { %v7421_v57 = vrot.slane %v7420_v41, 4  ;;  %v15712_v0 = vadd.f32 %v11976_v20, %v11864_v21  ;;  %v11867_v3 = vadd.f32 %v11866_v50, %v11865_v33  ;;  %v7441_v53 = vshll.u32 %v7074_v16, 16  ;;  %v11980_v18 = vpop.f32.mrb[180].mxu0 }
 0x4bb   : > { %v7431_v48 = vrot.slane %v7430_v42, 4  ;;  %v7748_v9 = vsel %vm13145_vm13, %v7746_v19, %v7747_v4  ;;  %v7440_v55 = vrot.slane %v7438_v13, 4  ;;  %v7447_v7 = vshll.u32 %v7075_v11, 16  ;;  %v11981_v15 = vpop.f32.mrb[181].mxu0 }
 0x4bc   : > { %v7426_v10 = vsel %vm13121_vm8, %v7421_v57, %v7425_v32  ;;  %v11142_v35 = vcombine.low %v7745_v17, %v7748_v9  ;;  %v15718_v45 = vadd.f32 %v11979_v29, %v11867_v3  ;;  %v7443_v47 = vrot.slane %v7441_v53, 5  ;;  %v11983_v54 = vpop.f32.mrb[182].mxu0 }
 0x4bd   : > { %v7436_v8 = vsel %vm13121_vm8, %v7431_v48, %v7435_v30  ;;  %v7449_v26 = vrot.slane %v7447_v7, 5  ;;  %v7451_v37 = vshrl.u32 %v7075_v11, 16  ;;  %v7457_v51 = vshll.u32 %v7076_v63, 16  ;;  %v11984_v16 = vpop.f32.mrb[183].mxu0 }
 0x4be   : > { %v11109_v34 = vcombine.low %v7426_v10, %v7436_v8  ;;  %v7444_v59 = vor.u32 %v7443_v47, %v7440_v55  ;;  %v8382_v24 = vshrl.u32 %v8018_v25, 16  ;;  %v8385_v2 = vshll.u32 %v8018_v25, 16  ;;  %v11868_v12 = vpop.f32.mrb[148].mxu1  ;;  %v8489_v47 = vld [vmem:[#allocation2 + $0x28] sm:$0xf] }
 0x4bf   : > { %v7453_v28 = vrot.slane %v7451_v37, 4  ;;  %v7459_v23 = vrot.slane %v7457_v51, 5  ;;  %v8391_v32 = vshll.u32 %v8019_v5, 16  ;;  %v8395_v39 = vshrl.u32 %v8019_v5, 16  ;;  %v11869_v36 = vpop.f32.mrb[149].mxu1 }
 0x4c0   : > { %9960 = vmatmul.mubr.bf16.gmra.mrb[248].mxu1 %v11109_v34  ;;  %v7445_v49 = vrot.slane %v7444_v59, 4  ;;  %v8384_v6 = vrot.slane %v8382_v24, 4  ;;  %v8387_v30 = vrot.slane %v8385_v2, 5  ;;  %v8401_v22 = vshll.u32 %v8020_v58, 16  ;;  %v11871_v4 = vpop.f32.mrb[150].mxu1  ;;  %v12703_v59 = vld [vmem:[#allocation2 + $0xcc] sm:$0xff]  }
 0x4c1   : > { %9967 = vmatprep.mubr.bf16.mxu1 %v11142_v35  ;;  %v7454_v56 = vor.u32 %v7453_v28, %v7449_v26  ;;  %v8393_v41 = vrot.slane %v8391_v32, 5  ;;  %v8397_v20 = vrot.slane %v8395_v39, 4  ;;  %v11175_v21 = vrot.slane %v8485_v38, 9  ;;  %v11872_v33 = vpop.f32.mrb[151].mxu1  ;;  %v8488_v35 = vld [vmem:[#allocation2 + $0x24] sm:$0xe] }
 0x4c2   : > { %v7450_v29 = vsel %vm13121_vm8, %v7445_v49, %v7449_v26  ;;  %v8388_v11 = vor.u32 %v8387_v30, %v8384_v6  ;;  %v8403_v42 = vrot.slane %v8401_v22, 5  ;;  %v8583_v17 = vrot.slane %v8486_v52, 5  ;;  %v11986_v3 = vpop.f32.mrb[184].mxu0  ;;  %v8490_v26 = vld [vmem:[#allocation2 + $0x2c] sm:$0x1] }
 0x4c3   : > { %v7455_v19 = vrot.slane %v7454_v56, 4  ;;  %v8398_v50 = vor.u32 %v8397_v20, %v8393_v41  ;;  %v8586_v13 = vrot.slane %v8487_v40, 5  ;;  %v11982_v57 = vadd.f32 %v11981_v15, %v11980_v18  ;;  %v11987_v9 = vpop.f32.mrb[185].mxu0  ;;  %v8492_v37 = vld [vmem:[#allocation2 + $0x34] sm:$0xf] }
 0x4c4   : > { %v8389_v63 = vrot.slane %v8388_v11, 4  ;;  %v8584_v53 = vsel %vm13145_vm13, %v11175_v21, %v8583_v17  ;;  %v8585_v25 = vrot.slane %v8583_v17, 4  ;;  %v11870_v48 = vadd.f32 %v11869_v36, %v11868_v12  ;;  %v11989_v58 = vpop.f32.mrb[186].mxu0  ;;  %v8491_v2 = vld [vmem:[#allocation2 + $0x30] sm:$0xe] }
 0x4c5   : > { %v7460_v55 = vsel %vm13121_vm8, %v7455_v19, %v7459_v23  ;;  %v8399_v7 = vrot.slane %v8398_v50, 4  ;;  %v11985_v5 = vadd.f32 %v11984_v16, %v11983_v54  ;;  %v11873_v10 = vadd.f32 %v11872_v33, %v11871_v4  ;;  %v11990_v52 = vpop.f32.mrb[187].mxu0  ;;  %v8493_v23 = vld [vmem:[#allocation2 + $0x38] sm:$0x1]  ;;  %v8498_v20 = vld [vmem:[#allocation2 + $0x4c] sm:$0xf] }
 0x4c6   : > { %v11110_v38 = vcombine.low %v7450_v29, %v7460_v55  ;;  %v8394_v18 = vsel %vm13121_vm8, %v8389_v63, %v8393_v41  ;;  %v8587_v15 = vsel %vm13145_vm13, %v8585_v25, %v8586_v13  ;;  %v15732_v8 = vadd.f32 %v11982_v57, %v11870_v48  ;;  %v11874_v51 = vpop.f32.mrb[152].mxu1  ;;  %v8494_v48 = vld [vmem:[#allocation2 + $0x3c] sm:$0xe] }
 0x4c7   : > { %v8404_v54 = vsel %vm13121_vm8, %v8399_v7, %v8403_v42  ;;  %v11191_v34 = vcombine.low %v8584_v53, %v8587_v15  ;;  %v15736_v24 = vadd.f32 %v11985_v5, %v11873_v10  ;;  %v11875_v40 = vpop.f32.mrb[153].mxu1  ;;  %v11176_v16 = vrot.slane %v8488_v35, 9  ;;  %v8497_v35 = vld [vmem:[#allocation2 + $0x48] sm:$0xe] }
 0x4c8   : > { %9968 = vmatmul.mubr.bf16.gmra.mrb[252].mxu1 %v11110_v38  ;;  %v11174_v12 = vcombine.low %v8394_v18, %v8404_v54  ;;  %v8590_v28 = vrot.slane %v8489_v47, 5  ;;  %v11877_v32 = vpop.f32.mrb[154].mxu1  ;;  %v8593_v39 = vrot.slane %v8490_v26, 5  ;;  %v8597_v36 = vrot.slane %v8492_v37, 5  ;;  %v8499_v47 = vld [vmem:[#allocation2 + $0x50] sm:$0x1] }
 0x4c9   : > { %12358 = vmatprep.mubr.bf16.mxu1 %v11191_v34  ;;  %v11988_v49 = vadd.f32 %v11987_v9, %v11986_v3  ;;  %v11876_v6 = vadd.f32 %v11875_v40, %v11874_v51  ;;  %v11878_v30 = vpop.f32.mrb[155].mxu1  ;;  %v11177_v4 = vrot.slane %v8491_v2, 9  ;;  %v11991_v56 = vadd.f32 %v11990_v52, %v11989_v58  ;;  %v8496_v9 = vld [vmem:[#allocation2 + $0x44] sm:$0x1]  ;;  %v8501_v51 = vld [vmem:[#allocation2 + $0x58] sm:$0xf] }
 0x4ca   : > { %10128 = vmatprep.mubr.bf16.mxu0 %v11174_v12  ;;  %v8592_v22 = vrot.slane %v8590_v28, 4  ;;  %v11879_v41 = vadd.f32 %v11878_v30, %v11877_v32  ;;  %v8599_v21 = vrot.slane %v8597_v36, 4  ;;  %v8600_v33 = vrot.slane %v8493_v23, 5  ;;  %v11992_v11 = vpop.f32.mrb[188].mxu0 }
 0x4cb   : > { %10129 = vmatmul.mubr.bf16.gmra.mrb[28].mxu0 %v12703_v59  ;;  %v15738_v29 = vadd.f32 %v11988_v49, %v11876_v6  ;;  %v8604_v19 = vrot.slane %v8495_v44, 5  ;;  %v11993_v50 = vpop.f32.mrb[189].mxu0  ;;  %v8591_v13 = vsel %vm13145_vm13, %v11176_v16, %v8590_v28  ;;  %v8611_v3 = vrot.slane %v8498_v20, 5  ;;  %v8504_v59 = vld [vmem:[#allocation2 + $0x64] sm:$0xf] }
 0x4cc   : > { %v8594_v42 = vsel %vm13145_vm13, %v8592_v22, %v8593_v39  ;;  %v15742_v17 = vadd.f32 %v11991_v56, %v11879_v41  ;;  %v8601_v57 = vsel %vm13145_vm13, %v8599_v21, %v8600_v33  ;;  %v11995_v63 = vpop.f32.mrb[190].mxu0  ;;  %v8598_v25 = vsel %vm13145_vm13, %v11177_v4, %v8597_v36  ;;  %v8500_v41 = vld [vmem:[#allocation2 + $0x54] sm:$0xe]  ;;  %v8502_v20 = vld [vmem:[#allocation2 + $0x5c] sm:$0x1] }
 0x4cd   : > { %v11192_v53 = vcombine.low %v8591_v13, %v8594_v42  ;;  %v11996_v7 = vpop.f32.mrb[191].mxu0  ;;  %v11193_v5 = vcombine.low %v8598_v25, %v8601_v57  ;;  %v8606_v10 = vrot.slane %v8604_v19, 4  ;;  %v11994_v58 = vadd.f32 %v11993_v50, %v11992_v11  ;;  %v8503_v50 = vld [vmem:[#allocation2 + $0x60] sm:$0xe]  ;;  %v8505_v13 = vld [vmem:[#allocation2 + $0x68] sm:$0x1] }
 0x4ce   : > { %v11880_v55 = vpop.f32.mrb[156].mxu1  ;;  %v11997_v18 = vadd.f32 %v11996_v7, %v11995_v63  ;;  %v8613_v15 = vrot.slane %v8611_v3, 4  ;;  %v11178_v52 = vrot.slane %v8494_v48, 9  ;;  %v8607_v54 = vrot.slane %v8496_v9, 5  ;;  %v8507_v48 = vld [vmem:[#allocation2 + $0x70] sm:$0xf] }
 0x4cf   : > { %v11881_v38 = vpop.f32.mrb[157].mxu1  ;;  %v11179_v2 = vrot.slane %v8497_v35, 9  ;;  %v8614_v40 = vrot.slane %v8499_v47, 5  ;;  %v8618_v23 = vrot.slane %v8501_v51, 5  ;;  %v8625_v49 = vrot.slane %v8504_v59, 5 }
 0x4d0   : > { %12359 = vmatmul.mubr.bf16.vlgmr.msra.gmra.mrb[0].mxu1 %v11192_v53  ;;  %v11882_v26 = vadd.f32 %v11881_v38, %v11880_v55  ;;  %v11883_v37 = vpop.f32.mrb[158].mxu1  ;;  %v8608_v28 = vsel %vm13145_vm13, %v8606_v10, %v8607_v54  ;;  %v8605_v30 = vsel %vm13145_vm13, %v11178_v52, %v8604_v19  ;;  %v11180_v9 = vrot.slane %v8500_v41, 9 }
 0x4d1   : > { %12362 = vmatprep.mubr.bf16.mxu1 %v11193_v5  ;;  %v11884_v34 = vpop.f32.mrb[159].mxu1  ;;  %v8615_v39 = vsel %vm13145_vm13, %v8613_v15, %v8614_v40  ;;  %v11194_v4 = vcombine.low %v8605_v30, %v8608_v28  ;;  %v8612_v56 = vsel %vm13145_vm13, %v11179_v2, %v8611_v3  ;;  %v8620_v42 = vrot.slane %v8618_v23, 4  ;;  %v8510_v3 = vld [vmem:[#allocation2 + $0x7c] sm:$0xf]  ;;  %v8506_v40 = vld [vmem:[#allocation2 + $0x6c] sm:$0xe] }
 0x4d2   : > { %v15750_v12 = vadd.f32 %v11994_v58, %v11882_v26  ;;  %v11885_v16 = vadd.f32 %v11884_v34, %v11883_v37  ;;  %v11998_v32 = vpop.f32.mrb[192].mxu0  ;;  %v11195_v11 = vcombine.low %v8612_v56, %v8615_v39  ;;  %v8627_v53 = vrot.slane %v8625_v49, 4  ;;  %v8509_v30 = vld [vmem:[#allocation2 + $0x78] sm:$0xe] }
 0x4d3   : > { %v11999_v6 = vpop.f32.mrb[193].mxu0  ;;  %v8621_v55 = vrot.slane %v8502_v20, 5  ;;  %v11181_v5 = vrot.slane %v8503_v50, 9  ;;  %v8628_v10 = vrot.slane %v8505_v13, 5  ;;  %v8632_v38 = vrot.slane %v8507_v48, 5 }
 0x4d4   : > { %v15756_v36 = vadd.f32 %v11997_v18, %v11885_v16  ;;  %v12000_v44 = vadd.f32 %v11999_v6, %v11998_v32  ;;  %v12001_v22 = vpop.f32.mrb[194].mxu0  ;;  %v8639_v37 = vrot.slane %v8510_v3, 5  ;;  %v8619_v52 = vsel %vm13145_vm13, %v11180_v9, %v8618_v23  ;;  %v8508_v16 = vld [vmem:[#allocation2 + $0x74] sm:$0x1]  ;;  %v8513_v20 = vld [vmem:[#allocation2 + $0x88] sm:$0xf] }
 0x4d5   : > { %v12002_v33 = vpop.f32.mrb[195].mxu0  ;;  %v8622_v58 = vsel %vm13145_vm13, %v8620_v42, %v8621_v55  ;;  %v8629_v15 = vsel %vm13145_vm13, %v8627_v53, %v8628_v10  ;;  %v8626_v2 = vsel %vm13145_vm13, %v11181_v5, %v8625_v49  ;;  %v8634_v6 = vrot.slane %v8632_v38, 4  ;;  %v8516_v49 = vld [vmem:[#allocation2 + $0x94] sm:$0xf] }
 0x4d6   : > { %v11886_v21 = vpop.f32.mrb[160].mxu1  ;;  %v12003_v63 = vadd.f32 %v12002_v33, %v12001_v22  ;;  %v11196_v59 = vcombine.low %v8619_v52, %v8622_v58  ;;  %v11197_v39 = vcombine.low %v8626_v2, %v8629_v15  ;;  %v8641_v56 = vrot.slane %v8639_v37, 4  ;;  %v8512_v58 = vld [vmem:[#allocation2 + $0x84] sm:$0xe] }
 0x4d7   : > { %v11887_v57 = vpop.f32.mrb[161].mxu1  ;;  %v8635_v33 = vrot.slane %v8508_v16, 5  ;;  %v11183_v42 = vrot.slane %v8509_v30, 9  ;;  %v8646_v53 = vrot.slane %v8513_v20, 5  ;;  %v8653_v9 = vrot.slane %v8516_v49, 5 }
 0x4d8   : > { %12363 = vmatmul.mubr.bf16.gmra.mrb[4].mxu1 %v11194_v4  ;;  %v11888_v25 = vadd.f32 %v11887_v57, %v11886_v21  ;;  %v11889_v19 = vpop.f32.mrb[162].mxu1  ;;  %v11182_v21 = vrot.slane %v8506_v40, 9 }
 0x4d9   : > { %12366 = vmatprep.mubr.bf16.mxu1 %v11195_v11  ;;  %v11890_v7 = vpop.f32.mrb[163].mxu1  ;;  %v8655_v16 = vrot.slane %v8653_v9, 4 }
 0x4da   : > { %v15762_v35 = vadd.f32 %v12000_v44, %v11888_v25  ;;  %v11891_v47 = vadd.f32 %v11890_v7, %v11889_v19  ;;  %v12004_v18 = vpop.f32.mrb[196].mxu0  ;;  %v8511_v44 = vld [vmem:[#allocation2 + $0x80] sm:$0x1]  ;;  %v8633_v7 = vsel %vm13145_vm13, %v11182_v21, %v8632_v38 }
 0x4db   : > { %v12005_v51 = vpop.f32.mrb[197].mxu0  ;;  %v8642_v50 = vrot.slane %v8511_v44, 5 }
 0x4dc   : > { %v15768_v26 = vadd.f32 %v12003_v63, %v11891_v47  ;;  %v12006_v54 = vadd.f32 %v12005_v51, %v12004_v18  ;;  %v12007_v34 = vpop.f32.mrb[198].mxu0  ;;  %v8636_v63 = vsel %vm13145_vm13, %v8634_v6, %v8635_v33  ;;  %v8640_v47 = vsel %vm13145_vm13, %v11183_v42, %v8639_v37  ;;  %v8514_v18 = vld [vmem:[#allocation2 + $0x8c] sm:$0x1] }
 0x4dd   : > { %v12008_v32 = vpop.f32.mrb[199].mxu0  ;;  %v8643_v19 = vsel %vm13145_vm13, %v8641_v56, %v8642_v50  ;;  %v11198_v10 = vcombine.low %v8633_v7, %v8636_v63  ;;  %v8649_v6 = vrot.slane %v8514_v18, 5  ;;  %v8522_v37 = vld [vmem:[#allocation2 + $0xac] sm:$0xf] }
 0x4de   : > { %v11892_v28 = vpop.f32.mrb[164].mxu1  ;;  %v12009_v4 = vadd.f32 %v12008_v32, %v12007_v34  ;;  %v11199_v52 = vcombine.low %v8640_v47, %v8643_v19  ;;  %v8515_v34 = vld [vmem:[#allocation2 + $0x90] sm:$0xe]  ;;  %v8519_v32 = vld [vmem:[#allocation2 + $0xa0] sm:$0xf] }
 0x4df   : > { %v11893_v22 = vpop.f32.mrb[165].mxu1  ;;  %v11185_v44 = vrot.slane %v8515_v34, 9  ;;  %v8518_v19 = vld [vmem:[#allocation2 + $0x9c] sm:$0xe]  ;;  %v8521_v47 = vld [vmem:[#allocation2 + $0xa8] sm:$0xe] }
 0x4e0   : > { %12367 = vmatmul.mubr.bf16.gmra.mrb[8].mxu1 %v11196_v59  ;;  %v11894_v41 = vadd.f32 %v11893_v22, %v11892_v28  ;;  %v11895_v23 = vpop.f32.mrb[166].mxu1  ;;  %v8517_v59 = vld [vmem:[#allocation2 + $0x98] sm:$0x1]  ;;  %v11186_v34 = vrot.slane %v8518_v19, 9 }
 0x4e1   : > { %12370 = vmatprep.mubr.bf16.mxu1 %v11197_v39  ;;  %v11896_v11 = vpop.f32.mrb[167].mxu1  ;;  %v11184_v39 = vrot.slane %v8512_v58, 9  ;;  %v8656_v22 = vrot.slane %v8517_v59, 5  ;;  %v8523_v58 = vld [vmem:[#allocation2 + $0xb0] sm:$0x1] }
 0x4e2   : > { %v15774_v13 = vadd.f32 %v12006_v54, %v11894_v41  ;;  %v11897_v57 = vadd.f32 %v11896_v11, %v11895_v23  ;;  %v12010_v25 = vpop.f32.mrb[200].mxu0  ;;  %v8648_v54 = vrot.slane %v8646_v53, 4  ;;  %v8660_v23 = vrot.slane %v8519_v32, 5 }
 0x4e3   : > { %v12011_v55 = vpop.f32.mrb[201].mxu0  ;;  %v8657_v21 = vsel %vm13145_vm13, %v8655_v16, %v8656_v22  ;;  %v8667_v11 = vrot.slane %v8522_v37, 5  ;;  %v8647_v42 = vsel %vm13145_vm13, %v11184_v39, %v8646_v53  ;;  %v8670_v16 = vrot.slane %v8523_v58, 5 }
 0x4e4   : > { %v15780_v48 = vadd.f32 %v12009_v4, %v11897_v57  ;;  %v12012_v3 = vadd.f32 %v12011_v55, %v12010_v25  ;;  %v12013_v5 = vpop.f32.mrb[202].mxu0  ;;  %v8650_v41 = vsel %vm13145_vm13, %v8648_v54, %v8649_v6  ;;  %v8654_v25 = vsel %vm13145_vm13, %v11185_v44, %v8653_v9  ;;  %v8520_v55 = vld [vmem:[#allocation2 + $0xa4] sm:$0x1]  ;;  %v8525_v54 = vld [vmem:[#allocation2 + $0xb8] sm:$0xf] }
 0x4e5   : > { %v12014_v51 = vpop.f32.mrb[203].mxu0  ;;  %v11200_v63 = vcombine.low %v8647_v42, %v8650_v41  ;;  %v8663_v59 = vrot.slane %v8520_v55, 5  ;;  %v8528_v9 = vld [vmem:[#allocation2 + $0xc4] sm:$0xf]  ;;  %v8674_v39 = vrot.slane %v8525_v54, 5 }
 0x4e6   : > { %v11898_v15 = vpop.f32.mrb[168].mxu1  ;;  %v12015_v40 = vadd.f32 %v12014_v51, %v12013_v5  ;;  %v11201_v5 = vcombine.low %v8654_v25, %v8657_v21  ;;  %v8669_v51 = vrot.slane %v8667_v11, 4  ;;  %v8681_v44 = vrot.slane %v8528_v9, 5  ;;  %v8524_v41 = vld [vmem:[#allocation2 + $0xb4] sm:$0xe] }
 0x4e7   : > { %v11899_v2 = vpop.f32.mrb[169].mxu1  ;;  %v8531_v25 = vld [vmem:[#allocation2 + $0xd0] sm:$0xf]  ;;  %v8676_v55 = vrot.slane %v8674_v39, 4 }
 0x4e8   : > { %12371 = vmatmul.mubr.bf16.gmra.mrb[12].mxu1 %v11198_v10  ;;  %v11900_v28 = vadd.f32 %v11899_v2, %v11898_v15  ;;  %v11901_v38 = vpop.f32.mrb[170].mxu1  ;;  %v8662_v10 = vrot.slane %v8660_v23, 4 }
 0x4e9   : > { %12374 = vmatprep.mubr.bf16.mxu1 %v11199_v52  ;;  %v11902_v30 = vpop.f32.mrb[171].mxu1 }
 0x4ea   : > { %v15786_v4 = vadd.f32 %v12012_v3, %v11900_v28  ;;  %v11903_v56 = vadd.f32 %v11902_v30, %v11901_v38  ;;  %v12016_v20 = vpop.f32.mrb[204].mxu0  ;;  %v8664_v32 = vsel %vm13145_vm13, %v8662_v10, %v8663_v59  ;;  %v8671_v30 = vsel %vm13145_vm13, %v8669_v51, %v8670_v16  ;;  %v8530_v59 = vld [vmem:[#allocation2 + $0xcc] sm:$0xe] }
 0x4eb   : > { %v12017_v49 = vpop.f32.mrb[205].mxu0 }
 0x4ec   : > { %v15792_v33 = vadd.f32 %v12015_v40, %v11903_v56  ;;  %v12018_v50 = vadd.f32 %v12017_v49, %v12016_v20  ;;  %v12019_v57 = vpop.f32.mrb[206].mxu0  ;;  %v11187_v40 = vrot.slane %v8521_v47, 9  ;;  %v8661_v56 = vsel %vm13145_vm13, %v11186_v34, %v8660_v23 }
 0x4ed   : > { %v12020_v3 = vpop.f32.mrb[207].mxu0  ;;  %v11202_v49 = vcombine.low %v8661_v56, %v8664_v32  ;;  %v11188_v47 = vrot.slane %v8524_v41, 9  ;;  %v8683_v23 = vrot.slane %v8681_v44, 4 }
 0x4ee   : > { %v11904_v7 = vpop.f32.mrb[172].mxu1  ;;  %v12021_v15 = vadd.f32 %v12020_v3, %v12019_v57  ;;  %v8668_v42 = vsel %vm13145_vm13, %v11187_v40, %v8667_v11  ;;  %v8529_v3 = vld [vmem:[#allocation2 + $0xc8] sm:$0x1] }
 0x4ef   : > { %v11905_v18 = vpop.f32.mrb[173].mxu1  ;;  %v11203_v19 = vcombine.low %v8668_v42, %v8671_v30  ;;  %v8675_v16 = vsel %vm13145_vm13, %v11188_v47, %v8674_v39  ;;  %v11190_v30 = vrot.slane %v8530_v59, 9 }
 0x4f0   : > { %12375 = vmatmul.mubr.bf16.gmra.mrb[16].mxu1 %v11200_v63  ;;  %v11906_v52 = vadd.f32 %v11905_v18, %v11904_v7  ;;  %v11907_v53 = vpop.f32.mrb[174].mxu1  ;;  %v8527_v7 = vld [vmem:[#allocation2 + $0xc0] sm:$0xe] }
 0x4f1   : > { %12378 = vmatprep.mubr.bf16.mxu1 %v11201_v5  ;;  %v11908_v2 = vpop.f32.mrb[175].mxu1  ;;  %v11189_v11 = vrot.slane %v8527_v7, 9 }
 0x4f2   : > { %v15798_v28 = vadd.f32 %v12018_v50, %v11906_v52  ;;  %v11909_v38 = vadd.f32 %v11908_v2, %v11907_v53  ;;  %v12022_v6 = vpop.f32.mrb[208].mxu0  ;;  %v8526_v50 = vld [vmem:[#allocation2 + $0xbc] sm:$0x1]  ;;  %v8688_v52 = vrot.slane %v8531_v25, 5  ;;  %v8684_v53 = vrot.slane %v8529_v3, 5 }
 0x4f3   : > { %v12023_v22 = vpop.f32.mrb[209].mxu0  ;;  %v8532_v2 = vld [vmem:[#allocation2 + $0xd4] sm:$0x1] }
 0x4f4   : > { %v15804_v37 = vadd.f32 %v12021_v15, %v11909_v38  ;;  %v12024_v20 = vadd.f32 %v12023_v22, %v12022_v6  ;;  %v12025_v21 = vpop.f32.mrb[210].mxu0  ;;  %v8677_v15 = vrot.slane %v8526_v50, 5  ;;  %v8685_v38 = vsel %vm13145_vm13, %v8683_v23, %v8684_v53 }
 0x4f5   : > { %v12026_v63 = vpop.f32.mrb[211].mxu0  ;;  %v8690_v22 = vrot.slane %v8688_v52, 4  ;;  %v8691_v56 = vrot.slane %v8532_v2, 5 }
 0x4f6   : > { %v11910_v57 = vpop.f32.mrb[176].mxu1  ;;  %v12027_v10 = vadd.f32 %v12026_v63, %v12025_v21  ;;  %v8678_v9 = vsel %vm13145_vm13, %v8676_v55, %v8677_v15  ;;  %v8689_v55 = vsel %vm13145_vm13, %v11190_v30, %v8688_v52 }
 0x4f7   : > { %v11911_v5 = vpop.f32.mrb[177].mxu1  ;;  %v11204_v21 = vcombine.low %v8675_v16, %v8678_v9  ;;  %v8692_v7 = vsel %vm13145_vm13, %v8690_v22, %v8691_v56 }
 0x4f8   : > { %12379 = vmatmul.mubr.bf16.gmra.mrb[20].mxu1 %v11202_v49  ;;  %v11912_v58 = vadd.f32 %v11911_v5, %v11910_v57  ;;  %v11913_v18 = vpop.f32.mrb[178].mxu1  ;;  %v8682_v49 = vsel %vm13145_vm13, %v11189_v11, %v8681_v44  ;;  %v11206_v47 = vcombine.low %v8689_v55, %v8692_v7 }
 0x4f9   : > { %12382 = vmatprep.mubr.bf16.mxu1 %v11203_v19  ;;  %v11914_v51 = vpop.f32.mrb[179].mxu1  ;;  %v11205_v57 = vcombine.low %v8682_v49, %v8685_v38 }
 0x4fa   : > { %v15810_v54 = vadd.f32 %v12024_v20, %v11912_v58  ;;  %v11915_v34 = vadd.f32 %v11914_v51, %v11913_v18  ;;  %v12028_v40 = vpop.f32.mrb[212].mxu0 }
 0x4fb   : > { %v12029_v6 = vpop.f32.mrb[213].mxu0 }
 0x4fc   : > { %v15818_v32 = vadd.f32 %v12027_v10, %v11915_v34  ;;  %v12030_v41 = vadd.f32 %v12029_v6, %v12028_v40  ;;  %v12031_v20 = vpop.f32.mrb[214].mxu0 }
 0x4fd   : > { %v12032_v50 = vpop.f32.mrb[215].mxu0 }
 0x4fe   : > { %v11916_v42 = vpop.f32.mrb[180].mxu1  ;;  %v12033_v39 = vadd.f32 %v12032_v50, %v12031_v20 }
 0x4ff   : > { %v11917_v63 = vpop.f32.mrb[181].mxu1 }
 0x500   : > { %12383 = vmatmul.mubr.bf16.gmra.mrb[24].mxu1 %v11204_v21  ;;  %v11918_v25 = vadd.f32 %v11917_v63, %v11916_v42  ;;  %v11919_v19 = vpop.f32.mrb[182].mxu1 }
 0x501   : > { %12386 = vmatprep.mubr.bf16.mxu1 %v11205_v57  ;;  %v11920_v3 = vpop.f32.mrb[183].mxu1 }
 0x502   : > { %v15826_v5 = vadd.f32 %v12030_v41, %v11918_v25  ;;  %v11921_v10 = vadd.f32 %v11920_v3, %v11919_v19  ;;  %v12034_v44 = vpop.f32.mrb[216].mxu0 }
 0x503   : > { %v12035_v58 = vpop.f32.mrb[217].mxu0 }
 0x504   : > { %v15828_v23 = vadd.f32 %v12033_v39, %v11921_v10  ;;  %v12036_v18 = vadd.f32 %v12035_v58, %v12034_v44  ;;  %v12037_v15 = vpop.f32.mrb[218].mxu0 }
 0x505   : > { %v12038_v11 = vpop.f32.mrb[219].mxu0 }
 0x506   : > { %v11922_v51 = vpop.f32.mrb[184].mxu1  ;;  %v12039_v34 = vadd.f32 %v12038_v11, %v12037_v15 }
 0x507   : > { %v11923_v53 = vpop.f32.mrb[185].mxu1 }
 0x508   : > { %12387 = vmatmul.mubr.bf16.gmra.mrb[28].mxu1 %v11206_v47  ;;  %v11924_v52 = vadd.f32 %v11923_v53, %v11922_v51  ;;  %v11925_v59 = vpop.f32.mrb[186].mxu1 }
 0x509   : > { %v11926_v46 = vpop.f32.mrb[187].mxu1 }
 0x50a   : > { %v15830_v2 = vadd.f32 %v12036_v18, %v11924_v52  ;;  %v11927_v9 = vadd.f32 %v11926_v46, %v11925_v59  ;;  %v12040_v40 = vpop.f32.mrb[220].mxu0 }
 0x50b   : > { %v12041_v38 = vpop.f32.mrb[221].mxu0 }
 0x50c   : > { %v15832_v16 = vadd.f32 %v12039_v34, %v11927_v9  ;;  %v12042_v6 = vadd.f32 %v12041_v38, %v12040_v40  ;;  %v12043_v30 = vpop.f32.mrb[222].mxu0 }
 0x50d   : > { %v12044_v56 = vpop.f32.mrb[223].mxu0 }
 0x50e   : > { %v11928_v22 = vpop.f32.mrb[188].mxu1  ;;  %v12045_v20 = vadd.f32 %v12044_v56, %v12043_v30 }
 0x50f   : > { %v11929_v41 = vpop.f32.mrb[189].mxu1 }
 0x510   : > { %v11930_v21 = vadd.f32 %v11929_v41, %v11928_v22  ;;  %v11931_v49 = vpop.f32.mrb[190].mxu1 }
 0x511   : > { %v11932_v42 = vpop.f32.mrb[191].mxu1 }
 0x512   : > { %v15834_v50 = vadd.f32 %v12042_v6, %v11930_v21  ;;  %v11933_v57 = vadd.f32 %v11932_v42, %v11931_v49  ;;  %v12174_v63 = vpop.f32.mrb[224].mxu0 }
 0x513   : > { %v12175_v25 = vpop.f32.mrb[225].mxu0 }
 0x514   : > { %v15836_v39 = vadd.f32 %v12045_v20, %v11933_v57  ;;  %v12176_v19 = vadd.f32 %v12175_v25, %v12174_v63  ;;  %v12177_v55 = vpop.f32.mrb[226].mxu0 }
 0x515   : > { %v12178_v3 = vpop.f32.mrb[227].mxu0 }
 0x516   : > { %v12062_v7 = vpop.f32.mrb[192].mxu1  ;;  %v12179_v44 = vadd.f32 %v12178_v3, %v12177_v55 }
 0x517   : > { %v12063_v10 = vpop.f32.mrb[193].mxu1 }
 0x518   : > { %v12064_v47 = vadd.f32 %v12063_v10, %v12062_v7  ;;  %v12065_v58 = vpop.f32.mrb[194].mxu1 }
 0x519   : > { %v12066_v18 = vpop.f32.mrb[195].mxu1 }
 0x51a   : > { %v9850_v15 = vadd.f32 %v12064_v47, %v15658_v60  ;;  %v12067_v51 = vadd.f32 %v12066_v18, %v12065_v58  ;;  %v12180_v11 = vpop.f32.mrb[228].mxu0 }
 0x51b   : > { %v12181_v34 = vpop.f32.mrb[229].mxu0 }
 0x51c   : > { %v9853_v53 = vadd.f32 %v12067_v51, %v15664_v43  ;;  %v12182_v52 = vadd.f32 %v12181_v34, %v12180_v11  ;;  %v12183_v59 = vpop.f32.mrb[230].mxu0  ;;  %v15844_v43 = vadd.f32 %v12176_v19, %v9850_v15 }
 0x51d   : > { %v12184_v9 = vpop.f32.mrb[231].mxu0 }
 0x51e   : > { %v12068_v46 = vpop.f32.mrb[196].mxu1  ;;  %v12185_v38 = vadd.f32 %v12184_v9, %v12183_v59  ;;  %v15848_v7 = vadd.f32 %v12179_v44, %v9853_v53 }
 0x51f   : > { %v12069_v40 = vpop.f32.mrb[197].mxu1 }
 0x520   : > { %v12070_v6 = vadd.f32 %v12069_v40, %v12068_v46  ;;  %v12071_v30 = vpop.f32.mrb[198].mxu1 }
 0x521   : > { %v12072_v22 = vpop.f32.mrb[199].mxu1 }
 0x522   : > { %v9858_v56 = vadd.f32 %v12070_v6, %v15674_v14  ;;  %v12073_v41 = vadd.f32 %v12072_v22, %v12071_v30  ;;  %v12186_v20 = vpop.f32.mrb[232].mxu0 }
 0x523   : > { %v12187_v21 = vpop.f32.mrb[233].mxu0 }
 0x524   : > { %v9861_v60 = vadd.f32 %v12073_v41, %v15678_v1  ;;  %v15842_v49 = vadd.f32 %v12182_v52, %v9858_v56  ;;  %v12188_v42 = vadd.f32 %v12187_v21, %v12186_v20  ;;  %v12189_v57 = vpop.f32.mrb[234].mxu0 }
 0x525   : > { %v12190_v25 = vpop.f32.mrb[235].mxu0 }
 0x526   : > { %v12074_v63 = vpop.f32.mrb[200].mxu1  ;;  %v15846_v55 = vadd.f32 %v12185_v38, %v9861_v60  ;;  %v12191_v10 = vadd.f32 %v12190_v25, %v12189_v57 }
 0x527   : > { %v12075_v3 = vpop.f32.mrb[201].mxu1 }
 0x528   : > { %v12076_v14 = vadd.f32 %v12075_v3, %v12074_v63  ;;  %v12077_v47 = vpop.f32.mrb[202].mxu1 }
 0x529   : > { %v12078_v58 = vpop.f32.mrb[203].mxu1 }
 0x52a   : > { %v9866_v1 = vadd.f32 %v12076_v14, %v15690_v31  ;;  %v12079_v18 = vadd.f32 %v12078_v58, %v12077_v47  ;;  %v12192_v51 = vpop.f32.mrb[236].mxu0 }
 0x52b   : > { %v12193_v15 = vpop.f32.mrb[237].mxu0 }
 0x52c   : > { %v9869_v19 = vadd.f32 %v12079_v18, %v15692_v61  ;;  %v15852_v11 = vadd.f32 %v12188_v42, %v9866_v1  ;;  %v12194_v34 = vadd.f32 %v12193_v15, %v12192_v51  ;;  %v12195_v52 = vpop.f32.mrb[238].mxu0 }
 0x52d   : > { %v12196_v46 = vpop.f32.mrb[239].mxu0 }
 0x52e   : > { %v12080_v59 = vpop.f32.mrb[204].mxu1  ;;  %v12197_v53 = vadd.f32 %v12196_v46, %v12195_v52  ;;  %v15854_v9 = vadd.f32 %v12191_v10, %v9869_v19 }
 0x52f   : > { %v12081_v44 = vpop.f32.mrb[205].mxu1 }
 0x530   : > { %v12082_v40 = vadd.f32 %v12081_v44, %v12080_v59  ;;  %v12083_v38 = vpop.f32.mrb[206].mxu1 }
 0x531   : > { %v12084_v6 = vpop.f32.mrb[207].mxu1 }
 0x532   : > { %v9874_v31 = vadd.f32 %v12082_v40, %v15704_v27  ;;  %v12085_v30 = vadd.f32 %v12084_v6, %v12083_v38  ;;  %v12198_v22 = vpop.f32.mrb[240].mxu0 }
 0x533   : > { %v12199_v56 = vpop.f32.mrb[241].mxu0 }
 0x534   : > { %v9877_v61 = vadd.f32 %v12085_v30, %v15708_v62  ;;  %v15858_v41 = vadd.f32 %v12194_v34, %v9874_v31  ;;  %v12200_v20 = vadd.f32 %v12199_v56, %v12198_v22  ;;  %v12201_v60 = vpop.f32.mrb[242].mxu0 }
 0x535   : > { %v12202_v42 = vpop.f32.mrb[243].mxu0 }
 0x536   : > { %v12086_v21 = vpop.f32.mrb[208].mxu1  ;;  %v15860_v57 = vadd.f32 %v12197_v53, %v9877_v61  ;;  %v12203_v25 = vadd.f32 %v12202_v42, %v12201_v60 }
 0x537   : > { %v12087_v63 = vpop.f32.mrb[209].mxu1 }
 0x538   : > { %v12088_v3 = vadd.f32 %v12087_v63, %v12086_v21  ;;  %v12089_v10 = vpop.f32.mrb[210].mxu1 }
 0x539   : > { %v12090_v14 = vpop.f32.mrb[211].mxu1 }
 0x53a   : > { %v9882_v27 = vadd.f32 %v12088_v3, %v15712_v0  ;;  %v12091_v47 = vadd.f32 %v12090_v14, %v12089_v10  ;;  %v12204_v58 = vpop.f32.mrb[244].mxu0 }
 0x53b   : > { %v12205_v1 = vpop.f32.mrb[245].mxu0 }
 0x53c   : > { %v9885_v62 = vadd.f32 %v12091_v47, %v15718_v45  ;;  %v15864_v18 = vadd.f32 %v12200_v20, %v9882_v27  ;;  %v12206_v51 = vadd.f32 %v12205_v1, %v12204_v58  ;;  %v12207_v19 = vpop.f32.mrb[246].mxu0 }
 0x53d   : > { %v12208_v34 = vpop.f32.mrb[247].mxu0 }
 0x53e   : > { %v12092_v15 = vpop.f32.mrb[212].mxu1  ;;  %v15866_v52 = vadd.f32 %v12203_v25, %v9885_v62  ;;  %v12209_v46 = vadd.f32 %v12208_v34, %v12207_v19 }
 0x53f   : > { %v12093_v59 = vpop.f32.mrb[213].mxu1 }
 0x540   : > { %v12094_v44 = vadd.f32 %v12093_v59, %v12092_v15  ;;  %v12095_v53 = vpop.f32.mrb[214].mxu1 }
 0x541   : > { %v12096_v40 = vpop.f32.mrb[215].mxu1 }
 0x542   : > { %v9890_v0 = vadd.f32 %v12094_v44, %v15732_v8  ;;  %v12097_v38 = vadd.f32 %v12096_v40, %v12095_v53  ;;  %v12210_v6 = vpop.f32.mrb[248].mxu0 }
 0x543   : > { %v12211_v31 = vpop.f32.mrb[249].mxu0 }
 0x544   : > { %v9893_v45 = vadd.f32 %v12097_v38, %v15736_v24  ;;  %v15870_v30 = vadd.f32 %v12206_v51, %v9890_v0  ;;  %v12212_v22 = vadd.f32 %v12211_v31, %v12210_v6  ;;  %v12213_v61 = vpop.f32.mrb[250].mxu0 }
 0x545   : > { %v12214_v20 = vpop.f32.mrb[251].mxu0 }
 0x546   : > { %v12098_v56 = vpop.f32.mrb[216].mxu1  ;;  %v15872_v60 = vadd.f32 %v12209_v46, %v9893_v45  ;;  %v12215_v42 = vadd.f32 %v12214_v20, %v12213_v61 }
 0x547   : > { %v12099_v21 = vpop.f32.mrb[217].mxu1 }
 0x548   : > { %v12100_v63 = vadd.f32 %v12099_v21, %v12098_v56  ;;  %v12101_v25 = vpop.f32.mrb[218].mxu1 }
 0x549   : > { %v12102_v3 = vpop.f32.mrb[219].mxu1 }
 0x54a   : > { %v9898_v8 = vadd.f32 %v12100_v63, %v15738_v29  ;;  %v12103_v10 = vadd.f32 %v12102_v3, %v12101_v25  ;;  %v12216_v14 = vpop.f32.mrb[252].mxu0 }
 0x54b   : > { %v12217_v27 = vpop.f32.mrb[253].mxu0 }
 0x54c   : > { %v9901_v24 = vadd.f32 %v12103_v10, %v15742_v17  ;;  %v15876_v47 = vadd.f32 %v12212_v22, %v9898_v8  ;;  %v12218_v58 = vadd.f32 %v12217_v27, %v12216_v14  ;;  %v12219_v62 = vpop.f32.mrb[254].mxu0 }
 0x54d   : > { %v12220_v51 = vpop.f32.mrb[255].mxu0 }
 0x54e   : > { %v12104_v1 = vpop.f32.mrb[220].mxu1  ;;  %v15878_v19 = vadd.f32 %v12215_v42, %v9901_v24  ;;  %v12221_v34 = vadd.f32 %v12220_v51, %v12219_v62 }
 0x54f   : > { %v12105_v15 = vpop.f32.mrb[221].mxu1 }
 0x550   : > { %v12106_v59 = vadd.f32 %v12105_v15, %v12104_v1  ;;  %v12107_v46 = vpop.f32.mrb[222].mxu1 }
 0x551   : > { %v12108_v44 = vpop.f32.mrb[223].mxu1 }
 0x552   : > { %v9906_v29 = vadd.f32 %v12106_v59, %v15750_v12  ;;  %v12109_v53 = vadd.f32 %v12108_v44, %v12107_v46  ;;  %v12222_v40 = vpop.f32.mrb[0].mxu0 }
 0x553   : > { %v12223_v0 = vpop.f32.mrb[1].mxu0 }
 0x554   : > { %v9909_v17 = vadd.f32 %v12109_v53, %v15756_v36  ;;  %v15882_v38 = vadd.f32 %v12218_v58, %v9906_v29  ;;  %v12224_v6 = vadd.f32 %v12223_v0, %v12222_v40  ;;  %v12225_v45 = vpop.f32.mrb[2].mxu0 }
 0x555   : > { %v12226_v22 = vpop.f32.mrb[3].mxu0 }
 0x556   : > { %v12110_v31 = vpop.f32.mrb[224].mxu1  ;;  %v15884_v61 = vadd.f32 %v12221_v34, %v9909_v17  ;;  %v12227_v20 = vadd.f32 %v12226_v22, %v12225_v45 }
 0x557   : > { %v12111_v56 = vpop.f32.mrb[225].mxu1 }
 0x558   : > { %v12112_v21 = vadd.f32 %v12111_v56, %v12110_v31  ;;  %v12113_v42 = vpop.f32.mrb[226].mxu1 }
 0x559   : > { %v12114_v63 = vpop.f32.mrb[227].mxu1 }
 0x55a   : > { %v9914_v12 = vadd.f32 %v12112_v21, %v15762_v35  ;;  %v12115_v25 = vadd.f32 %v12114_v63, %v12113_v42  ;;  %v12228_v3 = vpop.f32.mrb[4].mxu0 }
 0x55b   : > { %v12229_v8 = vpop.f32.mrb[5].mxu0 }
 0x55c   : > { %v9917_v36 = vadd.f32 %v12115_v25, %v15768_v26  ;;  %v15888_v10 = vadd.f32 %v12224_v6, %v9914_v12  ;;  %v12230_v14 = vadd.f32 %v12229_v8, %v12228_v3  ;;  %v12231_v24 = vpop.f32.mrb[6].mxu0 }
 0x55d   : > { %v12232_v58 = vpop.f32.mrb[7].mxu0 }
 0x55e   : > { %v12116_v27 = vpop.f32.mrb[228].mxu1  ;;  %v15890_v62 = vadd.f32 %v12227_v20, %v9917_v36  ;;  %v12233_v51 = vadd.f32 %v12232_v58, %v12231_v24 }
 0x55f   : > { %v12117_v1 = vpop.f32.mrb[229].mxu1 }
 0x560   : > { %v12118_v15 = vadd.f32 %v12117_v1, %v12116_v27  ;;  %v12119_v34 = vpop.f32.mrb[230].mxu1 }
 0x561   : > { %v12120_v59 = vpop.f32.mrb[231].mxu1 }
 0x562   : > { %v9922_v35 = vadd.f32 %v12118_v15, %v15774_v13  ;;  %v12121_v46 = vadd.f32 %v12120_v59, %v12119_v34  ;;  %v12234_v44 = vpop.f32.mrb[8].mxu0 }
 0x563   : > { %v12235_v29 = vpop.f32.mrb[9].mxu0 }
 0x564   : > { %v9925_v26 = vadd.f32 %v12121_v46, %v15780_v48  ;;  %v15894_v53 = vadd.f32 %v12230_v14, %v9922_v35  ;;  %v12236_v40 = vadd.f32 %v12235_v29, %v12234_v44  ;;  %v12237_v17 = vpop.f32.mrb[10].mxu0 }
 0x565   : > { %v12238_v6 = vpop.f32.mrb[11].mxu0 }
 0x566   : > { %v12122_v0 = vpop.f32.mrb[232].mxu1  ;;  %v15896_v45 = vadd.f32 %v12233_v51, %v9925_v26  ;;  %v12239_v22 = vadd.f32 %v12238_v6, %v12237_v17 }
 0x567   : > { %v12123_v31 = vpop.f32.mrb[233].mxu1 }
 0x568   : > { %v12124_v56 = vadd.f32 %v12123_v31, %v12122_v0  ;;  %v12125_v20 = vpop.f32.mrb[234].mxu1 }
 0x569   : > { %v12126_v21 = vpop.f32.mrb[235].mxu1 }
 0x56a   : > { %v9930_v13 = vadd.f32 %v12124_v56, %v15786_v4  ;;  %v12127_v42 = vadd.f32 %v12126_v21, %v12125_v20  ;;  %v12240_v63 = vpop.f32.mrb[12].mxu0 }
 0x56b   : > { %v12241_v12 = vpop.f32.mrb[13].mxu0 }
 0x56c   : > { %v9933_v48 = vadd.f32 %v12127_v42, %v15792_v33  ;;  %v15900_v25 = vadd.f32 %v12236_v40, %v9930_v13  ;;  %v12242_v3 = vadd.f32 %v12241_v12, %v12240_v63  ;;  %v12243_v36 = vpop.f32.mrb[14].mxu0 }
 0x56d   : > { %v12244_v14 = vpop.f32.mrb[15].mxu0 }
 0x56e   : > { %v12128_v8 = vpop.f32.mrb[236].mxu1  ;;  %v15902_v24 = vadd.f32 %v12239_v22, %v9933_v48  ;;  %v12245_v58 = vadd.f32 %v12244_v14, %v12243_v36 }
 0x56f   : > { %v12129_v27 = vpop.f32.mrb[237].mxu1 }
 0x570   : > { %v12130_v1 = vadd.f32 %v12129_v27, %v12128_v8  ;;  %v12131_v51 = vpop.f32.mrb[238].mxu1 }
 0x571   : > { %v12132_v15 = vpop.f32.mrb[239].mxu1 }
 0x572   : > { %v9938_v4 = vadd.f32 %v12130_v1, %v15798_v28  ;;  %v12133_v34 = vadd.f32 %v12132_v15, %v12131_v51 }
 0x573   : > { %v12246_v59 = vpop.f32.mrb[16].mxu0 }
 0x574   : > { %v9941_v33 = vadd.f32 %v12133_v34, %v15804_v37  ;;  %v12247_v35 = vpop.f32.mrb[17].mxu0  ;;  %v15906_v46 = vadd.f32 %v12242_v3, %v9938_v4 }
 0x575   : > { %v12248_v44 = vadd.f32 %v12247_v35, %v12246_v59  ;;  %v12249_v26 = vpop.f32.mrb[18].mxu0 }
 0x576   : > { %v12250_v29 = vpop.f32.mrb[19].mxu0  ;;  %v15908_v40 = vadd.f32 %v12245_v58, %v9941_v33 }
 0x577   : > { %v12251_v17 = vadd.f32 %v12250_v29, %v12249_v26 }
 0x57a   : > { %v12134_v0 = vpop.f32.mrb[240].mxu1 }
 0x57b   : > { %v12135_v6 = vpop.f32.mrb[241].mxu1 }
 0x57c   : > { %v12136_v31 = vadd.f32 %v12135_v6, %v12134_v0  ;;  %v12137_v22 = vpop.f32.mrb[242].mxu1 }
 0x57d   : > { %v12138_v56 = vpop.f32.mrb[243].mxu1 }
 0x57e   : > { %v9946_v28 = vadd.f32 %v12136_v31, %v15810_v54  ;;  %v12139_v20 = vadd.f32 %v12138_v56, %v12137_v22  ;;  %v12252_v21 = vpop.f32.mrb[20].mxu0 }
 0x57f   : > { %v12253_v13 = vpop.f32.mrb[21].mxu0 }
 0x580   : > { %v9949_v37 = vadd.f32 %v12139_v20, %v15818_v32  ;;  %v12254_v42 = vadd.f32 %v12253_v13, %v12252_v21  ;;  %v12255_v63 = vpop.f32.mrb[22].mxu0  ;;  %v15912_v48 = vadd.f32 %v12248_v44, %v9946_v28 }
 0x581   : > { %v12256_v12 = vpop.f32.mrb[23].mxu0 }
 0x582   : > { %v12257_v3 = vadd.f32 %v12256_v12, %v12255_v63  ;;  %v15914_v36 = vadd.f32 %v12251_v17, %v9949_v37 }
 0x587   : > { %v12140_v8 = vpop.f32.mrb[244].mxu1 }
 0x588   : > { %v12141_v14 = vpop.f32.mrb[245].mxu1 }
 0x589   : > { %v12142_v27 = vadd.f32 %v12141_v14, %v12140_v8  ;;  %v12143_v58 = vpop.f32.mrb[246].mxu1 }
 0x58a   : > { %v12144_v1 = vpop.f32.mrb[247].mxu1 }
 0x58b   : > { %v9954_v54 = vadd.f32 %v12142_v27, %v15826_v5  ;;  %v12145_v51 = vadd.f32 %v12144_v1, %v12143_v58  ;;  %v12258_v15 = vpop.f32.mrb[24].mxu0 }
 0x58c   : > { %v12259_v4 = vpop.f32.mrb[25].mxu0 }
 0x58d   : > { %v9957_v32 = vadd.f32 %v12145_v51, %v15828_v23  ;;  %v12260_v34 = vadd.f32 %v12259_v4, %v12258_v15  ;;  %v12261_v59 = vpop.f32.mrb[26].mxu0  ;;  %v15918_v33 = vadd.f32 %v12254_v42, %v9954_v54 }
 0x58e   : > { %v12262_v35 = vpop.f32.mrb[27].mxu0 }
 0x58f   : > { %v12263_v44 = vadd.f32 %v12262_v35, %v12261_v59  ;;  %v15920_v26 = vadd.f32 %v12257_v3, %v9957_v32 }
 0x593   : > { %v12146_v29 = vpop.f32.mrb[248].mxu1 }
 0x594   : > { %v12147_v17 = vpop.f32.mrb[249].mxu1 }
 0x595   : > { %v12148_v0 = vadd.f32 %v12147_v17, %v12146_v29  ;;  %v12149_v6 = vpop.f32.mrb[250].mxu1 }
 0x596   : > { %v12150_v31 = vpop.f32.mrb[251].mxu1 }
 0x597   : > { %v9962_v5 = vadd.f32 %v12148_v0, %v15830_v2  ;;  %v12151_v22 = vadd.f32 %v12150_v31, %v12149_v6 }
 0x599   : > { %v9965_v56 = vadd.f32 %v12151_v22, %v15832_v16  ;;  %v15924_v28 = vadd.f32 %v12260_v34, %v9962_v5 }
 0x59b   : > { %v12152_v23 = vpop.f32.mrb[252].mxu1  ;;  %v15926_v20 = vadd.f32 %v12263_v44, %v9965_v56 }
 0x59c   : > { %v12153_v21 = vpop.f32.mrb[253].mxu1 }
 0x59d   : > { %v12154_v13 = vadd.f32 %v12153_v21, %v12152_v23  ;;  %v12155_v37 = vpop.f32.mrb[254].mxu1 }
 0x59e   : > { %v12264_v42 = vpop.f32.mrb[28].mxu0  ;;  %v12156_v63 = vpop.f32.mrb[255].mxu1 }
 0x59f   : > { %v9970_v12 = vadd.f32 %v12154_v13, %v15834_v50  ;;  %v12157_v3 = vadd.f32 %v12156_v63, %v12155_v37  ;;  %v12265_v8 = vpop.f32.mrb[29].mxu0 }
 0x5a0   : > { %v12266_v14 = vadd.f32 %v12265_v8, %v12264_v42  ;;  %v12267_v27 = vpop.f32.mrb[30].mxu0 }
 0x5a1   : > { %v9973_v2 = vadd.f32 %v12157_v3, %v15836_v39  ;;  %v12268_v58 = vpop.f32.mrb[31].mxu0 }
 0x5a2   : > { %v12269_v16 = vadd.f32 %v12268_v58, %v12267_v27  ;;  %v15930_v1 = vadd.f32 %v12266_v14, %v9970_v12 }
 0x5a3   : > { %v12360_v54 = vpop.f32.mrb[0].mxu1 }
 0x5a4   : > { %v15933_v51 = vadd.f32 %v12360_v54, %v15842_v49  ;;  %v10171_v15 = vpop.f32.mrb[1].mxu1  ;;  %v15935_v4 = vadd.f32 %v12269_v16, %v9973_v2 }
 0x5a5   : > { %v15938_v32 = vadd.f32 %v10171_v15, %v15844_v43  ;;  %v12361_v50 = vpop.f32.mrb[2].mxu1 }
 0x5a6   : > { %v15941_v34 = vadd.f32 %v12361_v50, %v15846_v55  ;;  %v10174_v59 = vpop.f32.mrb[3].mxu1 }
 0x5a7   : > { %v15944_v39 = vadd.f32 %v10174_v59, %v15848_v7 }
 0x5a9   : > { %v10298_v35 = vadd.f32 %v15944_v39, %v15938_v32 }
 0x5ab   : > { %v10299_v49 = vadd.f32 %v10298_v35, %v15933_v51  ;;  %v12364_v44 = vpop.f32.mrb[4].mxu1 }
 0x5ac   : > { %v15950_v29 = vadd.f32 %v12364_v44, %v15858_v41  ;;  %v10187_v17 = vpop.f32.mrb[5].mxu1 }
 0x5ad   : > { %v15953_v43 = vadd.f32 %v10187_v17, %v15852_v11  ;;  %v10300_v55 = vadd.f32 %v10299_v49, %v15941_v34  ;;  %v12365_v0 = vpop.f32.mrb[6].mxu1 }
 0x5ae   : > { %v15957_v6 = vadd.f32 %v12365_v0, %v15860_v57  ;;  %v10190_v7 = vpop.f32.mrb[7].mxu1 }
 0x5af   : > { %v10301_v31 = vadd.f32 %v10300_v55, %v15953_v43  ;;  %v15961_v5 = vadd.f32 %v10190_v7, %v15854_v9 }
 0x5b1   : > { %v10302_v22 = vadd.f32 %v10301_v31, %v15961_v5 }
 0x5b3   : > { %v10303_v41 = vadd.f32 %v10302_v22, %v15950_v29  ;;  %v12368_v56 = vpop.f32.mrb[8].mxu1 }
 0x5b4   : > { %v15966_v11 = vadd.f32 %v12368_v56, %v15870_v30  ;;  %v10203_v23 = vpop.f32.mrb[9].mxu1 }
 0x5b5   : > { %v15969_v21 = vadd.f32 %v10203_v23, %v15864_v18  ;;  %v10304_v57 = vadd.f32 %v10303_v41, %v15957_v6  ;;  %v12369_v13 = vpop.f32.mrb[10].mxu1 }
 0x5b6   : > { %v15973_v37 = vadd.f32 %v12369_v13, %v15872_v60  ;;  %v10206_v9 = vpop.f32.mrb[11].mxu1 }
 0x5b7   : > { %v10305_v42 = vadd.f32 %v10304_v57, %v15969_v21  ;;  %v15977_v63 = vadd.f32 %v10206_v9, %v15866_v52 }
 0x5b9   : > { %v10306_v12 = vadd.f32 %v10305_v42, %v15977_v63 }
 0x5bb   : > { %v10307_v30 = vadd.f32 %v10306_v12, %v15966_v11  ;;  %v12372_v3 = vpop.f32.mrb[12].mxu1 }
 0x5bc   : > { %v15982_v18 = vadd.f32 %v12372_v3, %v15882_v38  ;;  %v10219_v8 = vpop.f32.mrb[13].mxu1 }
 0x5bd   : > { %v15985_v14 = vadd.f32 %v10219_v8, %v15876_v47  ;;  %v10308_v60 = vadd.f32 %v10307_v30, %v15973_v37  ;;  %v12373_v27 = vpop.f32.mrb[14].mxu1 }
 0x5be   : > { %v15989_v2 = vadd.f32 %v12373_v27, %v15884_v61  ;;  %v10222_v52 = vpop.f32.mrb[15].mxu1 }
 0x5bf   : > { %v10309_v58 = vadd.f32 %v10308_v60, %v15985_v14  ;;  %v15993_v16 = vadd.f32 %v10222_v52, %v15878_v19 }
 0x5c1   : > { %v10310_v54 = vadd.f32 %v10309_v58, %v15993_v16 }
 0x5c3   : > { %v10311_v38 = vadd.f32 %v10310_v54, %v15982_v18  ;;  %v12376_v15 = vpop.f32.mrb[16].mxu1 }
 0x5c4   : > { %v15998_v47 = vadd.f32 %v12376_v15, %v15894_v53  ;;  %v10235_v50 = vpop.f32.mrb[17].mxu1 }
 0x5c5   : > { %v10236_v59 = vadd.f32 %v10235_v50, %v15888_v10  ;;  %v10312_v61 = vadd.f32 %v10311_v38, %v15989_v2  ;;  %v12377_v35 = vpop.f32.mrb[18].mxu1 }
 0x5c6   : > { %v10247_v49 = vadd.f32 %v12377_v35, %v15896_v45  ;;  %v10238_v44 = vpop.f32.mrb[19].mxu1 }
 0x5c7   : > { %v10313_v17 = vadd.f32 %v10312_v61, %v10236_v59  ;;  %v10239_v19 = vadd.f32 %v10238_v44, %v15890_v62 }
 0x5c9   : > { %v10314_v55 = vadd.f32 %v10313_v17, %v10239_v19 }
 0x5cb   : > { %v10315_v0 = vadd.f32 %v10314_v55, %v15998_v47  ;;  %v12380_v7 = vpop.f32.mrb[20].mxu1 }
 0x5cc   : > { %v10260_v31 = vadd.f32 %v12380_v7, %v15906_v46  ;;  %v10251_v53 = vpop.f32.mrb[21].mxu1 }
 0x5cd   : > { %v10252_v22 = vadd.f32 %v10251_v53, %v15900_v25  ;;  %v10316_v41 = vadd.f32 %v10315_v0, %v10247_v49  ;;  %v12381_v10 = vpop.f32.mrb[22].mxu1 }
 0x5ce   : > { %v10263_v56 = vadd.f32 %v12381_v10, %v15908_v40  ;;  %v10254_v23 = vpop.f32.mrb[23].mxu1 }
 0x5cf   : > { %v10317_v57 = vadd.f32 %v10316_v41, %v10252_v22  ;;  %v10255_v45 = vadd.f32 %v10254_v23, %v15902_v24 }
 0x5d1   : > { %v10318_v13 = vadd.f32 %v10317_v57, %v10255_v45 }
 0x5d3   : > { %v10319_v9 = vadd.f32 %v10318_v13, %v10260_v31  ;;  %v12384_v62 = vpop.f32.mrb[24].mxu1 }
 0x5d4   : > { %v10276_v42 = vadd.f32 %v12384_v62, %v15918_v33  ;;  %v10267_v12 = vpop.f32.mrb[25].mxu1 }
 0x5d5   : > { %v10268_v30 = vadd.f32 %v10267_v12, %v15912_v48  ;;  %v10320_v46 = vadd.f32 %v10319_v9, %v10263_v56  ;;  %v12385_v3 = vpop.f32.mrb[26].mxu1 }
 0x5d6   : > { %v10279_v25 = vadd.f32 %v12385_v3, %v15920_v26  ;;  %v10270_v8 = vpop.f32.mrb[27].mxu1 }
 0x5d7   : > { %v10321_v60 = vadd.f32 %v10320_v46, %v10268_v30  ;;  %v10271_v40 = vadd.f32 %v10270_v8, %v15914_v36 }
 0x5d9   : > { %v10322_v27 = vadd.f32 %v10321_v60, %v10271_v40 }
 0x5db   : > { %v10323_v52 = vadd.f32 %v10322_v27, %v10276_v42  ;;  %v12388_v58 = vpop.f32.mrb[28].mxu1 }
 0x5dc   : > { %v10292_v24 = vadd.f32 %v12388_v58, %v15930_v1  ;;  %v10283_v54 = vpop.f32.mrb[29].mxu1 }
 0x5dd   : > { %v10284_v38 = vadd.f32 %v10283_v54, %v15924_v28  ;;  %v10324_v33 = vadd.f32 %v10323_v52, %v10279_v25  ;;  %v12389_v15 = vpop.f32.mrb[30].mxu1 }
 0x5de   : > { %v10295_v48 = vadd.f32 %v12389_v15, %v15935_v4  ;;  %v10286_v50 = vpop.f32.mrb[31].mxu1 }
 0x5df   : > { %v10325_v61 = vadd.f32 %v10324_v33, %v10284_v38  ;;  %v10287_v26 = vadd.f32 %v10286_v50, %v15926_v20 }
 0x5e1   : > { %v10326_v35 = vadd.f32 %v10325_v61, %v10287_v26 }
 0x5e3   : > { %v10327_v44 = vadd.f32 %v10326_v35, %v10292_v24 }
 0x5e5   : > { %v10328_v17 = vadd.f32 %v10327_v44, %v10295_v48 }
 0x5e7   : > { %v10329_v36 = vrot.slane %v10328_v17, 4 }
 0x5e9   : > { %v10330_v55 = vadd.f32 %v10329_v36, %v10328_v17 }
 0x5eb   : > { %v10331_v0 = vrot.slane %v10330_v55, 2 }
 0x5ed   : > { %v10332_v7 = vadd.f32 %v10331_v0, %v10330_v55 }
 0x5ef   : > { %v10333_v53 = vrot.slane %v10332_v7, 1 }
 0x5f1   : > { %v10334_v1 = vadd.f32 %v10333_v53, %v10332_v7 }
 0x5f3   : > { %v10335_v41 = vmul.f32 0.00390625, %v10334_v1 }
 0x5f5   : > { %v16018_v28 = vsub.f32 %v15969_v21, %v10335_v41  ;;  %v16021_v10 = vsub.f32 %v15977_v63, %v10335_v41  ;;  %v16024_v4 = vsub.f32 %v15966_v11, %v10335_v41  ;;  %v16027_v20 = vsub.f32 %v15973_v37, %v10335_v41 }
 0x5f6   : > { %v16030_v23 = vsub.f32 %v15985_v14, %v10335_v41  ;;  %v16033_v57 = vsub.f32 %v15993_v16, %v10335_v41  ;;  %v16036_v13 = vsub.f32 %v15982_v18, %v10335_v41  ;;  %v16039_v21 = vsub.f32 %v15989_v2, %v10335_v41 }
 0x5f7   : > { %v16041_v63 = vsub.f32 %v10236_v59, %v10335_v41  ;;  %v16043_v9 = vsub.f32 %v10239_v19, %v10335_v41  ;;  %v16046_v11 = vsub.f32 %v15998_v47, %v10335_v41  ;;  %v16048_v37 = vsub.f32 %v10247_v49, %v10335_v41 }
 0x5f8   : > { %v16050_v14 = vsub.f32 %v10252_v22, %v10335_v41  ;;  %v16052_v62 = vsub.f32 %v10255_v45, %v10335_v41  ;;  %v16054_v16 = vsub.f32 %v10260_v31, %v10335_v41  ;;  %v16056_v18 = vsub.f32 %v10263_v56, %v10335_v41 }
 0x5f9   : > { %v16058_v12 = vsub.f32 %v10268_v30, %v10335_v41  ;;  %v16060_v2 = vsub.f32 %v10271_v40, %v10335_v41  ;;  %v16062_v59 = vsub.f32 %v10276_v42, %v10335_v41  ;;  %v16064_v19 = vsub.f32 %v10279_v25, %v10335_v41 }
 0x5fa   : > { %v16066_v47 = vsub.f32 %v10284_v38, %v10335_v41  ;;  %v16068_v49 = vsub.f32 %v10287_v26, %v10335_v41  ;;  %v16070_v22 = vsub.f32 %v10292_v24, %v10335_v41  ;;  %v16072_v45 = vsub.f32 %v10295_v48, %v10335_v41 }
 0x5fb   : > { %v16075_v31 = vsub.f32 %v15938_v32, %v10335_v41  ;;  %v16078_v56 = vsub.f32 %v15944_v39, %v10335_v41  ;;  %v16081_v30 = vsub.f32 %v15933_v51, %v10335_v41  ;;  %v16088_v3 = vsub.f32 %v15941_v34, %v10335_v41 }
 0x5fc   : > { %v16091_v25 = vsub.f32 %v15953_v43, %v10335_v41  ;;  %v16096_v8 = vsub.f32 %v15961_v5, %v10335_v41  ;;  %v16101_v40 = vsub.f32 %v15950_v29, %v10335_v41  ;;  %v16106_v43 = vsub.f32 %v15957_v6, %v10335_v41 }
 0x5fd   : > { %v10368_v42 = vmul.f32 %v16075_v31, %v16075_v31  ;;  %v10369_v46 = vmul.f32 %v16078_v56, %v16078_v56  ;;  %v10370_v32 = vmul.f32 %v16081_v30, %v16081_v30  ;;  %v10371_v51 = vmul.f32 %v16088_v3, %v16088_v3 }
 0x5fe   : > { %v10372_v34 = vmul.f32 %v16091_v25, %v16091_v25  ;;  %v10373_v52 = vmul.f32 %v16096_v8, %v16096_v8  ;;  %v10374_v5 = vmul.f32 %v16101_v40, %v16101_v40  ;;  %v10375_v54 = vmul.f32 %v16106_v43, %v16106_v43 }
 0x5ff   : > { %v10400_v39 = vadd.f32 %v10369_v46, %v10368_v42  ;;  %v10376_v38 = vmul.f32 %v16018_v28, %v16018_v28  ;;  %v10377_v6 = vmul.f32 %v16021_v10, %v16021_v10  ;;  %v10378_v48 = vmul.f32 %v16024_v4, %v16024_v4 }
 0x600   : > { %v10379_v61 = vmul.f32 %v16027_v20, %v16027_v20  ;;  %v10380_v35 = vmul.f32 %v16030_v23, %v16030_v23  ;;  %v10381_v17 = vmul.f32 %v16033_v57, %v16033_v57  ;;  %v10382_v55 = vmul.f32 %v16036_v13, %v16036_v13 }
 0x601   : > { %v10401_v60 = vadd.f32 %v10400_v39, %v10370_v32  ;;  %v10383_v7 = vmul.f32 %v16039_v21, %v16039_v21  ;;  %v10384_v1 = vmul.f32 %v16041_v63, %v16041_v63  ;;  %v10385_v42 = vmul.f32 %v16043_v9, %v16043_v9 }
 0x602   : > { %v10386_v32 = vmul.f32 %v16046_v11, %v16046_v11 }
 0x603   : > { %v10402_v27 = vadd.f32 %v10401_v60, %v10371_v51  ;;  %v10387_v51 = vmul.f32 %v16048_v37, %v16048_v37 }
 0x605   : > { %v10403_v58 = vadd.f32 %v10402_v27, %v10372_v34  ;;  %v10388_v34 = vmul.f32 %v16050_v14, %v16050_v14 }
 0x607   : > { %v10404_v24 = vadd.f32 %v10403_v58, %v10373_v52  ;;  %v10389_v52 = vmul.f32 %v16052_v62, %v16052_v62 }
 0x609   : > { %v10405_v29 = vadd.f32 %v10404_v24, %v10374_v5  ;;  %v10390_v5 = vmul.f32 %v16054_v16, %v16054_v16 }
 0x60b   : > { %v10406_v33 = vadd.f32 %v10405_v29, %v10375_v54  ;;  %v10391_v54 = vmul.f32 %v16056_v18, %v16056_v18 }
 0x60d   : > { %v10407_v15 = vadd.f32 %v10406_v33, %v10376_v38  ;;  %v10392_v38 = vmul.f32 %v16058_v12, %v16058_v12 }
 0x60f   : > { %v10408_v50 = vadd.f32 %v10407_v15, %v10377_v6  ;;  %v10393_v6 = vmul.f32 %v16060_v2, %v16060_v2 }
 0x611   : > { %v10409_v26 = vadd.f32 %v10408_v50, %v10378_v48  ;;  %v10394_v48 = vmul.f32 %v16062_v59, %v16062_v59 }
 0x613   : > { %v10410_v44 = vadd.f32 %v10409_v26, %v10379_v61  ;;  %v10395_v61 = vmul.f32 %v16064_v19, %v16064_v19 }
 0x615   : > { %v10411_v36 = vadd.f32 %v10410_v44, %v10380_v35  ;;  %v10396_v35 = vmul.f32 %v16066_v47, %v16066_v47 }
 0x617   : > { %v10412_v0 = vadd.f32 %v10411_v36, %v10381_v17  ;;  %v10397_v17 = vmul.f32 %v16068_v49, %v16068_v49 }
 0x619   : > { %v10413_v53 = vadd.f32 %v10412_v0, %v10382_v55  ;;  %v10398_v55 = vmul.f32 %v16070_v22, %v16070_v22 }
 0x61b   : > { %v10414_v41 = vadd.f32 %v10413_v53, %v10383_v7  ;;  %v10399_v7 = vmul.f32 %v16072_v45, %v16072_v45 }
 0x61d   : > { %v10415_v46 = vadd.f32 %v10414_v41, %v10384_v1 }
 0x61f   : > { %v10416_v39 = vadd.f32 %v10415_v46, %v10385_v42 }
 0x621   : > { %v10417_v60 = vadd.f32 %v10416_v39, %v10386_v32 }
 0x623   : > { %v10418_v27 = vadd.f32 %v10417_v60, %v10387_v51 }
 0x625   : > { %v10419_v58 = vadd.f32 %v10418_v27, %v10388_v34 }
 0x627   : > { %v10420_v24 = vadd.f32 %v10419_v58, %v10389_v52 }
 0x629   : > { %v10421_v29 = vadd.f32 %v10420_v24, %v10390_v5 }
 0x62b   : > { %v10422_v33 = vadd.f32 %v10421_v29, %v10391_v54 }
 0x62d   : > { %v10423_v15 = vadd.f32 %v10422_v33, %v10392_v38 }
 0x62f   : > { %v10424_v50 = vadd.f32 %v10423_v15, %v10393_v6  ;;  %v12708_v6 = vld [vmem:[%s13107_s30 + $0xe8] sm:$0xff] }
 0x631   : > { %v10425_v26 = vadd.f32 %v10424_v50, %v10394_v48 }
 0x633   : > { %v10426_v44 = vadd.f32 %v10425_v26, %v10395_v61 }
 0x635   : > { %v10427_v36 = vadd.f32 %v10426_v44, %v10396_v35  ;;  %v12715_v44 = vld [vmem:[%s13107_s30 + $0x30] sm:$0xff] }
 0x637   : > { %v10428_v0 = vadd.f32 %v10427_v36, %v10397_v17  ;;  %v12716_v36 = vld [vmem:[%s13107_s30 + $0x38] sm:$0xff] }
 0x639   : > { %v10429_v53 = vadd.f32 %v10428_v0, %v10398_v55  ;;  %v12717_v0 = vld [vmem:[%s13107_s30 + $0x40] sm:$0xff] }
 0x63b   : > { %v10430_v1 = vadd.f32 %v10429_v53, %v10399_v7  ;;  %v12718_v53 = vld [vmem:[%s13107_s30 + $0x48] sm:$0xff] }
 0x63d   : > { %v10431_v41 = vrot.slane %v10430_v1, 4 }
 0x63f   : > { %v10432_v42 = vadd.f32 %v10431_v41, %v10430_v1  ;;  %v12719_v41 = vld [vmem:[%s13107_s30 + $0x50] sm:$0xff] }
 0x641   : > { %v10433_v46 = vrot.slane %v10432_v42, 2 }
 0x643   : > { %v10434_v32 = vadd.f32 %v10433_v46, %v10432_v42  ;;  %v12720_v46 = vld [vmem:[%s13107_s30 + $0x58] sm:$0xff] }
 0x645   : > { %v10435_v39 = vrot.slane %v10434_v32, 1 }
 0x647   : > { %v10436_v51 = vadd.f32 %v10435_v39, %v10434_v32  ;;  %v12721_v39 = vld [vmem:[%s13107_s30 + $0x60] sm:$0xff] }
 0x649   : > { %v10437_v60 = vmul.f32 0.00390625, %v10436_v51 }
 0x64b   : > { %v10438_v34 = vadd.f32 1e-05, %v10437_v60  ;;  %v12722_v60 = vld [vmem:[%s13107_s30 + $0x68] sm:$0xff] }
 0x64d   : > { %12706 = vrsqrt.f32 %v10438_v34 }
 0x657   : > { %v12707_v27 = vpop.eup %12706 }
 0x658   : > { %v10469_v52 = vmul.f32 %v12707_v27, %v16068_v49  ;;  %v10440_v58 = vmul.f32 %v12707_v27, %v16075_v31  ;;  %v10441_v5 = vmul.f32 %v12707_v27, %v16078_v56  ;;  %v10442_v24 = vmul.f32 %v12707_v27, %v16081_v30 }
 0x659   : > { %v10443_v54 = vmul.f32 %v12707_v27, %v16088_v3  ;;  %v10444_v29 = vmul.f32 %v12707_v27, %v16091_v25  ;;  %v10445_v38 = vmul.f32 %v12707_v27, %v16096_v8  ;;  %v10446_v33 = vmul.f32 %v12707_v27, %v16101_v40 }
 0x65a   : > { %v10501_v15 = vadd.f32 %v12708_v6, %v10469_v52  ;;  %v10447_v48 = vmul.f32 %v12707_v27, %v16106_v43  ;;  %v10448_v49 = vmul.f32 %v12707_v27, %v16018_v28  ;;  %v10449_v31 = vmul.f32 %v12707_v27, %v16021_v10 }
 0x65b   : > { %v10450_v56 = vmul.f32 %v12707_v27, %v16024_v4  ;;  %v10451_v30 = vmul.f32 %v12707_v27, %v16027_v20  ;;  %v10452_v3 = vmul.f32 %v12707_v27, %v16030_v23  ;;  %v10453_v25 = vmul.f32 %v12707_v27, %v16033_v57 }
 0x65c   : > { %v10533_v8 = vmax.f32 %v10501_v15, 0.0  ;;  %v10454_v40 = vmul.f32 %v12707_v27, %v16036_v13  ;;  %v10455_v50 = vmul.f32 %v12707_v27, %v16039_v21  ;;  %v10456_v61 = vmul.f32 %v12707_v27, %v16041_v63  ;;  %v12728_v15 = vld [vmem:[%s13107_s30 + $0x98] sm:$0xff] }
 0x65d   : > { %v10457_v43 = vmul.f32 %v12707_v27, %v16043_v9  ;;  %v10458_v28 = vmul.f32 %v12707_v27, %v16046_v11  ;;  %v10459_v10 = vmul.f32 %v12707_v27, %v16048_v37  ;;  %v10460_v4 = vmul.f32 %v12707_v27, %v16050_v14 }
 0x65e   : > { %10565 = vst [vmem:[%s16187_s18 + $0xe8] sm:$0xff] %v10533_v8  ;;  %v10461_v20 = vmul.f32 %v12707_v27, %v16052_v62  ;;  %v10462_v23 = vmul.f32 %v12707_v27, %v16054_v16  ;;  %v10463_v57 = vmul.f32 %v12707_v27, %v16056_v18  ;;  %v10464_v13 = vmul.f32 %v12707_v27, %v16058_v12  ;;  %v12709_v62 = vld [vmem:[%s13107_s30] sm:$0xff]  ;;  %v12710_v18 = vld [vmem:[%s13107_s30 + $0x8] sm:$0xff]  ;;  %v12732_v8 = vld [vmem:[%s13107_s30 + $0xb8] sm:$0xff] }
 0x65f   : > { %v10465_v21 = vmul.f32 %v12707_v27, %v16060_v2  ;;  %v10466_v63 = vmul.f32 %v12707_v27, %v16062_v59  ;;  %v10467_v9 = vmul.f32 %v12707_v27, %v16064_v19  ;;  %v10468_v11 = vmul.f32 %v12707_v27, %v16066_v47  ;;  %v12711_v2 = vld [vmem:[%s13107_s30 + $0x10] sm:$0xff]  ;;  %v12712_v19 = vld [vmem:[%s13107_s30 + $0x18] sm:$0xff] }
 0x660   : > { %v10470_v37 = vmul.f32 %v12707_v27, %v16070_v22  ;;  %v10471_v14 = vmul.f32 %v12707_v27, %v16072_v45  ;;  %v16201_v16 = vadd.f32 %v12709_v62, %v10440_v58  ;;  %v16204_v12 = vadd.f32 %v12710_v18, %v10441_v5  ;;  %v12713_v22 = vld [vmem:[%s13107_s30 + $0x20] sm:$0xff]  ;;  %v12714_v45 = vld [vmem:[%s13107_s30 + $0x28] sm:$0xff]  ;;  %v12723_v27 = vld [vmem:[%s13107_s30 + $0x70] sm:$0xff] }
 0x661   : > { %v16207_v59 = vadd.f32 %v12711_v2, %v10442_v24  ;;  %v16210_v47 = vadd.f32 %v12712_v19, %v10443_v54  ;;  %v16213_v26 = vadd.f32 %v12713_v22, %v10444_v29  ;;  %v16216_v35 = vadd.f32 %v12714_v45, %v10445_v38  ;;  %v12724_v58 = vld [vmem:[%s13107_s30 + $0x78] sm:$0xff]  ;;  %v12725_v24 = vld [vmem:[%s13107_s30 + $0x80] sm:$0xff]  ;;  %v12726_v29 = vld [vmem:[%s13107_s30 + $0x88] sm:$0xff] }
 0x662   : > { %v16219_v17 = vadd.f32 %v12715_v44, %v10446_v33  ;;  %v16222_v55 = vadd.f32 %v12716_v36, %v10447_v48  ;;  %v16225_v7 = vadd.f32 %v12717_v0, %v10448_v49  ;;  %v16228_v1 = vadd.f32 %v12718_v53, %v10449_v31  ;;  %v12727_v33 = vld [vmem:[%s13107_s30 + $0x90] sm:$0xff]  ;;  %v12729_v49 = vld [vmem:[%s13107_s30 + $0xa0] sm:$0xff]  ;;  %v12736_v62 = vld [vmem:[%s13107_s30 + $0xd8] sm:$0xff] }
 0x663   : > { %v16231_v42 = vadd.f32 %v12719_v41, %v10450_v56  ;;  %v16234_v32 = vadd.f32 %v12720_v46, %v10451_v30  ;;  %v16237_v51 = vadd.f32 %v12721_v39, %v10452_v3  ;;  %v16240_v34 = vadd.f32 %v12722_v60, %v10453_v25  ;;  %v12730_v56 = vld [vmem:[%s13107_s30 + $0xa8] sm:$0xff]  ;;  %v12731_v3 = vld [vmem:[%s13107_s30 + $0xb0] sm:$0xff] }
 0x664   : > { %v16243_v52 = vadd.f32 %v12723_v27, %v10454_v40  ;;  %v16246_v5 = vadd.f32 %v12724_v58, %v10455_v50  ;;  %v16249_v54 = vadd.f32 %v12725_v24, %v10456_v61  ;;  %v16252_v38 = vadd.f32 %v12726_v29, %v10457_v43  ;;  %v12733_v50 = vld [vmem:[%s13107_s30 + $0xc0] sm:$0xff]  ;;  %v12734_v43 = vld [vmem:[%s13107_s30 + $0xc8] sm:$0xff] }
 0x665   : > { %v16255_v6 = vadd.f32 %v12727_v33, %v10458_v28  ;;  %v16258_v48 = vadd.f32 %v12728_v15, %v10459_v10  ;;  %v16261_v31 = vadd.f32 %v12729_v49, %v10460_v4  ;;  %v16264_v30 = vadd.f32 %v12730_v56, %v10461_v20  ;;  %v12735_v10 = vld [vmem:[%s13107_s30 + $0xd0] sm:$0xff]  ;;  %v12737_v20 = vld [vmem:[%s13107_s30 + $0xe0] sm:$0xff] }
 0x666   : > { %v16267_v25 = vadd.f32 %v12731_v3, %v10462_v23  ;;  %v16270_v40 = vadd.f32 %v12732_v8, %v10463_v57  ;;  %v16273_v61 = vadd.f32 %v12733_v50, %v10464_v13  ;;  %v16276_v28 = vadd.f32 %v12734_v43, %v10465_v21  ;;  %v12738_v23 = vld [vmem:[%s13107_s30 + $0xf0] sm:$0xff]  ;;  %v12739_v13 = vld [vmem:[%s13107_s30 + $0xf8] sm:$0xff] }
 0x667   : > { %v16279_v4 = vadd.f32 %v12735_v10, %v10466_v63  ;;  %v16282_v18 = vadd.f32 %v12736_v62, %v10467_v9  ;;  %v16285_v2 = vadd.f32 %v12737_v20, %v10468_v11  ;;  %v16288_v57 = vadd.f32 %v12738_v23, %v10470_v37 }
 0x668   : > { %v16291_v19 = vadd.f32 %v12739_v13, %v10471_v14  ;;  %v10504_v21 = vmax.f32 %v16201_v16, 0.0  ;;  %v10505_v63 = vmax.f32 %v16204_v12, 0.0  ;;  %v10506_v22 = vmax.f32 %v16207_v59, 0.0 }
 0x669   : > { %v10507_v9 = vmax.f32 %v16210_v47, 0.0  ;;  %v10508_v11 = vmax.f32 %v16213_v26, 0.0  ;;  %v10509_v37 = vmax.f32 %v16216_v35, 0.0  ;;  %v10510_v45 = vmax.f32 %v16219_v17, 0.0 }
 0x66a   : > { %v10511_v14 = vmax.f32 %v16222_v55, 0.0  ;;  %v10512_v16 = vmax.f32 %v16225_v7, 0.0  ;;  %v10513_v12 = vmax.f32 %v16228_v1, 0.0  ;;  %v10514_v59 = vmax.f32 %v16231_v42, 0.0  ;;  %10536 = vst [vmem:[%s16187_s18] sm:$0xff] %v10504_v21  ;;  %10537 = vst [vmem:[%s16187_s18 + $0x8] sm:$0xff] %v10505_v63 }
 0x66b   : > { %10538 = vst [vmem:[%s16187_s18 + $0x10] sm:$0xff] %v10506_v22  ;;  %v10515_v47 = vmax.f32 %v16234_v32, 0.0  ;;  %v10516_v26 = vmax.f32 %v16237_v51, 0.0  ;;  %v10517_v35 = vmax.f32 %v16240_v34, 0.0  ;;  %v10518_v44 = vmax.f32 %v16243_v52, 0.0  ;;  %10539 = vst [vmem:[%s16187_s18 + $0x18] sm:$0xff] %v10507_v9 }
 0x66c   : > { %10540 = vst [vmem:[%s16187_s18 + $0x20] sm:$0xff] %v10508_v11  ;;  %10541 = vst [vmem:[%s16187_s18 + $0x28] sm:$0xff] %v10509_v37  ;;  %v10519_v17 = vmax.f32 %v16246_v5, 0.0  ;;  %v10520_v36 = vmax.f32 %v16249_v54, 0.0  ;;  %v10521_v55 = vmax.f32 %v16252_v38, 0.0  ;;  %v10522_v0 = vmax.f32 %v16255_v6, 0.0 }
 0x66d   : > { %10542 = vst [vmem:[%s16187_s18 + $0x30] sm:$0xff] %v10510_v45  ;;  %10543 = vst [vmem:[%s16187_s18 + $0x38] sm:$0xff] %v10511_v14  ;;  %v10523_v7 = vmax.f32 %v16258_v48, 0.0  ;;  %v10524_v53 = vmax.f32 %v16261_v31, 0.0  ;;  %v10525_v1 = vmax.f32 %v16264_v30, 0.0  ;;  %v10526_v41 = vmax.f32 %v16267_v25, 0.0 }
 0x66e   : > { %10544 = vst [vmem:[%s16187_s18 + $0x40] sm:$0xff] %v10512_v16  ;;  %10545 = vst [vmem:[%s16187_s18 + $0x48] sm:$0xff] %v10513_v12  ;;  %v10527_v42 = vmax.f32 %v16270_v40, 0.0  ;;  %v10528_v46 = vmax.f32 %v16273_v61, 0.0  ;;  %v10529_v32 = vmax.f32 %v16276_v28, 0.0  ;;  %v10530_v39 = vmax.f32 %v16279_v4, 0.0 }
 0x66f   : > { %10546 = vst [vmem:[%s16187_s18 + $0x50] sm:$0xff] %v10514_v59  ;;  %10547 = vst [vmem:[%s16187_s18 + $0x58] sm:$0xff] %v10515_v47  ;;  %v10531_v51 = vmax.f32 %v16282_v18, 0.0  ;;  %v10532_v60 = vmax.f32 %v16285_v2, 0.0  ;;  %v10534_v34 = vmax.f32 %v16288_v57, 0.0  ;;  %v10535_v27 = vmax.f32 %v16291_v19, 0.0 }
 0x670   : > { %10548 = vst [vmem:[%s16187_s18 + $0x60] sm:$0xff] %v10516_v26  ;;  %10549 = vst [vmem:[%s16187_s18 + $0x68] sm:$0xff] %v10517_v35 }
 0x671   : > { %10550 = vst [vmem:[%s16187_s18 + $0x70] sm:$0xff] %v10518_v44  ;;  %10551 = vst [vmem:[%s16187_s18 + $0x78] sm:$0xff] %v10519_v17 }
 0x672   : > { %10552 = vst [vmem:[%s16187_s18 + $0x80] sm:$0xff] %v10520_v36  ;;  %10553 = vst [vmem:[%s16187_s18 + $0x88] sm:$0xff] %v10521_v55 }
 0x673   : > { %10554 = vst [vmem:[%s16187_s18 + $0x90] sm:$0xff] %v10522_v0  ;;  %10555 = vst [vmem:[%s16187_s18 + $0x98] sm:$0xff] %v10523_v7 }
 0x674   : > { %10556 = vst [vmem:[%s16187_s18 + $0xa0] sm:$0xff] %v10524_v53  ;;  %10557 = vst [vmem:[%s16187_s18 + $0xa8] sm:$0xff] %v10525_v1 }
 0x675   : > { %10558 = vst [vmem:[%s16187_s18 + $0xb0] sm:$0xff] %v10526_v41  ;;  %10559 = vst [vmem:[%s16187_s18 + $0xb8] sm:$0xff] %v10527_v42 }
 0x676   : > { %10560 = vst [vmem:[%s16187_s18 + $0xc0] sm:$0xff] %v10528_v46  ;;  %10561 = vst [vmem:[%s16187_s18 + $0xc8] sm:$0xff] %v10529_v32 }
 0x677   : > { %10562 = vst [vmem:[%s16187_s18 + $0xd0] sm:$0xff] %v10530_v39  ;;  %10563 = vst [vmem:[%s16187_s18 + $0xd8] sm:$0xff] %v10531_v51 }
 0x678   : > { %10564 = vst [vmem:[%s16187_s18 + $0xe0] sm:$0xff] %v10532_v60  ;;  %10566 = vst [vmem:[%s16187_s18 + $0xf0] sm:$0xff] %v10534_v34 }
 0x679   : > { %10567 = vst [vmem:[%s16187_s18 + $0xf8] sm:$0xff] %v10535_v27 }
 0x67a   : > { %12839 = shalt.err (!%p12836_p2)
}
 0x67b   : > { %s12840_s25 = scalar_lea.hbm %s16344_s26, 4096  ;;  %s12844_s21 = scalar_lea.hbm %s16409_s3, 8192 }
 0x67c   : > { %p12841_p13 = scmp.ne.s32.totalorder %s16344_s26, %s12840_s25  ;;  %p12845_p4 = scmp.lt.u32.totalorder %s16344_s26, %s16409_s3 }
 0x67d   : > { %p12846_p5 = scmp.lt.u32.totalorder %s12844_s21, %s12840_s25  ;;  %p12848_p11 = scmp.lt.u32.totalorder %s12840_s25, %s16344_s26 }
 0x67e   : > { %p12842_p6 = pnand %p12841_p13, %p16536_p0 }
 0x67f   : > { %p12847_p8 = por %p12846_p5, %p12845_p4 }
 0x680   : > { %p12843_p10 = pneg %p12842_p6 }
 0x681   : > { %p12849_p1 = por %p12848_p11, %p12847_p8 }
 0x683   : > { %p12850_p3 = pnand %p12849_p1, %p12843_p10 }
 0x685   : > { %12853 = shalt.err (!%p12850_p3)
}
 0x686   : > { %s12907_s30 = smov 128   ;;  %s12908_s18 = smov 8  }
 0x687   : > { %12400 = dma.vmem_to_hbm [thread:$0]  (%p16536_p0), %s16346_s17, 4096, %s16344_s26, %s10569_s27, %s12907_s30, %s12907_s30, %s12908_s18  }
 0x688 PF: > { %s10597_s20 = sand.u32 1, %s12884_s12   ;;  %p16537_p7 = scmp.ne.s32.totalorder %s16427_s19, 0 }
 0x689   : > { %p16538_p9 = scmp.ge.s32.totalorder %s12896_s15, 2  ;;  %s10598_s16 = scalar_lea.sflag [#allocation6], %s10597_s20 }
 0x68b   : > { %p12414_p12 = pnand %p16538_p9, %p16537_p7 }
 0x68d   : > { %12879 = dma.done.wait (!%p12414_p12), %s10598_s16, 4096  }
 0x68e   : > { %12881 = vsyncadd (!%p12414_p12), %s10598_s16, 4294963200  ;;  %p17_p2 = scmp.ge.s32.totalorder %s13039_s4, 4   ;;  %s16539_s12 = smov %s12888_s13 }
 0x68f   : > { %s16540_s13 = smov %s12892_s14  ;;  %s16541_s14 = smov %s13055_s9 }
 0x690   : > { %s16542_s15 = smov %s13039_s4  ;;  %19 = sbr.rel (!%p17_p2) target bundleno = 6 (0x6), region = 87 }
 0x697   :  { %10603 = vsyncpa [#allocation5], 1 }
 0x698   :  { %10605 = vsyncpa [#allocation5 + $0x1], 1 }
 0x699   :  { %10606 = vsyncpa [#allocation8], 1 }
 0x69a   :  { %10607 = vsyncpa [#allocation6], 1 }
 0x69b   :  { %10609 = vsyncpa [#allocation6 + $0x1], 1 }

</bundles_post_ra>
